<compile_context>
chip_gen: v7x
topology: tpu7x:2x2x1
jax: 0.10.0
libtpu: 0.0.40
codegen_flags: <defaults>
</compile_context>

<pallas_src>
import jax
import jax.numpy as jnp
from jax import lax
from jax.experimental import pallas as pl
from jax.experimental.pallas import tpu as pltpu


# --------------------------------------------------------------------------- #
# Helpers
# --------------------------------------------------------------------------- #
def _round_up(x, m):
    return (x + m - 1) // m * m


def _pick_tile_rows(hout, wout, wp, cin_p, cout_p, ks, budget=24 << 20):
    """Largest output-row tile whose double-buffered working set fits the budget."""
    cap = max(8, _round_up(hout, 8))
    for th in (512, 256, 128, 64, 32, 16, 8):
        th = min(th, cap)
        xbuf = 2 * (th + ks - 1) * wp * cin_p * 4          # manual double buffer
        ybuf = 2 * th * wout * cout_p * 4                  # pipelined out block
        wbuf = 2 * ks * ks * cin_p * cout_p * 4            # resident weights
        tmp = 4 * th * wout * max(cin_p, cout_p) * 4       # acc + tap temporaries
        if xbuf + ybuf + wbuf + tmp <= budget:
            return th
    return 8


def _interp_matrix(out_size, in_size, scale):
    """Bilinear interpolation matrix matching nn.Upsample(align_corners=False)."""
    o = jnp.arange(out_size, dtype=jnp.float32)
    src = jnp.clip((o + 0.5) / float(scale) - 0.5, 0.0, float(in_size - 1))
    i0 = jnp.floor(src).astype(jnp.int32)
    i1 = jnp.minimum(i0 + 1, in_size - 1)
    f = src - i0.astype(jnp.float32)
    return ((1.0 - f)[:, None] * jax.nn.one_hot(i0, in_size, dtype=jnp.float32)
            + f[:, None] * jax.nn.one_hot(i1, in_size, dtype=jnp.float32))


def _bilinear_upsample_nhwc(x, sh, sw):
    n, h, w, c = x.shape
    mh = _interp_matrix(h * sh, h, sh)
    mw = _interp_matrix(w * sw, w, sw)
    x = jnp.einsum('oh,nhwc->nowc', mh, x)
    x = jnp.einsum('pw,nowc->nopc', mw, x)
    return x


# --------------------------------------------------------------------------- #
# Pallas kernels
# --------------------------------------------------------------------------- #
def _make_conv_kernel(ks, th, wout, num_rt):
    """Fused im2col conv + per-tile channel (sum, sumsq) partials.

    Grid = (N, num_row_tiles). The padded NHWC input stays in HBM; a row block
    with a (ks-1)-row halo is manually DMA'd into a double-buffered VMEM scratch
    (prefetching the next row tile of the same batch element while computing).
    """
    thh = th + ks - 1

    def kernel(x_hbm, w_ref, y_ref, stats_ref, xbuf, sem):
        b = pl.program_id(0)
        rt = pl.program_id(1)

        def start_fetch(row_tile, slot):
            pltpu.make_async_copy(
                x_hbm.at[b, pl.ds(row_tile * th, thh)],
                xbuf.at[slot],
                sem.at[slot],
            ).start()

        # Prime at the start of every batch element's row sweep.
        @pl.when(rt == 0)
        def _():
            start_fetch(0, 0)

        # Prefetch the next row tile of this batch element.
        @pl.when(rt + 1 < num_rt)
        def _():
            start_fetch(rt + 1, (rt + 1) & 1)

        slot = rt & 1
        # Wait for the current tile's DMA.
        pltpu.make_async_copy(
            x_hbm.at[b, pl.ds(rt * th, thh)], xbuf.at[slot], sem.at[slot]
        ).wait()

        x = xbuf[slot]                       # (thh, wp, cin_p)
        cin_p = x.shape[-1]
        cout_p = w_ref.shape[-1]

        acc = jnp.zeros((th * wout, cout_p), jnp.float32)
        for ki in range(ks):                 # fused im2col: ks*ks shifted views
            for kj in range(ks):
                patch = x[ki:ki + th, kj:kj + wout, :].reshape(th * wout, cin_p)
                acc = acc + jnp.dot(patch, w_ref[ki * ks + kj],
                                    preferred_element_type=jnp.float32)

        y_ref[...] = acc.reshape(1, th, wout, cout_p)
        # Per-tile partial statistics (own output block per grid step -> no
        # shared accumulator, batch axis stays megacore-parallel).
        stats_ref[:, 0:1, :] = jnp.sum(acc, axis=0, keepdims=True)[None]
        stats_ref[:, 1:2, :] = jnp.sum(acc * acc, axis=0, keepdims=True)[None]

    return kernel


def _scale_shift_relu_kernel(y_ref, scale_ref, shift_ref, o_ref):
    """out = max(y * scale + shift, 0) with precomputed per-channel scale/shift."""
    o_ref[...] = jnp.maximum(y_ref[...] * scale_ref[...] + shift_ref[...], 0.0)


# --------------------------------------------------------------------------- #
# FeatrueMapping forward
# --------------------------------------------------------------------------- #
def featrue_mapping_forward(x_nchw, params, kernel_size, scale_factor, eps=1e-5):
    ks = int(kernel_size)
    pad = 1 if ks == 3 else 0
    if isinstance(scale_factor, (tuple, list)):
        sh, sw = int(scale_factor[0]), int(scale_factor[1])
    else:
        sh = sw = int(scale_factor)

    w = params["conv_w"].astype(jnp.float32)        # (Cout, Cin, ks, ks)
    gamma = params["bn_gamma"].astype(jnp.float32)  # (Cout,)
    beta = params["bn_beta"].astype(jnp.float32)    # (Cout,)
    # NOTE: params["conv_b"] is intentionally unused -- a per-channel bias
    # followed by training-mode BatchNorm cancels exactly.

    cout, cin = int(w.shape[0]), int(w.shape[1])
    n, _, h, w_in = x_nchw.shape
    ho, wo = h * sh, w_in * sw
    hout = ho + 2 * pad - ks + 1
    wout = wo + 2 * pad - ks + 1

    cin_p = _round_up(cin, 128)
    cout_p = _round_up(cout, 128)
    wp = wo + ks - 1                                  # width incl. conv halo

    th = _pick_tile_rows(hout, wout, wp, cin_p, cout_p, ks)
    hout_pad = _round_up(hout, th)
    num_rt = hout_pad // th
    hp_pad = hout_pad + ks - 1                        # input rows incl. halo + align

    # NCHW -> NHWC, bilinear upsample via two small interpolation matmuls.
    x = jnp.transpose(x_nchw, (0, 2, 3, 1)).astype(jnp.float32)
    x = _bilinear_upsample_nhwc(x, sh, sw)            # (N, Ho, Wo, Cin)

    # Zero-pad: conv halo + row-tile alignment + channel padding to 128 lanes.
    # (Padded rows/channels conv to exact zeros since there is no bias, so the
    #  BN statistics -- divided by the true row count -- are unaffected.)
    x = jnp.pad(x, ((0, 0),
                    (pad, hp_pad - pad - ho),
                    (pad, ks - 1 - pad),
                    (0, cin_p - cin)))

    # Weights: (Cout,Cin,kh,kw) -> (kh*kw, Cin_pad, Cout_pad)
    w_r = jnp.transpose(w, (2, 3, 1, 0))
    w_r = jnp.pad(w_r, ((0, 0), (0, 0), (0, cin_p - cin), (0, cout_p - cout)))
    w_r = w_r.reshape(ks * ks, cin_p, cout_p)

    # ---- pass 1: fused im2col conv + per-tile channel statistics ------------ #
    thh = th + ks - 1
    vmem_need = 4 * (2 * thh * wp * cin_p
                     + 2 * th * wout * cout_p
                     + 2 * ks * ks * cin_p * cout_p
                     + 4 * th * wout * max(cin_p, cout_p))
    vmem_limit1 = int(min(max(2 * vmem_need, 32 << 20), 64 << 20))

    conv_kernel = _make_conv_kernel(ks, th, wout, num_rt)
    y, stats = pl.pallas_call(
        conv_kernel,
        out_shape=(
            jax.ShapeDtypeStruct((n, hout_pad, wout, cout_p), jnp.float32),
            jax.ShapeDtypeStruct((n * num_rt, 2, cout_p), jnp.float32),
        ),
        grid=(n, num_rt),
        in_specs=[
            pl.BlockSpec(memory_space=pl.ANY),                        # padded input (HBM)
            pl.BlockSpec((ks * ks, cin_p, cout_p), lambda b, r: (0, 0, 0)),
        ],
        out_specs=(
            pl.BlockSpec((1, th, wout, cout_p), lambda b, r: (b, r, 0, 0)),
            pl.BlockSpec((1, 2, cout_p), lambda b, r: (b * num_rt + r, 0, 0)),
        ),
        scratch_shapes=[
            pltpu.VMEM((2, thh, wp, cin_p), jnp.float32),
            pltpu.SemaphoreType.DMA((2,)),
        ],
        compiler_params=pltpu.CompilerParams(
            dimension_semantics=("parallel", "arbitrary"),
            vmem_limit_bytes=vmem_limit1),
    )(x, w_r)

    # ---- tiny cross-tile reduction + per-channel scale/shift ---------------- #
    n_rows = float(n * hout * wout)          # alignment-padded rows are exact zeros
    ssum = jnp.sum(stats[:, 0, :], axis=0)
    ssq = jnp.sum(stats[:, 1, :], axis=0)
    mean = ssum / n_rows
    # TODO(synk): E[y^2]-E[y]^2 can cancel catastrophically for large means; a
    # shifted/two-pass accumulation would be more robust for production.
    var = jnp.maximum(ssq / n_rows - mean * mean, 0.0)
    inv = lax.rsqrt(var + eps)
    gamma_p = jnp.pad(gamma, (0, cout_p - cout))
    beta_p = jnp.pad(beta, (0, cout_p - cout))
    scale = (gamma_p * inv).reshape(1, cout_p)
    shift = (beta_p - mean * gamma_p * inv).reshape(1, cout_p)

    # ---- pass 2: lane-dense scale/shift + ReLU ------------------------------ #
    vmem_limit2 = int(min(max(4 * (4 * th * wout * cout_p * 4), 32 << 20), 64 << 20))
    out = pl.pallas_call(
        _scale_shift_relu_kernel,
        out_shape=jax.ShapeDtypeStruct((n, hout_pad, wout, cout_p), jnp.float32),
        grid=(n, num_rt),
        in_specs=[
            pl.BlockSpec((1, th, wout, cout_p), lambda b, r: (b, r, 0, 0)),
            pl.BlockSpec((1, cout_p), lambda b, r: (0, 0)),
            pl.BlockSpec((1, cout_p), lambda b, r: (0, 0)),
        ],
        out_specs=pl.BlockSpec((1, th, wout, cout_p), lambda b, r: (b, r, 0, 0)),
        compiler_params=pltpu.CompilerParams(
            dimension_semantics=("parallel", "parallel"),
            vmem_limit_bytes=vmem_limit2),
    )(y, scale, shift)

    out = out[:, :hout, :, :cout]                     # drop alignment / lane padding
    return jnp.transpose(out, (0, 3, 1, 2))           # NHWC -> NCHW


# --------------------------------------------------------------------------- #
# Pure-JAX reference (matches the PyTorch module in training mode)
# --------------------------------------------------------------------------- #
def _reference(x_nchw, params, ks, scale, eps=1e-5):
    pad = 1 if ks == 3 else 0
    if isinstance(scale, (tuple, list)):
        sh, sw = int(scale[0]), int(scale[1])
    else:
        sh = sw = int(scale)
    x = jnp.transpose(x_nchw, (0, 2, 3, 1)).astype(jnp.float32)
    x = _bilinear_upsample_nhwc(x, sh, sw)
    y = lax.conv_general_dilated(
        x, jnp.transpose(params["conv_w"], (2, 3, 1, 0)).astype(jnp.float32),
        window_strides=(1, 1), padding=((pad, pad), (pad, pad)),
        dimension_numbers=("NHWC", "HWIO", "NHWC"))
    y = y + params["conv_b"]
    mean = jnp.mean(y, axis=(0, 1, 2))
    var = jnp.var(y, axis=(0, 1, 2))
    y = (y - mean) * lax.rsqrt(var + eps) * params["bn_gamma"] + params["bn_beta"]
    y = jnp.maximum(y, 0.0)
    return jnp.transpose(y, (0, 3, 1, 2))


# --------------------------------------------------------------------------- #
# Demo / correctness check
# --------------------------------------------------------------------------- #
if __name__ == "__main__":
    key = jax.random.PRNGKey(0)

    def make_params(k, cout, cin, ks):
        kw, kb = jax.random.split(k)
        return {
            "conv_w": jax.random.normal(kw, (cout, cin, ks, ks), jnp.float32) * 0.1,
            "conv_b": jax.random.normal(kb, (cout,), jnp.float32) * 0.1,
            "bn_gamma": jnp.ones((cout,), jnp.float32),   # PyTorch BN default init
            "bn_beta": jnp.zeros((cout,), jnp.float32),
        }

    k1, k2, k3, k4 = jax.random.split(key, 4)

    # Case 1: 3x3 conv, scale_factor=2 (generic FeatrueMapping config).
    N, Cin, H, W = 2, 4, 16, 16
    Cout, ks, scale = 8, 3, 2
    x = jax.random.normal(k1, (N, Cin, H, W), jnp.float32)
    params = make_params(k2, Cout, Cin, ks)
    out = jax.block_until_ready(featrue_mapping_forward(x, params, ks, scale))
    ref = _reference(x, params, ks, scale)
    assert out.shape == (N, Cout, H * scale, W * scale), out.shape
    err = float(jnp.max(jnp.abs(out - ref)))
    assert jnp.allclose(out, ref, atol=2e-3, rtol=2e-3), err

    # Case 2: 1x1 conv, scale_factor=(4,4) -- the config Deep_Module uses.
    N2, C2, H2, W2 = 2, 4, 8, 8
    x2 = jax.random.normal(k3, (N2, C2, H2, W2), jnp.float32)
    params2 = make_params(k4, C2, C2, 1)
    out2 = jax.block_until_ready(featrue_mapping_forward(x2, params2, 1, (4, 4)))
    ref2 = _reference(x2, params2, 1, (4, 4))
    assert out2.shape == (N2, C2, H2 * 4, W2 * 4), out2.shape
    err2 = float(jnp.max(jnp.abs(out2 - ref2)))
    assert jnp.allclose(out2, ref2, atol=2e-3, rtol=2e-3), err2

    print("KERNEL_OK")
</pallas_src>

<mosaic_0001>
module attributes {stable_mosaic.version = 11 : i64} {
  func.func @kernel(%arg0: i32, %arg1: i32, %arg2: memref<2x34x34x128xf32, #tpu.memory_space<any>>, %arg3: memref<9x128x128xf32, #tpu.memory_space<vmem>>, %arg4: memref<1x32x32x128xf32, #tpu.memory_space<vmem>>, %arg5: memref<1x2x128xf32, #tpu.memory_space<vmem>>, %arg6: memref<2x34x34x128xf32, #tpu.memory_space<vmem>>, %arg7: memref<2x!tpu.dma_semaphore, #tpu.memory_space<semaphore_mem>>) attributes {dimension_semantics = [#tpu.dimension_semantics<parallel>, #tpu.dimension_semantics<arbitrary>], iteration_bounds = array<i64: 2, 1>, scalar_prefetch = 0 : i64, scratch_operands = 2 : i64, tpu.core_type = #tpu.core_type<tc>, window_params = [{}, {pipeline_mode = #tpu.pipeline_mode<synchronous>, transform_indices = @transform_1, window_bounds = array<i64: 9, 128, 128>}, {transform_indices = @transform_2, window_bounds = array<i64: 1, 32, 32, 128>}, {transform_indices = @transform_3, window_bounds = array<i64: 1, 2, 128>}]} {
    %c0_i32 = arith.constant 0 : i32
    %0 = arith.cmpi eq, %arg1, %c0_i32 : i32
    %1 = arith.extui %0 : i1 to i32
    %c0_i32_0 = arith.constant 0 : i32
    %2 = arith.cmpi ne, %1, %c0_i32_0 : i32
    scf.if %2 {
      %c0_i32_51 = arith.constant 0 : i32
      %c0_i32_52 = arith.constant 0 : i32
      %c0_i32_53 = arith.constant 0 : i32
      %c0_i32_54 = arith.constant 0 : i32
      %c0_i32_55 = arith.constant 0 : i32
      %84 = tpu.memref_slice %arg2[%arg0, %c0_i32_53, %c0_i32_54, %c0_i32_55] : memref<2x34x34x128xf32, #tpu.memory_space<any>> -> memref<1x34x34x128xf32, #tpu.memory_space<any>>
      %85 = tpu.memref_squeeze %84 : memref<1x34x34x128xf32, #tpu.memory_space<any>> -> memref<34x34x128xf32, #tpu.memory_space<any>>
      %c0_i32_56 = arith.constant 0 : i32
      %c0_i32_57 = arith.constant 0 : i32
      %c0_i32_58 = arith.constant 0 : i32
      %86 = tpu.memref_slice %arg6[%c0_i32_51, %c0_i32_56, %c0_i32_57, %c0_i32_58] : memref<2x34x34x128xf32, #tpu.memory_space<vmem>> -> memref<1x34x34x128xf32, #tpu.memory_space<vmem>>
      %87 = tpu.memref_squeeze %86 : memref<1x34x34x128xf32, #tpu.memory_space<vmem>> -> memref<34x34x128xf32, #tpu.memory_space<vmem>>
      %88 = tpu.memref_slice %arg7[%c0_i32_52] : memref<2x!tpu.dma_semaphore, #tpu.memory_space<semaphore_mem>> -> memref<1x!tpu.dma_semaphore, #tpu.memory_space<semaphore_mem>>
      %89 = tpu.memref_squeeze %88 : memref<1x!tpu.dma_semaphore, #tpu.memory_space<semaphore_mem>> -> memref<!tpu.dma_semaphore, #tpu.memory_space<semaphore_mem>>
      tpu.enqueue_dma source(%85 : memref<34x34x128xf32, #tpu.memory_space<any>>) target(%87 : memref<34x34x128xf32, #tpu.memory_space<vmem>>) target_semaphore(%89 : memref<!tpu.dma_semaphore, #tpu.memory_space<semaphore_mem>>)
    } else {
    }
    %c1_i32 = arith.constant 1 : i32
    %3 = arith.addi %arg1, %c1_i32 : i32
    %c1_i32_1 = arith.constant 1 : i32
    %4 = arith.cmpi slt, %3, %c1_i32_1 : i32
    %5 = arith.extui %4 : i1 to i32
    %c0_i32_2 = arith.constant 0 : i32
    %6 = arith.cmpi ne, %5, %c0_i32_2 : i32
    scf.if %6 {
      %c1_i32_51 = arith.constant 1 : i32
      %84 = arith.addi %arg1, %c1_i32_51 : i32
      %c1_i32_52 = arith.constant 1 : i32
      %85 = arith.addi %arg1, %c1_i32_52 : i32
      %c1_i32_53 = arith.constant 1 : i32
      %86 = arith.andi %85, %c1_i32_53 : i32
      %c32_i32_54 = arith.constant 32 : i32
      %87 = arith.muli %84, %c32_i32_54 : i32
      %c0_i32_55 = arith.constant 0 : i32
      %c0_i32_56 = arith.constant 0 : i32
      %88 = tpu.memref_slice %arg2[%arg0, %87, %c0_i32_55, %c0_i32_56] : memref<2x34x34x128xf32, #tpu.memory_space<any>> -> memref<1x34x34x128xf32, #tpu.memory_space<any>>
      %89 = tpu.memref_squeeze %88 : memref<1x34x34x128xf32, #tpu.memory_space<any>> -> memref<34x34x128xf32, #tpu.memory_space<any>>
      %c0_i32_57 = arith.constant 0 : i32
      %c0_i32_58 = arith.constant 0 : i32
      %c0_i32_59 = arith.constant 0 : i32
      %90 = tpu.memref_slice %arg6[%86, %c0_i32_57, %c0_i32_58, %c0_i32_59] : memref<2x34x34x128xf32, #tpu.memory_space<vmem>> -> memref<1x34x34x128xf32, #tpu.memory_space<vmem>>
      %91 = tpu.memref_squeeze %90 : memref<1x34x34x128xf32, #tpu.memory_space<vmem>> -> memref<34x34x128xf32, #tpu.memory_space<vmem>>
      %92 = tpu.memref_slice %arg7[%86] : memref<2x!tpu.dma_semaphore, #tpu.memory_space<semaphore_mem>> -> memref<1x!tpu.dma_semaphore, #tpu.memory_space<semaphore_mem>>
      %93 = tpu.memref_squeeze %92 : memref<1x!tpu.dma_semaphore, #tpu.memory_space<semaphore_mem>> -> memref<!tpu.dma_semaphore, #tpu.memory_space<semaphore_mem>>
      tpu.enqueue_dma source(%89 : memref<34x34x128xf32, #tpu.memory_space<any>>) target(%91 : memref<34x34x128xf32, #tpu.memory_space<vmem>>) target_semaphore(%93 : memref<!tpu.dma_semaphore, #tpu.memory_space<semaphore_mem>>)
    } else {
    }
    %c1_i32_3 = arith.constant 1 : i32
    %7 = arith.andi %arg1, %c1_i32_3 : i32
    %c32_i32 = arith.constant 32 : i32
    %8 = arith.muli %arg1, %c32_i32 : i32
    %c0_i32_4 = arith.constant 0 : i32
    %c0_i32_5 = arith.constant 0 : i32
    %9 = tpu.memref_slice %arg2[%arg0, %8, %c0_i32_4, %c0_i32_5] : memref<2x34x34x128xf32, #tpu.memory_space<any>> -> memref<1x34x34x128xf32, #tpu.memory_space<any>>
    %10 = tpu.memref_squeeze %9 : memref<1x34x34x128xf32, #tpu.memory_space<any>> -> memref<34x34x128xf32, #tpu.memory_space<any>>
    %c0_i32_6 = arith.constant 0 : i32
    %c0_i32_7 = arith.constant 0 : i32
    %c0_i32_8 = arith.constant 0 : i32
    %11 = tpu.memref_slice %arg6[%7, %c0_i32_6, %c0_i32_7, %c0_i32_8] : memref<2x34x34x128xf32, #tpu.memory_space<vmem>> -> memref<1x34x34x128xf32, #tpu.memory_space<vmem>>
    %12 = tpu.memref_squeeze %11 : memref<1x34x34x128xf32, #tpu.memory_space<vmem>> -> memref<34x34x128xf32, #tpu.memory_space<vmem>>
    %13 = tpu.memref_slice %arg7[%7] : memref<2x!tpu.dma_semaphore, #tpu.memory_space<semaphore_mem>> -> memref<1x!tpu.dma_semaphore, #tpu.memory_space<semaphore_mem>>
    %14 = tpu.memref_squeeze %13 : memref<1x!tpu.dma_semaphore, #tpu.memory_space<semaphore_mem>> -> memref<!tpu.dma_semaphore, #tpu.memory_space<semaphore_mem>>
    tpu.wait_dma2 semaphore(%14 : memref<!tpu.dma_semaphore, #tpu.memory_space<semaphore_mem>>) src(%10 : memref<34x34x128xf32, #tpu.memory_space<any>>) dst(%12 : memref<34x34x128xf32, #tpu.memory_space<vmem>>)
    %15 = arith.index_cast %7 : i32 to index
    %c0 = arith.constant 0 : index
    %c0_9 = arith.constant 0 : index
    %c0_10 = arith.constant 0 : index
    %16 = vector.load %arg6[%15, %c0, %c0_9, %c0_10] : memref<2x34x34x128xf32, #tpu.memory_space<vmem>>, vector<1x34x34x128xf32>
    %17 = vector.shape_cast %16 : vector<1x34x34x128xf32> to vector<34x34x128xf32>
    %cst = arith.constant 0.000000e+00 : f32
    %18 = vector.broadcast %cst : f32 to vector<1024x128xf32>
    %19 = vector.extract_strided_slice %17 {offsets = [0, 0, 0], sizes = [32, 32, 128], strides = [1, 1, 1]} : vector<34x34x128xf32> to vector<32x32x128xf32>
    %20 = vector.shape_cast %19 : vector<32x32x128xf32> to vector<1024x128xf32>
    %c0_11 = arith.constant 0 : index
    %c0_12 = arith.constant 0 : index
    %c0_13 = arith.constant 0 : index
    %21 = vector.load %arg3[%c0_11, %c0_12, %c0_13] : memref<9x128x128xf32, #tpu.memory_space<vmem>>, vector<1x128x128xf32>
    %22 = vector.shape_cast %21 : vector<1x128x128xf32> to vector<128x128xf32>
    %cst_14 = arith.constant dense<0.000000e+00> : vector<1024x128xf32>
    %23 = tpu.matmul %20, %22, %cst_14 {dimension_numbers = #tpu.dot_dimension_numbers<[1], [0], [0], [1], [0, 0, 1, 1], [], []>} : vector<1024x128xf32>, vector<128x128xf32>, vector<1024x128xf32> -> vector<1024x128xf32>
    %24 = arith.addf %18, %23 : vector<1024x128xf32>
    %25 = vector.extract_strided_slice %17 {offsets = [0, 1, 0], sizes = [32, 32, 128], strides = [1, 1, 1]} : vector<34x34x128xf32> to vector<32x32x128xf32>
    %26 = vector.shape_cast %25 : vector<32x32x128xf32> to vector<1024x128xf32>
    %c1 = arith.constant 1 : index
    %c0_15 = arith.constant 0 : index
    %c0_16 = arith.constant 0 : index
    %27 = vector.load %arg3[%c1, %c0_15, %c0_16] : memref<9x128x128xf32, #tpu.memory_space<vmem>>, vector<1x128x128xf32>
    %28 = vector.shape_cast %27 : vector<1x128x128xf32> to vector<128x128xf32>
    %cst_17 = arith.constant dense<0.000000e+00> : vector<1024x128xf32>
    %29 = tpu.matmul %26, %28, %cst_17 {dimension_numbers = #tpu.dot_dimension_numbers<[1], [0], [0], [1], [0, 0, 1, 1], [], []>} : vector<1024x128xf32>, vector<128x128xf32>, vector<1024x128xf32> -> vector<1024x128xf32>
    %30 = arith.addf %24, %29 : vector<1024x128xf32>
    %31 = vector.extract_strided_slice %17 {offsets = [0, 2, 0], sizes = [32, 32, 128], strides = [1, 1, 1]} : vector<34x34x128xf32> to vector<32x32x128xf32>
    %32 = vector.shape_cast %31 : vector<32x32x128xf32> to vector<1024x128xf32>
    %c2 = arith.constant 2 : index
    %c0_18 = arith.constant 0 : index
    %c0_19 = arith.constant 0 : index
    %33 = vector.load %arg3[%c2, %c0_18, %c0_19] : memref<9x128x128xf32, #tpu.memory_space<vmem>>, vector<1x128x128xf32>
    %34 = vector.shape_cast %33 : vector<1x128x128xf32> to vector<128x128xf32>
    %cst_20 = arith.constant dense<0.000000e+00> : vector<1024x128xf32>
    %35 = tpu.matmul %32, %34, %cst_20 {dimension_numbers = #tpu.dot_dimension_numbers<[1], [0], [0], [1], [0, 0, 1, 1], [], []>} : vector<1024x128xf32>, vector<128x128xf32>, vector<1024x128xf32> -> vector<1024x128xf32>
    %36 = arith.addf %30, %35 : vector<1024x128xf32>
    %37 = vector.extract_strided_slice %17 {offsets = [1, 0, 0], sizes = [32, 32, 128], strides = [1, 1, 1]} : vector<34x34x128xf32> to vector<32x32x128xf32>
    %38 = vector.shape_cast %37 : vector<32x32x128xf32> to vector<1024x128xf32>
    %c3 = arith.constant 3 : index
    %c0_21 = arith.constant 0 : index
    %c0_22 = arith.constant 0 : index
    %39 = vector.load %arg3[%c3, %c0_21, %c0_22] : memref<9x128x128xf32, #tpu.memory_space<vmem>>, vector<1x128x128xf32>
    %40 = vector.shape_cast %39 : vector<1x128x128xf32> to vector<128x128xf32>
    %cst_23 = arith.constant dense<0.000000e+00> : vector<1024x128xf32>
    %41 = tpu.matmul %38, %40, %cst_23 {dimension_numbers = #tpu.dot_dimension_numbers<[1], [0], [0], [1], [0, 0, 1, 1], [], []>} : vector<1024x128xf32>, vector<128x128xf32>, vector<1024x128xf32> -> vector<1024x128xf32>
    %42 = arith.addf %36, %41 : vector<1024x128xf32>
    %43 = vector.extract_strided_slice %17 {offsets = [1, 1, 0], sizes = [32, 32, 128], strides = [1, 1, 1]} : vector<34x34x128xf32> to vector<32x32x128xf32>
    %44 = vector.shape_cast %43 : vector<32x32x128xf32> to vector<1024x128xf32>
    %c4 = arith.constant 4 : index
    %c0_24 = arith.constant 0 : index
    %c0_25 = arith.constant 0 : index
    %45 = vector.load %arg3[%c4, %c0_24, %c0_25] : memref<9x128x128xf32, #tpu.memory_space<vmem>>, vector<1x128x128xf32>
    %46 = vector.shape_cast %45 : vector<1x128x128xf32> to vector<128x128xf32>
    %cst_26 = arith.constant dense<0.000000e+00> : vector<1024x128xf32>
    %47 = tpu.matmul %44, %46, %cst_26 {dimension_numbers = #tpu.dot_dimension_numbers<[1], [0], [0], [1], [0, 0, 1, 1], [], []>} : vector<1024x128xf32>, vector<128x128xf32>, vector<1024x128xf32> -> vector<1024x128xf32>
    %48 = arith.addf %42, %47 : vector<1024x128xf32>
    %49 = vector.extract_strided_slice %17 {offsets = [1, 2, 0], sizes = [32, 32, 128], strides = [1, 1, 1]} : vector<34x34x128xf32> to vector<32x32x128xf32>
    %50 = vector.shape_cast %49 : vector<32x32x128xf32> to vector<1024x128xf32>
    %c5 = arith.constant 5 : index
    %c0_27 = arith.constant 0 : index
    %c0_28 = arith.constant 0 : index
    %51 = vector.load %arg3[%c5, %c0_27, %c0_28] : memref<9x128x128xf32, #tpu.memory_space<vmem>>, vector<1x128x128xf32>
    %52 = vector.shape_cast %51 : vector<1x128x128xf32> to vector<128x128xf32>
    %cst_29 = arith.constant dense<0.000000e+00> : vector<1024x128xf32>
    %53 = tpu.matmul %50, %52, %cst_29 {dimension_numbers = #tpu.dot_dimension_numbers<[1], [0], [0], [1], [0, 0, 1, 1], [], []>} : vector<1024x128xf32>, vector<128x128xf32>, vector<1024x128xf32> -> vector<1024x128xf32>
    %54 = arith.addf %48, %53 : vector<1024x128xf32>
    %55 = vector.extract_strided_slice %17 {offsets = [2, 0, 0], sizes = [32, 32, 128], strides = [1, 1, 1]} : vector<34x34x128xf32> to vector<32x32x128xf32>
    %56 = vector.shape_cast %55 : vector<32x32x128xf32> to vector<1024x128xf32>
    %c6 = arith.constant 6 : index
    %c0_30 = arith.constant 0 : index
    %c0_31 = arith.constant 0 : index
    %57 = vector.load %arg3[%c6, %c0_30, %c0_31] : memref<9x128x128xf32, #tpu.memory_space<vmem>>, vector<1x128x128xf32>
    %58 = vector.shape_cast %57 : vector<1x128x128xf32> to vector<128x128xf32>
    %cst_32 = arith.constant dense<0.000000e+00> : vector<1024x128xf32>
    %59 = tpu.matmul %56, %58, %cst_32 {dimension_numbers = #tpu.dot_dimension_numbers<[1], [0], [0], [1], [0, 0, 1, 1], [], []>} : vector<1024x128xf32>, vector<128x128xf32>, vector<1024x128xf32> -> vector<1024x128xf32>
    %60 = arith.addf %54, %59 : vector<1024x128xf32>
    %61 = vector.extract_strided_slice %17 {offsets = [2, 1, 0], sizes = [32, 32, 128], strides = [1, 1, 1]} : vector<34x34x128xf32> to vector<32x32x128xf32>
    %62 = vector.shape_cast %61 : vector<32x32x128xf32> to vector<1024x128xf32>
    %c7 = arith.constant 7 : index
    %c0_33 = arith.constant 0 : index
    %c0_34 = arith.constant 0 : index
    %63 = vector.load %arg3[%c7, %c0_33, %c0_34] : memref<9x128x128xf32, #tpu.memory_space<vmem>>, vector<1x128x128xf32>
    %64 = vector.shape_cast %63 : vector<1x128x128xf32> to vector<128x128xf32>
    %cst_35 = arith.constant dense<0.000000e+00> : vector<1024x128xf32>
    %65 = tpu.matmul %62, %64, %cst_35 {dimension_numbers = #tpu.dot_dimension_numbers<[1], [0], [0], [1], [0, 0, 1, 1], [], []>} : vector<1024x128xf32>, vector<128x128xf32>, vector<1024x128xf32> -> vector<1024x128xf32>
    %66 = arith.addf %60, %65 : vector<1024x128xf32>
    %67 = vector.extract_strided_slice %17 {offsets = [2, 2, 0], sizes = [32, 32, 128], strides = [1, 1, 1]} : vector<34x34x128xf32> to vector<32x32x128xf32>
    %68 = vector.shape_cast %67 : vector<32x32x128xf32> to vector<1024x128xf32>
    %c8 = arith.constant 8 : index
    %c0_36 = arith.constant 0 : index
    %c0_37 = arith.constant 0 : index
    %69 = vector.load %arg3[%c8, %c0_36, %c0_37] : memref<9x128x128xf32, #tpu.memory_space<vmem>>, vector<1x128x128xf32>
    %70 = vector.shape_cast %69 : vector<1x128x128xf32> to vector<128x128xf32>
    %cst_38 = arith.constant dense<0.000000e+00> : vector<1024x128xf32>
    %71 = tpu.matmul %68, %70, %cst_38 {dimension_numbers = #tpu.dot_dimension_numbers<[1], [0], [0], [1], [0, 0, 1, 1], [], []>} : vector<1024x128xf32>, vector<128x128xf32>, vector<1024x128xf32> -> vector<1024x128xf32>
    %72 = arith.addf %66, %71 : vector<1024x128xf32>
    %73 = vector.shape_cast %72 : vector<1024x128xf32> to vector<1x32x32x128xf32>
    %c0_39 = arith.constant 0 : index
    %c0_40 = arith.constant 0 : index
    %c0_41 = arith.constant 0 : index
    %c0_42 = arith.constant 0 : index
    %74 = vector.load %arg4[%c0_39, %c0_40, %c0_41, %c0_42] : memref<1x32x32x128xf32, #tpu.memory_space<vmem>>, vector<1x32x32x128xf32>
    tpu.vector_store %arg4[%c0_39, %c0_40, %c0_41, %c0_42], %73 {strides = array<i32>} : memref<1x32x32x128xf32, #tpu.memory_space<vmem>>, vector<1x32x32x128xf32>,
    %cst_43 = arith.constant dense<0.000000e+00> : vector<128xf32>
    %75 = vector.multi_reduction <add>, %72, %cst_43 [0] : vector<1024x128xf32> to vector<128xf32>
    %76 = vector.shape_cast %75 : vector<128xf32> to vector<1x128xf32>
    %77 = vector.shape_cast %76 : vector<1x128xf32> to vector<1x1x128xf32>
    %c0_44 = arith.constant 0 : index
    %c0_45 = arith.constant 0 : index
    %c0_46 = arith.constant 0 : index
    %78 = vector.load %arg5[%c0_44, %c0_45, %c0_46] : memref<1x2x128xf32, #tpu.memory_space<vmem>>, vector<1x1x128xf32>
    tpu.vector_store %arg5[%c0_44, %c0_45, %c0_46], %77 {strides = array<i32>} : memref<1x2x128xf32, #tpu.memory_space<vmem>>, vector<1x1x128xf32>,
    %79 = arith.mulf %72, %72 : vector<1024x128xf32>
    %cst_47 = arith.constant dense<0.000000e+00> : vector<128xf32>
    %80 = vector.multi_reduction <add>, %79, %cst_47 [0] : vector<1024x128xf32> to vector<128xf32>
    %81 = vector.shape_cast %80 : vector<128xf32> to vector<1x128xf32>
    %82 = vector.shape_cast %81 : vector<1x128xf32> to vector<1x1x128xf32>
    %c0_48 = arith.constant 0 : index
    %c1_49 = arith.constant 1 : index
    %c0_50 = arith.constant 0 : index
    %83 = vector.load %arg5[%c0_48, %c1_49, %c0_50] : memref<1x2x128xf32, #tpu.memory_space<vmem>>, vector<1x1x128xf32>
    tpu.vector_store %arg5[%c0_48, %c1_49, %c0_50], %82 {strides = array<i32>} : memref<1x2x128xf32, #tpu.memory_space<vmem>>, vector<1x1x128xf32>,
    return
  }
  func.func @transform_1(%arg0: i32, %arg1: i32) -> (i32, i32, i32) {
    %c0_i32 = arith.constant 0 : i32
    %c0_i32_0 = arith.constant 0 : i32
    %c0_i32_1 = arith.constant 0 : i32
    %c0_i32_2 = arith.constant 0 : i32
    return %c0_i32, %c0_i32_0, %c0_i32_1 : i32, i32, i32
  }
  func.func @transform_2(%arg0: i32, %arg1: i32) -> (i32, i32, i32, i32) {
    %c0_i32 = arith.constant 0 : i32
    %c0_i32_0 = arith.constant 0 : i32
    %c0_i32_1 = arith.constant 0 : i32
    return %arg0, %arg1, %c0_i32, %c0_i32_0 : i32, i32, i32, i32
  }
  func.func @transform_3(%arg0: i32, %arg1: i32) -> (i32, i32, i32) {
    %c1_i32 = arith.constant 1 : i32
    %0 = arith.muli %arg0, %c1_i32 : i32
    %1 = arith.addi %0, %arg1 : i32
    %c0_i32 = arith.constant 0 : i32
    %c0_i32_0 = arith.constant 0 : i32
    %c0_i32_1 = arith.constant 0 : i32
    return %1, %c0_i32, %c0_i32_0 : i32, i32, i32
  }
}

</mosaic_0001>

<bundles_post_ra>
// kernel: tpu_custom_call.1
= control target key start
LH: loop header
LB: loop body
LE: loop exit
PB: predicated region body
PF: predicated region fallthrough
CT: control target
= control target key end

     0   :  { %9 = vsyncpa [#allocation5], 0  ;;  %s19944_s0 = inlined_call_operand.vmem [shape: f32[2,34,34,128], index: 0, kind: input, shape index: {}]   ;;  %s19945_s1 = inlined_call_operand.vmem [shape: f32[9,128,128], index: 1, kind: input, shape index: {}]   ;;  %s19946_s2 = inlined_call_operand.hbm [shape: f32[2,32,32,128], index: 2, kind: output, shape index: {0}]   ;;  %s19947_s3 = inlined_call_operand.hbm [shape: f32[2,2,128], index: 3, kind: output, shape index: {1}]  }
   0x1   :  { %11 = vsyncpa [#allocation5 + $0x1], 0 }
   0x2   :  { %12 = vsyncpa [#allocation7], 0 }
   0x3   :  { %14 = vsyncpa [#allocation7 + $0x1], 0  ;;  %s16113_s12 = smov 0   ;;  %s16115_s13 = smov 0  }
   0x4   :  { %s16117_s14 = smov 0   ;;  %s16119_s15 = smov 0  }
   0x5   :  { %s16121_s16 = smov 0   ;;  %s16123_s17 = smov 0  }
   0x6 LB: > { %s10420_s18 = sadd.s32 4294967295, %s16087_s17   ;;  %s10421_s19 = sadd.s32 4294967294, %s16087_s17   ;;  %s16087_s17 = sphi %s16123_s17, %s20_s17   ;;  %s16083_s16 = sphi %s16121_s16, %s21352_s16   ;;  %s16079_s15 = sphi %s16119_s15, %s21351_s15   ;;  %s16075_s14 = sphi %s16117_s14, %s21350_s14   ;;  %s16071_s13 = sphi %s16115_s13, %s21349_s13   ;;  %s16067_s12 = sphi %s16113_s12, %s21348_s12  }
   0x7   : > { %s32_s20 = sadd.s32 1, %s16083_s16  ;;  %s62_s21 = sadd.s32 1, %s16075_s14 }
   0x8   : > { %p34_p0 = scmp.ge.s32.totalorder %s32_s20, 2  ;;  %p72_p1 = scmp.ne.s32.totalorder %s16075_s14, %s16071_s13 }
   0x9   : > { %p73_p2 = scmp.eq.s32.totalorder %s10420_s18, 1  ;;  %p78_p3 = scmp.ne.s32.totalorder %s16071_s13, %s16067_s12 }
   0xa   : > { %s21354_s20 = smov (%p34_p0, %s32_s20), 0  ;;  %p79_p5 = scmp.eq.s32.totalorder %s10421_s19, 1 }
   0xb   : > { %p16153_p4 = por %p73_p2, %p72_p1  ;;  %s57_s23 = ssub.s32 %s16083_s16, %s21354_s20 }
   0xc   : > { %p10423_p6 = scmp.ge.s32.totalorder %s16087_s17, 1  ;;  %p60_p7 = scmp.eq.s32.totalorder %s57_s23, 0 }
   0xd   : > { %p16160_p8 = por %p79_p5, %p78_p3  ;;  %p128_p9 = scmp.lt.s32.totalorder %s16087_s17, 3 }
   0xe   : > { %s16166_s25 = scalar_select %p60_p7, %s16075_s14, %s62_s21  }
   0xf   : > { %p129_p10 = pnand %p10423_p6, %p128_p9 }
  0x11   : > { %132 = sbr.rel (%p129_p10) target bundleno = 1562 (0x61a), region = 24 }
  0x18   : > { %s16169_s26 = sand.u32 1, %s16071_s13   ;;  %s156_s27 = smul.u32 1360, %s16079_s15 }
  0x19   : > { %s10424_s28 = sshll.u32 %s16169_s26, 10  ;;  %s10425_s29 = sshll.u32 %s16169_s26, 1 }
  0x1a   : > { %s16177_s5 = scalar_lea.vmem %s19944_s0, %s156_s27  ;;  %s16351_s6 = scalar_lea.vmem [#allocation4], %s10424_s28 }
  0x1b   : > { %v261_v0 = vld [vmem:[%s16177_s5] sm:$0xff]  ;;  %v263_v1 = vld [vmem:[%s16177_s5 + $0x8] sm:$0xff]  ;;  %v265_v2 = vld [vmem:[%s16177_s5 + $0x10] sm:$0xff]  ;;  %s16355_s7 = scalar_lea.vmem [#allocation6], %s10425_s29 }
  0x1c   : > { %262 = vst [vmem:[#allocation2] sm:$0xff] %v261_v0  ;;  %264 = vst [vmem:[#allocation2 + $0x8] sm:$0xff] %v263_v1  ;;  %v267_v3 = vld [vmem:[%s16177_s5 + $0x18] sm:$0xff]  ;;  %v269_v4 = vld [vmem:[%s16177_s5 + $0x28] sm:$0xff] }
  0x1d   : > { %266 = vst [vmem:[#allocation2 + $0x10] sm:$0xff] %v265_v2  ;;  %v271_v5 = vld [vmem:[%s16177_s5 + $0x30] sm:$0xff]  ;;  %268 = vst [vmem:[#allocation2 + $0x18] sm:$0xff] %v267_v3  ;;  %v273_v6 = vld [vmem:[%s16177_s5 + $0x38] sm:$0xff] }
  0x1e   : > { %270 = vst [vmem:[#allocation2 + $0x28] sm:$0xff] %v269_v4  ;;  %272 = vst [vmem:[#allocation2 + $0x30] sm:$0xff] %v271_v5  ;;  %v275_v7 = vld [vmem:[%s16177_s5 + $0x40] sm:$0xff]  ;;  %v277_v8 = vld [vmem:[%s16177_s5 + $0x50] sm:$0xff] }
  0x1f   : > { %274 = vst [vmem:[#allocation2 + $0x38] sm:$0xff] %v273_v6  ;;  %276 = vst [vmem:[#allocation2 + $0x40] sm:$0xff] %v275_v7  ;;  %v279_v9 = vld [vmem:[%s16177_s5 + $0x58] sm:$0xff]  ;;  %v281_v10 = vld [vmem:[%s16177_s5 + $0x60] sm:$0xff] }
  0x20   : > { %278 = vst [vmem:[#allocation2 + $0x50] sm:$0xff] %v277_v8  ;;  %v283_v11 = vld [vmem:[%s16177_s5 + $0x68] sm:$0xff]  ;;  %280 = vst [vmem:[#allocation2 + $0x58] sm:$0xff] %v279_v9  ;;  %v285_v12 = vld [vmem:[%s16177_s5 + $0x78] sm:$0xff] }
  0x21   : > { %282 = vst [vmem:[#allocation2 + $0x60] sm:$0xff] %v281_v10  ;;  %284 = vst [vmem:[#allocation2 + $0x68] sm:$0xff] %v283_v11  ;;  %v287_v13 = vld [vmem:[%s16177_s5 + $0x80] sm:$0xff]  ;;  %v289_v14 = vld [vmem:[%s16177_s5 + $0x88] sm:$0xff] }
  0x22   : > { %286 = vst [vmem:[#allocation2 + $0x78] sm:$0xff] %v285_v12  ;;  %288 = vst [vmem:[#allocation2 + $0x80] sm:$0xff] %v287_v13  ;;  %v291_v15 = vld [vmem:[%s16177_s5 + $0x90] sm:$0xff]  ;;  %v293_v16 = vld [vmem:[%s16177_s5 + $0xa0] sm:$0xff] }
  0x23   : > { %290 = vst [vmem:[#allocation2 + $0x88] sm:$0xff] %v289_v14  ;;  %v295_v17 = vld [vmem:[%s16177_s5 + $0xa8] sm:$0xff]  ;;  %292 = vst [vmem:[#allocation2 + $0x90] sm:$0xff] %v291_v15  ;;  %v297_v18 = vld [vmem:[%s16177_s5 + $0xb0] sm:$0xff] }
  0x24   : > { %294 = vst [vmem:[#allocation2 + $0xa0] sm:$0xff] %v293_v16  ;;  %296 = vst [vmem:[#allocation2 + $0xa8] sm:$0xff] %v295_v17  ;;  %v299_v19 = vld [vmem:[%s16177_s5 + $0xb8] sm:$0xff]  ;;  %v301_v20 = vld [vmem:[%s16177_s5 + $0xc8] sm:$0xff] }
  0x25   : > { %298 = vst [vmem:[#allocation2 + $0xb0] sm:$0xff] %v297_v18  ;;  %300 = vst [vmem:[#allocation2 + $0xb8] sm:$0xff] %v299_v19  ;;  %v303_v21 = vld [vmem:[%s16177_s5 + $0xd0] sm:$0xff]  ;;  %v305_v22 = vld [vmem:[%s16177_s5 + $0xd8] sm:$0xff] }
  0x26   : > { %302 = vst [vmem:[#allocation2 + $0xc8] sm:$0xff] %v301_v20  ;;  %v307_v23 = vld [vmem:[%s16177_s5 + $0xe0] sm:$0xff]  ;;  %304 = vst [vmem:[#allocation2 + $0xd0] sm:$0xff] %v303_v21  ;;  %v309_v24 = vld [vmem:[%s16177_s5 + $0xf0] sm:$0xff] }
  0x27   : > { %306 = vst [vmem:[#allocation2 + $0xd8] sm:$0xff] %v305_v22  ;;  %308 = vst [vmem:[#allocation2 + $0xe0] sm:$0xff] %v307_v23  ;;  %v311_v25 = vld [vmem:[%s16177_s5 + $0xf8] sm:$0xff]  ;;  %v313_v26 = vld [vmem:[%s16177_s5 + $0x100] sm:$0xff] }
  0x28   : > { %310 = vst [vmem:[#allocation2 + $0xf0] sm:$0xff] %v309_v24  ;;  %312 = vst [vmem:[#allocation2 + $0xf8] sm:$0xff] %v311_v25  ;;  %v315_v27 = vld [vmem:[%s16177_s5 + $0x108] sm:$0xff]  ;;  %v317_v28 = vld [vmem:[%s16177_s5 + $0x118] sm:$0xff] }
  0x29   : > { %314 = vst [vmem:[#allocation2 + $0x100] sm:$0xff] %v313_v26  ;;  %v319_v29 = vld [vmem:[%s16177_s5 + $0x120] sm:$0xff]  ;;  %316 = vst [vmem:[#allocation2 + $0x108] sm:$0xff] %v315_v27  ;;  %v321_v30 = vld [vmem:[%s16177_s5 + $0x128] sm:$0xff] }
  0x2a   : > { %318 = vst [vmem:[#allocation2 + $0x118] sm:$0xff] %v317_v28  ;;  %320 = vst [vmem:[#allocation2 + $0x120] sm:$0xff] %v319_v29  ;;  %v323_v31 = vld [vmem:[%s16177_s5 + $0x130] sm:$0xff]  ;;  %v325_v32 = vld [vmem:[%s16177_s5 + $0x140] sm:$0xff] }
  0x2b   : > { %322 = vst [vmem:[#allocation2 + $0x128] sm:$0xff] %v321_v30  ;;  %324 = vst [vmem:[#allocation2 + $0x130] sm:$0xff] %v323_v31  ;;  %v327_v33 = vld [vmem:[%s16177_s5 + $0x148] sm:$0xff]  ;;  %v329_v34 = vld [vmem:[%s16177_s5 + $0x150] sm:$0xff] }
  0x2c   : > { %326 = vst [vmem:[#allocation2 + $0x140] sm:$0xff] %v325_v32  ;;  %v331_v35 = vld [vmem:[%s16177_s5 + $0x158] sm:$0xff]  ;;  %328 = vst [vmem:[#allocation2 + $0x148] sm:$0xff] %v327_v33  ;;  %v333_v36 = vld [vmem:[%s16177_s5 + $0x168] sm:$0xff] }
  0x2d   : > { %330 = vst [vmem:[#allocation2 + $0x150] sm:$0xff] %v329_v34  ;;  %332 = vst [vmem:[#allocation2 + $0x158] sm:$0xff] %v331_v35  ;;  %v335_v37 = vld [vmem:[%s16177_s5 + $0x170] sm:$0xff]  ;;  %v337_v38 = vld [vmem:[%s16177_s5 + $0x178] sm:$0xff] }
  0x2e   : > { %334 = vst [vmem:[#allocation2 + $0x168] sm:$0xff] %v333_v36  ;;  %336 = vst [vmem:[#allocation2 + $0x170] sm:$0xff] %v335_v37  ;;  %v339_v39 = vld [vmem:[%s16177_s5 + $0x180] sm:$0xff]  ;;  %v341_v40 = vld [vmem:[%s16177_s5 + $0x190] sm:$0xff] }
  0x2f   : > { %338 = vst [vmem:[#allocation2 + $0x178] sm:$0xff] %v337_v38  ;;  %v343_v41 = vld [vmem:[%s16177_s5 + $0x198] sm:$0xff]  ;;  %340 = vst [vmem:[#allocation2 + $0x180] sm:$0xff] %v339_v39  ;;  %v345_v42 = vld [vmem:[%s16177_s5 + $0x1a0] sm:$0xff] }
  0x30   : > { %342 = vst [vmem:[#allocation2 + $0x190] sm:$0xff] %v341_v40  ;;  %344 = vst [vmem:[#allocation2 + $0x198] sm:$0xff] %v343_v41  ;;  %v347_v43 = vld [vmem:[%s16177_s5 + $0x1a8] sm:$0xff]  ;;  %v349_v44 = vld [vmem:[%s16177_s5 + $0x1b8] sm:$0xff] }
  0x31   : > { %346 = vst [vmem:[#allocation2 + $0x1a0] sm:$0xff] %v345_v42  ;;  %348 = vst [vmem:[#allocation2 + $0x1a8] sm:$0xff] %v347_v43  ;;  %v351_v45 = vld [vmem:[%s16177_s5 + $0x1c0] sm:$0xff]  ;;  %v353_v46 = vld [vmem:[%s16177_s5 + $0x1c8] sm:$0xff] }
  0x32   : > { %350 = vst [vmem:[#allocation2 + $0x1b8] sm:$0xff] %v349_v44  ;;  %v355_v47 = vld [vmem:[%s16177_s5 + $0x1d0] sm:$0xff]  ;;  %352 = vst [vmem:[#allocation2 + $0x1c0] sm:$0xff] %v351_v45  ;;  %v357_v48 = vld [vmem:[%s16177_s5 + $0x1e0] sm:$0xff] }
  0x33   : > { %354 = vst [vmem:[#allocation2 + $0x1c8] sm:$0xff] %v353_v46  ;;  %356 = vst [vmem:[#allocation2 + $0x1d0] sm:$0xff] %v355_v47  ;;  %v359_v49 = vld [vmem:[%s16177_s5 + $0x1e8] sm:$0xff]  ;;  %v361_v50 = vld [vmem:[%s16177_s5 + $0x1f0] sm:$0xff] }
  0x34   : > { %358 = vst [vmem:[#allocation2 + $0x1e0] sm:$0xff] %v357_v48  ;;  %360 = vst [vmem:[#allocation2 + $0x1e8] sm:$0xff] %v359_v49  ;;  %v363_v51 = vld [vmem:[%s16177_s5 + $0x1f8] sm:$0xff]  ;;  %v365_v52 = vld [vmem:[%s16177_s5 + $0x208] sm:$0xff] }
  0x35   : > { %362 = vst [vmem:[#allocation2 + $0x1f0] sm:$0xff] %v361_v50  ;;  %v367_v53 = vld [vmem:[%s16177_s5 + $0x210] sm:$0xff]  ;;  %364 = vst [vmem:[#allocation2 + $0x1f8] sm:$0xff] %v363_v51  ;;  %v369_v54 = vld [vmem:[%s16177_s5 + $0x218] sm:$0xff] }
  0x36   : > { %366 = vst [vmem:[#allocation2 + $0x208] sm:$0xff] %v365_v52  ;;  %368 = vst [vmem:[#allocation2 + $0x210] sm:$0xff] %v367_v53  ;;  %v371_v55 = vld [vmem:[%s16177_s5 + $0x220] sm:$0xff]  ;;  %v373_v56 = vld [vmem:[%s16177_s5 + $0x230] sm:$0xff] }
  0x37   : > { %370 = vst [vmem:[#allocation2 + $0x218] sm:$0xff] %v369_v54  ;;  %372 = vst [vmem:[#allocation2 + $0x220] sm:$0xff] %v371_v55  ;;  %v375_v57 = vld [vmem:[%s16177_s5 + $0x238] sm:$0xff]  ;;  %v377_v58 = vld [vmem:[%s16177_s5 + $0x240] sm:$0xff] }
  0x38   : > { %374 = vst [vmem:[#allocation2 + $0x230] sm:$0xff] %v373_v56  ;;  %v379_v59 = vld [vmem:[%s16177_s5 + $0x248] sm:$0xff]  ;;  %376 = vst [vmem:[#allocation2 + $0x238] sm:$0xff] %v375_v57  ;;  %v381_v60 = vld [vmem:[%s16177_s5 + $0x258] sm:$0xff] }
  0x39   : > { %378 = vst [vmem:[#allocation2 + $0x240] sm:$0xff] %v377_v58  ;;  %380 = vst [vmem:[#allocation2 + $0x248] sm:$0xff] %v379_v59  ;;  %v383_v61 = vld [vmem:[%s16177_s5 + $0x260] sm:$0xff]  ;;  %v385_v62 = vld [vmem:[%s16177_s5 + $0x268] sm:$0xff] }
  0x3a   : > { %382 = vst [vmem:[#allocation2 + $0x258] sm:$0xff] %v381_v60  ;;  %384 = vst [vmem:[#allocation2 + $0x260] sm:$0xff] %v383_v61  ;;  %v387_v63 = vld [vmem:[%s16177_s5 + $0x270] sm:$0xff]  ;;  %v389_v0 = vld [vmem:[%s16177_s5 + $0x280] sm:$0xff] }
  0x3b   : > { %386 = vst [vmem:[#allocation2 + $0x268] sm:$0xff] %v385_v62  ;;  %v391_v1 = vld [vmem:[%s16177_s5 + $0x288] sm:$0xff]  ;;  %388 = vst [vmem:[#allocation2 + $0x270] sm:$0xff] %v387_v63  ;;  %v393_v2 = vld [vmem:[%s16177_s5 + $0x290] sm:$0xff] }
  0x3c   : > { %390 = vst [vmem:[#allocation2 + $0x280] sm:$0xff] %v389_v0  ;;  %392 = vst [vmem:[#allocation2 + $0x288] sm:$0xff] %v391_v1  ;;  %v395_v3 = vld [vmem:[%s16177_s5 + $0x298] sm:$0xff]  ;;  %v397_v4 = vld [vmem:[%s16177_s5 + $0x2a8] sm:$0xff] }
  0x3d   : > { %394 = vst [vmem:[#allocation2 + $0x290] sm:$0xff] %v393_v2  ;;  %396 = vst [vmem:[#allocation2 + $0x298] sm:$0xff] %v395_v3  ;;  %v399_v5 = vld [vmem:[%s16177_s5 + $0x2b0] sm:$0xff]  ;;  %v401_v6 = vld [vmem:[%s16177_s5 + $0x2b8] sm:$0xff] }
  0x3e   : > { %398 = vst [vmem:[#allocation2 + $0x2a8] sm:$0xff] %v397_v4  ;;  %v403_v7 = vld [vmem:[%s16177_s5 + $0x2c0] sm:$0xff]  ;;  %400 = vst [vmem:[#allocation2 + $0x2b0] sm:$0xff] %v399_v5  ;;  %v405_v8 = vld [vmem:[%s16177_s5 + $0x2d0] sm:$0xff] }
  0x3f   : > { %402 = vst [vmem:[#allocation2 + $0x2b8] sm:$0xff] %v401_v6  ;;  %404 = vst [vmem:[#allocation2 + $0x2c0] sm:$0xff] %v403_v7  ;;  %v407_v9 = vld [vmem:[%s16177_s5 + $0x2d8] sm:$0xff]  ;;  %v409_v10 = vld [vmem:[%s16177_s5 + $0x2e0] sm:$0xff] }
  0x40   : > { %406 = vst [vmem:[#allocation2 + $0x2d0] sm:$0xff] %v405_v8  ;;  %408 = vst [vmem:[#allocation2 + $0x2d8] sm:$0xff] %v407_v9  ;;  %v411_v11 = vld [vmem:[%s16177_s5 + $0x2e8] sm:$0xff]  ;;  %v413_v12 = vld [vmem:[%s16177_s5 + $0x2f8] sm:$0xff] }
  0x41   : > { %410 = vst [vmem:[#allocation2 + $0x2e0] sm:$0xff] %v409_v10  ;;  %v415_v13 = vld [vmem:[%s16177_s5 + $0x300] sm:$0xff]  ;;  %412 = vst [vmem:[#allocation2 + $0x2e8] sm:$0xff] %v411_v11  ;;  %v417_v14 = vld [vmem:[%s16177_s5 + $0x308] sm:$0xff] }
  0x42   : > { %414 = vst [vmem:[#allocation2 + $0x2f8] sm:$0xff] %v413_v12  ;;  %416 = vst [vmem:[#allocation2 + $0x300] sm:$0xff] %v415_v13  ;;  %v419_v15 = vld [vmem:[%s16177_s5 + $0x310] sm:$0xff]  ;;  %v421_v16 = vld [vmem:[%s16177_s5 + $0x320] sm:$0xff] }
  0x43   : > { %418 = vst [vmem:[#allocation2 + $0x308] sm:$0xff] %v417_v14  ;;  %420 = vst [vmem:[#allocation2 + $0x310] sm:$0xff] %v419_v15  ;;  %v423_v17 = vld [vmem:[%s16177_s5 + $0x328] sm:$0xff]  ;;  %v425_v18 = vld [vmem:[%s16177_s5 + $0x330] sm:$0xff] }
  0x44   : > { %422 = vst [vmem:[#allocation2 + $0x320] sm:$0xff] %v421_v16  ;;  %v427_v19 = vld [vmem:[%s16177_s5 + $0x338] sm:$0xff]  ;;  %424 = vst [vmem:[#allocation2 + $0x328] sm:$0xff] %v423_v17  ;;  %v429_v20 = vld [vmem:[%s16177_s5 + $0x348] sm:$0xff] }
  0x45   : > { %426 = vst [vmem:[#allocation2 + $0x330] sm:$0xff] %v425_v18  ;;  %428 = vst [vmem:[#allocation2 + $0x338] sm:$0xff] %v427_v19  ;;  %v431_v21 = vld [vmem:[%s16177_s5 + $0x350] sm:$0xff]  ;;  %v433_v22 = vld [vmem:[%s16177_s5 + $0x358] sm:$0xff] }
  0x46   : > { %430 = vst [vmem:[#allocation2 + $0x348] sm:$0xff] %v429_v20  ;;  %432 = vst [vmem:[#allocation2 + $0x350] sm:$0xff] %v431_v21  ;;  %v435_v23 = vld [vmem:[%s16177_s5 + $0x360] sm:$0xff]  ;;  %v437_v24 = vld [vmem:[%s16177_s5 + $0x370] sm:$0xff] }
  0x47   : > { %434 = vst [vmem:[#allocation2 + $0x358] sm:$0xff] %v433_v22  ;;  %v439_v25 = vld [vmem:[%s16177_s5 + $0x378] sm:$0xff]  ;;  %436 = vst [vmem:[#allocation2 + $0x360] sm:$0xff] %v435_v23  ;;  %v441_v26 = vld [vmem:[%s16177_s5 + $0x380] sm:$0xff] }
  0x48   : > { %438 = vst [vmem:[#allocation2 + $0x370] sm:$0xff] %v437_v24  ;;  %440 = vst [vmem:[#allocation2 + $0x378] sm:$0xff] %v439_v25  ;;  %v443_v27 = vld [vmem:[%s16177_s5 + $0x388] sm:$0xff]  ;;  %v445_v28 = vld [vmem:[%s16177_s5 + $0x398] sm:$0xff] }
  0x49   : > { %442 = vst [vmem:[#allocation2 + $0x380] sm:$0xff] %v441_v26  ;;  %444 = vst [vmem:[#allocation2 + $0x388] sm:$0xff] %v443_v27  ;;  %v447_v29 = vld [vmem:[%s16177_s5 + $0x3a0] sm:$0xff]  ;;  %v449_v30 = vld [vmem:[%s16177_s5 + $0x3a8] sm:$0xff] }
  0x4a   : > { %446 = vst [vmem:[#allocation2 + $0x398] sm:$0xff] %v445_v28  ;;  %v451_v31 = vld [vmem:[%s16177_s5 + $0x3b0] sm:$0xff]  ;;  %448 = vst [vmem:[#allocation2 + $0x3a0] sm:$0xff] %v447_v29  ;;  %v453_v32 = vld [vmem:[%s16177_s5 + $0x3c0] sm:$0xff] }
  0x4b   : > { %450 = vst [vmem:[#allocation2 + $0x3a8] sm:$0xff] %v449_v30  ;;  %452 = vst [vmem:[#allocation2 + $0x3b0] sm:$0xff] %v451_v31  ;;  %v455_v33 = vld [vmem:[%s16177_s5 + $0x3c8] sm:$0xff]  ;;  %v457_v34 = vld [vmem:[%s16177_s5 + $0x3d0] sm:$0xff] }
  0x4c   : > { %454 = vst [vmem:[#allocation2 + $0x3c0] sm:$0xff] %v453_v32  ;;  %456 = vst [vmem:[#allocation2 + $0x3c8] sm:$0xff] %v455_v33  ;;  %v459_v35 = vld [vmem:[%s16177_s5 + $0x3d8] sm:$0xff]  ;;  %v461_v36 = vld [vmem:[%s16177_s5 + $0x3e8] sm:$0xff] }
  0x4d   : > { %458 = vst [vmem:[#allocation2 + $0x3d0] sm:$0xff] %v457_v34  ;;  %v463_v37 = vld [vmem:[%s16177_s5 + $0x3f0] sm:$0xff]  ;;  %460 = vst [vmem:[#allocation2 + $0x3d8] sm:$0xff] %v459_v35  ;;  %v465_v38 = vld [vmem:[%s16177_s5 + $0x3f8] sm:$0xff] }
  0x4e   : > { %462 = vst [vmem:[#allocation2 + $0x3e8] sm:$0xff] %v461_v36  ;;  %464 = vst [vmem:[#allocation2 + $0x3f0] sm:$0xff] %v463_v37  ;;  %v467_v39 = vld [vmem:[%s16177_s5 + $0x400] sm:$0xff]  ;;  %v469_v40 = vld [vmem:[%s16177_s5 + $0x410] sm:$0xff] }
  0x4f   : > { %466 = vst [vmem:[#allocation2 + $0x3f8] sm:$0xff] %v465_v38  ;;  %468 = vst [vmem:[#allocation2 + $0x400] sm:$0xff] %v467_v39  ;;  %v471_v41 = vld [vmem:[%s16177_s5 + $0x418] sm:$0xff]  ;;  %v473_v42 = vld [vmem:[%s16177_s5 + $0x420] sm:$0xff] }
  0x50   : > { %470 = vst [vmem:[#allocation2 + $0x410] sm:$0xff] %v469_v40  ;;  %v475_v43 = vld [vmem:[%s16177_s5 + $0x428] sm:$0xff]  ;;  %472 = vst [vmem:[#allocation2 + $0x418] sm:$0xff] %v471_v41  ;;  %v477_v44 = vld [vmem:[%s16177_s5 + $0x438] sm:$0xff] }
  0x51   : > { %474 = vst [vmem:[#allocation2 + $0x420] sm:$0xff] %v473_v42  ;;  %476 = vst [vmem:[#allocation2 + $0x428] sm:$0xff] %v475_v43  ;;  %v479_v45 = vld [vmem:[%s16177_s5 + $0x440] sm:$0xff]  ;;  %v481_v46 = vld [vmem:[%s16177_s5 + $0x448] sm:$0xff] }
  0x52   : > { %478 = vst [vmem:[#allocation2 + $0x438] sm:$0xff] %v477_v44  ;;  %480 = vst [vmem:[#allocation2 + $0x440] sm:$0xff] %v479_v45  ;;  %v483_v47 = vld [vmem:[%s16177_s5 + $0x450] sm:$0xff]  ;;  %v485_v48 = vld [vmem:[%s16177_s5 + $0x460] sm:$0xff] }
  0x53   : > { %482 = vst [vmem:[#allocation2 + $0x448] sm:$0xff] %v481_v46  ;;  %v487_v49 = vld [vmem:[%s16177_s5 + $0x468] sm:$0xff]  ;;  %484 = vst [vmem:[#allocation2 + $0x450] sm:$0xff] %v483_v47  ;;  %v489_v50 = vld [vmem:[%s16177_s5 + $0x470] sm:$0xff] }
  0x54   : > { %486 = vst [vmem:[#allocation2 + $0x460] sm:$0xff] %v485_v48  ;;  %488 = vst [vmem:[#allocation2 + $0x468] sm:$0xff] %v487_v49  ;;  %v491_v51 = vld [vmem:[%s16177_s5 + $0x478] sm:$0xff]  ;;  %v493_v52 = vld [vmem:[%s16177_s5 + $0x488] sm:$0xff] }
  0x55   : > { %490 = vst [vmem:[#allocation2 + $0x470] sm:$0xff] %v489_v50  ;;  %492 = vst [vmem:[#allocation2 + $0x478] sm:$0xff] %v491_v51  ;;  %v495_v53 = vld [vmem:[%s16177_s5 + $0x490] sm:$0xff]  ;;  %v497_v54 = vld [vmem:[%s16177_s5 + $0x498] sm:$0xff] }
  0x56   : > { %494 = vst [vmem:[#allocation2 + $0x488] sm:$0xff] %v493_v52  ;;  %v499_v55 = vld [vmem:[%s16177_s5 + $0x4a0] sm:$0xff]  ;;  %496 = vst [vmem:[#allocation2 + $0x490] sm:$0xff] %v495_v53  ;;  %v501_v56 = vld [vmem:[%s16177_s5 + $0x4b0] sm:$0xff] }
  0x57   : > { %498 = vst [vmem:[#allocation2 + $0x498] sm:$0xff] %v497_v54  ;;  %500 = vst [vmem:[#allocation2 + $0x4a0] sm:$0xff] %v499_v55  ;;  %v503_v57 = vld [vmem:[%s16177_s5 + $0x4b8] sm:$0xff]  ;;  %v505_v58 = vld [vmem:[%s16177_s5 + $0x4c0] sm:$0xff] }
  0x58   : > { %502 = vst [vmem:[#allocation2 + $0x4b0] sm:$0xff] %v501_v56  ;;  %504 = vst [vmem:[#allocation2 + $0x4b8] sm:$0xff] %v503_v57  ;;  %v507_v59 = vld [vmem:[%s16177_s5 + $0x4c8] sm:$0xff]  ;;  %v509_v60 = vld [vmem:[%s16177_s5 + $0x4d8] sm:$0xff] }
  0x59   : > { %506 = vst [vmem:[#allocation2 + $0x4c0] sm:$0xff] %v505_v58  ;;  %v511_v61 = vld [vmem:[%s16177_s5 + $0x4e0] sm:$0xff]  ;;  %508 = vst [vmem:[#allocation2 + $0x4c8] sm:$0xff] %v507_v59  ;;  %v513_v62 = vld [vmem:[%s16177_s5 + $0x4e8] sm:$0xff] }
  0x5a   : > { %510 = vst [vmem:[#allocation2 + $0x4d8] sm:$0xff] %v509_v60  ;;  %512 = vst [vmem:[#allocation2 + $0x4e0] sm:$0xff] %v511_v61  ;;  %v515_v63 = vld [vmem:[%s16177_s5 + $0x4f0] sm:$0xff]  ;;  %v517_v0 = vld [vmem:[%s16177_s5 + $0x500] sm:$0xff] }
  0x5b   : > { %514 = vst [vmem:[#allocation2 + $0x4e8] sm:$0xff] %v513_v62  ;;  %516 = vst [vmem:[#allocation2 + $0x4f0] sm:$0xff] %v515_v63  ;;  %v519_v1 = vld [vmem:[%s16177_s5 + $0x508] sm:$0xff]  ;;  %v521_v2 = vld [vmem:[%s16177_s5 + $0x510] sm:$0xff] }
  0x5c   : > { %518 = vst [vmem:[#allocation2 + $0x500] sm:$0xff] %v517_v0  ;;  %v523_v3 = vld [vmem:[%s16177_s5 + $0x518] sm:$0xff]  ;;  %520 = vst [vmem:[#allocation2 + $0x508] sm:$0xff] %v519_v1  ;;  %v525_v4 = vld [vmem:[%s16177_s5 + $0x528] sm:$0xff] }
  0x5d   : > { %522 = vst [vmem:[#allocation2 + $0x510] sm:$0xff] %v521_v2  ;;  %524 = vst [vmem:[#allocation2 + $0x518] sm:$0xff] %v523_v3  ;;  %v527_v5 = vld [vmem:[%s16177_s5 + $0x530] sm:$0xff]  ;;  %v529_v6 = vld [vmem:[%s16177_s5 + $0x538] sm:$0xff] }
  0x5e   : > { %526 = vst [vmem:[#allocation2 + $0x528] sm:$0xff] %v525_v4  ;;  %528 = vst [vmem:[#allocation2 + $0x530] sm:$0xff] %v527_v5  ;;  %v531_v7 = vld [vmem:[%s16177_s5 + $0x540] sm:$0xff]  ;;  %v10427_v9 = vld [vmem:[%s16177_s5 + $0x48] sm:$0x3] }
  0x5f   : > { %530 = vst [vmem:[#allocation2 + $0x538] sm:$0xff] %v529_v6  ;;  %v10426_v8 = vld [vmem:[%s16177_s5 + $0x20] sm:$0x3]  ;;  %532 = vst [vmem:[#allocation2 + $0x540] sm:$0xff] %v531_v7  ;;  %v10428_v10 = vld [vmem:[%s16177_s5 + $0x70] sm:$0x3] }
  0x60   : > { %543 = vst [vmem:[#allocation2 + $0x20] sm:$0x3] %v10426_v8  ;;  %545 = vst [vmem:[#allocation2 + $0x48] sm:$0x3] %v10427_v9  ;;  %v10429_v11 = vld [vmem:[%s16177_s5 + $0x98] sm:$0x3] }
  0x61   : > { %v10430_v12 = vld [vmem:[%s16177_s5 + $0xc0] sm:$0x3]  ;;  %547 = vst [vmem:[#allocation2 + $0x70] sm:$0x3] %v10428_v10  ;;  %549 = vst [vmem:[#allocation2 + $0x98] sm:$0x3] %v10429_v11 }
  0x62   : > { %551 = vst [vmem:[#allocation2 + $0xc0] sm:$0x3] %v10430_v12  ;;  %v10431_v13 = vld [vmem:[%s16177_s5 + $0xe8] sm:$0x3]  ;;  %v10432_v14 = vld [vmem:[%s16177_s5 + $0x110] sm:$0x3] }
  0x63   : > { %v10433_v15 = vld [vmem:[%s16177_s5 + $0x138] sm:$0x3]  ;;  %553 = vst [vmem:[#allocation2 + $0xe8] sm:$0x3] %v10431_v13  ;;  %555 = vst [vmem:[#allocation2 + $0x110] sm:$0x3] %v10432_v14 }
  0x64   : > { %557 = vst [vmem:[#allocation2 + $0x138] sm:$0x3] %v10433_v15  ;;  %v10434_v16 = vld [vmem:[%s16177_s5 + $0x160] sm:$0x3]  ;;  %v10435_v17 = vld [vmem:[%s16177_s5 + $0x188] sm:$0x3] }
  0x65   : > { %v10436_v18 = vld [vmem:[%s16177_s5 + $0x1b0] sm:$0x3]  ;;  %559 = vst [vmem:[#allocation2 + $0x160] sm:$0x3] %v10434_v16  ;;  %561 = vst [vmem:[#allocation2 + $0x188] sm:$0x3] %v10435_v17 }
  0x66   : > { %563 = vst [vmem:[#allocation2 + $0x1b0] sm:$0x3] %v10436_v18  ;;  %v10437_v19 = vld [vmem:[%s16177_s5 + $0x1d8] sm:$0x3]  ;;  %v10438_v20 = vld [vmem:[%s16177_s5 + $0x200] sm:$0x3] }
  0x67   : > { %v10439_v21 = vld [vmem:[%s16177_s5 + $0x228] sm:$0x3]  ;;  %565 = vst [vmem:[#allocation2 + $0x1d8] sm:$0x3] %v10437_v19  ;;  %567 = vst [vmem:[#allocation2 + $0x200] sm:$0x3] %v10438_v20 }
  0x68   : > { %569 = vst [vmem:[#allocation2 + $0x228] sm:$0x3] %v10439_v21  ;;  %v10440_v22 = vld [vmem:[%s16177_s5 + $0x250] sm:$0x3]  ;;  %v10441_v23 = vld [vmem:[%s16177_s5 + $0x278] sm:$0x3] }
  0x69   : > { %v10442_v24 = vld [vmem:[%s16177_s5 + $0x2a0] sm:$0x3]  ;;  %571 = vst [vmem:[#allocation2 + $0x250] sm:$0x3] %v10440_v22  ;;  %573 = vst [vmem:[#allocation2 + $0x278] sm:$0x3] %v10441_v23 }
  0x6a   : > { %575 = vst [vmem:[#allocation2 + $0x2a0] sm:$0x3] %v10442_v24  ;;  %v10443_v25 = vld [vmem:[%s16177_s5 + $0x2c8] sm:$0x3]  ;;  %v10444_v26 = vld [vmem:[%s16177_s5 + $0x2f0] sm:$0x3] }
  0x6b   : > { %v10445_v27 = vld [vmem:[%s16177_s5 + $0x318] sm:$0x3]  ;;  %577 = vst [vmem:[#allocation2 + $0x2c8] sm:$0x3] %v10443_v25  ;;  %579 = vst [vmem:[#allocation2 + $0x2f0] sm:$0x3] %v10444_v26 }
  0x6c   : > { %581 = vst [vmem:[#allocation2 + $0x318] sm:$0x3] %v10445_v27  ;;  %v10446_v28 = vld [vmem:[%s16177_s5 + $0x340] sm:$0x3]  ;;  %v10447_v29 = vld [vmem:[%s16177_s5 + $0x368] sm:$0x3] }
  0x6d   : > { %v10448_v30 = vld [vmem:[%s16177_s5 + $0x390] sm:$0x3]  ;;  %583 = vst [vmem:[#allocation2 + $0x340] sm:$0x3] %v10446_v28  ;;  %585 = vst [vmem:[#allocation2 + $0x368] sm:$0x3] %v10447_v29 }
  0x6e   : > { %587 = vst [vmem:[#allocation2 + $0x390] sm:$0x3] %v10448_v30  ;;  %v10449_v31 = vld [vmem:[%s16177_s5 + $0x3b8] sm:$0x3]  ;;  %v10450_v32 = vld [vmem:[%s16177_s5 + $0x3e0] sm:$0x3] }
  0x6f   : > { %v10451_v33 = vld [vmem:[%s16177_s5 + $0x408] sm:$0x3]  ;;  %589 = vst [vmem:[#allocation2 + $0x3b8] sm:$0x3] %v10449_v31  ;;  %591 = vst [vmem:[#allocation2 + $0x3e0] sm:$0x3] %v10450_v32 }
  0x70   : > { %593 = vst [vmem:[#allocation2 + $0x408] sm:$0x3] %v10451_v33  ;;  %v10452_v34 = vld [vmem:[%s16177_s5 + $0x430] sm:$0x3]  ;;  %v10453_v35 = vld [vmem:[%s16177_s5 + $0x458] sm:$0x3] }
  0x71   : > { %v10454_v36 = vld [vmem:[%s16177_s5 + $0x480] sm:$0x3]  ;;  %595 = vst [vmem:[#allocation2 + $0x430] sm:$0x3] %v10452_v34  ;;  %597 = vst [vmem:[#allocation2 + $0x458] sm:$0x3] %v10453_v35 }
  0x72   : > { %599 = vst [vmem:[#allocation2 + $0x480] sm:$0x3] %v10454_v36  ;;  %v10455_v37 = vld [vmem:[%s16177_s5 + $0x4a8] sm:$0x3]  ;;  %v10456_v38 = vld [vmem:[%s16177_s5 + $0x4d0] sm:$0x3] }
  0x73   : > { %v10457_v39 = vld [vmem:[%s16177_s5 + $0x4f8] sm:$0x3]  ;;  %601 = vst [vmem:[#allocation2 + $0x4a8] sm:$0x3] %v10455_v37  ;;  %603 = vst [vmem:[#allocation2 + $0x4d0] sm:$0x3] %v10456_v38 }
  0x74   : > { %605 = vst [vmem:[#allocation2 + $0x4f8] sm:$0x3] %v10457_v39  ;;  %v10458_v40 = vld [vmem:[%s16177_s5 + $0x520] sm:$0x3]  ;;  %v10459_v41 = vld [vmem:[%s16177_s5 + $0x548] sm:$0x3] }
  0x75   : > { %607 = vst [vmem:[#allocation2 + $0x520] sm:$0x3] %v10458_v40  ;;  %609 = vst [vmem:[#allocation2 + $0x548] sm:$0x3] %v10459_v41 }
  0x76   : > { %613 = vsyncadd [#allocation3], 18496 }
  0x77   : > { %16055 = dma.done.wait [#allocation3], 18496 }
  0x78   : > { %16056 = vsyncadd [#allocation3], 4294948800  ;;  %v10870_v42 = vld [vmem:[%s19945_s1 + $0x80] sm:$0xff]  ;;  %v10871_v43 = vld [vmem:[%s19945_s1 + $0x88] sm:$0xff]  ;;  %vm1438_vm0 = vcmask 1046528   ;;  %vm3282_vm1 = vcmask 1045504  }
  0x79   : > { %v10918_v44 = vld [vmem:[%s19945_s1 + $0x200] sm:$0xff]  ;;  %v14320_v45 = vpack.c.bf16 %v10871_v43, %v10870_v42  ;;  %v10919_v46 = vld [vmem:[%s19945_s1 + $0x208] sm:$0xff]  ;;  %v10872_v47 = vld [vmem:[%s19945_s1 + $0x90] sm:$0xff]  ;;  %s11007_s27 = sshll.u32 %s16079_s15, 14  ;;  %s10257_s28 = sshll.u32 %s16351_s6, 4  ;;  %s19861_s28 = int_to_ptr.vmem [resolvable:$true] %s10257_s28 }
  0x7a   : > { %v10873_v48 = vld [vmem:[%s19945_s1 + $0x98] sm:$0xff]  ;;  %v16375_v49 = vpack.c.bf16 %v10919_v46, %v10918_v44  ;;  %v10920_v51 = vld [vmem:[%s19945_s1 + $0x210] sm:$0xff]  ;;  %v10874_v53 = vld [vmem:[%s19945_s1 + $0xa0] sm:$0xff]  ;;  %s19859_s4 = scalar_lea.hbm %s19946_s2, %s11007_s27  ;;  %s10236_s5 = scalar_lea.sflag [#allocation5], %s16169_s26 }
  0x7b   : > { %v14324_v50 = vpack.c.bf16 %v10873_v48, %v10872_v47  ;;  %v10921_v52 = vld [vmem:[%s19945_s1 + $0x218] sm:$0xff]  ;;  %14321 = vmatprep.subr.bf16.mxu1 %v14320_v45  ;;  %v10875_v55 = vld [vmem:[%s19945_s1 + $0xa8] sm:$0xff]  ;;  %v10922_v56 = vld [vmem:[%s19945_s1 + $0x220] sm:$0xff]  ;;  %s15975_s8 = scalar_lea.vmem %s19861_s28, 16384  ;;  %s16089_s9 = smov [#allocation4]  }
  0x7c   : > { %20487 = vst [vmem:[#allocation13_spill] sm:$0xff] %v16375_v49  ;;  %v16386_v54 = vpack.c.bf16 %v10921_v52, %v10920_v51  ;;  %v10923_v57 = vld [vmem:[%s19945_s1 + $0x228] sm:$0xff]  ;;  %14449 = vmatprep.subr.bf16.mxu0 %v16375_v49  ;;  %14323 = vmatpush3.bf16.msra.mxu1 %v14320_v45  ;;  %v14328_v58 = vpack.c.bf16 %v10875_v55, %v10874_v53  ;;  %v10876_v60 = vld [vmem:[%s19945_s1 + $0xb0] sm:$0xff]  ;;  %v10877_v61 = vld [vmem:[%s19945_s1 + $0xb8] sm:$0xff]  ;;  %p15976_p11 = scmp.ne.s32.totalorder %s19861_s28, %s15975_s8  ;;  %s15979_s10 = sshll.u32 %s16089_s9, 4  ;;  %s15980_s10 = int_to_ptr.vmem [resolvable:$false] %s15979_s10 }
  0x7d   : > { %14451 = vmatpush3.bf16.msra.mxu0 %v16375_v49  ;;  %14325 = vmatprep.subr.bf16.mxu1 %v14324_v50  ;;  %v16400_v59 = vpack.c.bf16 %v10923_v57, %v10922_v56  ;;  %v10924_v62 = vld [vmem:[%s19945_s1 + $0x230] sm:$0xff]  ;;  %v10925_v63 = vld [vmem:[%s19945_s1 + $0x238] sm:$0xff]  ;;  %v14332_v0 = vpack.c.bf16 %v10877_v61, %v10876_v60  ;;  %v10878_v1 = vld [vmem:[%s19945_s1 + $0xc0] sm:$0xff]  ;;  %s15981_s11 = scalar_lea.vmem %s15980_s10, 32768  ;;  %p15982_p0 = scmp.lt.s32.totalorder %s19861_s28, %s15980_s10 }
  0x7e   : > { %20488 = vst [vmem:[#allocation14_spill] sm:$0xff] %v16386_v54  ;;  %14453 = vmatprep.subr.bf16.mxu0 %v16386_v54  ;;  %v10879_v2 = vld [vmem:[%s19945_s1 + $0xc8] sm:$0xff]  ;;  %v16422_v3 = vpack.c.bf16 %v10925_v63, %v10924_v62  ;;  %v10926_v4 = vld [vmem:[%s19945_s1 + $0x240] sm:$0xff]  ;;  %v16434_v10 = vld [vmem:[#allocation2 + $0x30] sm:$0xff]  ;;  %p15977_p12 = pnand %p15976_p11, %p16153_p4  ;;  %p15983_p1 = scmp.lt.s32.totalorder %s15981_s11, %s15975_s8 }
  0x7f   : > { %20489 = vst [vmem:[#allocation15_spill] sm:$0xff] %v16400_v59  ;;  %v10927_v5 = vld [vmem:[%s19945_s1 + $0x248] sm:$0xff]  ;;  %v1092_v6 = vld [vmem:[#allocation2] sm:$0xff]  ;;  %v1449_v13 = vrot.slane %v16434_v10, 1  ;;  %v14336_v14 = vpack.c.bf16 %v10879_v2, %v10878_v1  ;;  %v10880_v16 = vld [vmem:[%s19945_s1 + $0xd0] sm:$0xff] }
  0x80   : > { %14327 = vmatpush3.bf16.msra.mxu1 %v14324_v50  ;;  %20490 = vst [vmem:[#allocation16_spill] sm:$0xff] %v16422_v3  ;;  %v16430_v7 = vld [vmem:[#allocation2 + $0x8] sm:$0xff]  ;;  %v1439_v8 = vrot.slane %v1092_v6, 1  ;;  %v16441_v15 = vpack.c.bf16 %v10927_v5, %v10926_v4  ;;  %v10881_v17 = vld [vmem:[%s19945_s1 + $0xd8] sm:$0xff]  ;;  %v10928_v20 = vld [vmem:[%s19945_s1 + $0x250] sm:$0xff]  ;;  %p15978_p13 = pneg %p15977_p12  ;;  %p15984_p2 = por %p15983_p1, %p15982_p0 }
  0x81   : > { %14455 = vmatpush3.bf16.msra.mxu0 %v16386_v54  ;;  %14329 = vmatprep.subr.bf16.mxu1 %v14328_v58  ;;  %v16432_v9 = vld [vmem:[#allocation2 + $0x28] sm:$0xff]  ;;  %v1440_v11 = vrot.slane %v16430_v7, 1  ;;  %v10929_v21 = vld [vmem:[%s19945_s1 + $0x258] sm:$0xff]  ;;  %v14340_v22 = vpack.c.bf16 %v10881_v17, %v10880_v16  ;;  %v10882_v24 = vld [vmem:[%s19945_s1 + $0xe0] sm:$0xff] }
  0x82   : > { %14457 = vmatprep.subr.bf16.mxu0 %v16400_v59  ;;  %v1448_v12 = vrot.slane %v16432_v9, 1  ;;  %20491 = vst [vmem:[#allocation17_spill] sm:$0xff] %v16441_v15  ;;  %v16466_v23 = vpack.c.bf16 %v10929_v21, %v10928_v20  ;;  %v10883_v25 = vld [vmem:[%s19945_s1 + $0xe8] sm:$0xff]  ;;  %v10930_v26 = vld [vmem:[%s19945_s1 + $0x260] sm:$0xff]  ;;  %v10884_v30 = vld [vmem:[%s19945_s1 + $0xf0] sm:$0xff]  ;;  %p15985_p3 = pnand %p15984_p2, %p15978_p13 }
  0x83   : > { %v1441_v18 = vsel %vm1438_vm0, %v1439_v8, %v1440_v11  ;;  %v10931_v27 = vld [vmem:[%s19945_s1 + $0x268] sm:$0xff]  ;;  %v14344_v28 = vpack.c.bf16 %v10883_v25, %v10882_v24  ;;  %v10885_v31 = vld [vmem:[%s19945_s1 + $0xf8] sm:$0xff]  ;;  %v10932_v32 = vld [vmem:[%s19945_s1 + $0x270] sm:$0xff] }
  0x84   : > { %14331 = vmatpush3.bf16.msra.mxu1 %v14328_v58  ;;  %v16455_v19 = vsel %vm1438_vm0, %v1448_v12, %v1449_v13  ;;  %12336 = vmatprep.mubr.f32.mxu1 %v1441_v18  ;;  %20492 = vst [vmem:[#allocation18_spill] sm:$0xff] %v16466_v23  ;;  %v16482_v29 = vpack.c.bf16 %v10931_v27, %v10930_v26  ;;  %v10933_v33 = vld [vmem:[%s19945_s1 + $0x278] sm:$0xff]  ;;  %v1094_v35 = vld [vmem:[#allocation2 + $0x10] sm:$0xff]  ;;  %v1262_v37 = vld [vmem:[%s19945_s1] sm:$0xff] }
  0x85   : > { %14459 = vmatpush3.bf16.msra.mxu0 %v16400_v59  ;;  %14333 = vmatprep.subr.bf16.mxu1 %v14332_v0  ;;  %v14348_v34 = vpack.c.bf16 %v10885_v31, %v10884_v30  ;;  %v16498_v36 = vpack.c.bf16 %v10933_v33, %v10932_v32  ;;  %v1263_v38 = vld [vmem:[%s19945_s1 + $0x8] sm:$0xff]  ;;  %v16506_v39 = vld [vmem:[#allocation2 + $0x38] sm:$0xff]  ;;  %v10934_v40 = vld [vmem:[%s19945_s1 + $0x280] sm:$0xff]  ;;  %v1442_v43 = vrot.slane %v1094_v35, 1 }
  0x86   : > { %14461 = vmatprep.subr.bf16.mxu0 %v16422_v3  ;;  %13232 = vmatprep.mubr.f32.mxu0 %v16455_v19  ;;  %20493 = vst [vmem:[#allocation19_spill] sm:$0xff] %v16482_v29  ;;  %v10935_v41 = vld [vmem:[%s19945_s1 + $0x288] sm:$0xff]  ;;  %v1095_v42 = vld [vmem:[#allocation2 + $0x18] sm:$0xff]  ;;  %v16514_v44 = vld [vmem:[#allocation2 + $0x40] sm:$0xff]  ;;  %v14352_v45 = vpack.c.bf16 %v1263_v38, %v1262_v37  ;;  %v1451_v46 = vrot.slane %v16506_v39, 1 }
  0x87   : > { %20494 = vst [vmem:[#allocation20_spill] sm:$0xff] %v16498_v36  ;;  %v1096_v47 = vld [vmem:[#allocation2 + $0x20] sm:$0x3]  ;;  %v14480_v48 = vpack.c.bf16 %v10935_v41, %v10934_v40  ;;  %v1444_v50 = vrot.slane %v1095_v42, 1  ;;  %v16519_v51 = vld [vmem:[#allocation2 + $0x48] sm:$0x3]  ;;  %v1443_v58 = vsel %vm1438_vm0, %v1440_v11, %v1442_v43 }
  0x88   : > { %14335 = vmatpush3.bf16.msra.mxu1 %v14332_v0  ;;  %v16521_v52 = vld [vmem:[#allocation2 + $0x50] sm:$0xff]  ;;  %v1453_v53 = vrot.slane %v16514_v44, 1  ;;  %v16524_v55 = vld [vmem:[#allocation2 + $0x58] sm:$0xff]  ;;  %v1446_v60 = vrot.slane %v1096_v47, 1  ;;  %v1452_v63 = vsel %vm1438_vm0, %v1449_v13, %v1451_v46  ;;  %v1455_v0 = vrot.slane %v16519_v51, 1  ;;  %v16549_v5 = vld [vmem:[#allocation2 + $0x60] sm:$0xff] }
  0x89   : > { %14463 = vmatpush3.bf16.msra.mxu0 %v16422_v3  ;;  %14337 = vmatprep.subr.bf16.mxu1 %v14336_v14  ;;  %v10936_v56 = vld [vmem:[%s19945_s1 + $0x290] sm:$0xff]  ;;  %v10937_v57 = vld [vmem:[%s19945_s1 + $0x298] sm:$0xff]  ;;  %v1445_v1 = vsel %vm1438_vm0, %v1442_v43, %v1444_v50  ;;  %v1457_v2 = vrot.slane %v16521_v52, 1  ;;  %v1458_v4 = vrot.slane %v16524_v55, 1  ;;  %v16552_v8 = vld [vmem:[#allocation2 + $0x68] sm:$0xff]  ;;  %v1460_v20 = vrot.slane %v16549_v5, 1 }
  0x8a   : > { %14465 = vmatprep.subr.bf16.mxu0 %v16441_v15  ;;  %v1264_v61 = vld [vmem:[%s19945_s1 + $0x10] sm:$0xff]  ;;  %v1265_v62 = vld [vmem:[%s19945_s1 + $0x18] sm:$0xff]  ;;  %v14484_v6 = vpack.c.bf16 %v10937_v57, %v10936_v56  ;;  %v1454_v7 = vsel %vm1438_vm0, %v1451_v46, %v1453_v53  ;;  %v10938_v12 = vld [vmem:[%s19945_s1 + $0x2a0] sm:$0xff]  ;;  %v1456_v18 = vsel %vm1438_vm0, %v1453_v53, %v1455_v0 }
  0x8b   : > { %v14356_v11 = vpack.c.bf16 %v1265_v62, %v1264_v61  ;;  %v10939_v13 = vld [vmem:[%s19945_s1 + $0x2a8] sm:$0xff]  ;;  %v1266_v16 = vld [vmem:[%s19945_s1 + $0x20] sm:$0xff]  ;;  %v16570_v21 = vsel %vm1438_vm0, %v1457_v2, %v1458_v4  ;;  %v16573_v24 = vld [vmem:[#allocation2 + $0x70] sm:$0x3]  ;;  %v16588_v32 = vsel %vm1438_vm0, %v1458_v4, %v1460_v20 }
  0x8c   : > { %14339 = vmatpush3.bf16.msra.mxu1 %v14336_v14  ;;  %v1447_v14 = vsel %vm1438_vm0, %v1444_v50, %v1446_v60  ;;  %v1267_v17 = vld [vmem:[%s19945_s1 + $0x28] sm:$0xff]  ;;  %20495 = vst [vmem:[#allocation21_spill] sm:$0xff] %v16570_v21  ;;  %v16575_v25 = vld [vmem:[#allocation2 + $0x78] sm:$0xff]  ;;  %v14488_v26 = vpack.c.bf16 %v10939_v13, %v10938_v12  ;;  %v16577_v27 = vld [vmem:[#allocation2 + $0x80] sm:$0xff]  ;;  %v1464_v33 = vrot.slane %v16573_v24, 1 }
  0x8d   : > { %14467 = vmatpush3.bf16.msra.mxu0 %v16441_v15  ;;  %14341 = vmatprep.subr.bf16.mxu1 %v14340_v22  ;;  %v10941_v30 = vld [vmem:[%s19945_s1 + $0x2b8] sm:$0xff]  ;;  %v14360_v31 = vpack.c.bf16 %v1267_v17, %v1266_v16  ;;  %20496 = vst [vmem:[#allocation22_spill] sm:$0xff] %v16588_v32  ;;  %v1467_v38 = vrot.slane %v16577_v27, 1  ;;  %v16602_v40 = vld [vmem:[#allocation2 + $0x88] sm:$0xff]  ;;  %v16604_v42 = vld [vmem:[#allocation2 + $0x90] sm:$0xff] }
  0x8e   : > { %14469 = vmatprep.subr.bf16.mxu0 %v16466_v23  ;;  %v1269_v35 = vld [vmem:[%s19945_s1 + $0x38] sm:$0xff]  ;;  %v10942_v43 = vld [vmem:[%s19945_s1 + $0x2c0] sm:$0xff]  ;;  %v1471_v53 = vrot.slane %v16604_v42, 1  ;;  %v16626_v60 = vld [vmem:[#allocation2 + $0xa8] sm:$0xff] }
  0x8f   : > { %v16622_v56 = vld [vmem:[#allocation2 + $0x98] sm:$0x3]  ;;  %v16624_v57 = vld [vmem:[#allocation2 + $0xa0] sm:$0xff]  ;;  %v10944_v61 = vld [vmem:[%s19945_s1 + $0x2d0] sm:$0xff]  ;;  %v1476_v4 = vrot.slane %v16626_v60, 1 }
  0x90   : > { %14343 = vmatpush3.bf16.msra.mxu1 %v14340_v22  ;;  %v1462_v22 = vrot.slane %v16552_v8, 1  ;;  %v10945_v62 = vld [vmem:[%s19945_s1 + $0x2d8] sm:$0xff]  ;;  %v1473_v0 = vrot.slane %v16622_v56, 1  ;;  %v1475_v2 = vrot.slane %v16624_v57, 1  ;;  %v10946_v12 = vld [vmem:[%s19945_s1 + $0x2e0] sm:$0xff]  ;;  %v10947_v13 = vld [vmem:[%s19945_s1 + $0x2e8] sm:$0xff] }
  0x91   : > { %14471 = vmatpush3.bf16.msra.mxu0 %v16466_v23  ;;  %14345 = vmatprep.subr.bf16.mxu1 %v14344_v28  ;;  %v1271_v16 = vld [vmem:[%s19945_s1 + $0x48] sm:$0xff]  ;;  %v16800_v54 = vld [vmem:[#allocation2 + $0x138] sm:$0x3] }
  0x92   : > { %14473 = vmatprep.subr.bf16.mxu0 %v16482_v29  ;;  %v16598_v37 = vsel %vm1438_vm0, %v1460_v20, %v1462_v22  ;;  %v16615_v47 = vsel %vm1438_vm0, %v1462_v22, %v1464_v33  ;;  %v16667_v17 = vsel %vm1438_vm0, %v1471_v53, %v1473_v0  ;;  %v16671_v20 = vsel %vm1438_vm0, %v1475_v2, %v1476_v4  ;;  %v16679_v33 = vld [vmem:[#allocation2 + $0xd0] sm:$0xff] }
  0x93   : > { %20497 = vst [vmem:[#allocation23_spill] sm:$0xff] %v16598_v37  ;;  %20498 = vst [vmem:[#allocation24_spill] sm:$0xff] %v16615_v47 }
  0x94   : > { %14347 = vmatpush3.bf16.msra.mxu1 %v14344_v28  ;;  %v10940_v28 = vld [vmem:[%s19945_s1 + $0x2b0] sm:$0xff]  ;;  %20502 = vst [vmem:[#allocation28_spill] sm:$0xff] %v16667_v17  ;;  %20503 = vst [vmem:[#allocation29_spill] sm:$0xff] %v16671_v20 }
  0x95   : > { %14475 = vmatpush3.bf16.msra.mxu0 %v16482_v29  ;;  %14349 = vmatprep.subr.bf16.mxu1 %v14348_v34  ;;  %v14492_v41 = vpack.c.bf16 %v10941_v30, %v10940_v28  ;;  %v16676_v28 = vld [vmem:[#allocation2 + $0xc8] sm:$0xff]  ;;  %v14504_v30 = vpack.c.bf16 %v10947_v13, %v10946_v12  ;;  %v16726_v13 = vld [vmem:[#allocation2 + $0xf0] sm:$0xff]  ;;  %v16770_v29 = vld [vmem:[#allocation2 + $0x120] sm:$0xff] }
  0x96   : > { %14477 = vmatprep.subr.bf16.mxu0 %v16498_v36  ;;  %v1503_v3 = vrot.slane %v16770_v29, 1 }
  0x98   : > { %14351 = vmatpush3.bf16.msra.mxu1 %v14348_v34  ;;  %v1268_v34 = vld [vmem:[%s19945_s1 + $0x30] sm:$0xff] }
  0x99   : > { %14479 = vmatpush3.bf16.msra.mxu0 %v16498_v36  ;;  %14353 = vmatprep.subr.bf16.mxu1 %v14352_v45  ;;  %v14364_v46 = vpack.c.bf16 %v1269_v35, %v1268_v34  ;;  %v10948_v34 = vld [vmem:[%s19945_s1 + $0x2f0] sm:$0xff]  ;;  %v10949_v35 = vld [vmem:[%s19945_s1 + $0x2f8] sm:$0xff] }
  0x9a   : > { %14481 = vmatprep.subr.bf16.mxu0 %v14480_v48  ;;  %v16768_v36 = vld [vmem:[#allocation2 + $0x118] sm:$0xff] }
  0x9b   : > { %12337 = vmatmul.mubr.f32.vlgmr.msra.gmra.mrb[0].mxu1 %v1443_v58  ;;  %v1502_v15 = vrot.slane %v16768_v36, 1 }
  0x9c   : > { %13233 = vmatmul.mubr.f32.vlgmr.msra.gmra.mrb[0].mxu0 %v1452_v63  ;;  %14355 = vmatpush3.bf16.msra.mxu1 %v14352_v45  ;;  %v10943_v45 = vld [vmem:[%s19945_s1 + $0x2c8] sm:$0xff] }
  0x9d   : > { %14483 = vmatpush3.bf16.msra.mxu0 %v14480_v48  ;;  %12339 = vmatprep.mubr.f32.mxu1 %v1445_v1  ;;  %v1469_v48 = vrot.slane %v16602_v40, 1  ;;  %v14496_v58 = vpack.c.bf16 %v10943_v45, %v10942_v43  ;;  %v1484_v43 = vrot.slane %v16676_v28, 1  ;;  %v1485_v45 = vrot.slane %v16679_v33, 1 }
  0x9e   : > { %13235 = vmatprep.mubr.f32.mxu0 %v1454_v7  ;;  %14485 = vmatprep.subr.bf16.mxu0 %v14484_v6  ;;  %v16797_v59 = vsel %vm1438_vm0, %v1502_v15, %v1503_v3  ;;  %v1509_v15 = vrot.slane %v16800_v54, 1 }
  0x9f   : > { %12340 = vmatmul.mubr.f32.gmra.mrb[2].mxu1 %v1447_v14  ;;  %14357 = vmatprep.subr.bf16.mxu1 %v14356_v11  ;;  %v16642_v1 = vsel %vm1438_vm0, %v1469_v48, %v1471_v53  ;;  %v1270_v14 = vld [vmem:[%s19945_s1 + $0x40] sm:$0xff]  ;;  %v16718_v2 = vsel %vm1438_vm0, %v1484_v43, %v1485_v45  ;;  %v1273_v43 = vld [vmem:[%s19945_s1 + $0x58] sm:$0xff]  ;;  %20515 = vst [vmem:[#allocation41_spill] sm:$0xff] %v16797_v59 }
  0xa0   : > { %13236 = vmatmul.mubr.f32.gmra.mrb[2].mxu0 %v1456_v18  ;;  %12342 = vmatprep.mubr.f32.mxu1 %v16455_v19  ;;  %v1466_v19 = vrot.slane %v16575_v25, 1  ;;  %20501 = vst [vmem:[#allocation27_spill] sm:$0xff] %v16642_v1  ;;  %v16702_v53 = vld [vmem:[#allocation2 + $0xe0] sm:$0xff]  ;;  %20507 = vst [vmem:[#allocation33_spill] sm:$0xff] %v16718_v2 }
  0xa1   : > { %13238 = vmatprep.mubr.f32.mxu0 %v16570_v21  ;;  %14487 = vmatpush3.bf16.msra.mxu0 %v14484_v6  ;;  %v16646_v6 = vld [vmem:[#allocation2 + $0xb0] sm:$0xff] }
  0xa2   : > { %14489 = vmatprep.subr.bf16.mxu0 %v14488_v26  ;;  %14359 = vmatpush3.bf16.msra.mxu1 %v14356_v11  ;;  %v16619_v50 = vsel %vm1438_vm0, %v1466_v19, %v1467_v38  ;;  %v14500_v11 = vpack.c.bf16 %v10945_v62, %v10944_v61  ;;  %v10951_v61 = vld [vmem:[%s19945_s1 + $0x308] sm:$0xff] }
  0xa3   : > { %12343 = vmatmul.mubr.f32.gmra.mrb[4].mxu1 %v1452_v63  ;;  %14361 = vmatprep.subr.bf16.mxu1 %v14360_v31  ;;  %20499 = vst [vmem:[#allocation25_spill] sm:$0xff] %v16619_v50  ;;  %v16638_v63 = vsel %vm1438_vm0, %v1467_v38, %v1469_v48  ;;  %v14508_v48 = vpack.c.bf16 %v10949_v35, %v10948_v34  ;;  %v16742_v34 = vld [vmem:[#allocation2 + $0x100] sm:$0xff]  ;;  %v16746_v35 = vld [vmem:[#allocation2 + $0x108] sm:$0xff] }
  0xa4   : > { %13239 = vmatmul.mubr.f32.gmra.mrb[4].mxu0 %v16588_v32  ;;  %12345 = vmatprep.mubr.f32.mxu1 %v1454_v7  ;;  %20500 = vst [vmem:[#allocation26_spill] sm:$0xff] %v16638_v63  ;;  %v16648_v7 = vld [vmem:[#allocation2 + $0xb8] sm:$0xff] }
  0xa5   : > { %13241 = vmatprep.mubr.f32.mxu0 %v16598_v37  ;;  %14491 = vmatpush3.bf16.msra.mxu0 %v14488_v26  ;;  %v1480_v22 = vrot.slane %v16648_v7, 1  ;;  %v16674_v26 = vld [vmem:[#allocation2 + $0xc0] sm:$0x3] }
  0xa6   : > { %14493 = vmatprep.subr.bf16.mxu0 %v14492_v41  ;;  %14363 = vmatpush3.bf16.msra.mxu1 %v14360_v31  ;;  %v14368_v31 = vpack.c.bf16 %v1271_v16, %v1270_v14  ;;  %v1482_v38 = vrot.slane %v16674_v26, 1  ;;  %v16728_v14 = vld [vmem:[#allocation2 + $0xf8] sm:$0xff] }
  0xa7   : > { %12346 = vmatmul.mubr.f32.gmra.mrb[6].mxu1 %v1456_v18  ;;  %14365 = vmatprep.subr.bf16.mxu1 %v14364_v46  ;;  %v1478_v18 = vrot.slane %v16646_v6, 1 }
  0xa8   : > { %13242 = vmatmul.mubr.f32.gmra.mrb[6].mxu0 %v16615_v47  ;;  %12348 = vmatprep.mubr.f32.mxu1 %v16570_v21  ;;  %v16714_v62 = vsel %vm1438_vm0, %v1480_v22, %v1482_v38  ;;  %v1272_v38 = vld [vmem:[%s19945_s1 + $0x50] sm:$0xff]  ;;  %v16892_v21 = vld [vmem:[#allocation2 + $0x1a8] sm:$0xff] }
  0xa9   : > { %13244 = vmatprep.mubr.f32.mxu0 %v16619_v50  ;;  %14495 = vmatpush3.bf16.msra.mxu0 %v14492_v41  ;;  %v16691_v19 = vsel %vm1438_vm0, %v1476_v4, %v1478_v18  ;;  %v16695_v41 = vsel %vm1438_vm0, %v1478_v18, %v1480_v22  ;;  %20506 = vst [vmem:[#allocation32_spill] sm:$0xff] %v16714_v62  ;;  %v1489_v4 = vrot.slane %v16702_v53, 1  ;;  %20532 = vst [vmem:[#allocation58_spill] sm:$0xff] %v16892_v21 }
  0xaa   : > { %14497 = vmatprep.subr.bf16.mxu0 %v14496_v58  ;;  %14367 = vmatpush3.bf16.msra.mxu1 %v14364_v46  ;;  %20504 = vst [vmem:[#allocation30_spill] sm:$0xff] %v16691_v19  ;;  %20505 = vst [vmem:[#allocation31_spill] sm:$0xff] %v16695_v41  ;;  %v16699_v46 = vld [vmem:[#allocation2 + $0xd8] sm:$0xff]  ;;  %v14372_v23 = vpack.c.bf16 %v1273_v43, %v1272_v38  ;;  %v16784_v38 = vld [vmem:[#allocation2 + $0x128] sm:$0xff] }
  0xab   : > { %12349 = vmatmul.mubr.f32.gmra.mrb[8].mxu1 %v16588_v32  ;;  %14369 = vmatprep.subr.bf16.mxu1 %v14368_v31  ;;  %v1487_v0 = vrot.slane %v16699_v46, 1  ;;  %v16787_v43 = vld [vmem:[#allocation2 + $0x130] sm:$0xff]  ;;  %v16889_v32 = vld [vmem:[#allocation2 + $0x1a0] sm:$0xff] }
  0xac   : > { %13245 = vmatmul.mubr.f32.gmra.mrb[8].mxu0 %v16638_v63  ;;  %12351 = vmatprep.mubr.f32.mxu1 %v16598_v37  ;;  %v16875_v37 = vld [vmem:[#allocation2 + $0x198] sm:$0xff]  ;;  %20531 = vst [vmem:[#allocation57_spill] sm:$0xff] %v16889_v32 }
  0xad   : > { %13247 = vmatprep.mubr.f32.mxu0 %v16642_v1  ;;  %14499 = vmatpush3.bf16.msra.mxu0 %v14496_v58  ;;  %v10950_v58 = vld [vmem:[%s19945_s1 + $0x300] sm:$0xff]  ;;  %v16734_v16 = vsel %vm1438_vm0, %v1485_v45, %v1487_v0  ;;  %v16738_v22 = vsel %vm1438_vm0, %v1487_v0, %v1489_v4  ;;  %v16765_v0 = vld [vmem:[#allocation2 + $0x110] sm:$0x3]  ;;  %20528 = vst [vmem:[#allocation54_spill] sm:$0xff] %v16875_v37 }
  0xae   : > { %14501 = vmatprep.subr.bf16.mxu0 %v14500_v11  ;;  %v16723_v12 = vpack.c.bf16 %v10951_v61, %v10950_v58  ;;  %14371 = vmatpush3.bf16.msra.mxu1 %v14368_v31  ;;  %20508 = vst [vmem:[#allocation34_spill] sm:$0xff] %v16734_v16  ;;  %20509 = vst [vmem:[#allocation35_spill] sm:$0xff] %v16738_v22  ;;  %v1494_v31 = vrot.slane %v16728_v14, 1  ;;  %v1498_v61 = vrot.slane %v16746_v35, 1 }
  0xaf   : > { %12352 = vmatmul.mubr.f32.gmra.mrb[10].mxu1 %v16615_v47  ;;  %14373 = vmatprep.subr.bf16.mxu1 %v14372_v23  ;;  %v16870_v47 = vld [vmem:[#allocation2 + $0x188] sm:$0x3] }
  0xb0   : > { %13248 = vmatmul.mubr.f32.gmra.mrb[10].mxu0 %v16667_v17  ;;  %12354 = vmatprep.mubr.f32.mxu1 %v16619_v50  ;;  %20526 = vst [vmem:[#allocation52_spill] sm:$0xff] %v16870_v47 }
  0xb1   : > { %13250 = vmatprep.mubr.f32.mxu0 %v16671_v20  ;;  %14503 = vmatpush3.bf16.msra.mxu0 %v14500_v11  ;;  %v16721_v11 = vld [vmem:[#allocation2 + $0xe8] sm:$0x3] }
  0xb2   : > { %14505 = vmatprep.subr.bf16.mxu0 %v14504_v30  ;;  %v1491_v18 = vrot.slane %v16721_v11, 1  ;;  %14375 = vmatpush3.bf16.msra.mxu1 %v14372_v23  ;;  %v1507_v23 = vrot.slane %v16787_v43, 1 }
  0xb3   : > { %12355 = vmatmul.mubr.f32.gmra.mrb[12].mxu1 %v16638_v63  ;;  %v16857_v63 = vld [vmem:[#allocation2 + $0x180] sm:$0xff] }
  0xb4   : > { %13251 = vmatmul.mubr.f32.gmra.mrb[12].mxu0 %v16691_v19  ;;  %12357 = vmatprep.mubr.f32.mxu1 %v16642_v1  ;;  %v16758_v45 = vsel %vm1438_vm0, %v1489_v4, %v1491_v18  ;;  %v1500_v18 = vrot.slane %v16765_v0, 1  ;;  %v16854_v1 = vld [vmem:[#allocation2 + $0x178] sm:$0xff]  ;;  %20523 = vst [vmem:[#allocation49_spill] sm:$0xff] %v16857_v63  ;;  %v1525_v50 = vrot.slane %v16857_v63, 1 }
  0xb5   : > { %13253 = vmatprep.mubr.f32.mxu0 %v16695_v41  ;;  %14507 = vmatpush3.bf16.msra.mxu0 %v14504_v30  ;;  %v1493_v30 = vrot.slane %v16726_v13, 1  ;;  %20510 = vst [vmem:[#allocation36_spill] sm:$0xff] %v16758_v45  ;;  %20522 = vst [vmem:[#allocation48_spill] sm:$0xff] %v16854_v1  ;;  %v16914_v63 = vld [vmem:[#allocation2 + $0x1b8] sm:$0xff] }
  0xb6   : > { %14509 = vmatprep.subr.bf16.mxu0 %v14508_v48  ;;  %20536 = vst [vmem:[#allocation62_spill] sm:$0xff] %v16914_v63 }
  0xb7   : > { %12358 = vmatmul.mubr.f32.gmra.mrb[14].mxu1 %v16667_v17  ;;  %v16762_v58 = vsel %vm1438_vm0, %v1493_v30, %v1494_v31  ;;  %v16840_v17 = vld [vmem:[#allocation2 + $0x170] sm:$0xff] }
  0xb8   : > { %13254 = vmatmul.mubr.f32.gmra.mrb[14].mxu0 %v16714_v62  ;;  %12360 = vmatprep.mubr.f32.mxu1 %v16671_v20  ;;  %20511 = vst [vmem:[#allocation37_spill] sm:$0xff] %v16762_v58  ;;  %v16835_v20 = vld [vmem:[#allocation2 + $0x160] sm:$0x3] }
  0xb9   : > { %13256 = vmatprep.mubr.f32.mxu0 %v16718_v2  ;;  %14511 = vmatpush3.bf16.msra.mxu0 %v14508_v48  ;;  %v1496_v48 = vrot.slane %v16742_v34, 1 }
  0xba   : > { %14513 = vmatprep.subr.bf16.mxu0 %v16723_v12 }
  0xbb   : > { %12361 = vmatmul.mubr.f32.gmra.mrb[16].mxu1 %v16691_v19  ;;  %v16776_v4 = vsel %vm1438_vm0, %v1494_v31, %v1496_v48  ;;  %v16780_v30 = vsel %vm1438_vm0, %v1496_v48, %v1498_v61  ;;  %v16793_v31 = vsel %vm1438_vm0, %v1498_v61, %v1500_v18  ;;  %v1505_v48 = vrot.slane %v16784_v38, 1 }
  0xbc   : > { %13257 = vmatmul.mubr.f32.gmra.mrb[16].mxu0 %v16734_v16  ;;  %12363 = vmatprep.mubr.f32.mxu1 %v16695_v41  ;;  %20512 = vst [vmem:[#allocation38_spill] sm:$0xff] %v16776_v4  ;;  %20513 = vst [vmem:[#allocation39_spill] sm:$0xff] %v16780_v30  ;;  %v16822_v41 = vld [vmem:[#allocation2 + $0x158] sm:$0xff] }
  0xbd   : > { %13259 = vmatprep.mubr.f32.mxu0 %v16738_v22  ;;  %20514 = vst [vmem:[#allocation40_spill] sm:$0xff] %v16793_v31  ;;  %v16811_v61 = vsel %vm1438_vm0, %v1503_v3, %v1505_v48  ;;  %v16815_v18 = vsel %vm1438_vm0, %v1505_v48, %v1507_v23  ;;  %v16828_v3 = vsel %vm1438_vm0, %v1507_v23, %v1509_v15  ;;  %v1516_v19 = vrot.slane %v16822_v41, 1 }
  0xbe   : > { %20516 = vst [vmem:[#allocation42_spill] sm:$0xff] %v16811_v61  ;;  %20517 = vst [vmem:[#allocation43_spill] sm:$0xff] %v16815_v18 }
  0xbf   : > { %12364 = vmatmul.mubr.f32.gmra.mrb[18].mxu1 %v16714_v62  ;;  %v16819_v62 = vld [vmem:[#allocation2 + $0x150] sm:$0xff]  ;;  %20518 = vst [vmem:[#allocation44_spill] sm:$0xff] %v16828_v3 }
  0xc0   : > { %13260 = vmatmul.mubr.f32.gmra.mrb[18].mxu0 %v16758_v45  ;;  %12366 = vmatprep.mubr.f32.mxu1 %v16718_v2  ;;  %v16805_v2 = vld [vmem:[#allocation2 + $0x148] sm:$0xff]  ;;  %v1514_v48 = vrot.slane %v16819_v62, 1 }
  0xc1   : > { %13262 = vmatprep.mubr.f32.mxu0 %v16762_v58 }
  0xc2   : > { %v16850_v15 = vsel %vm1438_vm0, %v1514_v48, %v1516_v19 }
  0xc3   : > { %12367 = vmatmul.mubr.f32.gmra.mrb[20].mxu1 %v16734_v16  ;;  %v16803_v16 = vld [vmem:[#allocation2 + $0x140] sm:$0xff]  ;;  %20521 = vst [vmem:[#allocation47_spill] sm:$0xff] %v16850_v15 }
  0xc4   : > { %13263 = vmatmul.mubr.f32.gmra.mrb[20].mxu0 %v16776_v4  ;;  %12369 = vmatprep.mubr.f32.mxu1 %v16738_v22  ;;  %v1512_v22 = vrot.slane %v16805_v2, 1 }
  0xc5   : > { %13265 = vmatprep.mubr.f32.mxu0 %v16780_v30 }
  0xc6   : > { %v16846_v23 = vsel %vm1438_vm0, %v1512_v22, %v1514_v48  ;;  %v1523_v48 = vrot.slane %v16854_v1, 1  ;;  %v1168_v1 = vld [vmem:[#allocation2 + $0x260] sm:$0xff] }
  0xc7   : > { %12370 = vmatmul.mubr.f32.gmra.mrb[22].mxu1 %v16758_v45  ;;  %v1511_v45 = vrot.slane %v16803_v16, 1  ;;  %20520 = vst [vmem:[#allocation46_spill] sm:$0xff] %v16846_v23 }
  0xc8   : > { %13266 = vmatmul.mubr.f32.gmra.mrb[22].mxu0 %v16793_v31  ;;  %12372 = vmatprep.mubr.f32.mxu1 %v16762_v58 }
  0xc9   : > { %13268 = vmatprep.mubr.f32.mxu0 %v16797_v59  ;;  %v16832_v58 = vsel %vm1438_vm0, %v1511_v45, %v1512_v22  ;;  %v1518_v45 = vrot.slane %v16835_v20, 1 }
  0xca   : > { %20519 = vst [vmem:[#allocation45_spill] sm:$0xff] %v16832_v58 }
  0xcb   : > { %12373 = vmatmul.mubr.f32.gmra.mrb[24].mxu1 %v16776_v4  ;;  %v16838_v4 = vld [vmem:[#allocation2 + $0x168] sm:$0xff]  ;;  %v16863_v22 = vsel %vm1438_vm0, %v1516_v19, %v1518_v45  ;;  %v16885_v45 = vsel %vm1438_vm0, %v1523_v48, %v1525_v50 }
  0xcc   : > { %13269 = vmatmul.mubr.f32.gmra.mrb[24].mxu0 %v16811_v61  ;;  %12375 = vmatprep.mubr.f32.mxu1 %v16780_v30  ;;  %v1521_v30 = vrot.slane %v16840_v17, 1  ;;  %20524 = vst [vmem:[#allocation50_spill] sm:$0xff] %v16863_v22  ;;  %20530 = vst [vmem:[#allocation56_spill] sm:$0xff] %v16885_v45 }
  0xcd   : > { %13271 = vmatprep.mubr.f32.mxu0 %v16815_v18 }
  0xce   : > { %v16881_v19 = vsel %vm1438_vm0, %v1521_v30, %v1523_v48 }
  0xcf   : > { %12376 = vmatmul.mubr.f32.gmra.mrb[26].mxu1 %v16793_v31  ;;  %v1520_v31 = vrot.slane %v16838_v4, 1  ;;  %20529 = vst [vmem:[#allocation55_spill] sm:$0xff] %v16881_v19 }
  0xd0   : > { %13272 = vmatmul.mubr.f32.gmra.mrb[26].mxu0 %v16828_v3  ;;  %12378 = vmatprep.mubr.f32.mxu1 %v16797_v59 }
  0xd1   : > { %13274 = vmatprep.mubr.f32.mxu0 %v16832_v58  ;;  %v16867_v59 = vsel %vm1438_vm0, %v1520_v31, %v1521_v30  ;;  %v1527_v31 = vrot.slane %v16870_v47, 1  ;;  %v1274_v30 = vld [vmem:[%s19945_s1 + $0x60] sm:$0xff]  ;;  %v16911_v47 = vld [vmem:[#allocation2 + $0x1b0] sm:$0x3] }
  0xd2   : > { %20525 = vst [vmem:[#allocation51_spill] sm:$0xff] %v16867_v59  ;;  %20535 = vst [vmem:[#allocation61_spill] sm:$0xff] %v16911_v47 }
  0xd3   : > { %12379 = vmatmul.mubr.f32.gmra.mrb[28].mxu1 %v16811_v61  ;;  %v16873_v61 = vld [vmem:[#allocation2 + $0x190] sm:$0xff]  ;;  %v16904_v49 = vsel %vm1438_vm0, %v1525_v50, %v1527_v31 }
  0xd4   : > { %13275 = vmatmul.mubr.f32.gmra.mrb[28].mxu0 %v16846_v23  ;;  %12381 = vmatprep.mubr.f32.mxu1 %v16815_v18  ;;  %20527 = vst [vmem:[#allocation53_spill] sm:$0xff] %v16873_v61  ;;  %v1530_v18 = vrot.slane %v16875_v37, 1  ;;  %20533 = vst [vmem:[#allocation59_spill] sm:$0xff] %v16904_v49 }
  0xd5   : > { %13277 = vmatprep.mubr.f32.mxu0 %v16850_v15 }
  0xd7   : > { %12382 = vmatmul.mubr.f32.gmra.mrb[30].mxu1 %v16828_v3  ;;  %v1529_v3 = vrot.slane %v16873_v61, 1  ;;  %v1534_v61 = vrot.slane %v16892_v21, 1  ;;  %v1166_v21 = vld [vmem:[#allocation2 + $0x250] sm:$0x3] }
  0xd8   : > { %13278 = vmatmul.mubr.f32.gmra.mrb[30].mxu0 %v16863_v22  ;;  %12384 = vmatprep.mubr.f32.mxu1 %v16832_v58  ;;  %v1275_v58 = vld [vmem:[%s19945_s1 + $0x68] sm:$0xff] }
  0xd9   : > { %13280 = vmatprep.mubr.f32.mxu0 %v16867_v59  ;;  %v14376_v48 = vpack.c.bf16 %v1275_v58, %v1274_v30  ;;  %v16908_v37 = vsel %vm1438_vm0, %v1529_v3, %v1530_v18  ;;  %v16916_v58 = vld [vmem:[#allocation2 + $0x1c0] sm:$0xff]  ;;  %v1536_v3 = vrot.slane %v16911_v47, 1  ;;  %v1538_v30 = vrot.slane %v16914_v63, 1  ;;  %v16946_v63 = vld [vmem:[#allocation2 + $0x1d8] sm:$0x3]  ;;  %v16951_v47 = vld [vmem:[#allocation2 + $0x1e8] sm:$0xff] }
  0xda   : > { %20534 = vst [vmem:[#allocation60_spill] sm:$0xff] %v16908_v37  ;;  %20537 = vst [vmem:[#allocation63_spill] sm:$0xff] %v16916_v58 }
  0xdb   : > { %12385 = vmatmul.mubr.f32.gmra.mrb[32].mxu1 %v16846_v23  ;;  %v1532_v23 = vrot.slane %v16889_v32, 1  ;;  %14377 = vmatprep.subr.bf16.mxu1 %v14376_v48  ;;  %20544 = vst [vmem:[#allocation70_spill] sm:$0xff] %v16946_v63  ;;  %20546 = vst [vmem:[#allocation72_spill] sm:$0xff] %v16951_v47  ;;  %v1167_v32 = vld [vmem:[#allocation2 + $0x258] sm:$0xff] }
  0xdc   : > { %13281 = vmatmul.mubr.f32.gmra.mrb[32].mxu0 %v16881_v19  ;;  %12387 = vmatprep.mubr.f32.mxu1 %v16850_v15  ;;  %v16930_v15 = vld [vmem:[#allocation2 + $0x1c8] sm:$0xff] }
  0xdd   : > { %13283 = vmatprep.mubr.f32.mxu0 %v16885_v45  ;;  %v16922_v50 = vsel %vm1438_vm0, %v1530_v18, %v1532_v23  ;;  %14379 = vmatpush3.bf16.msra.mxu1 %v14376_v48  ;;  %v16926_v31 = vsel %vm1438_vm0, %v1532_v23, %v1534_v61  ;;  %20540 = vst [vmem:[#allocation66_spill] sm:$0xff] %v16930_v15  ;;  %v1541_v23 = vrot.slane %v16930_v15, 1  ;;  %v16968_v15 = vld [vmem:[#allocation2 + $0x1f8] sm:$0xff] }
  0xde   : > { %20538 = vst [vmem:[#allocation64_spill] sm:$0xff] %v16922_v50  ;;  %20539 = vst [vmem:[#allocation65_spill] sm:$0xff] %v16926_v31  ;;  %v16939_v18 = vsel %vm1438_vm0, %v1534_v61, %v1536_v3  ;;  %v1545_v3 = vrot.slane %v16946_v63, 1  ;;  %v16986_v63 = vld [vmem:[#allocation2 + $0x210] sm:$0xff] }
  0xdf   : > { %12388 = vmatmul.mubr.f32.gmra.mrb[34].mxu1 %v16863_v22  ;;  %v1539_v22 = vrot.slane %v16916_v58, 1  ;;  %20542 = vst [vmem:[#allocation68_spill] sm:$0xff] %v16939_v18  ;;  %20550 = vst [vmem:[#allocation76_spill] sm:$0xff] %v16968_v15 }
  0xe0   : > { %13284 = vmatmul.mubr.f32.gmra.mrb[34].mxu0 %v16904_v49  ;;  %12390 = vmatprep.mubr.f32.mxu1 %v16867_v59  ;;  %v16933_v59 = vld [vmem:[#allocation2 + $0x1d0] sm:$0xff]  ;;  %20555 = vst [vmem:[#allocation81_spill] sm:$0xff] %v16986_v63 }
  0xe1   : > { %13286 = vmatprep.mubr.f32.mxu0 %v16908_v37  ;;  %20541 = vst [vmem:[#allocation67_spill] sm:$0xff] %v16933_v59  ;;  %v16943_v48 = vsel %vm1438_vm0, %v1538_v30, %v1539_v22  ;;  %v1543_v58 = vrot.slane %v16933_v59, 1  ;;  %v16957_v61 = vsel %vm1438_vm0, %v1539_v22, %v1541_v23  ;;  %v16965_v59 = vld [vmem:[#allocation2 + $0x1f0] sm:$0xff] }
  0xe2   : > { %20543 = vst [vmem:[#allocation69_spill] sm:$0xff] %v16943_v48  ;;  %20547 = vst [vmem:[#allocation73_spill] sm:$0xff] %v16957_v61 }
  0xe3   : > { %12391 = vmatmul.mubr.f32.gmra.mrb[36].mxu1 %v16881_v19  ;;  %v16949_v19 = vld [vmem:[#allocation2 + $0x1e0] sm:$0xff]  ;;  %v16961_v30 = vsel %vm1438_vm0, %v1541_v23, %v1543_v58  ;;  %20549 = vst [vmem:[#allocation75_spill] sm:$0xff] %v16965_v59  ;;  %v16974_v22 = vsel %vm1438_vm0, %v1543_v58, %v1545_v3  ;;  %v1550_v23 = vrot.slane %v16965_v59, 1 }
  0xe4   : > { %13287 = vmatmul.mubr.f32.gmra.mrb[36].mxu0 %v16922_v50  ;;  %12393 = vmatprep.mubr.f32.mxu1 %v16885_v45  ;;  %20545 = vst [vmem:[#allocation71_spill] sm:$0xff] %v16949_v19  ;;  %20548 = vst [vmem:[#allocation74_spill] sm:$0xff] %v16961_v30  ;;  %v1548_v45 = vrot.slane %v16951_v47, 1  ;;  %v1552_v47 = vrot.slane %v16968_v15, 1  ;;  %v17000_v15 = vld [vmem:[#allocation2 + $0x218] sm:$0xff]  ;;  %v17003_v59 = vld [vmem:[#allocation2 + $0x220] sm:$0xff] }
  0xe5   : > { %13289 = vmatprep.mubr.f32.mxu0 %v16926_v31  ;;  %20551 = vst [vmem:[#allocation77_spill] sm:$0xff] %v16974_v22  ;;  %20558 = vst [vmem:[#allocation84_spill] sm:$0xff] %v17000_v15 }
  0xe6   : > { %v16992_v58 = vsel %vm1438_vm0, %v1548_v45, %v1550_v23  ;;  %v16996_v3 = vsel %vm1438_vm0, %v1550_v23, %v1552_v47  ;;  %20559 = vst [vmem:[#allocation85_spill] sm:$0xff] %v17003_v59  ;;  %v1559_v23 = vrot.slane %v17000_v15, 1  ;;  %v1165_v15 = vld [vmem:[#allocation2 + $0x248] sm:$0xff] }
  0xe7   : > { %12394 = vmatmul.mubr.f32.gmra.mrb[38].mxu1 %v16904_v49  ;;  %v1547_v49 = vrot.slane %v16949_v19, 1  ;;  %v16981_v19 = vld [vmem:[#allocation2 + $0x200] sm:$0x3]  ;;  %20556 = vst [vmem:[#allocation82_spill] sm:$0xff] %v16992_v58  ;;  %20557 = vst [vmem:[#allocation83_spill] sm:$0xff] %v16996_v3 }
  0xe8   : > { %13290 = vmatmul.mubr.f32.gmra.mrb[38].mxu0 %v16939_v18  ;;  %12396 = vmatprep.mubr.f32.mxu1 %v16908_v37  ;;  %20553 = vst [vmem:[#allocation79_spill] sm:$0xff] %v16981_v19 }
  0xe9   : > { %13292 = vmatprep.mubr.f32.mxu0 %v16943_v48  ;;  %v16978_v37 = vsel %vm1438_vm0, %v1547_v49, %v1548_v45  ;;  %v1554_v49 = vrot.slane %v16981_v19, 1  ;;  %v17021_v19 = vld [vmem:[#allocation2 + $0x238] sm:$0xff] }
  0xea   : > { %20552 = vst [vmem:[#allocation78_spill] sm:$0xff] %v16978_v37  ;;  %20564 = vst [vmem:[#allocation90_spill] sm:$0xff] %v17021_v19 }
  0xeb   : > { %12397 = vmatmul.mubr.f32.gmra.mrb[40].mxu1 %v16922_v50  ;;  %v16984_v50 = vld [vmem:[#allocation2 + $0x208] sm:$0xff]  ;;  %v17009_v45 = vsel %vm1438_vm0, %v1552_v47, %v1554_v49 }
  0xec   : > { %13293 = vmatmul.mubr.f32.gmra.mrb[40].mxu0 %v16957_v61  ;;  %12399 = vmatprep.mubr.f32.mxu1 %v16926_v31  ;;  %20554 = vst [vmem:[#allocation80_spill] sm:$0xff] %v16984_v50  ;;  %v1557_v31 = vrot.slane %v16986_v63, 1  ;;  %20560 = vst [vmem:[#allocation86_spill] sm:$0xff] %v17009_v45  ;;  %v1561_v63 = vrot.slane %v17003_v59, 1  ;;  %v17035_v59 = vld [vmem:[#allocation2 + $0x240] sm:$0xff] }
  0xed   : > { %13295 = vmatprep.mubr.f32.mxu0 %v16961_v30 }
  0xee   : > { %v17027_v47 = vsel %vm1438_vm0, %v1557_v31, %v1559_v23  ;;  %v17031_v49 = vsel %vm1438_vm0, %v1559_v23, %v1561_v63 }
  0xef   : > { %12400 = vmatmul.mubr.f32.gmra.mrb[42].mxu1 %v16939_v18  ;;  %v1556_v18 = vrot.slane %v16984_v50, 1  ;;  %v17016_v50 = vld [vmem:[#allocation2 + $0x228] sm:$0x3]  ;;  %20565 = vst [vmem:[#allocation91_spill] sm:$0xff] %v17027_v47  ;;  %20566 = vst [vmem:[#allocation92_spill] sm:$0xff] %v17031_v49 }
  0xf0   : > { %13296 = vmatmul.mubr.f32.gmra.mrb[42].mxu0 %v16974_v22  ;;  %12402 = vmatprep.mubr.f32.mxu1 %v16943_v48  ;;  %20562 = vst [vmem:[#allocation88_spill] sm:$0xff] %v17016_v50 }
  0xf1   : > { %13298 = vmatprep.mubr.f32.mxu0 %v16978_v37  ;;  %v17013_v48 = vsel %vm1438_vm0, %v1556_v18, %v1557_v31  ;;  %v1563_v18 = vrot.slane %v17016_v50, 1  ;;  %v1277_v31 = vld [vmem:[%s19945_s1 + $0x78] sm:$0xff]  ;;  %v1570_v50 = vrot.slane %v1165_v15, 1  ;;  %v1574_v15 = vrot.slane %v1167_v32, 1 }
  0xf2   : > { %20561 = vst [vmem:[#allocation87_spill] sm:$0xff] %v17013_v48  ;;  %v1171_v32 = vld [vmem:[#allocation2 + $0x278] sm:$0x3] }
  0xf3   : > { %12403 = vmatmul.mubr.f32.gmra.mrb[44].mxu1 %v16957_v61  ;;  %v17019_v61 = vld [vmem:[#allocation2 + $0x230] sm:$0xff] }
  0xf4   : > { %13299 = vmatmul.mubr.f32.gmra.mrb[44].mxu0 %v16992_v58  ;;  %12405 = vmatprep.mubr.f32.mxu1 %v16961_v30  ;;  %20563 = vst [vmem:[#allocation89_spill] sm:$0xff] %v17019_v61  ;;  %v1566_v30 = vrot.slane %v17021_v19, 1  ;;  %v17048_v19 = vsel %vm1438_vm0, %v1561_v63, %v1563_v18  ;;  %v1572_v63 = vrot.slane %v1166_v21, 1  ;;  %v1575_v18 = vrot.slane %v1168_v1, 1  ;;  %v1172_v1 = vld [vmem:[#allocation2 + $0x280] sm:$0xff] }
  0xf5   : > { %13301 = vmatprep.mubr.f32.mxu0 %v16996_v3  ;;  %20567 = vst [vmem:[#allocation93_spill] sm:$0xff] %v17048_v19 }
  0xf7   : > { %12406 = vmatmul.mubr.f32.gmra.mrb[46].mxu1 %v16974_v22  ;;  %v1565_v22 = vrot.slane %v17019_v61, 1 }
  0xf8   : > { %13302 = vmatmul.mubr.f32.gmra.mrb[46].mxu0 %v17009_v45  ;;  %12408 = vmatprep.mubr.f32.mxu1 %v16978_v37  ;;  %v1276_v37 = vld [vmem:[%s19945_s1 + $0x70] sm:$0xff] }
  0xf9   : > { %13304 = vmatprep.mubr.f32.mxu0 %v17013_v48  ;;  %v14380_v23 = vpack.c.bf16 %v1277_v31, %v1276_v37  ;;  %v17052_v61 = vsel %vm1438_vm0, %v1565_v22, %v1566_v30  ;;  %v1169_v31 = vld [vmem:[#allocation2 + $0x268] sm:$0xff] }
  0xfa   : > { %20568 = vst [vmem:[#allocation94_spill] sm:$0xff] %v17052_v61  ;;  %v1577_v21 = vrot.slane %v1169_v31, 1  ;;  %v1174_v31 = vld [vmem:[#allocation2 + $0x290] sm:$0xff] }
  0xfb   : > { %12409 = vmatmul.mubr.f32.gmra.mrb[48].mxu1 %v16992_v58  ;;  %v1568_v58 = vrot.slane %v17035_v59, 1  ;;  %14381 = vmatprep.subr.bf16.mxu1 %v14380_v23 }
  0xfc   : > { %13305 = vmatmul.mubr.f32.gmra.mrb[48].mxu0 %v17027_v47  ;;  %12411 = vmatprep.mubr.f32.mxu1 %v16996_v3  ;;  %v17175_v3 = vld [vmem:[#allocation2 + $0x2c8] sm:$0x3] }
  0xfd   : > { %13307 = vmatprep.mubr.f32.mxu0 %v17031_v49  ;;  %v17059_v37 = vsel %vm1438_vm0, %v1566_v30, %v1568_v58  ;;  %14383 = vmatpush3.bf16.msra.mxu1 %v14380_v23  ;;  %v17062_v22 = vsel %vm1438_vm0, %v1568_v58, %v1570_v50  ;;  %v17069_v30 = vsel %vm1438_vm0, %v1570_v50, %v1572_v63  ;;  %v1581_v50 = vrot.slane %v1171_v32, 1 }
  0xfe   : > { %20569 = vst [vmem:[#allocation95_spill] sm:$0xff] %v17059_v37  ;;  %20570 = vst [vmem:[#allocation96_spill] sm:$0xff] %v17062_v22  ;;  %v17072_v23 = vsel %vm1438_vm0, %v1574_v15, %v1575_v18  ;;  %v1583_v15 = vrot.slane %v1172_v1, 1  ;;  %v1176_v1 = vld [vmem:[#allocation2 + $0x2a0] sm:$0x3] }
  0xff   : > { %12412 = vmatmul.mubr.f32.gmra.mrb[50].mxu1 %v17009_v45  ;;  %v1170_v45 = vld [vmem:[#allocation2 + $0x270] sm:$0xff]  ;;  %20571 = vst [vmem:[#allocation97_spill] sm:$0xff] %v17069_v30  ;;  %20572 = vst [vmem:[#allocation98_spill] sm:$0xff] %v17072_v23 }
 0x100   : > { %13308 = vmatmul.mubr.f32.gmra.mrb[50].mxu0 %v17048_v19  ;;  %12414 = vmatprep.mubr.f32.mxu1 %v17013_v48  ;;  %v1579_v58 = vrot.slane %v1170_v45, 1 }
 0x101   : > { %13310 = vmatprep.mubr.f32.mxu0 %v17052_v61 }
 0x102   : > { %v17082_v63 = vsel %vm1438_vm0, %v1577_v21, %v1579_v58 }
 0x103   : > { %12415 = vmatmul.mubr.f32.gmra.mrb[52].mxu1 %v17027_v47  ;;  %v1173_v47 = vld [vmem:[#allocation2 + $0x288] sm:$0xff]  ;;  %20574 = vst [vmem:[#allocation100_spill] sm:$0xff] %v17082_v63 }
 0x104   : > { %13311 = vmatmul.mubr.f32.gmra.mrb[52].mxu0 %v17059_v37  ;;  %12417 = vmatprep.mubr.f32.mxu1 %v17031_v49  ;;  %v17079_v49 = vsel %vm1438_vm0, %v1575_v18, %v1577_v21  ;;  %v1584_v45 = vrot.slane %v1173_v47, 1  ;;  %v1586_v18 = vrot.slane %v1174_v31, 1 }
 0x105   : > { %13313 = vmatprep.mubr.f32.mxu0 %v17062_v22  ;;  %20573 = vst [vmem:[#allocation99_spill] sm:$0xff] %v17079_v49 }
 0x106   : > { %v17092_v32 = vsel %vm1438_vm0, %v1583_v15, %v1584_v45  ;;  %v17099_v47 = vsel %vm1438_vm0, %v1584_v45, %v1586_v18  ;;  %v3295_v45 = vrot.slane %v16506_v39, 2 }
 0x107   : > { %12418 = vmatmul.mubr.f32.gmra.mrb[54].mxu1 %v17048_v19  ;;  %v1175_v19 = vld [vmem:[#allocation2 + $0x298] sm:$0xff]  ;;  %20576 = vst [vmem:[#allocation102_spill] sm:$0xff] %v17092_v32  ;;  %20577 = vst [vmem:[#allocation103_spill] sm:$0xff] %v17099_v47 }
 0x108   : > { %13314 = vmatmul.mubr.f32.gmra.mrb[54].mxu0 %v17069_v30  ;;  %12420 = vmatprep.mubr.f32.mxu1 %v17052_v61  ;;  %v17089_v61 = vsel %vm1438_vm0, %v1579_v58, %v1581_v50  ;;  %v1588_v21 = vrot.slane %v1175_v19, 1  ;;  %v3292_v50 = vrot.slane %v16432_v9, 2  ;;  %v3293_v19 = vrot.slane %v16434_v10, 2  ;;  %v17118_v10 = vld [vmem:[#allocation2 + $0x2a8] sm:$0xff] }
 0x109   : > { %13316 = vmatprep.mubr.f32.mxu0 %v17072_v23  ;;  %20575 = vst [vmem:[#allocation101_spill] sm:$0xff] %v17089_v61  ;;  %v3297_v9 = vrot.slane %v16514_v44, 2  ;;  %v3299_v44 = vrot.slane %v16519_v51, 2  ;;  %v10954_v51 = vld [vmem:[%s19945_s1 + $0x320] sm:$0xff] }
 0x10a   : > { %v17102_v58 = vsel %vm1438_vm0, %v1586_v18, %v1588_v21  ;;  %v17115_v31 = vsel %vm3282_vm1, %v3292_v50, %v3293_v19  ;;  %v17120_v18 = vld [vmem:[#allocation2 + $0x2b0] sm:$0xff]  ;;  %v17133_v39 = vsel %vm3282_vm1, %v3293_v19, %v3295_v45  ;;  %v10955_v19 = vld [vmem:[%s19945_s1 + $0x328] sm:$0xff] }
 0x10b   : > { %12421 = vmatmul.mubr.f32.gmra.mrb[56].mxu1 %v17059_v37  ;;  %20578 = vst [vmem:[#allocation104_spill] sm:$0xff] %v17102_v58  ;;  %20580 = vst [vmem:[#allocation106_spill] sm:$0xff] %v17115_v31  ;;  %v1593_v50 = vrot.slane %v17120_v18, 1  ;;  %v3304_v37 = vrot.slane %v16549_v5, 2  ;;  %v10956_v5 = vld [vmem:[%s19945_s1 + $0x330] sm:$0xff] }
 0x10c   : > { %13317 = vmatmul.mubr.f32.gmra.mrb[56].mxu0 %v17079_v49  ;;  %12423 = vmatprep.mubr.f32.mxu1 %v17062_v22  ;;  %v1590_v22 = vrot.slane %v1176_v1, 1  ;;  %v10952_v1 = vld [vmem:[%s19945_s1 + $0x310] sm:$0xff]  ;;  %20581 = vst [vmem:[#allocation107_spill] sm:$0xff] %v17133_v39 }
 0x10d   : > { %13319 = vmatprep.mubr.f32.mxu0 %v17082_v63 }
 0x10e   : > { %v17111_v15 = vsel %vm1438_vm0, %v1588_v21, %v1590_v22  ;;  %v10953_v22 = vld [vmem:[%s19945_s1 + $0x318] sm:$0xff]  ;;  %v1592_v21 = vrot.slane %v17118_v10, 1 }
 0x10f   : > { %12424 = vmatmul.mubr.f32.gmra.mrb[58].mxu1 %v17069_v30  ;;  %20579 = vst [vmem:[#allocation105_spill] sm:$0xff] %v17111_v15  ;;  %v14516_v30 = vpack.c.bf16 %v10953_v22, %v10952_v1  ;;  %v17168_v22 = vsel %vm3282_vm1, %v3297_v9, %v3299_v44  ;;  %v1599_v44 = vrot.slane %v17175_v3, 1 }
 0x110   : > { %13320 = vmatmul.mubr.f32.gmra.mrb[58].mxu0 %v17089_v61  ;;  %12426 = vmatprep.mubr.f32.mxu1 %v17072_v23  ;;  %v17145_v23 = vld [vmem:[#allocation2 + $0x2c0] sm:$0xff]  ;;  %20583 = vst [vmem:[#allocation109_spill] sm:$0xff] %v17168_v22 }
 0x111   : > { %13322 = vmatprep.mubr.f32.mxu0 %v17092_v32  ;;  %v1597_v48 = vrot.slane %v17145_v23, 1 }
 0x113   : > { %12427 = vmatmul.mubr.f32.gmra.mrb[60].mxu1 %v17079_v49  ;;  %v3301_v49 = vrot.slane %v16521_v52, 2  ;;  %v10887_v52 = vld [vmem:[%s19945_s1 + $0x108] sm:$0xff] }
 0x114   : > { %13323 = vmatmul.mubr.f32.gmra.mrb[60].mxu0 %v17099_v47  ;;  %12429 = vmatprep.mubr.f32.mxu1 %v17082_v63  ;;  %v17141_v63 = vsel %vm3282_vm1, %v3295_v45, %v3297_v9  ;;  %v10886_v45 = vld [vmem:[%s19945_s1 + $0x100] sm:$0xff]  ;;  %v14520_v9 = vpack.c.bf16 %v10955_v19, %v10954_v51 }
 0x115   : > { %13325 = vmatprep.mubr.f32.mxu0 %v17102_v58  ;;  %20582 = vst [vmem:[#allocation108_spill] sm:$0xff] %v17141_v63  ;;  %v17163_v1 = vpack.c.bf16 %v10887_v52, %v10886_v45  ;;  %v3306_v45 = vrot.slane %v16552_v8, 2  ;;  %v17183_v52 = vld [vmem:[#allocation2 + $0x2d8] sm:$0xff] }
 0x117   : > { %12430 = vmatmul.mubr.f32.gmra.mrb[62].mxu1 %v17089_v61  ;;  %v17138_v61 = vld [vmem:[#allocation2 + $0x2b8] sm:$0xff]  ;;  %14385 = vmatprep.subr.bf16.mxu1 %v17163_v1 }
 0x118   : > { %13326 = vmatmul.mubr.f32.gmra.mrb[62].mxu0 %v17111_v15  ;;  %12432 = vmatprep.mubr.f32.mxu1 %v17092_v32  ;;  %v3302_v32 = vrot.slane %v16524_v55, 2  ;;  %v1595_v55 = vrot.slane %v17138_v61, 1 }
 0x119   : > { %13456 = vmatprep.mubr.f32.mxu0 %v17115_v31  ;;  %v17592_v31 = vld [vmem:[#allocation2 + $0x400] sm:$0xff] }
 0x11a   : > { %v17196_v8 = vsel %vm1438_vm0, %v1593_v50, %v1595_v55  ;;  %v17202_v51 = vsel %vm3282_vm1, %v3302_v32, %v3304_v37  ;;  %v17205_v19 = vsel %vm1438_vm0, %v1595_v55, %v1597_v48  ;;  %v10958_v55 = vld [vmem:[%s19945_s1 + $0x340] sm:$0xff] }
 0x11b   : > { %12433 = vmatmul.mubr.f32.gmra.mrb[64].mxu1 %v17099_v47  ;;  %v17171_v47 = vsel %vm1438_vm0, %v1592_v21, %v1593_v50  ;;  %20586 = vst [vmem:[#allocation112_spill] sm:$0xff] %v17196_v8  ;;  %v3308_v21 = vrot.slane %v16573_v24, 2  ;;  %20587 = vst [vmem:[#allocation113_spill] sm:$0xff] %v17202_v51  ;;  %v17212_v50 = vsel %vm3282_vm1, %v3304_v37, %v3306_v45  ;;  %v3310_v24 = vrot.slane %v16575_v25, 2 }
 0x11c   : > { %13457 = vmatmul.mubr.f32.vlgmr.msra.gmra.mrb[0].mxu0 %v17133_v39  ;;  %12435 = vmatprep.mubr.f32.mxu1 %v17102_v58  ;;  %20584 = vst [vmem:[#allocation110_spill] sm:$0xff] %v17171_v47  ;;  %v17178_v58 = vsel %vm3282_vm1, %v3301_v49, %v3302_v32  ;;  %v10957_v49 = vld [vmem:[%s19945_s1 + $0x338] sm:$0xff]  ;;  %20588 = vst [vmem:[#allocation114_spill] sm:$0xff] %v17205_v19  ;;  %v17228_v25 = vsel %vm1438_vm0, %v1597_v48, %v1599_v44  ;;  %v3313_v37 = vrot.slane %v16602_v40, 2  ;;  %v17248_v40 = vld [vmem:[#allocation2 + $0x300] sm:$0xff] }
 0x11d   : > { %14515 = vmatpush3.bf16.msra.mxu0 %v16723_v12  ;;  %13459 = vmatprep.mubr.f32.mxu0 %v17141_v63  ;;  %20585 = vst [vmem:[#allocation111_spill] sm:$0xff] %v17178_v58  ;;  %v17181_v12 = vld [vmem:[#allocation2 + $0x2d0] sm:$0xff]  ;;  %20589 = vst [vmem:[#allocation115_spill] sm:$0xff] %v17212_v50  ;;  %v17216_v63 = vld [vmem:[#allocation2 + $0x2e8] sm:$0xff]  ;;  %v14524_v32 = vpack.c.bf16 %v10957_v49, %v10956_v5  ;;  %v17234_v5 = vsel %vm3282_vm1, %v3306_v45, %v3308_v21  ;;  %v3315_v44 = vrot.slane %v16604_v42, 2 }
 0x11e   : > { %14517 = vmatprep.subr.bf16.mxu0 %v14516_v30  ;;  %20590 = vst [vmem:[#allocation116_spill] sm:$0xff] %v17228_v25  ;;  %20591 = vst [vmem:[#allocation117_spill] sm:$0xff] %v17234_v5 }
 0x11f   : > { %12436 = vmatmul.mubr.f32.gmra.mrb[66].mxu1 %v17111_v15  ;;  %v1601_v15 = vrot.slane %v17181_v12, 1 }
 0x120   : > { %13460 = vmatmul.mubr.f32.gmra.mrb[2].mxu0 %v17168_v22  ;;  %12438 = vmatprep.mubr.f32.mxu1 %v17171_v47  ;;  %v1602_v22 = vrot.slane %v17183_v52, 1  ;;  %v17209_v47 = vld [vmem:[#allocation2 + $0x2e0] sm:$0xff] }
 0x121   : > { %13462 = vmatprep.mubr.f32.mxu0 %v17178_v58  ;;  %14519 = vmatpush3.bf16.msra.mxu0 %v14516_v30  ;;  %v3311_v58 = vrot.slane %v16577_v27, 2  ;;  %v10959_v30 = vld [vmem:[%s19945_s1 + $0x348] sm:$0xff]  ;;  %v1604_v27 = vrot.slane %v17209_v47, 1 }
 0x122   : > { %14521 = vmatprep.subr.bf16.mxu0 %v14520_v9  ;;  %v17237_v49 = vsel %vm1438_vm0, %v1601_v15, %v1602_v22  ;;  %v14528_v45 = vpack.c.bf16 %v10959_v30, %v10958_v55  ;;  %v1611_v30 = vrot.slane %v17248_v40, 1 }
 0x123   : > { %12439 = vmatmul.mubr.f32.gmra.mrb[68].mxu1 %v17196_v8  ;;  %20592 = vst [vmem:[#allocation118_spill] sm:$0xff] %v17237_v49  ;;  %v1606_v8 = vrot.slane %v17216_v63, 1  ;;  %v17243_v48 = vsel %vm3282_vm1, %v3310_v24, %v3311_v58  ;;  %v17254_v15 = vsel %vm1438_vm0, %v1602_v22, %v1604_v27  ;;  %v3317_v24 = vrot.slane %v16622_v56, 2 }
 0x124   : > { %13463 = vmatmul.mubr.f32.gmra.mrb[4].mxu0 %v17202_v51  ;;  %12441 = vmatprep.mubr.f32.mxu1 %v17205_v19  ;;  %v17240_v51 = vld [vmem:[#allocation2 + $0x2f0] sm:$0x3]  ;;  %20593 = vst [vmem:[#allocation119_spill] sm:$0xff] %v17243_v48  ;;  %v17246_v19 = vld [vmem:[#allocation2 + $0x2f8] sm:$0xff]  ;;  %20594 = vst [vmem:[#allocation120_spill] sm:$0xff] %v17254_v15  ;;  %v17270_v22 = vsel %vm3282_vm1, %v3313_v37, %v3315_v44 }
 0x125   : > { %13465 = vmatprep.mubr.f32.mxu0 %v17212_v50  ;;  %14523 = vmatpush3.bf16.msra.mxu0 %v14520_v9  ;;  %v17257_v9 = vsel %vm3282_vm1, %v3311_v58, %v3313_v37  ;;  %v1608_v42 = vrot.slane %v17240_v51, 1  ;;  %v17262_v21 = vsel %vm1438_vm0, %v1604_v27, %v1606_v8  ;;  %v1610_v55 = vrot.slane %v17246_v19, 1  ;;  %20597 = vst [vmem:[#allocation123_spill] sm:$0xff] %v17270_v22  ;;  %v20654_v50 = vld [vmem:[#allocation54_spill] sm:$0xff] }
 0x126   : > { %14525 = vmatprep.subr.bf16.mxu0 %v14524_v32  ;;  %20595 = vst [vmem:[#allocation121_spill] sm:$0xff] %v17257_v9  ;;  %20596 = vst [vmem:[#allocation122_spill] sm:$0xff] %v17262_v21  ;;  %v3319_v58 = vrot.slane %v16624_v57, 2  ;;  %v17285_v57 = vsel %vm3282_vm1, %v3315_v44, %v3317_v24  ;;  %v3322_v27 = vrot.slane %v16646_v6, 2  ;;  %v3374_v39 = vrot.slane %v20654_v50, 2  ;;  %v10963_v50 = vld [vmem:[%s19945_s1 + $0x368] sm:$0xff] }
 0x127   : > { %12442 = vmatmul.mubr.f32.gmra.mrb[70].mxu1 %v17228_v25  ;;  %v3320_v25 = vrot.slane %v16626_v60, 2  ;;  %v17280_v56 = vsel %vm1438_vm0, %v1606_v8, %v1608_v42  ;;  %20599 = vst [vmem:[#allocation125_spill] sm:$0xff] %v17285_v57  ;;  %v17288_v60 = vsel %vm1438_vm0, %v1610_v55, %v1611_v30  ;;  %v3324_v42 = vrot.slane %v16648_v7, 2 }
 0x128   : > { %13466 = vmatmul.mubr.f32.gmra.mrb[6].mxu0 %v17234_v5  ;;  %12444 = vmatprep.mubr.f32.mxu1 %v17237_v49  ;;  %v17267_v49 = vld [vmem:[#allocation2 + $0x308] sm:$0xff]  ;;  %20598 = vst [vmem:[#allocation124_spill] sm:$0xff] %v17280_v56  ;;  %20600 = vst [vmem:[#allocation126_spill] sm:$0xff] %v17288_v60  ;;  %v17410_v5 = vld [vmem:[#allocation2 + $0x378] sm:$0xff] }
 0x129   : > { %13468 = vmatprep.mubr.f32.mxu0 %v17243_v48  ;;  %14527 = vmatpush3.bf16.msra.mxu0 %v14524_v32  ;;  %v17274_v48 = vld [vmem:[#allocation2 + $0x310] sm:$0xff]  ;;  %v1613_v32 = vrot.slane %v17267_v49, 1  ;;  %v17295_v8 = vsel %vm3282_vm1, %v3319_v58, %v3320_v25  ;;  %v17312_v7 = vsel %vm3282_vm1, %v3320_v25, %v3322_v27 }
 0x12a   : > { %14529 = vmatprep.subr.bf16.mxu0 %v14528_v45  ;;  %v1615_v37 = vrot.slane %v17274_v48, 1  ;;  %20601 = vst [vmem:[#allocation127_spill] sm:$0xff] %v17295_v8  ;;  %20603 = vst [vmem:[#allocation129_spill] sm:$0xff] %v17312_v7 }
 0x12b   : > { %12445 = vmatmul.mubr.f32.gmra.mrb[72].mxu1 %v17254_v15  ;;  %v17292_v15 = vld [vmem:[#allocation2 + $0x318] sm:$0x3]  ;;  %v17306_v6 = vsel %vm1438_vm0, %v1611_v30, %v1613_v32  ;;  %v17322_v30 = vsel %vm3282_vm1, %v3322_v27, %v3324_v42  ;;  %v3331_v27 = vrot.slane %v16699_v46, 2  ;;  %v17352_v46 = vld [vmem:[#allocation2 + $0x350] sm:$0xff] }
 0x12c   : > { %13469 = vmatmul.mubr.f32.gmra.mrb[8].mxu0 %v17257_v9  ;;  %12447 = vmatprep.mubr.f32.mxu1 %v17262_v21  ;;  %v17298_v21 = vld [vmem:[#allocation2 + $0x320] sm:$0xff]  ;;  %20602 = vst [vmem:[#allocation128_spill] sm:$0xff] %v17306_v6  ;;  %v1617_v44 = vrot.slane %v17292_v15, 1  ;;  %v17315_v24 = vsel %vm1438_vm0, %v1613_v32, %v1615_v37  ;;  %20605 = vst [vmem:[#allocation131_spill] sm:$0xff] %v17322_v30  ;;  %v17408_v9 = vld [vmem:[#allocation2 + $0x370] sm:$0xff] }
 0x12d   : > { %13471 = vmatprep.mubr.f32.mxu0 %v17270_v22  ;;  %14531 = vmatpush3.bf16.msra.mxu0 %v14528_v45  ;;  %v17300_v22 = vld [vmem:[#allocation2 + $0x328] sm:$0xff]  ;;  %v3326_v45 = vrot.slane %v16674_v26, 2  ;;  %20604 = vst [vmem:[#allocation130_spill] sm:$0xff] %v17315_v24  ;;  %v1619_v55 = vrot.slane %v17298_v21, 1  ;;  %v3329_v26 = vrot.slane %v16679_v33, 2 }
 0x12e   : > { %v1620_v58 = vrot.slane %v17300_v22, 1  ;;  %v17332_v25 = vsel %vm1438_vm0, %v1615_v37, %v1617_v44  ;;  %v3333_v37 = vrot.slane %v16702_v53, 2  ;;  %v17350_v44 = vld [vmem:[#allocation2 + $0x348] sm:$0xff] }
 0x12f   : > { %12448 = vmatmul.mubr.f32.gmra.mrb[74].mxu1 %v17280_v56  ;;  %v3328_v56 = vrot.slane %v16676_v28, 2  ;;  %20606 = vst [vmem:[#allocation132_spill] sm:$0xff] %v17332_v25  ;;  %v17338_v28 = vsel %vm3282_vm1, %v3324_v42, %v3326_v45  ;;  %v17361_v45 = vsel %vm3282_vm1, %v3329_v26, %v3331_v27 }
 0x130   : > { %13472 = vmatmul.mubr.f32.gmra.mrb[10].mxu0 %v17285_v57  ;;  %12450 = vmatprep.mubr.f32.mxu1 %v17288_v60  ;;  %v17319_v60 = vld [vmem:[#allocation2 + $0x330] sm:$0xff]  ;;  %20607 = vst [vmem:[#allocation133_spill] sm:$0xff] %v17338_v28  ;;  %v17341_v33 = vsel %vm1438_vm0, %v1619_v55, %v1620_v58  ;;  %20611 = vst [vmem:[#allocation137_spill] sm:$0xff] %v17361_v45  ;;  %v3335_v55 = vrot.slane %v16721_v11, 2  ;;  %v17378_v57 = vld [vmem:[#allocation2 + $0x360] sm:$0xff] }
 0x131   : > { %13474 = vmatprep.mubr.f32.mxu0 %v17295_v8  ;;  %v17326_v8 = vld [vmem:[#allocation2 + $0x338] sm:$0xff]  ;;  %v1622_v32 = vrot.slane %v17319_v60, 1  ;;  %20608 = vst [vmem:[#allocation134_spill] sm:$0xff] %v17341_v33 }
 0x133   : > { %12451 = vmatmul.mubr.f32.gmra.mrb[76].mxu1 %v17306_v6  ;;  %v1624_v6 = vrot.slane %v17326_v8, 1  ;;  %v17358_v42 = vsel %vm1438_vm0, %v1620_v58, %v1622_v32  ;;  %v17374_v58 = vsel %vm3282_vm1, %v3331_v27, %v3333_v37  ;;  %v3340_v27 = vrot.slane %v16742_v34, 2 }
 0x134   : > { %13475 = vmatmul.mubr.f32.gmra.mrb[12].mxu0 %v17312_v7  ;;  %12453 = vmatprep.mubr.f32.mxu1 %v17315_v24  ;;  %v17344_v7 = vld [vmem:[#allocation2 + $0x340] sm:$0x3]  ;;  %v17347_v24 = vsel %vm3282_vm1, %v3328_v56, %v3329_v26  ;;  %20610 = vst [vmem:[#allocation136_spill] sm:$0xff] %v17358_v42  ;;  %20613 = vst [vmem:[#allocation139_spill] sm:$0xff] %v17374_v58  ;;  %v3337_v26 = vrot.slane %v16726_v13, 2  ;;  %v10960_v13 = vld [vmem:[%s19945_s1 + $0x350] sm:$0xff] }
 0x135   : > { %13477 = vmatprep.mubr.f32.mxu0 %v17322_v30  ;;  %20609 = vst [vmem:[#allocation135_spill] sm:$0xff] %v17347_v24  ;;  %v1626_v56 = vrot.slane %v17344_v7, 1  ;;  %v17366_v53 = vsel %vm1438_vm0, %v1622_v32, %v1624_v6  ;;  %v3338_v30 = vrot.slane %v16728_v14, 2  ;;  %v10961_v14 = vld [vmem:[%s19945_s1 + $0x358] sm:$0xff] }
 0x136   : > { %20612 = vst [vmem:[#allocation138_spill] sm:$0xff] %v17366_v53  ;;  %v14532_v34 = vpack.c.bf16 %v10961_v14, %v10960_v13  ;;  %v1637_v13 = vrot.slane %v17408_v9, 1  ;;  %v1638_v14 = vrot.slane %v17410_v5, 1 }
 0x137   : > { %12454 = vmatmul.mubr.f32.gmra.mrb[78].mxu1 %v17332_v25  ;;  %v1628_v25 = vrot.slane %v17350_v44, 1  ;;  %v17384_v11 = vsel %vm1438_vm0, %v1624_v6, %v1626_v56  ;;  %v1633_v56 = vrot.slane %v17378_v57, 1 }
 0x138   : > { %13478 = vmatmul.mubr.f32.gmra.mrb[14].mxu0 %v17338_v28  ;;  %12456 = vmatprep.mubr.f32.mxu1 %v17341_v33  ;;  %v1629_v28 = vrot.slane %v17352_v46, 1  ;;  %v17371_v33 = vld [vmem:[#allocation2 + $0x358] sm:$0xff]  ;;  %20614 = vst [vmem:[#allocation140_spill] sm:$0xff] %v17384_v11 }
 0x139   : > { %13480 = vmatprep.mubr.f32.mxu0 %v17347_v24  ;;  %v1631_v32 = vrot.slane %v17371_v33, 1  ;;  %v3342_v24 = vrot.slane %v16746_v35, 2  ;;  %14533 = vmatprep.subr.bf16.mxu0 %v14532_v34 }
 0x13a   : > { %v17399_v6 = vsel %vm1438_vm0, %v1628_v25, %v1629_v28  ;;  %14535 = vmatpush3.bf16.msra.mxu0 %v14532_v34 }
 0x13b   : > { %12457 = vmatmul.mubr.f32.gmra.mrb[80].mxu1 %v17358_v42  ;;  %v17396_v42 = vsel %vm3282_vm1, %v3333_v37, %v3335_v55  ;;  %20616 = vst [vmem:[#allocation142_spill] sm:$0xff] %v17399_v6  ;;  %v17416_v25 = vsel %vm1438_vm0, %v1629_v28, %v1631_v32  ;;  %v17419_v37 = vsel %vm3282_vm1, %v3338_v30, %v3340_v27 }
 0x13c   : > { %13481 = vmatmul.mubr.f32.gmra.mrb[16].mxu0 %v17361_v45  ;;  %12459 = vmatprep.mubr.f32.mxu1 %v17366_v53  ;;  %20615 = vst [vmem:[#allocation141_spill] sm:$0xff] %v17396_v42  ;;  %v17402_v53 = vld [vmem:[#allocation2 + $0x368] sm:$0x3]  ;;  %v17405_v45 = vsel %vm3282_vm1, %v3337_v26, %v3338_v30  ;;  %20618 = vst [vmem:[#allocation144_spill] sm:$0xff] %v17416_v25  ;;  %v17424_v35 = vsel %vm1438_vm0, %v1631_v32, %v1633_v56  ;;  %v3344_v26 = vrot.slane %v16765_v0, 2 }
 0x13d   : > { %13483 = vmatprep.mubr.f32.mxu0 %v17374_v58  ;;  %20617 = vst [vmem:[#allocation143_spill] sm:$0xff] %v17405_v45  ;;  %20619 = vst [vmem:[#allocation145_spill] sm:$0xff] %v17419_v37  ;;  %v1635_v55 = vrot.slane %v17402_v53, 1  ;;  %v17432_v28 = vsel %vm3282_vm1, %v3340_v27, %v3342_v24  ;;  %v3346_v30 = vrot.slane %v16768_v36, 2  ;;  %v3349_v27 = vrot.slane %v16784_v38, 2  ;;  %v17462_v38 = vld [vmem:[#allocation2 + $0x3a0] sm:$0xff] }
 0x13e   : > { %20620 = vst [vmem:[#allocation146_spill] sm:$0xff] %v17424_v35  ;;  %20621 = vst [vmem:[#allocation147_spill] sm:$0xff] %v17432_v28  ;;  %v17448_v36 = vsel %vm3282_vm1, %v3342_v24, %v3344_v26 }
 0x13f   : > { %12460 = vmatmul.mubr.f32.gmra.mrb[82].mxu1 %v17384_v11  ;;  %v3347_v11 = vrot.slane %v16770_v29, 2  ;;  %v17442_v0 = vsel %vm1438_vm0, %v1633_v56, %v1635_v55  ;;  %20623 = vst [vmem:[#allocation149_spill] sm:$0xff] %v17448_v36  ;;  %v17451_v29 = vsel %vm1438_vm0, %v1637_v13, %v1638_v14  ;;  %v3351_v56 = vrot.slane %v16787_v43, 2  ;;  %v17460_v55 = vld [vmem:[#allocation2 + $0x398] sm:$0xff] }
 0x140   : > { %13484 = vmatmul.mubr.f32.gmra.mrb[18].mxu0 %v17396_v42  ;;  %12462 = vmatprep.mubr.f32.mxu1 %v17399_v6  ;;  %v17429_v6 = vld [vmem:[#allocation2 + $0x380] sm:$0xff]  ;;  %20622 = vst [vmem:[#allocation148_spill] sm:$0xff] %v17442_v0  ;;  %20624 = vst [vmem:[#allocation150_spill] sm:$0xff] %v17451_v29  ;;  %v17564_v42 = vld [vmem:[#allocation2 + $0x3e8] sm:$0xff] }
 0x141   : > { %13486 = vmatprep.mubr.f32.mxu0 %v17405_v45  ;;  %v17436_v45 = vld [vmem:[#allocation2 + $0x388] sm:$0xff]  ;;  %v1640_v32 = vrot.slane %v17429_v6, 1  ;;  %v17471_v26 = vsel %vm3282_vm1, %v3347_v11, %v3349_v27 }
 0x142   : > { %v1642_v34 = vrot.slane %v17436_v45, 1  ;;  %20627 = vst [vmem:[#allocation153_spill] sm:$0xff] %v17471_v26 }
 0x143   : > { %12463 = vmatmul.mubr.f32.gmra.mrb[84].mxu1 %v17416_v25  ;;  %v17454_v25 = vld [vmem:[#allocation2 + $0x390] sm:$0x3]  ;;  %v17468_v24 = vsel %vm1438_vm0, %v1638_v14, %v1640_v32  ;;  %v17484_v14 = vsel %vm3282_vm1, %v3349_v27, %v3351_v56  ;;  %v3358_v27 = vrot.slane %v16819_v62, 2  ;;  %v17514_v62 = vld [vmem:[#allocation2 + $0x3c8] sm:$0xff] }
 0x144   : > { %13487 = vmatmul.mubr.f32.gmra.mrb[20].mxu0 %v17419_v37  ;;  %12465 = vmatprep.mubr.f32.mxu1 %v17424_v35  ;;  %v17457_v35 = vsel %vm3282_vm1, %v3346_v30, %v3347_v11  ;;  %20626 = vst [vmem:[#allocation152_spill] sm:$0xff] %v17468_v24  ;;  %v1644_v13 = vrot.slane %v17454_v25, 1  ;;  %v17476_v43 = vsel %vm1438_vm0, %v1640_v32, %v1642_v34  ;;  %v3353_v30 = vrot.slane %v16800_v54, 2  ;;  %v17488_v37 = vld [vmem:[#allocation2 + $0x3b0] sm:$0xff] }
 0x145   : > { %13489 = vmatprep.mubr.f32.mxu0 %v17432_v28  ;;  %20625 = vst [vmem:[#allocation151_spill] sm:$0xff] %v17457_v35  ;;  %20628 = vst [vmem:[#allocation154_spill] sm:$0xff] %v17476_v43  ;;  %v3355_v11 = vrot.slane %v16803_v16, 2  ;;  %v3356_v28 = vrot.slane %v16805_v2, 2 }
 0x146   : > { %20629 = vst [vmem:[#allocation155_spill] sm:$0xff] %v17484_v14  ;;  %v17494_v54 = vsel %vm1438_vm0, %v1642_v34, %v1644_v13  ;;  %v17500_v16 = vsel %vm3282_vm1, %v3351_v56, %v3353_v30  ;;  %v3360_v34 = vrot.slane %v16822_v41, 2  ;;  %v17512_v13 = vld [vmem:[#allocation2 + $0x3c0] sm:$0xff] }
 0x147   : > { %12466 = vmatmul.mubr.f32.gmra.mrb[86].mxu1 %v17442_v0  ;;  %v1646_v0 = vrot.slane %v17460_v55, 1  ;;  %20630 = vst [vmem:[#allocation156_spill] sm:$0xff] %v17494_v54  ;;  %20631 = vst [vmem:[#allocation157_spill] sm:$0xff] %v17500_v16  ;;  %v17523_v56 = vsel %vm3282_vm1, %v3356_v28, %v3358_v27 }
 0x148   : > { %13490 = vmatmul.mubr.f32.gmra.mrb[22].mxu0 %v17448_v36  ;;  %12468 = vmatprep.mubr.f32.mxu1 %v17451_v29  ;;  %v1647_v36 = vrot.slane %v17462_v38, 1  ;;  %v17481_v29 = vld [vmem:[#allocation2 + $0x3a8] sm:$0xff]  ;;  %20635 = vst [vmem:[#allocation161_spill] sm:$0xff] %v17523_v56 }
 0x149   : > { %13492 = vmatprep.mubr.f32.mxu0 %v17457_v35  ;;  %v1649_v32 = vrot.slane %v17481_v29, 1  ;;  %v17540_v35 = vld [vmem:[#allocation2 + $0x3d8] sm:$0xff] }
 0x14a   : > { %v17503_v2 = vsel %vm1438_vm0, %v1646_v0, %v1647_v36 }
 0x14b   : > { %12469 = vmatmul.mubr.f32.gmra.mrb[88].mxu1 %v17468_v24  ;;  %20632 = vst [vmem:[#allocation158_spill] sm:$0xff] %v17503_v2  ;;  %v1651_v24 = vrot.slane %v17488_v37, 1  ;;  %v17520_v0 = vsel %vm1438_vm0, %v1647_v36, %v1649_v32  ;;  %v17536_v36 = vsel %vm3282_vm1, %v3358_v27, %v3360_v34 }
 0x14c   : > { %13493 = vmatmul.mubr.f32.gmra.mrb[24].mxu0 %v17471_v26  ;;  %12471 = vmatprep.mubr.f32.mxu1 %v17476_v43  ;;  %v17506_v26 = vld [vmem:[#allocation2 + $0x3b8] sm:$0x3]  ;;  %v17509_v43 = vsel %vm3282_vm1, %v3355_v11, %v3356_v28  ;;  %20634 = vst [vmem:[#allocation160_spill] sm:$0xff] %v17520_v0  ;;  %v3362_v11 = vrot.slane %v16835_v20, 2  ;;  %20637 = vst [vmem:[#allocation163_spill] sm:$0xff] %v17536_v36  ;;  %v3364_v28 = vrot.slane %v16838_v4, 2 }
 0x14d   : > { %13495 = vmatprep.mubr.f32.mxu0 %v17484_v14  ;;  %20633 = vst [vmem:[#allocation159_spill] sm:$0xff] %v17509_v43  ;;  %v1653_v30 = vrot.slane %v17506_v26, 1  ;;  %v17528_v41 = vsel %vm1438_vm0, %v1649_v32, %v1651_v24  ;;  %v3365_v14 = vrot.slane %v16840_v17, 2 }
 0x14e   : > { %20636 = vst [vmem:[#allocation162_spill] sm:$0xff] %v17528_v41  ;;  %v17552_v4 = vsel %vm3282_vm1, %v3360_v34, %v3362_v11 }
 0x14f   : > { %12472 = vmatmul.mubr.f32.gmra.mrb[90].mxu1 %v17494_v54  ;;  %v1655_v54 = vrot.slane %v17512_v13, 1  ;;  %v17546_v20 = vsel %vm1438_vm0, %v1651_v24, %v1653_v30  ;;  %v20644_v24 = vld [vmem:[#allocation49_spill] sm:$0xff] }
 0x150   : > { %13496 = vmatmul.mubr.f32.gmra.mrb[26].mxu0 %v17500_v16  ;;  %12474 = vmatprep.mubr.f32.mxu1 %v17503_v2  ;;  %v1656_v16 = vrot.slane %v17514_v62, 1  ;;  %v17533_v2 = vld [vmem:[#allocation2 + $0x3d0] sm:$0xff]  ;;  %20638 = vst [vmem:[#allocation164_spill] sm:$0xff] %v17546_v20  ;;  %v3369_v30 = vrot.slane %v20644_v24, 2  ;;  %20645 = vst [vmem:[#allocation49_spill] sm:$0xff] %v17564_v42  ;;  %v20650_v24 = vld [vmem:[#allocation52_spill] sm:$0xff] }
 0x151   : > { %13498 = vmatprep.mubr.f32.mxu0 %v17509_v43  ;;  %v1658_v32 = vrot.slane %v17533_v2, 1  ;;  %v20639_v43 = vld [vmem:[#allocation48_spill] sm:$0xff] }
 0x152   : > { %v3367_v27 = vrot.slane %v20639_v43, 2  ;;  %20640 = vst [vmem:[#allocation48_spill] sm:$0xff] %v17552_v4  ;;  %v17555_v17 = vsel %vm1438_vm0, %v1655_v54, %v1656_v16  ;;  %v17566_v43 = vld [vmem:[#allocation2 + $0x3f0] sm:$0xff] }
 0x153   : > { %12475 = vmatmul.mubr.f32.gmra.mrb[92].mxu1 %v17520_v0  ;;  %20641 = vst [vmem:[#allocation165_spill] sm:$0xff] %v17555_v17  ;;  %v1660_v0 = vrot.slane %v17540_v35, 1  ;;  %20646 = vst [vmem:[#allocation168_spill] sm:$0xff] %v17566_v43  ;;  %v17572_v54 = vsel %vm1438_vm0, %v1656_v16, %v1658_v32 }
 0x154   : > { %13499 = vmatmul.mubr.f32.gmra.mrb[28].mxu0 %v17523_v56  ;;  %12477 = vmatprep.mubr.f32.mxu1 %v17528_v41  ;;  %v17558_v56 = vld [vmem:[#allocation2 + $0x3e0] sm:$0x3]  ;;  %v17561_v41 = vsel %vm3282_vm1, %v3364_v28, %v3365_v14  ;;  %20647 = vst [vmem:[#allocation169_spill] sm:$0xff] %v17572_v54  ;;  %v17575_v34 = vsel %vm3282_vm1, %v3365_v14, %v3367_v27  ;;  %v20653_v14 = vld [vmem:[#allocation53_spill] sm:$0xff] }
 0x155   : > { %13501 = vmatprep.mubr.f32.mxu0 %v17536_v36  ;;  %20642 = vst [vmem:[#allocation166_spill] sm:$0xff] %v17558_v56  ;;  %20643 = vst [vmem:[#allocation167_spill] sm:$0xff] %v17561_v41  ;;  %v1662_v11 = vrot.slane %v17558_v56, 1  ;;  %v17580_v28 = vsel %vm1438_vm0, %v1658_v32, %v1660_v0  ;;  %v3371_v36 = vrot.slane %v20650_v24, 2  ;;  %v17588_v16 = vsel %vm3282_vm1, %v3367_v27, %v3369_v30  ;;  %v17624_v56 = vld [vmem:[#allocation2 + $0x418] sm:$0xff] }
 0x156   : > { %20648 = vst [vmem:[#allocation170_spill] sm:$0xff] %v17575_v34  ;;  %20649 = vst [vmem:[#allocation171_spill] sm:$0xff] %v17580_v28  ;;  %v3373_v58 = vrot.slane %v20653_v14, 2  ;;  %v10962_v14 = vld [vmem:[%s19945_s1 + $0x360] sm:$0xff] }
 0x157   : > { %12478 = vmatmul.mubr.f32.gmra.mrb[94].mxu1 %v17546_v20  ;;  %v1664_v20 = vrot.slane %v17564_v42, 1  ;;  %20652 = vst [vmem:[#allocation172_spill] sm:$0xff] %v17588_v16  ;;  %v17598_v32 = vsel %vm1438_vm0, %v1660_v0, %v1662_v11  ;;  %v1669_v11 = vrot.slane %v17592_v31, 1  ;;  %v17622_v42 = vld [vmem:[#allocation2 + $0x410] sm:$0xff]  ;;  %20663 = vst [vmem:[#allocation175_spill] sm:$0xff] %v17624_v56 }
 0x158   : > { %13502 = vmatmul.mubr.f32.gmra.mrb[30].mxu0 %v17552_v4  ;;  %12480 = vmatprep.mubr.f32.mxu1 %v17555_v17  ;;  %v1665_v4 = vrot.slane %v17566_v43, 1  ;;  %v17585_v17 = vld [vmem:[#allocation2 + $0x3f8] sm:$0xff]  ;;  %20655 = vst [vmem:[#allocation53_spill] sm:$0xff] %v17598_v32 }
 0x159   : > { %13504 = vmatprep.mubr.f32.mxu0 %v17561_v41  ;;  %20651 = vst [vmem:[#allocation52_spill] sm:$0xff] %v17585_v17  ;;  %v1667_v24 = vrot.slane %v17585_v17, 1  ;;  %v20656_v41 = vld [vmem:[#allocation57_spill] sm:$0xff]  ;;  %v20661_v17 = vld [vmem:[#allocation58_spill] sm:$0xff] }
 0x15a   : > { %v3376_v27 = vrot.slane %v20656_v41, 2  ;;  %v17613_v0 = vsel %vm1438_vm0, %v1664_v20, %v1665_v4  ;;  %v14536_v41 = vpack.c.bf16 %v10963_v50, %v10962_v14  ;;  %v3378_v43 = vrot.slane %v20661_v17, 2  ;;  %20662 = vst [vmem:[#allocation58_spill] sm:$0xff] %v17622_v42 }
 0x15b   : > { %12481 = vmatmul.mubr.f32.gmra.mrb[96].mxu1 %v17572_v54  ;;  %v17610_v54 = vsel %vm3282_vm1, %v3369_v30, %v3371_v36  ;;  %20658 = vst [vmem:[#allocation57_spill] sm:$0xff] %v17613_v0  ;;  %v17630_v36 = vsel %vm1438_vm0, %v1665_v4, %v1667_v24  ;;  %v17638_v17 = vsel %vm1438_vm0, %v1667_v24, %v1669_v11  ;;  %v20667_v30 = vld [vmem:[#allocation61_spill] sm:$0xff]  ;;  %v1673_v50 = vrot.slane %v17622_v42, 1  ;;  %v17702_v42 = vld [vmem:[#allocation2 + $0x450] sm:$0xff] }
 0x15c   : > { %13505 = vmatmul.mubr.f32.gmra.mrb[32].mxu0 %v17575_v34  ;;  %12483 = vmatprep.mubr.f32.mxu1 %v17580_v28  ;;  %20657 = vst [vmem:[#allocation54_spill] sm:$0xff] %v17610_v54  ;;  %v17616_v28 = vld [vmem:[#allocation2 + $0x408] sm:$0x3]  ;;  %v17619_v34 = vsel %vm3282_vm1, %v3373_v58, %v3374_v39  ;;  %20664 = vst [vmem:[#allocation176_spill] sm:$0xff] %v17630_v36  ;;  %v17633_v20 = vsel %vm3282_vm1, %v3374_v39, %v3376_v27  ;;  %v3380_v14 = vrot.slane %v20667_v30, 2  ;;  %v20670_v39 = vld [vmem:[#allocation62_spill] sm:$0xff] }
 0x15d   : > { %13507 = vmatprep.mubr.f32.mxu0 %v17588_v16  ;;  %20659 = vst [vmem:[#allocation173_spill] sm:$0xff] %v17616_v28  ;;  %20660 = vst [vmem:[#allocation174_spill] sm:$0xff] %v17619_v34  ;;  %14537 = vmatprep.subr.bf16.mxu0 %v14536_v41  ;;  %v1671_v58 = vrot.slane %v17616_v28, 1  ;;  %v17646_v4 = vsel %vm3282_vm1, %v3376_v27, %v3378_v43  ;;  %v20671_v16 = vld [vmem:[#allocation63_spill] sm:$0xff]  ;;  %v20674_v30 = vld [vmem:[#allocation66_spill] sm:$0xff] }
 0x15e   : > { %20665 = vst [vmem:[#allocation177_spill] sm:$0xff] %v17633_v20  ;;  %20666 = vst [vmem:[#allocation178_spill] sm:$0xff] %v17638_v17  ;;  %14539 = vmatpush3.bf16.msra.mxu0 %v14536_v41  ;;  %v3383_v28 = vrot.slane %v20671_v16, 2  ;;  %v3385_v27 = vrot.slane %v20674_v30, 2  ;;  %v17676_v30 = vld [vmem:[#allocation2 + $0x440] sm:$0xff] }
 0x15f   : > { %12484 = vmatmul.mubr.f32.gmra.mrb[98].mxu1 %v17598_v32  ;;  %v1674_v32 = vrot.slane %v17624_v56, 1  ;;  %20669 = vst [vmem:[#allocation179_spill] sm:$0xff] %v17646_v4  ;;  %v17656_v24 = vsel %vm1438_vm0, %v1669_v11, %v1671_v58  ;;  %v20679_v11 = vld [vmem:[#allocation67_spill] sm:$0xff]  ;;  %20681 = vst [vmem:[#allocation183_spill] sm:$0xff] %v17676_v30  ;;  %v20689_v56 = vld [vmem:[#allocation72_spill] sm:$0xff] }
 0x160   : > { %13508 = vmatmul.mubr.f32.gmra.mrb[34].mxu0 %v17610_v54  ;;  %12486 = vmatprep.mubr.f32.mxu1 %v17613_v0  ;;  %v17643_v0 = vld [vmem:[#allocation2 + $0x420] sm:$0xff]  ;;  %v3382_v54 = vrot.slane %v20670_v39, 2  ;;  %20673 = vst [vmem:[#allocation63_spill] sm:$0xff] %v17656_v24  ;;  %v17662_v39 = vsel %vm3282_vm1, %v3378_v43, %v3380_v14  ;;  %v3387_v58 = vrot.slane %v20679_v11, 2  ;;  %v17685_v14 = vsel %vm3282_vm1, %v3383_v28, %v3385_v27  ;;  %v20685_v11 = vld [vmem:[#allocation70_spill] sm:$0xff] }
 0x161   : > { %13510 = vmatprep.mubr.f32.mxu0 %v17619_v34  ;;  %20668 = vst [vmem:[#allocation61_spill] sm:$0xff] %v17643_v0  ;;  %v17650_v34 = vld [vmem:[#allocation2 + $0x428] sm:$0xff]  ;;  %v1676_v41 = vrot.slane %v17643_v0, 1  ;;  %20675 = vst [vmem:[#allocation66_spill] sm:$0xff] %v17662_v39  ;;  %v17665_v16 = vsel %vm1438_vm0, %v1673_v50, %v1674_v32  ;;  %v17674_v0 = vld [vmem:[#allocation2 + $0x438] sm:$0xff] }
 0x162   : > { %20672 = vst [vmem:[#allocation62_spill] sm:$0xff] %v17650_v34  ;;  %20676 = vst [vmem:[#allocation180_spill] sm:$0xff] %v17665_v16 }
 0x163   : > { %12487 = vmatmul.mubr.f32.gmra.mrb[100].mxu1 %v17630_v36  ;;  %v1678_v36 = vrot.slane %v17650_v34, 1  ;;  %20680 = vst [vmem:[#allocation67_spill] sm:$0xff] %v17674_v0  ;;  %v17682_v43 = vsel %vm1438_vm0, %v1674_v32, %v1676_v41  ;;  %20683 = vst [vmem:[#allocation185_spill] sm:$0xff] %v17685_v14  ;;  %v17698_v32 = vsel %vm3282_vm1, %v3385_v27, %v3387_v58 }
 0x164   : > { %13511 = vmatmul.mubr.f32.gmra.mrb[36].mxu0 %v17633_v20  ;;  %12489 = vmatprep.mubr.f32.mxu1 %v17638_v17  ;;  %v17668_v20 = vld [vmem:[#allocation2 + $0x430] sm:$0x3]  ;;  %v17671_v17 = vsel %vm3282_vm1, %v3382_v54, %v3383_v28  ;;  %20682 = vst [vmem:[#allocation184_spill] sm:$0xff] %v17682_v43  ;;  %20687 = vst [vmem:[#allocation187_spill] sm:$0xff] %v17698_v32  ;;  %v20688_v28 = vld [vmem:[#allocation71_spill] sm:$0xff] }
 0x165   : > { %13513 = vmatprep.mubr.f32.mxu0 %v17646_v4  ;;  %20677 = vst [vmem:[#allocation181_spill] sm:$0xff] %v17668_v20  ;;  %20678 = vst [vmem:[#allocation182_spill] sm:$0xff] %v17671_v17  ;;  %v1680_v54 = vrot.slane %v17668_v20, 1  ;;  %v17690_v50 = vsel %vm1438_vm0, %v1676_v41, %v1678_v36  ;;  %v3389_v4 = vrot.slane %v20685_v11, 2  ;;  %v3391_v34 = vrot.slane %v20688_v28, 2 }
 0x166   : > { %20684 = vst [vmem:[#allocation186_spill] sm:$0xff] %v17690_v50  ;;  %v3392_v20 = vrot.slane %v20689_v56, 2  ;;  %20690 = vst [vmem:[#allocation71_spill] sm:$0xff] %v17702_v42 }
 0x167   : > { %12490 = vmatmul.mubr.f32.gmra.mrb[102].mxu1 %v17656_v24  ;;  %v1682_v24 = vrot.slane %v17674_v0, 1  ;;  %v17708_v41 = vsel %vm1438_vm0, %v1678_v36, %v1680_v54  ;;  %v17714_v28 = vsel %vm3282_vm1, %v3387_v58, %v3389_v4  ;;  %v20697_v36 = vld [vmem:[#allocation76_spill] sm:$0xff] }
 0x168   : > { %13514 = vmatmul.mubr.f32.gmra.mrb[38].mxu0 %v17662_v39  ;;  %12492 = vmatprep.mubr.f32.mxu1 %v17665_v16  ;;  %v1683_v39 = vrot.slane %v17676_v30, 1  ;;  %v17695_v16 = vld [vmem:[#allocation2 + $0x448] sm:$0xff]  ;;  %20691 = vst [vmem:[#allocation72_spill] sm:$0xff] %v17708_v41  ;;  %v3396_v54 = vrot.slane %v20697_v36, 2  ;;  %v20703_v36 = vld [vmem:[#allocation79_spill] sm:$0xff] }
 0x169   : > { %13516 = vmatprep.mubr.f32.mxu0 %v17671_v17  ;;  %20686 = vst [vmem:[#allocation70_spill] sm:$0xff] %v17695_v16  ;;  %v1685_v11 = vrot.slane %v17695_v16, 1  ;;  %v20692_v17 = vld [vmem:[#allocation75_spill] sm:$0xff]  ;;  %v17726_v16 = vld [vmem:[#allocation2 + $0x460] sm:$0xff] }
 0x16a   : > { %v3394_v27 = vrot.slane %v20692_v17, 2  ;;  %20693 = vst [vmem:[#allocation75_spill] sm:$0xff] %v17714_v28  ;;  %v17717_v56 = vsel %vm1438_vm0, %v1682_v24, %v1683_v39  ;;  %20698 = vst [vmem:[#allocation76_spill] sm:$0xff] %v17726_v16  ;;  %v17728_v17 = vld [vmem:[#allocation2 + $0x468] sm:$0xff]  ;;  %v17754_v0 = vld [vmem:[#allocation2 + $0x478] sm:$0xff] }
 0x16b   : > { %12493 = vmatmul.mubr.f32.gmra.mrb[104].mxu1 %v17682_v43  ;;  %20694 = vst [vmem:[#allocation188_spill] sm:$0xff] %v17717_v56  ;;  %v1687_v43 = vrot.slane %v17702_v42, 1  ;;  %20699 = vst [vmem:[#allocation191_spill] sm:$0xff] %v17728_v17  ;;  %v17734_v4 = vsel %vm1438_vm0, %v1683_v39, %v1685_v11  ;;  %v20707_v30 = vld [vmem:[#allocation81_spill] sm:$0xff] }
 0x16c   : > { %13517 = vmatmul.mubr.f32.gmra.mrb[40].mxu0 %v17685_v14  ;;  %12495 = vmatprep.mubr.f32.mxu1 %v17690_v50  ;;  %v17720_v14 = vld [vmem:[#allocation2 + $0x458] sm:$0x3]  ;;  %v17723_v50 = vsel %vm3282_vm1, %v3391_v34, %v3392_v20  ;;  %20700 = vst [vmem:[#allocation192_spill] sm:$0xff] %v17734_v4  ;;  %v17737_v24 = vsel %vm3282_vm1, %v3392_v20, %v3394_v27  ;;  %v20706_v20 = vld [vmem:[#allocation80_spill] sm:$0xff] }
 0x16d   : > { %13519 = vmatprep.mubr.f32.mxu0 %v17698_v32  ;;  %20695 = vst [vmem:[#allocation189_spill] sm:$0xff] %v17720_v14  ;;  %20696 = vst [vmem:[#allocation190_spill] sm:$0xff] %v17723_v50  ;;  %v1689_v34 = vrot.slane %v17720_v14, 1  ;;  %v17742_v58 = vsel %vm1438_vm0, %v1685_v11, %v1687_v43  ;;  %v3398_v32 = vrot.slane %v20703_v36, 2  ;;  %v17750_v39 = vsel %vm3282_vm1, %v3394_v27, %v3396_v54 }
 0x16e   : > { %20701 = vst [vmem:[#allocation193_spill] sm:$0xff] %v17737_v24  ;;  %20702 = vst [vmem:[#allocation194_spill] sm:$0xff] %v17742_v58  ;;  %v3400_v42 = vrot.slane %v20706_v20, 2  ;;  %v3401_v14 = vrot.slane %v20707_v30, 2 }
 0x16f   : > { %12496 = vmatmul.mubr.f32.gmra.mrb[106].mxu1 %v17708_v41  ;;  %v1691_v41 = vrot.slane %v17726_v16, 1  ;;  %20705 = vst [vmem:[#allocation195_spill] sm:$0xff] %v17750_v39  ;;  %20708 = vst [vmem:[#allocation80_spill] sm:$0xff] %v17754_v0  ;;  %v17760_v11 = vsel %vm1438_vm0, %v1687_v43, %v1689_v34  ;;  %v17766_v20 = vsel %vm3282_vm1, %v3396_v54, %v3398_v32  ;;  %v20715_v43 = vld [vmem:[#allocation85_spill] sm:$0xff] }
 0x170   : > { %13520 = vmatmul.mubr.f32.gmra.mrb[42].mxu0 %v17714_v28  ;;  %12498 = vmatprep.mubr.f32.mxu1 %v17717_v56  ;;  %v1692_v28 = vrot.slane %v17728_v17, 1  ;;  %v17747_v56 = vld [vmem:[#allocation2 + $0x470] sm:$0xff]  ;;  %20709 = vst [vmem:[#allocation81_spill] sm:$0xff] %v17760_v11  ;;  %v3405_v34 = vrot.slane %v20715_v43, 2  ;;  %v20720_v43 = vld [vmem:[#allocation88_spill] sm:$0xff] }
 0x171   : > { %13522 = vmatprep.mubr.f32.mxu0 %v17723_v50  ;;  %20704 = vst [vmem:[#allocation79_spill] sm:$0xff] %v17747_v56  ;;  %v1694_v36 = vrot.slane %v17747_v56, 1  ;;  %v20710_v50 = vld [vmem:[#allocation84_spill] sm:$0xff]  ;;  %v17778_v56 = vld [vmem:[#allocation2 + $0x488] sm:$0xff] }
 0x172   : > { %v3403_v27 = vrot.slane %v20710_v50, 2  ;;  %20711 = vst [vmem:[#allocation84_spill] sm:$0xff] %v17766_v20  ;;  %v17769_v30 = vsel %vm1438_vm0, %v1691_v41, %v1692_v28  ;;  %v17780_v50 = vld [vmem:[#allocation2 + $0x490] sm:$0xff]  ;;  %v17806_v16 = vld [vmem:[#allocation2 + $0x4a0] sm:$0xff] }
 0x173   : > { %12499 = vmatmul.mubr.f32.gmra.mrb[108].mxu1 %v17734_v4  ;;  %20712 = vst [vmem:[#allocation196_spill] sm:$0xff] %v17769_v30  ;;  %v1696_v4 = vrot.slane %v17754_v0, 1  ;;  %20716 = vst [vmem:[#allocation85_spill] sm:$0xff] %v17780_v50  ;;  %v17786_v32 = vsel %vm1438_vm0, %v1692_v28, %v1694_v36  ;;  %v20724_v17 = vld [vmem:[#allocation90_spill] sm:$0xff] }
 0x174   : > { %13523 = vmatmul.mubr.f32.gmra.mrb[44].mxu0 %v17737_v24  ;;  %12501 = vmatprep.mubr.f32.mxu1 %v17742_v58  ;;  %v17772_v24 = vld [vmem:[#allocation2 + $0x480] sm:$0x3]  ;;  %v17775_v58 = vsel %vm3282_vm1, %v3400_v42, %v3401_v14  ;;  %20717 = vst [vmem:[#allocation199_spill] sm:$0xff] %v17786_v32  ;;  %v17789_v41 = vsel %vm3282_vm1, %v3401_v14, %v3403_v27  ;;  %v20723_v14 = vld [vmem:[#allocation89_spill] sm:$0xff] }
 0x175   : > { %13525 = vmatprep.mubr.f32.mxu0 %v17750_v39  ;;  %20713 = vst [vmem:[#allocation197_spill] sm:$0xff] %v17772_v24  ;;  %20714 = vst [vmem:[#allocation198_spill] sm:$0xff] %v17775_v58  ;;  %v1698_v42 = vrot.slane %v17772_v24, 1  ;;  %v17794_v54 = vsel %vm1438_vm0, %v1694_v36, %v1696_v4  ;;  %v3407_v39 = vrot.slane %v20720_v43, 2  ;;  %v17802_v28 = vsel %vm3282_vm1, %v3403_v27, %v3405_v34 }
 0x176   : > { %20718 = vst [vmem:[#allocation200_spill] sm:$0xff] %v17789_v41  ;;  %20719 = vst [vmem:[#allocation201_spill] sm:$0xff] %v17794_v54  ;;  %v3409_v0 = vrot.slane %v20723_v14, 2  ;;  %v3410_v24 = vrot.slane %v20724_v17, 2  ;;  %v3412_v27 = vrot.slane %v17035_v59, 2  ;;  %v10964_v14 = vld [vmem:[%s19945_s1 + $0x370] sm:$0xff] }
 0x177   : > { %12502 = vmatmul.mubr.f32.gmra.mrb[110].mxu1 %v17760_v11  ;;  %v1700_v11 = vrot.slane %v17778_v56, 1  ;;  %20722 = vst [vmem:[#allocation202_spill] sm:$0xff] %v17802_v28  ;;  %v17812_v36 = vsel %vm1438_vm0, %v1696_v4, %v1698_v42  ;;  %v10965_v17 = vld [vmem:[%s19945_s1 + $0x378] sm:$0xff]  ;;  %v1705_v42 = vrot.slane %v17806_v16, 1 }
 0x178   : > { %13526 = vmatmul.mubr.f32.gmra.mrb[46].mxu0 %v17766_v20  ;;  %12504 = vmatprep.mubr.f32.mxu1 %v17769_v30  ;;  %v1701_v20 = vrot.slane %v17780_v50, 1  ;;  %v17799_v30 = vld [vmem:[#allocation2 + $0x498] sm:$0xff]  ;;  %20725 = vst [vmem:[#allocation89_spill] sm:$0xff] %v17812_v36  ;;  %v14540_v59 = vpack.c.bf16 %v10965_v17, %v10964_v14  ;;  %v17838_v50 = vld [vmem:[#allocation2 + $0x4b0] sm:$0xff] }
 0x179   : > { %13528 = vmatprep.mubr.f32.mxu0 %v17775_v58  ;;  %20721 = vst [vmem:[#allocation88_spill] sm:$0xff] %v17799_v30  ;;  %v1703_v43 = vrot.slane %v17799_v30, 1  ;;  %v17835_v58 = vld [vmem:[#allocation2 + $0x248] sm:$0xff]  ;;  %v15711_v14 = vld [vmem:[#allocation2 + $0x250] sm:$0x3] }
 0x17a   : > { %v17827_v4 = vsel %vm1438_vm0, %v1700_v11, %v1701_v20  ;;  %20730 = vst [vmem:[#allocation206_spill] sm:$0xff] %v17835_v58  ;;  %v3414_v30 = vrot.slane %v17835_v58, 2  ;;  %14541 = vmatprep.subr.bf16.mxu0 %v14540_v59  ;;  %v3416_v17 = vrot.slane %v15711_v14, 2  ;;  %v17878_v14 = vld [vmem:[#allocation2 + $0x268] sm:$0xff] }
 0x17b   : > { %12505 = vmatmul.mubr.f32.gmra.mrb[112].mxu1 %v17786_v32  ;;  %v17824_v32 = vsel %vm3282_vm1, %v3405_v34, %v3407_v39  ;;  %20727 = vst [vmem:[#allocation203_spill] sm:$0xff] %v17827_v4  ;;  %v17846_v39 = vsel %vm1438_vm0, %v1701_v20, %v1703_v43  ;;  %v17854_v34 = vsel %vm1438_vm0, %v1703_v43, %v1705_v42  ;;  %20741 = vst [vmem:[#allocation217_spill] sm:$0xff] %v17878_v14 }
 0x17c   : > { %13529 = vmatmul.mubr.f32.gmra.mrb[48].mxu0 %v17789_v41  ;;  %12507 = vmatprep.mubr.f32.mxu1 %v17794_v54  ;;  %20726 = vst [vmem:[#allocation90_spill] sm:$0xff] %v17824_v32  ;;  %v17830_v54 = vld [vmem:[#allocation2 + $0x4a8] sm:$0x3]  ;;  %v17833_v41 = vsel %vm3282_vm1, %v3409_v0, %v3410_v24  ;;  %20732 = vst [vmem:[#allocation208_spill] sm:$0xff] %v17846_v39  ;;  %v17849_v0 = vsel %vm3282_vm1, %v3410_v24, %v3412_v27  ;;  %v17863_v24 = vld [vmem:[#allocation2 + $0x258] sm:$0xff] }
 0x17d   : > { %13531 = vmatprep.mubr.f32.mxu0 %v17802_v28  ;;  %20728 = vst [vmem:[#allocation204_spill] sm:$0xff] %v17830_v54  ;;  %20729 = vst [vmem:[#allocation205_spill] sm:$0xff] %v17833_v41  ;;  %v17840_v28 = vld [vmem:[#allocation2 + $0x4b8] sm:$0xff]  ;;  %v1707_v11 = vrot.slane %v17830_v54, 1  ;;  %14543 = vmatpush3.bf16.msra.mxu0 %v14540_v59  ;;  %v17861_v20 = vsel %vm3282_vm1, %v3412_v27, %v3414_v30  ;;  %v3418_v58 = vrot.slane %v17863_v24, 2  ;;  %v17869_v54 = vld [vmem:[#allocation2 + $0x4c8] sm:$0xff] }
 0x17e   : > { %20731 = vst [vmem:[#allocation207_spill] sm:$0xff] %v17840_v28  ;;  %20733 = vst [vmem:[#allocation209_spill] sm:$0xff] %v17849_v0 }
 0x17f   : > { %12508 = vmatmul.mubr.f32.gmra.mrb[114].mxu1 %v17812_v36  ;;  %20734 = vst [vmem:[#allocation210_spill] sm:$0xff] %v17854_v34  ;;  %v1709_v36 = vrot.slane %v17838_v50, 1  ;;  %20736 = vst [vmem:[#allocation212_spill] sm:$0xff] %v17861_v20  ;;  %v17875_v59 = vsel %vm1438_vm0, %v1705_v42, %v1707_v11  ;;  %v17894_v11 = vld [vmem:[#allocation2 + $0x270] sm:$0xff] }
 0x180   : > { %13532 = vmatmul.mubr.f32.gmra.mrb[50].mxu0 %v17824_v32  ;;  %12510 = vmatprep.mubr.f32.mxu1 %v17827_v4  ;;  %v1710_v32 = vrot.slane %v17840_v28, 1  ;;  %v17858_v4 = vld [vmem:[#allocation2 + $0x4c0] sm:$0xff]  ;;  %20737 = vst [vmem:[#allocation213_spill] sm:$0xff] %v17863_v24  ;;  %20739 = vst [vmem:[#allocation215_spill] sm:$0xff] %v17869_v54  ;;  %v3421_v24 = vrot.slane %v17878_v14, 2  ;;  %v17897_v14 = vld [vmem:[#allocation2 + $0x4d8] sm:$0xff] }
 0x181   : > { %13534 = vmatprep.mubr.f32.mxu0 %v17833_v41  ;;  %20735 = vst [vmem:[#allocation211_spill] sm:$0xff] %v17858_v4  ;;  %v17866_v41 = vld [vmem:[#allocation2 + $0x260] sm:$0xff]  ;;  %20740 = vst [vmem:[#allocation216_spill] sm:$0xff] %v17875_v59  ;;  %v1712_v27 = vrot.slane %v17858_v4, 1  ;;  %v3423_v4 = vrot.slane %v17894_v11, 2  ;;  %v17925_v28 = vld [vmem:[#allocation2 + $0x288] sm:$0xff] }
 0x182   : > { %20738 = vst [vmem:[#allocation214_spill] sm:$0xff] %v17866_v41  ;;  %v3419_v43 = vrot.slane %v17866_v41, 2  ;;  %v17883_v41 = vsel %vm3282_vm1, %v3414_v30, %v3416_v17  ;;  %20746 = vst [vmem:[#allocation222_spill] sm:$0xff] %v17894_v11  ;;  %v15716_v11 = vld [vmem:[#allocation2 + $0x278] sm:$0x3] }
 0x183   : > { %12511 = vmatmul.mubr.f32.gmra.mrb[116].mxu1 %v17846_v39  ;;  %20742 = vst [vmem:[#allocation218_spill] sm:$0xff] %v17883_v41  ;;  %v17886_v39 = vsel %vm1438_vm0, %v1709_v36, %v1710_v32  ;;  %v17905_v30 = vsel %vm1438_vm0, %v1710_v32, %v1712_v27  ;;  %v17920_v32 = vsel %vm3282_vm1, %v3421_v24, %v3423_v4  ;;  %20753 = vst [vmem:[#allocation229_spill] sm:$0xff] %v17925_v28 }
 0x184   : > { %13535 = vmatmul.mubr.f32.gmra.mrb[52].mxu0 %v17849_v0  ;;  %12513 = vmatprep.mubr.f32.mxu1 %v17854_v34  ;;  %20743 = vst [vmem:[#allocation219_spill] sm:$0xff] %v17886_v39  ;;  %v1714_v0 = vrot.slane %v17869_v54, 1  ;;  %v17889_v34 = vld [vmem:[#allocation2 + $0x4d0] sm:$0x3]  ;;  %v17892_v42 = vsel %vm3282_vm1, %v3418_v58, %v3419_v43  ;;  %20748 = vst [vmem:[#allocation224_spill] sm:$0xff] %v17905_v30  ;;  %v17908_v58 = vsel %vm3282_vm1, %v3419_v43, %v3421_v24  ;;  %v17922_v43 = vld [vmem:[#allocation2 + $0x280] sm:$0xff] }
 0x185   : > { %13537 = vmatprep.mubr.f32.mxu0 %v17861_v20  ;;  %20744 = vst [vmem:[#allocation220_spill] sm:$0xff] %v17889_v34  ;;  %20745 = vst [vmem:[#allocation221_spill] sm:$0xff] %v17892_v42  ;;  %v17899_v20 = vld [vmem:[#allocation2 + $0x4e0] sm:$0xff]  ;;  %v1716_v36 = vrot.slane %v17889_v34, 1  ;;  %v3425_v54 = vrot.slane %v15716_v11, 2  ;;  %v3427_v34 = vrot.slane %v17922_v43, 2 }
 0x186   : > { %20747 = vst [vmem:[#allocation223_spill] sm:$0xff] %v17899_v20  ;;  %20749 = vst [vmem:[#allocation225_spill] sm:$0xff] %v17908_v58  ;;  %v17913_v17 = vsel %vm1438_vm0, %v1712_v27, %v1714_v0  ;;  %v3428_v27 = vrot.slane %v17925_v28, 2 }
 0x187   : > { %12514 = vmatmul.mubr.f32.gmra.mrb[118].mxu1 %v17875_v59  ;;  %20750 = vst [vmem:[#allocation226_spill] sm:$0xff] %v17913_v17  ;;  %v1718_v59 = vrot.slane %v17897_v14, 1  ;;  %20751 = vst [vmem:[#allocation227_spill] sm:$0xff] %v17920_v32  ;;  %v17934_v11 = vsel %vm1438_vm0, %v1714_v0, %v1716_v36  ;;  %v17953_v36 = vld [vmem:[#allocation2 + $0x298] sm:$0xff] }
 0x188   : > { %13538 = vmatmul.mubr.f32.gmra.mrb[54].mxu0 %v17883_v41  ;;  %12516 = vmatprep.mubr.f32.mxu1 %v17886_v39  ;;  %v1719_v41 = vrot.slane %v17899_v20, 1  ;;  %v17917_v39 = vld [vmem:[#allocation2 + $0x4e8] sm:$0xff]  ;;  %20752 = vst [vmem:[#allocation228_spill] sm:$0xff] %v17922_v43  ;;  %20754 = vst [vmem:[#allocation230_spill] sm:$0xff] %v17934_v11  ;;  %v17939_v43 = vsel %vm3282_vm1, %v3423_v4, %v3425_v54  ;;  %v17944_v20 = vld [vmem:[#allocation2 + $0x290] sm:$0xff]  ;;  %v17951_v0 = vsel %vm3282_vm1, %v3427_v34, %v3428_v27 }
 0x189   : > { %13540 = vmatprep.mubr.f32.mxu0 %v17892_v42  ;;  %v17928_v42 = vld [vmem:[#allocation2 + $0x4f0] sm:$0xff]  ;;  %v1721_v24 = vrot.slane %v17917_v39, 1  ;;  %20755 = vst [vmem:[#allocation231_spill] sm:$0xff] %v17939_v43  ;;  %20757 = vst [vmem:[#allocation233_spill] sm:$0xff] %v17944_v20 }
 0x18a   : > { %v17942_v28 = vsel %vm1438_vm0, %v1718_v59, %v1719_v41  ;;  %20758 = vst [vmem:[#allocation234_spill] sm:$0xff] %v17951_v0  ;;  %20759 = vst [vmem:[#allocation235_spill] sm:$0xff] %v17953_v36 }
 0x18b   : > { %12517 = vmatmul.mubr.f32.gmra.mrb[120].mxu1 %v17905_v30  ;;  %20756 = vst [vmem:[#allocation232_spill] sm:$0xff] %v17942_v28  ;;  %v3430_v30 = vrot.slane %v17944_v20, 2  ;;  %v17960_v54 = vsel %vm1438_vm0, %v1719_v41, %v1721_v24  ;;  %v3437_v41 = vrot.slane %v17120_v18, 2  ;;  %v3441_v18 = vrot.slane %v17145_v23, 2 }
 0x18c   : > { %13541 = vmatmul.mubr.f32.gmra.mrb[56].mxu0 %v17908_v58  ;;  %12519 = vmatprep.mubr.f32.mxu1 %v17913_v17  ;;  %v1723_v58 = vrot.slane %v17928_v42, 1  ;;  %v17948_v17 = vld [vmem:[#allocation2 + $0x4f8] sm:$0x3]  ;;  %20760 = vst [vmem:[#allocation236_spill] sm:$0xff] %v17960_v54  ;;  %v3443_v23 = vrot.slane %v17175_v3, 2  ;;  %v10891_v3 = vld [vmem:[%s19945_s1 + $0x128] sm:$0xff] }
 0x18d   : > { %13543 = vmatprep.mubr.f32.mxu0 %v17920_v32  ;;  %v3432_v32 = vrot.slane %v17953_v36, 2  ;;  %v1725_v4 = vrot.slane %v17948_v17, 1  ;;  %v17965_v34 = vsel %vm3282_vm1, %v3428_v27, %v3430_v30  ;;  %v15721_v36 = vld [vmem:[#allocation2 + $0x2a0] sm:$0x3] }
 0x18e   : > { %20761 = vst [vmem:[#allocation237_spill] sm:$0xff] %v17965_v34  ;;  %v17968_v59 = vsel %vm1438_vm0, %v1721_v24, %v1723_v58  ;;  %v3434_v20 = vrot.slane %v15721_v36, 2  ;;  %v10888_v36 = vld [vmem:[%s19945_s1 + $0x110] sm:$0xff] }
 0x18f   : > { %12520 = vmatmul.mubr.f32.gmra.mrb[122].mxu1 %v17934_v11  ;;  %20762 = vst [vmem:[#allocation238_spill] sm:$0xff] %v17968_v59  ;;  %v17971_v11 = vsel %vm3282_vm1, %v3430_v30, %v3432_v32  ;;  %v17979_v27 = vsel %vm1438_vm0, %v1723_v58, %v1725_v4  ;;  %v3439_v30 = vrot.slane %v17138_v61, 2  ;;  %v10889_v58 = vld [vmem:[%s19945_s1 + $0x118] sm:$0xff]  ;;  %v3446_v4 = vrot.slane %v17183_v52, 2  ;;  %v10967_v52 = vld [vmem:[%s19945_s1 + $0x388] sm:$0xff] }
 0x190   : > { %13544 = vmatmul.mubr.f32.gmra.mrb[58].mxu0 %v17939_v43  ;;  %12522 = vmatprep.mubr.f32.mxu1 %v17942_v28  ;;  %20763 = vst [vmem:[#allocation239_spill] sm:$0xff] %v17971_v11  ;;  %v3436_v28 = vrot.slane %v17118_v10, 2  ;;  %20764 = vst [vmem:[#allocation240_spill] sm:$0xff] %v17979_v27  ;;  %v17983_v24 = vsel %vm3282_vm1, %v3432_v32, %v3434_v20  ;;  %v17998_v20 = vld [vmem:[#allocation2] sm:$0xff]  ;;  %v3445_v32 = vrot.slane %v17181_v12, 2  ;;  %v18435_v43 = vld [vmem:[#allocation2 + $0x1e8] sm:$0xff] }
 0x191   : > { %13546 = vmatprep.mubr.f32.mxu0 %v17951_v0  ;;  %20765 = vst [vmem:[#allocation241_spill] sm:$0xff] %v17983_v24  ;;  %20767 = vst [vmem:[#allocation243_spill] sm:$0xff] %v17998_v20  ;;  %v18003_v61 = vsel %vm3282_vm1, %v3437_v41, %v3439_v30  ;;  %v10966_v12 = vld [vmem:[%s19945_s1 + $0x380] sm:$0xff] }
 0x192   : > { %v17987_v10 = vsel %vm3282_vm1, %v3436_v28, %v3437_v41  ;;  %20768 = vst [vmem:[#allocation244_spill] sm:$0xff] %v18003_v61  ;;  %v18007_v28 = vsel %vm3282_vm1, %v3439_v30, %v3441_v18  ;;  %v18028_v41 = vld [vmem:[#allocation2 + $0x10] sm:$0xff]  ;;  %v18033_v30 = vsel %vm3282_vm1, %v3441_v18, %v3443_v23  ;;  %v15726_v23 = vld [vmem:[#allocation2 + $0x28] sm:$0xff] }
 0x193   : > { %12523 = vmatmul.mubr.f32.gmra.mrb[124].mxu1 %v17960_v54  ;;  %20766 = vst [vmem:[#allocation242_spill] sm:$0xff] %v17987_v10  ;;  %20769 = vst [vmem:[#allocation245_spill] sm:$0xff] %v18007_v28  ;;  %v10890_v54 = vld [vmem:[%s19945_s1 + $0x120] sm:$0xff]  ;;  %v10892_v18 = vld [vmem:[%s19945_s1 + $0x130] sm:$0xff] }
 0x194   : > { %13547 = vmatmul.mubr.f32.gmra.mrb[60].mxu0 %v17965_v34  ;;  %12525 = vmatprep.mubr.f32.mxu1 %v17968_v59  ;;  %v18011_v59 = vld [vmem:[#allocation2 + $0x8] sm:$0xff]  ;;  %20771 = vst [vmem:[#allocation247_spill] sm:$0xff] %v18028_v41  ;;  %20772 = vst [vmem:[#allocation248_spill] sm:$0xff] %v18033_v30  ;;  %v18402_v34 = vld [vmem:[#allocation2 + $0x1c0] sm:$0xff] }
 0x195   : > { %13549 = vmatprep.mubr.f32.mxu0 %v17971_v11  ;;  %20770 = vst [vmem:[#allocation246_spill] sm:$0xff] %v18011_v59 }
 0x197   : > { %12526 = vmatmul.mubr.f32.gmra.mrb[126].mxu1 %v17979_v27  ;;  %v14388_v27 = vpack.c.bf16 %v10889_v58, %v10888_v36  ;;  %v3448_v36 = vrot.slane %v17209_v47, 2  ;;  %v18039_v58 = vsel %vm3282_vm1, %v3445_v32, %v3446_v4  ;;  %v10893_v47 = vld [vmem:[%s19945_s1 + $0x138] sm:$0xff] }
 0x198   : > { %13550 = vmatmul.mubr.f32.gmra.mrb[62].mxu0 %v17983_v24  ;;  %12560 = vmatprep.mubr.f32.mxu1 %v17998_v20  ;;  %20773 = vst [vmem:[#allocation249_spill] sm:$0xff] %v18039_v58  ;;  %v18042_v24 = vld [vmem:[#allocation2 + $0x18] sm:$0xff] }
 0x199   : > { %13552 = vmatprep.mubr.f32.mxu0 %v17987_v10  ;;  %v14392_v10 = vpack.c.bf16 %v10891_v3, %v10890_v54  ;;  %20774 = vst [vmem:[#allocation250_spill] sm:$0xff] %v18042_v24  ;;  %v3452_v54 = vrot.slane %v17240_v51, 2  ;;  %v3454_v3 = vrot.slane %v17246_v19, 2  ;;  %v10895_v51 = vld [vmem:[%s19945_s1 + $0x148] sm:$0xff]  ;;  %v18457_v20 = vld [vmem:[#allocation2 + $0x1f8] sm:$0xff] }
 0x19b   : > { %12561 = vmatmul.mubr.f32.vlgmr.msra.gmra.mrb[0].mxu1 %v18011_v59 }
 0x19c   : > { %13553 = vmatmul.mubr.f32.gmra.mrb[64].mxu0 %v18003_v61  ;;  %14387 = vmatpush3.bf16.msra.mxu1 %v17163_v1  ;;  %v18036_v1 = vpack.c.bf16 %v10967_v52, %v10966_v12  ;;  %v3450_v61 = vrot.slane %v17216_v63, 2  ;;  %v18055_v63 = vsel %vm3282_vm1, %v3446_v4, %v3448_v36  ;;  %v3455_v12 = vrot.slane %v17248_v40, 2 }
 0x19d   : > { %12563 = vmatprep.mubr.f32.mxu1 %v18028_v41  ;;  %13555 = vmatprep.mubr.f32.mxu0 %v18007_v28  ;;  %20775 = vst [vmem:[#allocation251_spill] sm:$0xff] %v18055_v63  ;;  %v14396_v52 = vpack.c.bf16 %v10893_v47, %v10892_v18  ;;  %v3457_v40 = vrot.slane %v17267_v49, 2  ;;  %v15729_v18 = vld [vmem:[#allocation2 + $0x40] sm:$0xff]  ;;  %v18080_v47 = vld [vmem:[#allocation2 + $0x50] sm:$0xff]  ;;  %v18385_v28 = vld [vmem:[#allocation2 + $0x1a8] sm:$0xff] }
 0x19e   : > { %14389 = vmatprep.subr.bf16.mxu1 %v14388_v27  ;;  %14545 = vmatprep.subr.bf16.mxu0 %v18036_v1  ;;  %v18059_v32 = vsel %vm3282_vm1, %v3448_v36, %v3450_v61  ;;  %v18072_v19 = vsel %vm3282_vm1, %v3450_v61, %v3452_v54  ;;  %v18076_v4 = vsel %vm3282_vm1, %v3454_v3, %v3455_v12  ;;  %v3463_v61 = vrot.slane %v17298_v21, 2  ;;  %v18093_v3 = vld [vmem:[#allocation2 + $0x58] sm:$0xff] }
 0x19f   : > { %12564 = vmatmul.mubr.f32.gmra.mrb[2].mxu1 %v18042_v24  ;;  %20776 = vst [vmem:[#allocation252_spill] sm:$0xff] %v18059_v32  ;;  %20777 = vst [vmem:[#allocation253_spill] sm:$0xff] %v18072_v19  ;;  %v18085_v49 = vsel %vm3282_vm1, %v3455_v12, %v3457_v40  ;;  %v3464_v54 = vrot.slane %v17300_v22, 2  ;;  %v3466_v21 = vrot.slane %v17319_v60, 2  ;;  %v3468_v12 = vrot.slane %v17326_v8, 2  ;;  %v20848_v41 = vld [vmem:[#allocation215_spill] sm:$0xff] }
 0x1a0   : > { %13556 = vmatmul.mubr.f32.gmra.mrb[66].mxu0 %v18033_v30  ;;  %12566 = vmatprep.mubr.f32.mxu1 %v15726_v23  ;;  %v15727_v30 = vld [vmem:[#allocation2 + $0x30] sm:$0xff]  ;;  %v10894_v23 = vld [vmem:[%s19945_s1 + $0x140] sm:$0xff]  ;;  %20778 = vst [vmem:[#allocation254_spill] sm:$0xff] %v18076_v4  ;;  %20779 = vst [vmem:[#allocation255_spill] sm:$0xff] %v18085_v49  ;;  %v3472_v8 = vrot.slane %v17350_v44, 2  ;;  %v3558_v59 = vrot.slane %v20848_v41, 2 }
 0x1a1   : > { %13558 = vmatprep.mubr.f32.mxu0 %v18039_v58  ;;  %14391 = vmatpush3.bf16.msra.mxu1 %v14388_v27  ;;  %v15728_v27 = vld [vmem:[#allocation2 + $0x38] sm:$0xff]  ;;  %v14400_v36 = vpack.c.bf16 %v10895_v51, %v10894_v23  ;;  %v18097_v23 = vld [vmem:[#allocation2 + $0x60] sm:$0xff]  ;;  %v18106_v22 = vsel %vm3282_vm1, %v3463_v61, %v3464_v54  ;;  %v18118_v60 = vsel %vm3282_vm1, %v3464_v54, %v3466_v21  ;;  %v18142_v61 = vld [vmem:[#allocation2 + $0x90] sm:$0xff] }
 0x1a2   : > { %14393 = vmatprep.subr.bf16.mxu1 %v14392_v10  ;;  %20782 = vst [vmem:[#allocation258_spill] sm:$0xff] %v18106_v22  ;;  %v18113_v51 = vld [vmem:[#allocation2 + $0x78] sm:$0xff]  ;;  %20783 = vst [vmem:[#allocation259_spill] sm:$0xff] %v18118_v60  ;;  %v18146_v54 = vld [vmem:[#allocation2 + $0xa0] sm:$0xff] }
 0x1a3   : > { %12567 = vmatmul.mubr.f32.gmra.mrb[4].mxu1 %v15727_v30  ;;  %v3459_v30 = vrot.slane %v17274_v48, 2  ;;  %v18369_v58 = vld [vmem:[#allocation2 + $0x198] sm:$0xff] }
 0x1a4   : > { %13559 = vmatmul.mubr.f32.gmra.mrb[68].mxu0 %v18055_v63  ;;  %12569 = vmatprep.mubr.f32.mxu1 %v15728_v27  ;;  %v3470_v27 = vrot.slane %v17344_v7, 2 }
 0x1a5   : > { %13561 = vmatprep.mubr.f32.mxu0 %v18059_v32  ;;  %14395 = vmatpush3.bf16.msra.mxu1 %v14392_v10  ;;  %v3461_v10 = vrot.slane %v17292_v15, 2  ;;  %v18089_v48 = vsel %vm3282_vm1, %v3457_v40, %v3459_v30  ;;  %v18122_v40 = vsel %vm3282_vm1, %v3466_v21, %v3468_v12  ;;  %v20829_v32 = vld [vmem:[#allocation191_spill] sm:$0xff] }
 0x1a6   : > { %14397 = vmatprep.subr.bf16.mxu1 %v14396_v52  ;;  %20780 = vst [vmem:[#allocation256_spill] sm:$0xff] %v18089_v48  ;;  %20784 = vst [vmem:[#allocation260_spill] sm:$0xff] %v18122_v40  ;;  %v18135_v7 = vsel %vm3282_vm1, %v3468_v12, %v3470_v27  ;;  %v3482_v27 = vrot.slane %v17410_v5, 2  ;;  %v3536_v63 = vrot.slane %v20829_v32, 2  ;;  %v20833_v32 = vld [vmem:[#allocation80_spill] sm:$0xff] }
 0x1a7   : > { %12570 = vmatmul.mubr.f32.gmra.mrb[6].mxu1 %v15729_v18  ;;  %v18102_v15 = vsel %vm3282_vm1, %v3459_v30, %v3461_v10  ;;  %v3473_v30 = vrot.slane %v17352_v46, 2  ;;  %v18130_v18 = vld [vmem:[#allocation2 + $0x88] sm:$0xff]  ;;  %20785 = vst [vmem:[#allocation261_spill] sm:$0xff] %v18135_v7  ;;  %v3475_v10 = vrot.slane %v17371_v33, 2  ;;  %v3477_v46 = vrot.slane %v17378_v57, 2 }
 0x1a8   : > { %13562 = vmatmul.mubr.f32.gmra.mrb[70].mxu0 %v18072_v19  ;;  %12572 = vmatprep.mubr.f32.mxu1 %v18080_v47  ;;  %20781 = vst [vmem:[#allocation257_spill] sm:$0xff] %v18102_v15  ;;  %v3479_v33 = vrot.slane %v17402_v53, 2  ;;  %v3481_v57 = vrot.slane %v17408_v9, 2  ;;  %v18169_v53 = vld [vmem:[#allocation2 + $0xb0] sm:$0xff]  ;;  %v18352_v19 = vld [vmem:[#allocation2 + $0x180] sm:$0xff] }
 0x1a9   : > { %13564 = vmatprep.mubr.f32.mxu0 %v18076_v4  ;;  %14399 = vmatpush3.bf16.msra.mxu1 %v14396_v52  ;;  %v18109_v52 = vld [vmem:[#allocation2 + $0x68] sm:$0xff]  ;;  %v18139_v44 = vsel %vm3282_vm1, %v3472_v8, %v3473_v30  ;;  %v18151_v21 = vsel %vm3282_vm1, %v3473_v30, %v3475_v10  ;;  %v18155_v12 = vsel %vm3282_vm1, %v3475_v10, %v3477_v46  ;;  %v10897_v30 = vld [vmem:[%s19945_s1 + $0x158] sm:$0xff]  ;;  %v3484_v10 = vrot.slane %v17429_v6, 2 }
 0x1aa   : > { %14401 = vmatprep.subr.bf16.mxu1 %v14400_v36  ;;  %20786 = vst [vmem:[#allocation262_spill] sm:$0xff] %v18139_v44  ;;  %20787 = vst [vmem:[#allocation263_spill] sm:$0xff] %v18151_v21  ;;  %v18159_v8 = vld [vmem:[#allocation2 + $0xa8] sm:$0xff]  ;;  %v18174_v5 = vsel %vm3282_vm1, %v3477_v46, %v3479_v33  ;;  %v3488_v46 = vrot.slane %v17454_v25, 2  ;;  %v3490_v33 = vrot.slane %v17460_v55, 2  ;;  %v18319_v4 = vld [vmem:[#allocation2 + $0x158] sm:$0xff] }
 0x1ab   : > { %12573 = vmatmul.mubr.f32.gmra.mrb[8].mxu1 %v18093_v3  ;;  %20788 = vst [vmem:[#allocation264_spill] sm:$0xff] %v18155_v12  ;;  %20789 = vst [vmem:[#allocation265_spill] sm:$0xff] %v18174_v5  ;;  %v18190_v6 = vsel %vm3282_vm1, %v3482_v27, %v3484_v10 }
 0x1ac   : > { %13565 = vmatmul.mubr.f32.gmra.mrb[72].mxu0 %v18085_v49  ;;  %12575 = vmatprep.mubr.f32.mxu1 %v18097_v23  ;;  %20791 = vst [vmem:[#allocation267_spill] sm:$0xff] %v18190_v6 }
 0x1ad   : > { %13567 = vmatprep.mubr.f32.mxu0 %v18089_v48  ;;  %14403 = vmatpush3.bf16.msra.mxu1 %v14400_v36  ;;  %v18126_v36 = vld [vmem:[#allocation2 + $0x80] sm:$0xff]  ;;  %v20815_v48 = vld [vmem:[#allocation62_spill] sm:$0xff] }
 0x1ae   : > { %v3522_v49 = vrot.slane %v20815_v48, 2 }
 0x1af   : > { %12576 = vmatmul.mubr.f32.gmra.mrb[10].mxu1 %v18109_v52 }
 0x1b0   : > { %13568 = vmatmul.mubr.f32.gmra.mrb[74].mxu0 %v18102_v15  ;;  %12578 = vmatprep.mubr.f32.mxu1 %v18113_v51 }
 0x1b1   : > { %13570 = vmatprep.mubr.f32.mxu0 %v18106_v22  ;;  %v18297_v22 = vld [vmem:[#allocation2 + $0x148] sm:$0xff] }
 0x1b3   : > { %12579 = vmatmul.mubr.f32.gmra.mrb[12].mxu1 %v18126_v36 }
 0x1b4   : > { %13571 = vmatmul.mubr.f32.gmra.mrb[76].mxu0 %v18118_v60  ;;  %12581 = vmatprep.mubr.f32.mxu1 %v18130_v18  ;;  %v18181_v60 = vld [vmem:[#allocation2 + $0xb8] sm:$0xff] }
 0x1b5   : > { %13573 = vmatprep.mubr.f32.mxu0 %v18122_v40  ;;  %v3486_v40 = vrot.slane %v17436_v45, 2 }
 0x1b7   : > { %12582 = vmatmul.mubr.f32.gmra.mrb[14].mxu1 %v18142_v61  ;;  %v18194_v45 = vsel %vm3282_vm1, %v3484_v10, %v3486_v40  ;;  %v18207_v25 = vsel %vm3282_vm1, %v3486_v40, %v3488_v46  ;;  %v18218_v10 = vld [vmem:[#allocation2 + $0xf0] sm:$0xff] }
 0x1b8   : > { %13574 = vmatmul.mubr.f32.gmra.mrb[78].mxu0 %v18135_v7  ;;  %12584 = vmatprep.mubr.f32.mxu1 %v18146_v54  ;;  %v18178_v7 = vsel %vm3282_vm1, %v3481_v57, %v3482_v27  ;;  %20792 = vst [vmem:[#allocation268_spill] sm:$0xff] %v18194_v45  ;;  %v3491_v57 = vrot.slane %v17462_v38, 2  ;;  %20793 = vst [vmem:[#allocation269_spill] sm:$0xff] %v18207_v25  ;;  %v3493_v27 = vrot.slane %v17481_v29, 2  ;;  %v3495_v38 = vrot.slane %v17488_v37, 2 }
 0x1b9   : > { %13576 = vmatprep.mubr.f32.mxu0 %v18139_v44  ;;  %v10896_v44 = vld [vmem:[%s19945_s1 + $0x150] sm:$0xff]  ;;  %20790 = vst [vmem:[#allocation266_spill] sm:$0xff] %v18178_v7  ;;  %v3497_v29 = vrot.slane %v17506_v26, 2  ;;  %v3499_v37 = vrot.slane %v17512_v13, 2 }
 0x1ba   : > { %v14404_v9 = vpack.c.bf16 %v10897_v30, %v10896_v44  ;;  %v18185_v44 = vld [vmem:[#allocation2 + $0xc8] sm:$0xff]  ;;  %v18198_v30 = vld [vmem:[#allocation2 + $0xd0] sm:$0xff]  ;;  %v18211_v55 = vsel %vm3282_vm1, %v3490_v33, %v3491_v57  ;;  %v18223_v40 = vsel %vm3282_vm1, %v3491_v57, %v3493_v27  ;;  %v18227_v46 = vsel %vm3282_vm1, %v3493_v27, %v3495_v38 }
 0x1bb   : > { %12585 = vmatmul.mubr.f32.gmra.mrb[16].mxu1 %v18159_v8  ;;  %20794 = vst [vmem:[#allocation270_spill] sm:$0xff] %v18211_v55  ;;  %20795 = vst [vmem:[#allocation271_spill] sm:$0xff] %v18223_v40  ;;  %v3500_v33 = vrot.slane %v17514_v62, 2  ;;  %v18240_v26 = vsel %vm3282_vm1, %v3495_v38, %v3497_v29  ;;  %v3502_v57 = vrot.slane %v17533_v2, 2  ;;  %v3504_v62 = vrot.slane %v17540_v35, 2  ;;  %v18247_v27 = vld [vmem:[#allocation2 + $0x108] sm:$0xff] }
 0x1bc   : > { %13577 = vmatmul.mubr.f32.gmra.mrb[80].mxu0 %v18151_v21  ;;  %12587 = vmatprep.mubr.f32.mxu1 %v18169_v53  ;;  %20796 = vst [vmem:[#allocation272_spill] sm:$0xff] %v18227_v46  ;;  %20797 = vst [vmem:[#allocation273_spill] sm:$0xff] %v18240_v26  ;;  %v20800_v2 = vld [vmem:[#allocation166_spill] sm:$0xff]  ;;  %v20802_v35 = vld [vmem:[#allocation49_spill] sm:$0xff] }
 0x1bd   : > { %13579 = vmatprep.mubr.f32.mxu0 %v18155_v12  ;;  %14405 = vmatprep.subr.bf16.mxu1 %v14404_v9  ;;  %v18244_v13 = vsel %vm3282_vm1, %v3499_v37, %v3500_v33  ;;  %v18256_v38 = vsel %vm3282_vm1, %v3500_v33, %v3502_v57  ;;  %v3506_v29 = vrot.slane %v20800_v2, 2  ;;  %v18260_v37 = vsel %vm3282_vm1, %v3502_v57, %v3504_v62  ;;  %v20805_v57 = vld [vmem:[#allocation52_spill] sm:$0xff]  ;;  %v20811_v12 = vld [vmem:[#allocation175_spill] sm:$0xff] }
 0x1be   : > { %14407 = vmatpush3.bf16.msra.mxu1 %v14404_v9  ;;  %v18214_v9 = vld [vmem:[#allocation2 + $0xe0] sm:$0xff]  ;;  %20798 = vst [vmem:[#allocation274_spill] sm:$0xff] %v18244_v13  ;;  %20799 = vst [vmem:[#allocation275_spill] sm:$0xff] %v18256_v38  ;;  %v3511_v2 = vrot.slane %v20805_v57, 2  ;;  %v3518_v21 = vrot.slane %v20811_v12, 2 }
 0x1bf   : > { %12588 = vmatmul.mubr.f32.gmra.mrb[18].mxu1 %v18181_v60  ;;  %20801 = vst [vmem:[#allocation166_spill] sm:$0xff] %v18260_v37  ;;  %v18273_v33 = vsel %vm3282_vm1, %v3504_v62, %v3506_v29  ;;  %v20808_v29 = vld [vmem:[#allocation173_spill] sm:$0xff] }
 0x1c0   : > { %13580 = vmatmul.mubr.f32.gmra.mrb[82].mxu0 %v18174_v5  ;;  %12590 = vmatprep.mubr.f32.mxu1 %v18185_v44  ;;  %v18264_v5 = vld [vmem:[#allocation2 + $0x120] sm:$0xff]  ;;  %20804 = vst [vmem:[#allocation49_spill] sm:$0xff] %v18273_v33 }
 0x1c1   : > { %13582 = vmatprep.mubr.f32.mxu0 %v18178_v7  ;;  %v18202_v7 = vld [vmem:[#allocation2 + $0xd8] sm:$0xff] }
 0x1c3   : > { %12591 = vmatmul.mubr.f32.gmra.mrb[20].mxu1 %v18198_v30 }
 0x1c4   : > { %13583 = vmatmul.mubr.f32.gmra.mrb[84].mxu0 %v18190_v6  ;;  %12593 = vmatprep.mubr.f32.mxu1 %v18202_v7 }
 0x1c5   : > { %13585 = vmatprep.mubr.f32.mxu0 %v18194_v45  ;;  %v18231_v45 = vld [vmem:[#allocation2 + $0xf8] sm:$0xff] }
 0x1c7   : > { %12594 = vmatmul.mubr.f32.gmra.mrb[22].mxu1 %v18214_v9 }
 0x1c8   : > { %13586 = vmatmul.mubr.f32.gmra.mrb[86].mxu0 %v18207_v25  ;;  %12596 = vmatprep.mubr.f32.mxu1 %v18218_v10  ;;  %v18235_v25 = vld [vmem:[#allocation2 + $0x100] sm:$0xff] }
 0x1c9   : > { %13588 = vmatprep.mubr.f32.mxu0 %v18211_v55  ;;  %v20803_v55 = vld [vmem:[#allocation168_spill] sm:$0xff] }
 0x1ca   : > { %v3509_v6 = vrot.slane %v20803_v55, 2  ;;  %v3513_v55 = vrot.slane %v17592_v31, 2  ;;  %v20810_v31 = vld [vmem:[#allocation58_spill] sm:$0xff] }
 0x1cb   : > { %12597 = vmatmul.mubr.f32.gmra.mrb[24].mxu1 %v18231_v45 }
 0x1cc   : > { %13589 = vmatmul.mubr.f32.gmra.mrb[88].mxu0 %v18223_v40  ;;  %12599 = vmatprep.mubr.f32.mxu1 %v18235_v25  ;;  %v18251_v40 = vld [vmem:[#allocation2 + $0x118] sm:$0xff]  ;;  %v18289_v62 = vsel %vm3282_vm1, %v3509_v6, %v3511_v2  ;;  %v18293_v57 = vsel %vm3282_vm1, %v3511_v2, %v3513_v55  ;;  %v18307_v2 = vld [vmem:[#allocation2 + $0x150] sm:$0xff] }
 0x1cd   : > { %13591 = vmatprep.mubr.f32.mxu0 %v18227_v46  ;;  %v3508_v46 = vrot.slane %v20802_v35, 2  ;;  %20807 = vst [vmem:[#allocation52_spill] sm:$0xff] %v18289_v62  ;;  %20809 = vst [vmem:[#allocation173_spill] sm:$0xff] %v18293_v57 }
 0x1cf   : > { %12600 = vmatmul.mubr.f32.gmra.mrb[26].mxu1 %v18247_v27  ;;  %v18277_v35 = vsel %vm3282_vm1, %v3508_v46, %v3509_v6  ;;  %v3515_v46 = vrot.slane %v20808_v29, 2  ;;  %v10899_v6 = vld [vmem:[%s19945_s1 + $0x168] sm:$0xff] }
 0x1d0   : > { %13592 = vmatmul.mubr.f32.gmra.mrb[90].mxu0 %v18240_v26  ;;  %12602 = vmatprep.mubr.f32.mxu1 %v18251_v40  ;;  %v18268_v26 = vld [vmem:[#allocation2 + $0x128] sm:$0xff]  ;;  %20806 = vst [vmem:[#allocation168_spill] sm:$0xff] %v18277_v35 }
 0x1d1   : > { %13594 = vmatprep.mubr.f32.mxu0 %v18244_v13  ;;  %v18280_v13 = vld [vmem:[#allocation2 + $0x130] sm:$0xff]  ;;  %v18312_v12 = vsel %vm3282_vm1, %v3513_v55, %v3515_v46 }
 0x1d2   : > { %20812 = vst [vmem:[#allocation58_spill] sm:$0xff] %v18312_v12 }
 0x1d3   : > { %12603 = vmatmul.mubr.f32.gmra.mrb[28].mxu1 %v18264_v5 }
 0x1d4   : > { %13595 = vmatmul.mubr.f32.gmra.mrb[92].mxu0 %v18256_v38  ;;  %12605 = vmatprep.mubr.f32.mxu1 %v18268_v26  ;;  %v18284_v38 = vld [vmem:[#allocation2 + $0x140] sm:$0xff] }
 0x1d5   : > { %13597 = vmatprep.mubr.f32.mxu0 %v18260_v37  ;;  %v3517_v37 = vrot.slane %v20810_v31, 2  ;;  %v20813_v31 = vld [vmem:[#allocation61_spill] sm:$0xff] }
 0x1d7   : > { %12606 = vmatmul.mubr.f32.gmra.mrb[30].mxu1 %v18280_v13  ;;  %v18316_v15 = vsel %vm3282_vm1, %v3517_v37, %v3518_v21  ;;  %v20817_v37 = vld [vmem:[#allocation181_spill] sm:$0xff] }
 0x1d8   : > { %13598 = vmatmul.mubr.f32.gmra.mrb[94].mxu0 %v18273_v33  ;;  %12608 = vmatprep.mubr.f32.mxu1 %v18284_v38  ;;  %v3520_v33 = vrot.slane %v20813_v31, 2  ;;  %20814 = vst [vmem:[#allocation175_spill] sm:$0xff] %v18316_v15  ;;  %v3524_v46 = vrot.slane %v20817_v37, 2 }
 0x1d9   : > { %13600 = vmatprep.mubr.f32.mxu0 %v18277_v35  ;;  %v10898_v35 = vld [vmem:[%s19945_s1 + $0x160] sm:$0xff] }
 0x1da   : > { %v14408_v29 = vpack.c.bf16 %v10899_v6, %v10898_v35  ;;  %v18323_v35 = vld [vmem:[#allocation2 + $0x168] sm:$0xff]  ;;  %v18328_v55 = vsel %vm3282_vm1, %v3518_v21, %v3520_v33  ;;  %v18332_v48 = vsel %vm3282_vm1, %v3520_v33, %v3522_v49  ;;  %v20819_v6 = vld [vmem:[#allocation67_spill] sm:$0xff]  ;;  %v18345_v21 = vsel %vm3282_vm1, %v3522_v49, %v3524_v46 }
 0x1db   : > { %12609 = vmatmul.mubr.f32.gmra.mrb[32].mxu1 %v18297_v22  ;;  %20816 = vst [vmem:[#allocation61_spill] sm:$0xff] %v18328_v55  ;;  %20818 = vst [vmem:[#allocation62_spill] sm:$0xff] %v18332_v48  ;;  %v3526_v31 = vrot.slane %v20819_v6, 2  ;;  %v20822_v33 = vld [vmem:[#allocation70_spill] sm:$0xff]  ;;  %v20826_v46 = vld [vmem:[#allocation189_spill] sm:$0xff] }
 0x1dc   : > { %13601 = vmatmul.mubr.f32.gmra.mrb[96].mxu0 %v18289_v62  ;;  %12611 = vmatprep.mubr.f32.mxu1 %v18307_v2  ;;  %20821 = vst [vmem:[#allocation181_spill] sm:$0xff] %v18345_v21 }
 0x1dd   : > { %13603 = vmatprep.mubr.f32.mxu0 %v18293_v57  ;;  %14409 = vmatprep.subr.bf16.mxu1 %v14408_v29  ;;  %v20820_v57 = vld [vmem:[#allocation183_spill] sm:$0xff] }
 0x1de   : > { %14411 = vmatpush3.bf16.msra.mxu1 %v14408_v29  ;;  %v3527_v62 = vrot.slane %v20820_v57, 2  ;;  %v3529_v29 = vrot.slane %v20822_v33, 2  ;;  %v20824_v57 = vld [vmem:[#allocation71_spill] sm:$0xff] }
 0x1df   : > { %12612 = vmatmul.mubr.f32.gmra.mrb[34].mxu1 %v18319_v4  ;;  %v3531_v6 = vrot.slane %v20824_v57, 2  ;;  %v20828_v57 = vld [vmem:[#allocation76_spill] sm:$0xff] }
 0x1e0   : > { %13604 = vmatmul.mubr.f32.gmra.mrb[98].mxu0 %v18312_v12  ;;  %12614 = vmatprep.mubr.f32.mxu1 %v18323_v35  ;;  %v18336_v12 = vld [vmem:[#allocation2 + $0x170] sm:$0xff]  ;;  %v18349_v37 = vsel %vm3282_vm1, %v3526_v31, %v3527_v62  ;;  %v18361_v49 = vsel %vm3282_vm1, %v3527_v62, %v3529_v29  ;;  %v3533_v31 = vrot.slane %v20826_v46, 2 }
 0x1e1   : > { %13606 = vmatprep.mubr.f32.mxu0 %v18316_v15  ;;  %v18340_v15 = vld [vmem:[#allocation2 + $0x178] sm:$0xff]  ;;  %20823 = vst [vmem:[#allocation67_spill] sm:$0xff] %v18349_v37  ;;  %20825 = vst [vmem:[#allocation183_spill] sm:$0xff] %v18361_v49  ;;  %v18365_v33 = vsel %vm3282_vm1, %v3529_v29, %v3531_v6 }
 0x1e2   : > { %20827 = vst [vmem:[#allocation70_spill] sm:$0xff] %v18365_v33  ;;  %v18378_v62 = vsel %vm3282_vm1, %v3531_v6, %v3533_v31  ;;  %v20831_v29 = vld [vmem:[#allocation79_spill] sm:$0xff]  ;;  %v20835_v31 = vld [vmem:[#allocation197_spill] sm:$0xff] }
 0x1e3   : > { %12615 = vmatmul.mubr.f32.gmra.mrb[36].mxu1 %v18336_v12  ;;  %20830 = vst [vmem:[#allocation71_spill] sm:$0xff] %v18378_v62  ;;  %v3538_v46 = vrot.slane %v20831_v29, 2 }
 0x1e4   : > { %13607 = vmatmul.mubr.f32.gmra.mrb[100].mxu0 %v18328_v55  ;;  %12617 = vmatprep.mubr.f32.mxu1 %v18340_v15  ;;  %v18356_v55 = vld [vmem:[#allocation2 + $0x190] sm:$0xff] }
 0x1e5   : > { %13609 = vmatprep.mubr.f32.mxu0 %v18332_v48  ;;  %v3535_v48 = vrot.slane %v20828_v57, 2  ;;  %v18394_v6 = vsel %vm3282_vm1, %v3536_v63, %v3538_v46 }
 0x1e6   : > { %20834 = vst [vmem:[#allocation76_spill] sm:$0xff] %v18394_v6 }
 0x1e7   : > { %12618 = vmatmul.mubr.f32.gmra.mrb[38].mxu1 %v18352_v19  ;;  %v18382_v57 = vsel %vm3282_vm1, %v3535_v48, %v3536_v63  ;;  %v3542_v48 = vrot.slane %v20835_v31, 2 }
 0x1e8   : > { %13610 = vmatmul.mubr.f32.gmra.mrb[102].mxu0 %v18345_v21  ;;  %12620 = vmatprep.mubr.f32.mxu1 %v18356_v55  ;;  %v18373_v21 = vld [vmem:[#allocation2 + $0x1a0] sm:$0xff]  ;;  %20832 = vst [vmem:[#allocation189_spill] sm:$0xff] %v18382_v57 }
 0x1e9   : > { %13612 = vmatprep.mubr.f32.mxu0 %v18349_v37  ;;  %v3540_v37 = vrot.slane %v20833_v32, 2  ;;  %v3544_v32 = vrot.slane %v17778_v56, 2 }
 0x1eb   : > { %12621 = vmatmul.mubr.f32.gmra.mrb[40].mxu1 %v18369_v58  ;;  %v18398_v29 = vsel %vm3282_vm1, %v3538_v46, %v3540_v37  ;;  %v18411_v63 = vsel %vm3282_vm1, %v3540_v37, %v3542_v48  ;;  %v20839_v46 = vld [vmem:[#allocation88_spill] sm:$0xff] }
 0x1ec   : > { %13613 = vmatmul.mubr.f32.gmra.mrb[104].mxu0 %v18361_v49  ;;  %12623 = vmatprep.mubr.f32.mxu1 %v18373_v21  ;;  %v18389_v49 = vld [vmem:[#allocation2 + $0x1b8] sm:$0xff]  ;;  %20836 = vst [vmem:[#allocation191_spill] sm:$0xff] %v18398_v29  ;;  %20838 = vst [vmem:[#allocation79_spill] sm:$0xff] %v18411_v63  ;;  %v3547_v31 = vrot.slane %v20839_v46, 2 }
 0x1ed   : > { %13615 = vmatprep.mubr.f32.mxu0 %v18365_v33  ;;  %v20837_v33 = vld [vmem:[#allocation85_spill] sm:$0xff]  ;;  %v20842_v48 = vld [vmem:[#allocation204_spill] sm:$0xff] }
 0x1ee   : > { %v3545_v11 = vrot.slane %v20837_v33, 2  ;;  %v3549_v33 = vrot.slane %v17806_v16, 2  ;;  %v3553_v16 = vrot.slane %v17838_v50, 2 }
 0x1ef   : > { %12624 = vmatmul.mubr.f32.gmra.mrb[42].mxu1 %v18385_v28 }
 0x1f0   : > { %13616 = vmatmul.mubr.f32.gmra.mrb[106].mxu0 %v18378_v62  ;;  %12626 = vmatprep.mubr.f32.mxu1 %v18389_v49  ;;  %v18406_v62 = vld [vmem:[#allocation2 + $0x1c8] sm:$0xff]  ;;  %v18415_v56 = vsel %vm3282_vm1, %v3544_v32, %v3545_v11  ;;  %v18427_v37 = vsel %vm3282_vm1, %v3545_v11, %v3547_v31  ;;  %v3551_v32 = vrot.slane %v20842_v48, 2  ;;  %v18431_v46 = vsel %vm3282_vm1, %v3547_v31, %v3549_v33  ;;  %v10901_v11 = vld [vmem:[%s19945_s1 + $0x178] sm:$0xff]  ;;  %v18445_v31 = vld [vmem:[#allocation2 + $0x1f0] sm:$0xff] }
 0x1f1   : > { %13618 = vmatprep.mubr.f32.mxu0 %v18382_v57  ;;  %20840 = vst [vmem:[#allocation80_spill] sm:$0xff] %v18415_v56  ;;  %v18418_v57 = vld [vmem:[#allocation2 + $0x1d0] sm:$0xff]  ;;  %20841 = vst [vmem:[#allocation197_spill] sm:$0xff] %v18427_v37 }
 0x1f2   : > { %20843 = vst [vmem:[#allocation85_spill] sm:$0xff] %v18431_v46  ;;  %v20846_v48 = vld [vmem:[#allocation211_spill] sm:$0xff] }
 0x1f3   : > { %12627 = vmatmul.mubr.f32.gmra.mrb[44].mxu1 %v18402_v34 }
 0x1f4   : > { %13619 = vmatmul.mubr.f32.gmra.mrb[108].mxu0 %v18394_v6  ;;  %12629 = vmatprep.mubr.f32.mxu1 %v18406_v62  ;;  %v18422_v6 = vld [vmem:[#allocation2 + $0x1e0] sm:$0xff] }
 0x1f5   : > { %13621 = vmatprep.mubr.f32.mxu0 %v18398_v29  ;;  %v20844_v29 = vld [vmem:[#allocation207_spill] sm:$0xff] }
 0x1f6   : > { %v3554_v0 = vrot.slane %v20844_v29, 2  ;;  %v18450_v29 = vsel %vm3282_vm1, %v3549_v33, %v3551_v32  ;;  %v20850_v32 = vld [vmem:[#allocation220_spill] sm:$0xff] }
 0x1f7   : > { %12630 = vmatmul.mubr.f32.gmra.mrb[46].mxu1 %v18418_v57  ;;  %20845 = vst [vmem:[#allocation88_spill] sm:$0xff] %v18450_v29 }
 0x1f8   : > { %13622 = vmatmul.mubr.f32.gmra.mrb[110].mxu0 %v18411_v63  ;;  %12632 = vmatprep.mubr.f32.mxu1 %v18422_v6  ;;  %v3556_v63 = vrot.slane %v20846_v48, 2  ;;  %v18454_v24 = vsel %vm3282_vm1, %v3553_v16, %v3554_v0  ;;  %v3560_v16 = vrot.slane %v20850_v32, 2  ;;  %v20852_v48 = vld [vmem:[#allocation223_spill] sm:$0xff]  ;;  %v18490_v32 = vld [vmem:[#allocation2 + $0x220] sm:$0xff] }
 0x1f9   : > { %13624 = vmatprep.mubr.f32.mxu0 %v18415_v56  ;;  %v10900_v56 = vld [vmem:[%s19945_s1 + $0x170] sm:$0xff]  ;;  %20847 = vst [vmem:[#allocation204_spill] sm:$0xff] %v18454_v24 }
 0x1fa   : > { %v14412_v50 = vpack.c.bf16 %v10901_v11, %v10900_v56  ;;  %v18461_v56 = vld [vmem:[#allocation2 + $0x208] sm:$0xff]  ;;  %v18466_v33 = vsel %vm3282_vm1, %v3554_v0, %v3556_v63  ;;  %v18470_v41 = vsel %vm3282_vm1, %v3556_v63, %v3558_v59  ;;  %v3562_v11 = vrot.slane %v17897_v14, 2 }
 0x1fb   : > { %12633 = vmatmul.mubr.f32.gmra.mrb[48].mxu1 %v18435_v43  ;;  %20849 = vst [vmem:[#allocation207_spill] sm:$0xff] %v18466_v33  ;;  %20851 = vst [vmem:[#allocation211_spill] sm:$0xff] %v18470_v41  ;;  %v18483_v0 = vsel %vm3282_vm1, %v3558_v59, %v3560_v16  ;;  %v3565_v63 = vrot.slane %v17917_v39, 2 }
 0x1fc   : > { %13625 = vmatmul.mubr.f32.gmra.mrb[112].mxu0 %v18427_v37  ;;  %12635 = vmatprep.mubr.f32.mxu1 %v18445_v31  ;;  %20853 = vst [vmem:[#allocation215_spill] sm:$0xff] %v18483_v0  ;;  %v18511_v37 = vld [vmem:[#allocation2 + $0x510] sm:$0xff] }
 0x1fd   : > { %13627 = vmatprep.mubr.f32.mxu0 %v18431_v46  ;;  %14413 = vmatprep.subr.bf16.mxu1 %v14412_v50  ;;  %v3563_v46 = vrot.slane %v20852_v48, 2  ;;  %v18493_v48 = vld [vmem:[#allocation2 + $0x500] sm:$0xff]  ;;  %20860 = vst [vmem:[#allocation280_spill] sm:$0xff] %v18511_v37 }
 0x1fe   : > { %14415 = vmatpush3.bf16.msra.mxu1 %v14412_v50  ;;  %v3567_v50 = vrot.slane %v17928_v42, 2  ;;  %20855 = vst [vmem:[#allocation223_spill] sm:$0xff] %v18493_v48  ;;  %v3569_v42 = vrot.slane %v17948_v17, 2  ;;  %v6267_v16 = vrot.slane %v18493_v48, 2  ;;  %v1256_v48 = vld [vmem:[#allocation2 + $0x520] sm:$0x3] }
 0x1ff   : > { %12636 = vmatmul.mubr.f32.gmra.mrb[50].mxu1 %v18457_v20  ;;  %v18487_v14 = vsel %vm3282_vm1, %v3562_v11, %v3563_v46  ;;  %v18503_v39 = vsel %vm3282_vm1, %v3563_v46, %v3565_v63  ;;  %v18519_v46 = vld [vmem:[#allocation2 + $0x240] sm:$0xff] }
 0x200   : > { %13628 = vmatmul.mubr.f32.gmra.mrb[114].mxu0 %v18450_v29  ;;  %12638 = vmatprep.mubr.f32.mxu1 %v18461_v56  ;;  %v18474_v29 = vld [vmem:[#allocation2 + $0x210] sm:$0xff]  ;;  %20854 = vst [vmem:[#allocation220_spill] sm:$0xff] %v18487_v14  ;;  %20858 = vst [vmem:[#allocation278_spill] sm:$0xff] %v18503_v39  ;;  %v18507_v59 = vsel %vm3282_vm1, %v3565_v63, %v3567_v50  ;;  %v18524_v17 = vsel %vm3282_vm1, %v3567_v50, %v3569_v42  ;;  %v6270_v63 = vrot.slane %v18511_v37, 2 }
 0x201   : > { %13630 = vmatprep.mubr.f32.mxu0 %v18454_v24  ;;  %v18478_v24 = vld [vmem:[#allocation2 + $0x218] sm:$0xff]  ;;  %20859 = vst [vmem:[#allocation279_spill] sm:$0xff] %v18507_v59  ;;  %20863 = vst [vmem:[#allocation283_spill] sm:$0xff] %v18524_v17  ;;  %v6274_v50 = vrot.slane %v1256_v48, 2  ;;  %v10968_v48 = vld [vmem:[%s19945_s1 + $0x390] sm:$0xff] }
 0x203   : > { %12639 = vmatmul.mubr.f32.gmra.mrb[52].mxu1 %v18474_v29 }
 0x204   : > { %13631 = vmatmul.mubr.f32.gmra.mrb[116].mxu0 %v18466_v33  ;;  %12641 = vmatprep.mubr.f32.mxu1 %v18478_v24  ;;  %v18495_v33 = vld [vmem:[#allocation2 + $0x508] sm:$0xff] }
 0x205   : > { %13633 = vmatprep.mubr.f32.mxu0 %v18470_v41  ;;  %20856 = vst [vmem:[#allocation276_spill] sm:$0xff] %v18495_v33  ;;  %v18498_v41 = vld [vmem:[#allocation2 + $0x230] sm:$0xff]  ;;  %v6268_v11 = vrot.slane %v18495_v33, 2 }
 0x206   : > { %20857 = vst [vmem:[#allocation277_spill] sm:$0xff] %v18498_v41 }
 0x207   : > { %12642 = vmatmul.mubr.f32.gmra.mrb[54].mxu1 %v18490_v32 }
 0x208   : > { %13634 = vmatmul.mubr.f32.gmra.mrb[118].mxu0 %v18483_v0  ;;  %12644 = vmatprep.mubr.f32.mxu1 %v18498_v41  ;;  %v18513_v0 = vld [vmem:[#allocation2 + $0x238] sm:$0xff] }
 0x209   : > { %13636 = vmatprep.mubr.f32.mxu0 %v18487_v14  ;;  %20861 = vst [vmem:[#allocation281_spill] sm:$0xff] %v18513_v0  ;;  %v18516_v41 = vld [vmem:[#allocation2 + $0x518] sm:$0xff]  ;;  %v18528_v14 = vsel %vm3282_vm1, %v6267_v16, %v6268_v11  ;;  %v20869_v16 = vld [vmem:[#allocation214_spill] sm:$0xff] }
 0x20a   : > { %20862 = vst [vmem:[#allocation282_spill] sm:$0xff] %v18516_v41  ;;  %20864 = vst [vmem:[#allocation284_spill] sm:$0xff] %v18528_v14  ;;  %v6272_v33 = vrot.slane %v18516_v41, 2  ;;  %v20870_v41 = vld [vmem:[#allocation217_spill] sm:$0xff] }
 0x20b   : > { %12645 = vmatmul.mubr.f32.gmra.mrb[56].mxu1 %v18513_v0  ;;  %v20865_v0 = vld [vmem:[#allocation206_spill] sm:$0xff] }
 0x20c   : > { %13637 = vmatmul.mubr.f32.gmra.mrb[120].mxu0 %v18503_v39  ;;  %12647 = vmatprep.mubr.f32.mxu1 %v18519_v46  ;;  %v20866_v39 = vld [vmem:[#allocation213_spill] sm:$0xff]  ;;  %v18539_v42 = vsel %vm3282_vm1, %v6270_v63, %v6272_v33 }
 0x20d   : > { %13639 = vmatprep.mubr.f32.mxu0 %v18507_v59  ;;  %v18536_v59 = vsel %vm3282_vm1, %v6268_v11, %v6270_v63  ;;  %20868 = vst [vmem:[#allocation213_spill] sm:$0xff] %v18539_v42  ;;  %v10969_v11 = vld [vmem:[%s19945_s1 + $0x398] sm:$0xff] }
 0x20e   : > { %20867 = vst [vmem:[#allocation206_spill] sm:$0xff] %v18536_v59  ;;  %v20873_v63 = vld [vmem:[#allocation228_spill] sm:$0xff] }
 0x20f   : > { %12648 = vmatmul.mubr.f32.gmra.mrb[58].mxu1 %v20865_v0  ;;  %v18546_v0 = vsel %vm3282_vm1, %v6272_v33, %v6274_v50  ;;  %v10970_v33 = vld [vmem:[%s19945_s1 + $0x3a0] sm:$0xff] }
 0x210   : > { %13640 = vmatmul.mubr.f32.gmra.mrb[122].mxu0 %v18524_v17  ;;  %12650 = vmatprep.mubr.f32.mxu1 %v20866_v39  ;;  %20871 = vst [vmem:[#allocation214_spill] sm:$0xff] %v18546_v0  ;;  %v20872_v39 = vld [vmem:[#allocation222_spill] sm:$0xff]  ;;  %v20874_v50 = vld [vmem:[#allocation229_spill] sm:$0xff] }
 0x211   : > { %13642 = vmatprep.mubr.f32.mxu0 %v18528_v14  ;;  %v18822_v14 = vld [vmem:[#allocation2 + $0x4a0] sm:$0xff]  ;;  %v20889_v17 = vld [vmem:[#allocation246_spill] sm:$0xff] }
 0x212   : > { %v3284_v37 = vrot.slane %v20889_v17, 2  ;;  %v10904_v17 = vld [vmem:[%s19945_s1 + $0x190] sm:$0xff] }
 0x213   : > { %12651 = vmatmul.mubr.f32.gmra.mrb[60].mxu1 %v20869_v16  ;;  %v10971_v16 = vld [vmem:[%s19945_s1 + $0x3a8] sm:$0xff] }
 0x214   : > { %13643 = vmatmul.mubr.f32.gmra.mrb[124].mxu0 %v18536_v59  ;;  %12653 = vmatprep.mubr.f32.mxu1 %v20870_v41  ;;  %v14548_v41 = vpack.c.bf16 %v10969_v11, %v10968_v48  ;;  %v14552_v11 = vpack.c.bf16 %v10971_v16, %v10970_v33  ;;  %v10972_v59 = vld [vmem:[%s19945_s1 + $0x3b0] sm:$0xff]  ;;  %v10974_v33 = vld [vmem:[%s19945_s1 + $0x3c0] sm:$0xff]  ;;  %v18600_v16 = vld [vmem:[#allocation2 + $0x2b8] sm:$0xff] }
 0x215   : > { %13645 = vmatprep.mubr.f32.mxu0 %v18539_v42  ;;  %v20876_v42 = vld [vmem:[#allocation235_spill] sm:$0xff] }
 0x217   : > { %12654 = vmatmul.mubr.f32.gmra.mrb[62].mxu1 %v20872_v39  ;;  %v10902_v39 = vld [vmem:[%s19945_s1 + $0x180] sm:$0xff] }
 0x218   : > { %13646 = vmatmul.mubr.f32.gmra.mrb[126].mxu0 %v18546_v0  ;;  %12656 = vmatprep.mubr.f32.mxu1 %v20873_v63  ;;  %v10903_v0 = vld [vmem:[%s19945_s1 + $0x188] sm:$0xff] }
 0x219   : > { %13680 = vmatprep.mubr.f32.mxu0 %v18080_v47  ;;  %v20875_v47 = vld [vmem:[#allocation233_spill] sm:$0xff]  ;;  %v18573_v48 = vpack.c.bf16 %v10903_v0, %v10902_v39  ;;  %v18636_v39 = vld [vmem:[#allocation2 + $0x310] sm:$0xff] }
 0x21a   : > { %v18586_v0 = vld [vmem:[#allocation2 + $0x2a8] sm:$0xff] }
 0x21b   : > { %12657 = vmatmul.mubr.f32.gmra.mrb[64].mxu1 %v20874_v50  ;;  %14417 = vmatprep.subr.bf16.mxu1 %v18573_v48 }
 0x21c   : > { %13681 = vmatmul.mubr.f32.vlgmr.msra.gmra.mrb[0].mxu0 %v18093_v3  ;;  %12659 = vmatprep.mubr.f32.mxu1 %v20875_v47  ;;  %v10973_v3 = vld [vmem:[%s19945_s1 + $0x3b8] sm:$0xff] }
 0x21d   : > { %14547 = vmatpush3.bf16.msra.mxu0 %v18036_v1  ;;  %13683 = vmatprep.mubr.f32.mxu0 %v18097_v23  ;;  %v14556_v1 = vpack.c.bf16 %v10973_v3, %v10972_v59  ;;  %v18590_v23 = vld [vmem:[#allocation2 + $0x2b0] sm:$0xff]  ;;  %v18604_v59 = vld [vmem:[#allocation2 + $0x2c0] sm:$0xff] }
 0x21e   : > { %14549 = vmatprep.subr.bf16.mxu0 %v14548_v41  ;;  %v18666_v3 = vld [vmem:[#allocation2 + $0x350] sm:$0xff] }
 0x21f   : > { %12660 = vmatmul.mubr.f32.gmra.mrb[66].mxu1 %v20876_v42 }
 0x220   : > { %13684 = vmatmul.mubr.f32.gmra.mrb[2].mxu0 %v18109_v52  ;;  %12662 = vmatprep.mubr.f32.mxu1 %v18586_v0  ;;  %v10975_v52 = vld [vmem:[%s19945_s1 + $0x3c8] sm:$0xff] }
 0x221   : > { %13686 = vmatprep.mubr.f32.mxu0 %v18113_v51  ;;  %14551 = vmatpush3.bf16.msra.mxu0 %v14548_v41  ;;  %v14560_v51 = vpack.c.bf16 %v10975_v52, %v10974_v33  ;;  %v18608_v41 = vld [vmem:[#allocation2 + $0x2d0] sm:$0xff]  ;;  %v18728_v33 = vld [vmem:[#allocation2 + $0x3d8] sm:$0xff] }
 0x222   : > { %14553 = vmatprep.subr.bf16.mxu0 %v14552_v11  ;;  %v18736_v52 = vld [vmem:[#allocation2 + $0x3f0] sm:$0xff] }
 0x223   : > { %12663 = vmatmul.mubr.f32.gmra.mrb[68].mxu1 %v18590_v23 }
 0x224   : > { %13687 = vmatmul.mubr.f32.gmra.mrb[4].mxu0 %v18126_v36  ;;  %12665 = vmatprep.mubr.f32.mxu1 %v18600_v16  ;;  %v18612_v36 = vld [vmem:[#allocation2 + $0x2d8] sm:$0xff] }
 0x225   : > { %13689 = vmatprep.mubr.f32.mxu0 %v18130_v18  ;;  %14555 = vmatpush3.bf16.msra.mxu0 %v14552_v11  ;;  %v18616_v18 = vld [vmem:[#allocation2 + $0x2e0] sm:$0xff]  ;;  %v18658_v11 = vld [vmem:[#allocation2 + $0x338] sm:$0xff] }
 0x226   : > { %14557 = vmatprep.subr.bf16.mxu0 %v14556_v1 }
 0x227   : > { %12666 = vmatmul.mubr.f32.gmra.mrb[70].mxu1 %v18604_v59 }
 0x228   : > { %13690 = vmatmul.mubr.f32.gmra.mrb[6].mxu0 %v18142_v61  ;;  %12668 = vmatprep.mubr.f32.mxu1 %v18608_v41  ;;  %v18620_v61 = vld [vmem:[#allocation2 + $0x2e8] sm:$0xff] }
 0x229   : > { %13692 = vmatprep.mubr.f32.mxu0 %v18146_v54  ;;  %14559 = vmatpush3.bf16.msra.mxu0 %v14556_v1  ;;  %v18624_v54 = vld [vmem:[#allocation2 + $0x2f8] sm:$0xff] }
 0x22a   : > { %14561 = vmatprep.subr.bf16.mxu0 %v14560_v51  ;;  %v18682_v1 = vld [vmem:[#allocation2 + $0x378] sm:$0xff] }
 0x22b   : > { %12669 = vmatmul.mubr.f32.gmra.mrb[72].mxu1 %v18612_v36 }
 0x22c   : > { %13693 = vmatmul.mubr.f32.gmra.mrb[8].mxu0 %v18159_v8  ;;  %12671 = vmatprep.mubr.f32.mxu1 %v18616_v18  ;;  %v18628_v8 = vld [vmem:[#allocation2 + $0x300] sm:$0xff] }
 0x22d   : > { %13695 = vmatprep.mubr.f32.mxu0 %v18169_v53  ;;  %14563 = vmatpush3.bf16.msra.mxu0 %v14560_v51  ;;  %v18632_v53 = vld [vmem:[#allocation2 + $0x308] sm:$0xff]  ;;  %v18752_v51 = vld [vmem:[#allocation2 + $0x418] sm:$0xff] }
 0x22f   : > { %12672 = vmatmul.mubr.f32.gmra.mrb[74].mxu1 %v18620_v61 }
 0x230   : > { %13696 = vmatmul.mubr.f32.gmra.mrb[10].mxu0 %v18181_v60  ;;  %12674 = vmatprep.mubr.f32.mxu1 %v18624_v54  ;;  %v18640_v60 = vld [vmem:[#allocation2 + $0x320] sm:$0xff] }
 0x231   : > { %13698 = vmatprep.mubr.f32.mxu0 %v18185_v44  ;;  %v18644_v44 = vld [vmem:[#allocation2 + $0x328] sm:$0xff] }
 0x233   : > { %12675 = vmatmul.mubr.f32.gmra.mrb[76].mxu1 %v18628_v8 }
 0x234   : > { %13699 = vmatmul.mubr.f32.gmra.mrb[12].mxu0 %v18198_v30  ;;  %12677 = vmatprep.mubr.f32.mxu1 %v18632_v53  ;;  %v18648_v30 = vld [vmem:[#allocation2 + $0x330] sm:$0xff] }
 0x235   : > { %13701 = vmatprep.mubr.f32.mxu0 %v18202_v7  ;;  %v10976_v7 = vld [vmem:[%s19945_s1 + $0x3d0] sm:$0xff] }
 0x237   : > { %12678 = vmatmul.mubr.f32.gmra.mrb[78].mxu1 %v18636_v39 }
 0x238   : > { %13702 = vmatmul.mubr.f32.gmra.mrb[14].mxu0 %v18214_v9  ;;  %12680 = vmatprep.mubr.f32.mxu1 %v18640_v60  ;;  %v10977_v9 = vld [vmem:[%s19945_s1 + $0x3d8] sm:$0xff] }
 0x239   : > { %13704 = vmatprep.mubr.f32.mxu0 %v18218_v10  ;;  %v14564_v10 = vpack.c.bf16 %v10977_v9, %v10976_v7  ;;  %v18784_v7 = vld [vmem:[#allocation2 + $0x468] sm:$0xff]  ;;  %v18788_v9 = vld [vmem:[#allocation2 + $0x470] sm:$0xff] }
 0x23b   : > { %12681 = vmatmul.mubr.f32.gmra.mrb[80].mxu1 %v18644_v44  ;;  %14565 = vmatprep.subr.bf16.mxu0 %v14564_v10 }
 0x23c   : > { %13705 = vmatmul.mubr.f32.gmra.mrb[16].mxu0 %v18231_v45  ;;  %12683 = vmatprep.mubr.f32.mxu1 %v18648_v30  ;;  %v18662_v45 = vld [vmem:[#allocation2 + $0x348] sm:$0xff] }
 0x23d   : > { %13707 = vmatprep.mubr.f32.mxu0 %v18235_v25  ;;  %14567 = vmatpush3.bf16.msra.mxu0 %v14564_v10  ;;  %v18670_v25 = vld [vmem:[#allocation2 + $0x358] sm:$0xff] }
 0x23f   : > { %12684 = vmatmul.mubr.f32.gmra.mrb[82].mxu1 %v18658_v11 }
 0x240   : > { %13708 = vmatmul.mubr.f32.gmra.mrb[18].mxu0 %v18247_v27  ;;  %12686 = vmatprep.mubr.f32.mxu1 %v18662_v45  ;;  %v18674_v27 = vld [vmem:[#allocation2 + $0x360] sm:$0xff] }
 0x241   : > { %13710 = vmatprep.mubr.f32.mxu0 %v18251_v40  ;;  %v18678_v40 = vld [vmem:[#allocation2 + $0x370] sm:$0xff] }
 0x243   : > { %12687 = vmatmul.mubr.f32.gmra.mrb[84].mxu1 %v18666_v3 }
 0x244   : > { %13711 = vmatmul.mubr.f32.gmra.mrb[20].mxu0 %v18264_v5  ;;  %12689 = vmatprep.mubr.f32.mxu1 %v18670_v25  ;;  %v18686_v5 = vld [vmem:[#allocation2 + $0x380] sm:$0xff] }
 0x245   : > { %13713 = vmatprep.mubr.f32.mxu0 %v18268_v26  ;;  %v18690_v26 = vld [vmem:[#allocation2 + $0x388] sm:$0xff] }
 0x247   : > { %12690 = vmatmul.mubr.f32.gmra.mrb[86].mxu1 %v18674_v27 }
 0x248   : > { %13714 = vmatmul.mubr.f32.gmra.mrb[22].mxu0 %v18280_v13  ;;  %12692 = vmatprep.mubr.f32.mxu1 %v18678_v40  ;;  %v18694_v13 = vld [vmem:[#allocation2 + $0x398] sm:$0xff] }
 0x249   : > { %13716 = vmatprep.mubr.f32.mxu0 %v18284_v38  ;;  %v18698_v38 = vld [vmem:[#allocation2 + $0x3a0] sm:$0xff] }
 0x24b   : > { %12693 = vmatmul.mubr.f32.gmra.mrb[88].mxu1 %v18682_v1 }
 0x24c   : > { %13717 = vmatmul.mubr.f32.gmra.mrb[24].mxu0 %v18297_v22  ;;  %12695 = vmatprep.mubr.f32.mxu1 %v18686_v5  ;;  %v18702_v22 = vld [vmem:[#allocation2 + $0x3a8] sm:$0xff] }
 0x24d   : > { %13719 = vmatprep.mubr.f32.mxu0 %v18307_v2  ;;  %v18706_v2 = vld [vmem:[#allocation2 + $0x3b0] sm:$0xff] }
 0x24f   : > { %12696 = vmatmul.mubr.f32.gmra.mrb[90].mxu1 %v18690_v26 }
 0x250   : > { %13720 = vmatmul.mubr.f32.gmra.mrb[26].mxu0 %v18319_v4  ;;  %12698 = vmatprep.mubr.f32.mxu1 %v18694_v13  ;;  %v18710_v4 = vld [vmem:[#allocation2 + $0x3c0] sm:$0xff] }
 0x251   : > { %13722 = vmatprep.mubr.f32.mxu0 %v18323_v35  ;;  %v18714_v35 = vld [vmem:[#allocation2 + $0x3c8] sm:$0xff] }
 0x253   : > { %12699 = vmatmul.mubr.f32.gmra.mrb[92].mxu1 %v18698_v38 }
 0x254   : > { %13723 = vmatmul.mubr.f32.gmra.mrb[28].mxu0 %v18336_v12  ;;  %12701 = vmatprep.mubr.f32.mxu1 %v18702_v22  ;;  %v18718_v12 = vld [vmem:[#allocation2 + $0x3d0] sm:$0xff] }
 0x255   : > { %13725 = vmatprep.mubr.f32.mxu0 %v18340_v15  ;;  %v10979_v15 = vld [vmem:[%s19945_s1 + $0x3e8] sm:$0xff] }
 0x257   : > { %12702 = vmatmul.mubr.f32.gmra.mrb[94].mxu1 %v18706_v2 }
 0x258   : > { %13726 = vmatmul.mubr.f32.gmra.mrb[30].mxu0 %v18352_v19  ;;  %12704 = vmatprep.mubr.f32.mxu1 %v18710_v4  ;;  %v10978_v19 = vld [vmem:[%s19945_s1 + $0x3e0] sm:$0xff] }
 0x259   : > { %13728 = vmatprep.mubr.f32.mxu0 %v18356_v55  ;;  %v14568_v55 = vpack.c.bf16 %v10979_v15, %v10978_v19  ;;  %v18798_v19 = vld [vmem:[#allocation2 + $0x478] sm:$0xff]  ;;  %v18801_v15 = vld [vmem:[#allocation2 + $0x248] sm:$0xff] }
 0x25a   : > { %20879 = vst [vmem:[#allocation217_spill] sm:$0xff] %v18801_v15 }
 0x25b   : > { %12705 = vmatmul.mubr.f32.gmra.mrb[96].mxu1 %v18714_v35  ;;  %14569 = vmatprep.subr.bf16.mxu0 %v14568_v55 }
 0x25c   : > { %13729 = vmatmul.mubr.f32.gmra.mrb[32].mxu0 %v18369_v58  ;;  %12707 = vmatprep.mubr.f32.mxu1 %v18718_v12  ;;  %v18732_v58 = vld [vmem:[#allocation2 + $0x3e8] sm:$0xff] }
 0x25d   : > { %13731 = vmatprep.mubr.f32.mxu0 %v18373_v21  ;;  %14571 = vmatpush3.bf16.msra.mxu0 %v14568_v55  ;;  %v18740_v21 = vld [vmem:[#allocation2 + $0x3f8] sm:$0xff]  ;;  %v18804_v55 = vld [vmem:[#allocation2 + $0x488] sm:$0xff] }
 0x25f   : > { %12708 = vmatmul.mubr.f32.gmra.mrb[98].mxu1 %v18728_v33 }
 0x260   : > { %13732 = vmatmul.mubr.f32.gmra.mrb[34].mxu0 %v18385_v28  ;;  %12710 = vmatprep.mubr.f32.mxu1 %v18732_v58  ;;  %v18744_v28 = vld [vmem:[#allocation2 + $0x400] sm:$0xff] }
 0x261   : > { %13734 = vmatprep.mubr.f32.mxu0 %v18389_v49  ;;  %v18748_v49 = vld [vmem:[#allocation2 + $0x410] sm:$0xff] }
 0x263   : > { %12711 = vmatmul.mubr.f32.gmra.mrb[100].mxu1 %v18736_v52 }
 0x264   : > { %13735 = vmatmul.mubr.f32.gmra.mrb[36].mxu0 %v18402_v34  ;;  %12713 = vmatprep.mubr.f32.mxu1 %v18740_v21  ;;  %v18756_v34 = vld [vmem:[#allocation2 + $0x420] sm:$0xff] }
 0x265   : > { %13737 = vmatprep.mubr.f32.mxu0 %v18406_v62  ;;  %v18760_v62 = vld [vmem:[#allocation2 + $0x428] sm:$0xff] }
 0x267   : > { %12714 = vmatmul.mubr.f32.gmra.mrb[102].mxu1 %v18744_v28 }
 0x268   : > { %13738 = vmatmul.mubr.f32.gmra.mrb[38].mxu0 %v18418_v57  ;;  %12716 = vmatprep.mubr.f32.mxu1 %v18748_v49  ;;  %v18764_v57 = vld [vmem:[#allocation2 + $0x438] sm:$0xff] }
 0x269   : > { %13740 = vmatprep.mubr.f32.mxu0 %v18422_v6  ;;  %v18768_v6 = vld [vmem:[#allocation2 + $0x440] sm:$0xff] }
 0x26b   : > { %12717 = vmatmul.mubr.f32.gmra.mrb[104].mxu1 %v18752_v51 }
 0x26c   : > { %13741 = vmatmul.mubr.f32.gmra.mrb[40].mxu0 %v18435_v43  ;;  %12719 = vmatprep.mubr.f32.mxu1 %v18756_v34  ;;  %v18772_v43 = vld [vmem:[#allocation2 + $0x448] sm:$0xff] }
 0x26d   : > { %13743 = vmatprep.mubr.f32.mxu0 %v18445_v31  ;;  %v18776_v31 = vld [vmem:[#allocation2 + $0x450] sm:$0xff] }
 0x26f   : > { %12720 = vmatmul.mubr.f32.gmra.mrb[106].mxu1 %v18760_v62 }
 0x270   : > { %13744 = vmatmul.mubr.f32.gmra.mrb[42].mxu0 %v18457_v20  ;;  %12722 = vmatprep.mubr.f32.mxu1 %v18764_v57  ;;  %v18780_v20 = vld [vmem:[#allocation2 + $0x460] sm:$0xff] }
 0x271   : > { %13746 = vmatprep.mubr.f32.mxu0 %v18461_v56  ;;  %v20877_v56 = vld [vmem:[#allocation277_spill] sm:$0xff] }
 0x273   : > { %12723 = vmatmul.mubr.f32.gmra.mrb[108].mxu1 %v18768_v6 }
 0x274   : > { %13747 = vmatmul.mubr.f32.gmra.mrb[44].mxu0 %v18474_v29  ;;  %12725 = vmatprep.mubr.f32.mxu1 %v18772_v43  ;;  %v20878_v29 = vld [vmem:[#allocation281_spill] sm:$0xff] }
 0x275   : > { %13749 = vmatprep.mubr.f32.mxu0 %v18478_v24  ;;  %v10980_v24 = vld [vmem:[%s19945_s1 + $0x3f0] sm:$0xff] }
 0x277   : > { %12726 = vmatmul.mubr.f32.gmra.mrb[110].mxu1 %v18776_v31 }
 0x278   : > { %13750 = vmatmul.mubr.f32.gmra.mrb[46].mxu0 %v18490_v32  ;;  %12728 = vmatprep.mubr.f32.mxu1 %v18780_v20  ;;  %v10981_v32 = vld [vmem:[%s19945_s1 + $0x3f8] sm:$0xff] }
 0x279   : > { %13752 = vmatprep.mubr.f32.mxu0 %v20877_v56  ;;  %v14572_v10 = vpack.c.bf16 %v10981_v32, %v10980_v24  ;;  %v18807_v56 = vld [vmem:[#allocation2 + $0x258] sm:$0xff]  ;;  %v18819_v32 = vld [vmem:[#allocation2 + $0x268] sm:$0xff] }
 0x27a   : > { %20880 = vst [vmem:[#allocation222_spill] sm:$0xff] %v18807_v56  ;;  %v18816_v24 = vld [vmem:[#allocation2 + $0x498] sm:$0xff]  ;;  %20882 = vst [vmem:[#allocation229_spill] sm:$0xff] %v18819_v32 }
 0x27b   : > { %12729 = vmatmul.mubr.f32.gmra.mrb[112].mxu1 %v18784_v7  ;;  %14573 = vmatprep.subr.bf16.mxu0 %v14572_v10 }
 0x27c   : > { %13753 = vmatmul.mubr.f32.gmra.mrb[48].mxu0 %v20878_v29  ;;  %12731 = vmatprep.mubr.f32.mxu1 %v18788_v9  ;;  %v18813_v29 = vld [vmem:[#allocation2 + $0x260] sm:$0xff] }
 0x27d   : > { %13755 = vmatprep.mubr.f32.mxu0 %v18519_v46  ;;  %14575 = vmatpush3.bf16.msra.mxu0 %v14572_v10  ;;  %v18810_v46 = vld [vmem:[#allocation2 + $0x490] sm:$0xff]  ;;  %20881 = vst [vmem:[#allocation228_spill] sm:$0xff] %v18813_v29 }
 0x27e   : > { %v18825_v10 = vld [vmem:[#allocation2 + $0x270] sm:$0xff] }
 0x27f   : > { %12732 = vmatmul.mubr.f32.gmra.mrb[114].mxu1 %v18798_v19  ;;  %20883 = vst [vmem:[#allocation233_spill] sm:$0xff] %v18825_v10 }
 0x280   : > { %13756 = vmatmul.mubr.f32.gmra.mrb[50].mxu0 %v18801_v15  ;;  %12734 = vmatprep.mubr.f32.mxu1 %v18804_v55  ;;  %v18840_v15 = vld [vmem:[#allocation2 + $0x4c8] sm:$0xff] }
 0x281   : > { %13758 = vmatprep.mubr.f32.mxu0 %v18807_v56  ;;  %v18828_v56 = vld [vmem:[#allocation2 + $0x4b0] sm:$0xff]  ;;  %20886 = vst [vmem:[#allocation281_spill] sm:$0xff] %v18840_v15 }
 0x283   : > { %12735 = vmatmul.mubr.f32.gmra.mrb[116].mxu1 %v18810_v46 }
 0x284   : > { %13759 = vmatmul.mubr.f32.gmra.mrb[52].mxu0 %v18813_v29  ;;  %12737 = vmatprep.mubr.f32.mxu1 %v18816_v24  ;;  %v18832_v29 = vld [vmem:[#allocation2 + $0x4b8] sm:$0xff] }
 0x285   : > { %13761 = vmatprep.mubr.f32.mxu0 %v18819_v32  ;;  %20884 = vst [vmem:[#allocation235_spill] sm:$0xff] %v18832_v29  ;;  %v18836_v32 = vld [vmem:[#allocation2 + $0x4c0] sm:$0xff] }
 0x286   : > { %20885 = vst [vmem:[#allocation277_spill] sm:$0xff] %v18836_v32 }
 0x287   : > { %12738 = vmatmul.mubr.f32.gmra.mrb[118].mxu1 %v18822_v14 }
 0x288   : > { %13762 = vmatmul.mubr.f32.gmra.mrb[54].mxu0 %v18825_v10  ;;  %12740 = vmatprep.mubr.f32.mxu1 %v18828_v56  ;;  %v18844_v10 = vld [vmem:[#allocation2 + $0x4d8] sm:$0xff] }
 0x289   : > { %13764 = vmatprep.mubr.f32.mxu0 %v20873_v63  ;;  %20887 = vst [vmem:[#allocation285_spill] sm:$0xff] %v18844_v10  ;;  %v20888_v63 = vld [vmem:[#allocation243_spill] sm:$0xff] }
 0x28b   : > { %12741 = vmatmul.mubr.f32.gmra.mrb[120].mxu1 %v18832_v29  ;;  %v18850_v29 = vld [vmem:[#allocation2 + $0x4e0] sm:$0xff] }
 0x28c   : > { %13765 = vmatmul.mubr.f32.gmra.mrb[56].mxu0 %v20874_v50  ;;  %12743 = vmatprep.mubr.f32.mxu1 %v18836_v32  ;;  %v3283_v50 = vrot.slane %v20888_v63, 2  ;;  %20890 = vst [vmem:[#allocation243_spill] sm:$0xff] %v18850_v29  ;;  %v18861_v32 = vld [vmem:[#allocation2 + $0x4f0] sm:$0xff] }
 0x28d   : > { %13767 = vmatprep.mubr.f32.mxu0 %v20875_v47  ;;  %v18854_v47 = vld [vmem:[#allocation2 + $0x4e8] sm:$0xff] }
 0x28e   : > { %20891 = vst [vmem:[#allocation246_spill] sm:$0xff] %v18854_v47 }
 0x28f   : > { %12744 = vmatmul.mubr.f32.gmra.mrb[122].mxu1 %v18840_v15 }
 0x290   : > { %13768 = vmatmul.mubr.f32.gmra.mrb[58].mxu0 %v20876_v42  ;;  %12746 = vmatprep.mubr.f32.mxu1 %v18844_v10  ;;  %v20892_v42 = vld [vmem:[#allocation247_spill] sm:$0xff]  ;;  %v20893_v10 = vld [vmem:[#allocation250_spill] sm:$0xff] }
 0x291   : > { %13770 = vmatprep.mubr.f32.mxu0 %v18586_v0  ;;  %v3286_v15 = vrot.slane %v20892_v42, 2  ;;  %v3285_v0 = vsel %vm3282_vm1, %v3283_v50, %v3284_v37  ;;  %v3288_v63 = vrot.slane %v20893_v10, 2  ;;  %20894 = vst [vmem:[#allocation247_spill] sm:$0xff] %v18861_v32  ;;  %v15846_v50 = vld [vmem:[#allocation2 + $0x20] sm:$0x3] }
 0x292   : > { %v3290_v42 = vrot.slane %v15846_v50, 2  ;;  %v20905_v50 = vld [vmem:[#allocation123_spill] sm:$0xff] }
 0x293   : > { %12747 = vmatmul.mubr.f32.gmra.mrb[124].mxu1 %v18850_v29  ;;  %v3289_v10 = vsel %vm3282_vm1, %v3286_v15, %v3288_v63  ;;  %v10907_v29 = vld [vmem:[%s19945_s1 + $0x1a8] sm:$0xff] }
 0x294   : > { %13771 = vmatmul.mubr.f32.gmra.mrb[60].mxu0 %v18590_v23  ;;  %12749 = vmatprep.mubr.f32.mxu1 %v18854_v47  ;;  %v10905_v23 = vld [vmem:[%s19945_s1 + $0x198] sm:$0xff]  ;;  %v10906_v47 = vld [vmem:[%s19945_s1 + $0x1a0] sm:$0xff] }
 0x295   : > { %13773 = vmatprep.mubr.f32.mxu0 %v18600_v16  ;;  %v3287_v16 = vsel %vm3282_vm1, %v3284_v37, %v3286_v15  ;;  %v3291_v37 = vsel %vm3282_vm1, %v3288_v63, %v3290_v42  ;;  %v20895_v63 = vld [vmem:[#allocation106_spill] sm:$0xff] }
 0x297   : > { %12750 = vmatmul.mubr.f32.gmra.mrb[126].mxu1 %v18861_v32  ;;  %v14420_v32 = vpack.c.bf16 %v10905_v23, %v10904_v17  ;;  %v10911_v17 = vld [vmem:[%s19945_s1 + $0x1c8] sm:$0xff]  ;;  %v20899_v23 = vld [vmem:[#allocation111_spill] sm:$0xff] }
 0x298   : > { %13774 = vmatmul.mubr.f32.gmra.mrb[62].mxu0 %v18604_v59  ;;  %12784 = vmatprep.mubr.f32.mxu1 %v3285_v0  ;;  %v10982_v59 = vld [vmem:[%s19945_s1 + $0x400] sm:$0xff]  ;;  %v14424_v0 = vpack.c.bf16 %v10907_v29, %v10906_v47  ;;  %v20896_v29 = vld [vmem:[#allocation107_spill] sm:$0xff] }
 0x299   : > { %13776 = vmatprep.mubr.f32.mxu0 %v18608_v41  ;;  %v10983_v41 = vld [vmem:[%s19945_s1 + $0x408] sm:$0xff]  ;;  %v10910_v47 = vld [vmem:[%s19945_s1 + $0x1c0] sm:$0xff] }
 0x29a   : > { %v18890_v15 = vpack.c.bf16 %v10983_v41, %v10982_v59  ;;  %v20928_v41 = vld [vmem:[#allocation170_spill] sm:$0xff] }
 0x29b   : > { %12785 = vmatmul.mubr.f32.vlgmr.msra.gmra.mrb[0].mxu1 %v3287_v16  ;;  %v20900_v16 = vld [vmem:[#allocation113_spill] sm:$0xff] }
 0x29c   : > { %13777 = vmatmul.mubr.f32.gmra.mrb[64].mxu0 %v18612_v36  ;;  %14419 = vmatpush3.bf16.msra.mxu1 %v18573_v48  ;;  %v10908_v48 = vld [vmem:[%s19945_s1 + $0x1b0] sm:$0xff]  ;;  %v10909_v36 = vld [vmem:[%s19945_s1 + $0x1b8] sm:$0xff] }
 0x29d   : > { %12787 = vmatprep.mubr.f32.mxu1 %v3289_v10  ;;  %13779 = vmatprep.mubr.f32.mxu0 %v18616_v18  ;;  %v14428_v18 = vpack.c.bf16 %v10909_v36, %v10908_v48  ;;  %v20912_v10 = vld [vmem:[#allocation137_spill] sm:$0xff]  ;;  %v20941_v48 = vld [vmem:[#allocation235_spill] sm:$0xff] }
 0x29e   : > { %14421 = vmatprep.subr.bf16.mxu1 %v14420_v32  ;;  %14577 = vmatprep.subr.bf16.mxu0 %v18890_v15 }
 0x29f   : > { %12788 = vmatmul.mubr.f32.gmra.mrb[2].mxu1 %v3291_v37  ;;  %v20914_v37 = vld [vmem:[#allocation141_spill] sm:$0xff] }
 0x2a0   : > { %13780 = vmatmul.mubr.f32.gmra.mrb[66].mxu0 %v18620_v61  ;;  %12790 = vmatprep.mubr.f32.mxu1 %v20895_v63  ;;  %v20897_v61 = vld [vmem:[#allocation108_spill] sm:$0xff] }
 0x2a1   : > { %13782 = vmatprep.mubr.f32.mxu0 %v18624_v54  ;;  %14423 = vmatpush3.bf16.msra.mxu1 %v14420_v32  ;;  %v14432_v54 = vpack.c.bf16 %v10911_v17, %v10910_v47  ;;  %v20898_v32 = vld [vmem:[#allocation109_spill] sm:$0xff]  ;;  %v20944_v63 = vld [vmem:[#allocation84_spill] sm:$0xff] }
 0x2a2   : > { %14425 = vmatprep.subr.bf16.mxu1 %v14424_v0  ;;  %v20948_v47 = vld [vmem:[#allocation13_spill] sm:$0xff]  ;;  %v20949_v17 = vld [vmem:[#allocation200_spill] sm:$0xff] }
 0x2a3   : > { %12791 = vmatmul.mubr.f32.gmra.mrb[4].mxu1 %v20896_v29  ;;  %v20947_v29 = vld [vmem:[#allocation285_spill] sm:$0xff] }
 0x2a4   : > { %13783 = vmatmul.mubr.f32.gmra.mrb[68].mxu0 %v18628_v8  ;;  %12793 = vmatprep.mubr.f32.mxu1 %v20897_v61  ;;  %v20901_v8 = vld [vmem:[#allocation115_spill] sm:$0xff] }
 0x2a5   : > { %13785 = vmatprep.mubr.f32.mxu0 %v18632_v53  ;;  %14427 = vmatpush3.bf16.msra.mxu1 %v14424_v0  ;;  %v20902_v53 = vld [vmem:[#allocation117_spill] sm:$0xff]  ;;  %v20930_v0 = vld [vmem:[#allocation54_spill] sm:$0xff]  ;;  %v20950_v61 = vld [vmem:[#allocation243_spill] sm:$0xff] }
 0x2a6   : > { %14429 = vmatprep.subr.bf16.mxu1 %v14428_v18 }
 0x2a7   : > { %12794 = vmatmul.mubr.f32.gmra.mrb[6].mxu1 %v20898_v32  ;;  %v20952_v32 = vld [vmem:[#allocation246_spill] sm:$0xff] }
 0x2a8   : > { %13786 = vmatmul.mubr.f32.gmra.mrb[70].mxu0 %v18636_v39  ;;  %12796 = vmatprep.mubr.f32.mxu1 %v20899_v23  ;;  %v20903_v39 = vld [vmem:[#allocation119_spill] sm:$0xff] }
 0x2a9   : > { %13788 = vmatprep.mubr.f32.mxu0 %v18640_v60  ;;  %14431 = vmatpush3.bf16.msra.mxu1 %v14428_v18  ;;  %v20904_v60 = vld [vmem:[#allocation121_spill] sm:$0xff]  ;;  %v20946_v18 = vld [vmem:[#allocation198_spill] sm:$0xff] }
 0x2aa   : > { %14433 = vmatprep.subr.bf16.mxu1 %v14432_v54 }
 0x2ab   : > { %12797 = vmatmul.mubr.f32.gmra.mrb[8].mxu1 %v20900_v16 }
 0x2ac   : > { %13789 = vmatmul.mubr.f32.gmra.mrb[72].mxu0 %v18644_v44  ;;  %12799 = vmatprep.mubr.f32.mxu1 %v20901_v8  ;;  %v20906_v44 = vld [vmem:[#allocation125_spill] sm:$0xff] }
 0x2ad   : > { %13791 = vmatprep.mubr.f32.mxu0 %v18648_v30  ;;  %14435 = vmatpush3.bf16.msra.mxu1 %v14432_v54  ;;  %v20907_v30 = vld [vmem:[#allocation127_spill] sm:$0xff]  ;;  %v20951_v54 = vld [vmem:[#allocation202_spill] sm:$0xff] }
 0x2af   : > { %12800 = vmatmul.mubr.f32.gmra.mrb[10].mxu1 %v20902_v53 }
 0x2b0   : > { %13792 = vmatmul.mubr.f32.gmra.mrb[74].mxu0 %v18658_v11  ;;  %12802 = vmatprep.mubr.f32.mxu1 %v20903_v39  ;;  %v20908_v11 = vld [vmem:[#allocation129_spill] sm:$0xff] }
 0x2b1   : > { %13794 = vmatprep.mubr.f32.mxu0 %v18662_v45  ;;  %v10912_v45 = vld [vmem:[%s19945_s1 + $0x1d0] sm:$0xff] }
 0x2b3   : > { %12803 = vmatmul.mubr.f32.gmra.mrb[12].mxu1 %v20904_v60 }
 0x2b4   : > { %13795 = vmatmul.mubr.f32.gmra.mrb[76].mxu0 %v18666_v3  ;;  %12805 = vmatprep.mubr.f32.mxu1 %v20905_v50  ;;  %v10913_v3 = vld [vmem:[%s19945_s1 + $0x1d8] sm:$0xff] }
 0x2b5   : > { %13797 = vmatprep.mubr.f32.mxu0 %v18670_v25  ;;  %v20909_v25 = vld [vmem:[#allocation131_spill] sm:$0xff]  ;;  %v14436_v42 = vpack.c.bf16 %v10913_v3, %v10912_v45  ;;  %v20953_v45 = vld [vmem:[#allocation90_spill] sm:$0xff] }
 0x2b6   : > { %v20954_v3 = vld [vmem:[#allocation247_spill] sm:$0xff] }
 0x2b7   : > { %12806 = vmatmul.mubr.f32.gmra.mrb[14].mxu1 %v20906_v44  ;;  %14437 = vmatprep.subr.bf16.mxu1 %v14436_v42 }
 0x2b8   : > { %13798 = vmatmul.mubr.f32.gmra.mrb[78].mxu0 %v18674_v27  ;;  %12808 = vmatprep.mubr.f32.mxu1 %v20907_v30  ;;  %v20910_v27 = vld [vmem:[#allocation133_spill] sm:$0xff] }
 0x2b9   : > { %13800 = vmatprep.mubr.f32.mxu0 %v18678_v40  ;;  %v20911_v40 = vld [vmem:[#allocation135_spill] sm:$0xff]  ;;  %14439 = vmatpush3.bf16.msra.mxu1 %v14436_v42  ;;  %v20955_v42 = vld [vmem:[#allocation205_spill] sm:$0xff] }
 0x2bb   : > { %12809 = vmatmul.mubr.f32.gmra.mrb[16].mxu1 %v20908_v11 }
 0x2bc   : > { %13801 = vmatmul.mubr.f32.gmra.mrb[80].mxu0 %v18682_v1  ;;  %12811 = vmatprep.mubr.f32.mxu1 %v20909_v25  ;;  %v20913_v1 = vld [vmem:[#allocation139_spill] sm:$0xff] }
 0x2bd   : > { %13803 = vmatprep.mubr.f32.mxu0 %v18686_v5  ;;  %v20915_v5 = vld [vmem:[#allocation143_spill] sm:$0xff] }
 0x2bf   : > { %12812 = vmatmul.mubr.f32.gmra.mrb[18].mxu1 %v20910_v27 }
 0x2c0   : > { %13804 = vmatmul.mubr.f32.gmra.mrb[82].mxu0 %v18690_v26  ;;  %12814 = vmatprep.mubr.f32.mxu1 %v20911_v40  ;;  %v20916_v26 = vld [vmem:[#allocation145_spill] sm:$0xff] }
 0x2c1   : > { %13806 = vmatprep.mubr.f32.mxu0 %v18694_v13  ;;  %v20917_v13 = vld [vmem:[#allocation147_spill] sm:$0xff] }
 0x2c3   : > { %12815 = vmatmul.mubr.f32.gmra.mrb[20].mxu1 %v20912_v10 }
 0x2c4   : > { %13807 = vmatmul.mubr.f32.gmra.mrb[84].mxu0 %v18698_v38  ;;  %12817 = vmatprep.mubr.f32.mxu1 %v20913_v1  ;;  %v20918_v38 = vld [vmem:[#allocation149_spill] sm:$0xff] }
 0x2c5   : > { %13809 = vmatprep.mubr.f32.mxu0 %v18702_v22  ;;  %v20919_v22 = vld [vmem:[#allocation151_spill] sm:$0xff] }
 0x2c7   : > { %12818 = vmatmul.mubr.f32.gmra.mrb[22].mxu1 %v20914_v37 }
 0x2c8   : > { %13810 = vmatmul.mubr.f32.gmra.mrb[86].mxu0 %v18706_v2  ;;  %12820 = vmatprep.mubr.f32.mxu1 %v20915_v5  ;;  %v20920_v2 = vld [vmem:[#allocation153_spill] sm:$0xff] }
 0x2c9   : > { %13812 = vmatprep.mubr.f32.mxu0 %v18710_v4  ;;  %v20921_v4 = vld [vmem:[#allocation155_spill] sm:$0xff] }
 0x2cb   : > { %12821 = vmatmul.mubr.f32.gmra.mrb[24].mxu1 %v20916_v26 }
 0x2cc   : > { %13813 = vmatmul.mubr.f32.gmra.mrb[88].mxu0 %v18714_v35  ;;  %12823 = vmatprep.mubr.f32.mxu1 %v20917_v13  ;;  %v20922_v35 = vld [vmem:[#allocation157_spill] sm:$0xff] }
 0x2cd   : > { %13815 = vmatprep.mubr.f32.mxu0 %v18718_v12  ;;  %v20923_v12 = vld [vmem:[#allocation159_spill] sm:$0xff] }
 0x2cf   : > { %12824 = vmatmul.mubr.f32.gmra.mrb[26].mxu1 %v20918_v38 }
 0x2d0   : > { %13816 = vmatmul.mubr.f32.gmra.mrb[90].mxu0 %v18728_v33  ;;  %12826 = vmatprep.mubr.f32.mxu1 %v20919_v22  ;;  %v20924_v33 = vld [vmem:[#allocation161_spill] sm:$0xff] }
 0x2d1   : > { %13818 = vmatprep.mubr.f32.mxu0 %v18732_v58  ;;  %v10914_v58 = vld [vmem:[%s19945_s1 + $0x1e0] sm:$0xff] }
 0x2d3   : > { %12827 = vmatmul.mubr.f32.gmra.mrb[28].mxu1 %v20920_v2 }
 0x2d4   : > { %13819 = vmatmul.mubr.f32.gmra.mrb[92].mxu0 %v18736_v52  ;;  %12829 = vmatprep.mubr.f32.mxu1 %v20921_v4  ;;  %v10915_v52 = vld [vmem:[%s19945_s1 + $0x1e8] sm:$0xff] }
 0x2d5   : > { %13821 = vmatprep.mubr.f32.mxu0 %v18740_v21  ;;  %v20925_v21 = vld [vmem:[#allocation163_spill] sm:$0xff]  ;;  %v14440_v59 = vpack.c.bf16 %v10915_v52, %v10914_v58  ;;  %v20957_v52 = vld [vmem:[#allocation209_spill] sm:$0xff] }
 0x2d6   : > { %v20956_v58 = vld [vmem:[#allocation223_spill] sm:$0xff] }
 0x2d7   : > { %12830 = vmatmul.mubr.f32.gmra.mrb[30].mxu1 %v20922_v35  ;;  %14441 = vmatprep.subr.bf16.mxu1 %v14440_v59 }
 0x2d8   : > { %13822 = vmatmul.mubr.f32.gmra.mrb[94].mxu0 %v18744_v28  ;;  %12832 = vmatprep.mubr.f32.mxu1 %v20923_v12  ;;  %v20926_v28 = vld [vmem:[#allocation48_spill] sm:$0xff] }
 0x2d9   : > { %13824 = vmatprep.mubr.f32.mxu0 %v18748_v49  ;;  %v20927_v49 = vld [vmem:[#allocation167_spill] sm:$0xff]  ;;  %14443 = vmatpush3.bf16.msra.mxu1 %v14440_v59  ;;  %v20958_v59 = vld [vmem:[#allocation276_spill] sm:$0xff] }
 0x2db   : > { %12833 = vmatmul.mubr.f32.gmra.mrb[32].mxu1 %v20924_v33 }
 0x2dc   : > { %13825 = vmatmul.mubr.f32.gmra.mrb[96].mxu0 %v18752_v51  ;;  %12835 = vmatprep.mubr.f32.mxu1 %v20925_v21  ;;  %v20929_v51 = vld [vmem:[#allocation172_spill] sm:$0xff] }
 0x2dd   : > { %13827 = vmatprep.mubr.f32.mxu0 %v18756_v34  ;;  %v20931_v34 = vld [vmem:[#allocation174_spill] sm:$0xff] }
 0x2df   : > { %12836 = vmatmul.mubr.f32.gmra.mrb[34].mxu1 %v20926_v28 }
 0x2e0   : > { %13828 = vmatmul.mubr.f32.gmra.mrb[98].mxu0 %v18760_v62  ;;  %12838 = vmatprep.mubr.f32.mxu1 %v20927_v49  ;;  %v20932_v62 = vld [vmem:[#allocation177_spill] sm:$0xff] }
 0x2e1   : > { %13830 = vmatprep.mubr.f32.mxu0 %v18764_v57  ;;  %v20933_v57 = vld [vmem:[#allocation179_spill] sm:$0xff] }
 0x2e3   : > { %12839 = vmatmul.mubr.f32.gmra.mrb[36].mxu1 %v20928_v41 }
 0x2e4   : > { %13831 = vmatmul.mubr.f32.gmra.mrb[100].mxu0 %v18768_v6  ;;  %12841 = vmatprep.mubr.f32.mxu1 %v20929_v51  ;;  %v20934_v6 = vld [vmem:[#allocation66_spill] sm:$0xff] }
 0x2e5   : > { %13833 = vmatprep.mubr.f32.mxu0 %v18772_v43  ;;  %v20935_v43 = vld [vmem:[#allocation182_spill] sm:$0xff] }
 0x2e7   : > { %12842 = vmatmul.mubr.f32.gmra.mrb[38].mxu1 %v20930_v0 }
 0x2e8   : > { %13834 = vmatmul.mubr.f32.gmra.mrb[102].mxu0 %v18776_v31  ;;  %12844 = vmatprep.mubr.f32.mxu1 %v20931_v34  ;;  %v20936_v31 = vld [vmem:[#allocation185_spill] sm:$0xff] }
 0x2e9   : > { %13836 = vmatprep.mubr.f32.mxu0 %v18780_v20  ;;  %v20937_v20 = vld [vmem:[#allocation187_spill] sm:$0xff] }
 0x2eb   : > { %12845 = vmatmul.mubr.f32.gmra.mrb[40].mxu1 %v20932_v62 }
 0x2ec   : > { %13837 = vmatmul.mubr.f32.gmra.mrb[104].mxu0 %v18784_v7  ;;  %12847 = vmatprep.mubr.f32.mxu1 %v20933_v57  ;;  %v20938_v7 = vld [vmem:[#allocation75_spill] sm:$0xff] }
 0x2ed   : > { %13839 = vmatprep.mubr.f32.mxu0 %v18788_v9  ;;  %v20939_v9 = vld [vmem:[#allocation190_spill] sm:$0xff] }
 0x2ef   : > { %12848 = vmatmul.mubr.f32.gmra.mrb[42].mxu1 %v20934_v6 }
 0x2f0   : > { %13840 = vmatmul.mubr.f32.gmra.mrb[106].mxu0 %v18798_v19  ;;  %12850 = vmatprep.mubr.f32.mxu1 %v20935_v43  ;;  %v20940_v19 = vld [vmem:[#allocation193_spill] sm:$0xff] }
 0x2f1   : > { %13842 = vmatprep.mubr.f32.mxu0 %v18804_v55  ;;  %v10916_v55 = vld [vmem:[%s19945_s1 + $0x1f0] sm:$0xff] }
 0x2f3   : > { %12851 = vmatmul.mubr.f32.gmra.mrb[44].mxu1 %v20936_v31 }
 0x2f4   : > { %13843 = vmatmul.mubr.f32.gmra.mrb[108].mxu0 %v18810_v46  ;;  %12853 = vmatprep.mubr.f32.mxu1 %v20937_v20  ;;  %v10917_v46 = vld [vmem:[%s19945_s1 + $0x1f8] sm:$0xff] }
 0x2f5   : > { %13845 = vmatprep.mubr.f32.mxu0 %v18816_v24  ;;  %v20942_v24 = vld [vmem:[#allocation195_spill] sm:$0xff]  ;;  %v14444_v36 = vpack.c.bf16 %v10917_v46, %v10916_v55  ;;  %v20959_v55 = vld [vmem:[#allocation212_spill] sm:$0xff] }
 0x2f6   : > { %v20960_v46 = vld [vmem:[#allocation280_spill] sm:$0xff] }
 0x2f7   : > { %12854 = vmatmul.mubr.f32.gmra.mrb[46].mxu1 %v20938_v7  ;;  %14445 = vmatprep.subr.bf16.mxu1 %v14444_v36 }
 0x2f8   : > { %13846 = vmatmul.mubr.f32.gmra.mrb[110].mxu0 %v18822_v14  ;;  %12856 = vmatprep.mubr.f32.mxu1 %v20939_v9  ;;  %v20943_v14 = vld [vmem:[#allocation277_spill] sm:$0xff] }
 0x2f9   : > { %13848 = vmatprep.mubr.f32.mxu0 %v18828_v56  ;;  %v20945_v56 = vld [vmem:[#allocation281_spill] sm:$0xff]  ;;  %14447 = vmatpush3.bf16.msra.mxu1 %v14444_v36  ;;  %v20961_v36 = vld [vmem:[#allocation218_spill] sm:$0xff] }
 0x2fa   : > { %14608 = vmatprep.subr.bf16.mxu1 %v20948_v47 }
 0x2fb   : > { %12857 = vmatmul.mubr.f32.gmra.mrb[48].mxu1 %v20940_v19 }
 0x2fc   : > { %13849 = vmatmul.mubr.f32.gmra.mrb[112].mxu0 %v20941_v48  ;;  %12859 = vmatprep.mubr.f32.mxu1 %v20942_v24  ;;  %v19035_v48 = vld [vmem:[#allocation2 + $0x528] sm:$0xff] }
 0x2fd   : > { %13851 = vmatprep.mubr.f32.mxu0 %v20943_v14  ;;  %v20962_v14 = vld [vmem:[#allocation282_spill] sm:$0xff] }
 0x2ff   : > { %12860 = vmatmul.mubr.f32.gmra.mrb[50].mxu1 %v20944_v63 }
 0x300   : > { %13852 = vmatmul.mubr.f32.gmra.mrb[114].mxu0 %v20945_v56  ;;  %12862 = vmatprep.mubr.f32.mxu1 %v20946_v18  ;;  %v20963_v56 = vld [vmem:[#allocation221_spill] sm:$0xff] }
 0x301   : > { %13854 = vmatprep.mubr.f32.mxu0 %v20947_v29  ;;  %v19041_v29 = vld [vmem:[#allocation2 + $0x530] sm:$0xff] }
 0x303   : > { %12863 = vmatmul.mubr.f32.gmra.mrb[52].mxu1 %v20949_v17 }
 0x304   : > { %13855 = vmatmul.mubr.f32.gmra.mrb[116].mxu0 %v20950_v61  ;;  %12865 = vmatprep.mubr.f32.mxu1 %v20951_v54  ;;  %v19043_v61 = vld [vmem:[#allocation2 + $0x538] sm:$0xff] }
 0x305   : > { %13857 = vmatprep.mubr.f32.mxu0 %v20952_v32  ;;  %v20964_v32 = vld [vmem:[#allocation225_spill] sm:$0xff]  ;;  %v20985_v54 = vld [vmem:[#allocation251_spill] sm:$0xff] }
 0x307   : > { %12866 = vmatmul.mubr.f32.gmra.mrb[54].mxu1 %v20953_v45  ;;  %v20974_v45 = vld [vmem:[#allocation24_spill] sm:$0xff] }
 0x308   : > { %13858 = vmatmul.mubr.f32.gmra.mrb[118].mxu0 %v20954_v3  ;;  %12868 = vmatprep.mubr.f32.mxu1 %v20955_v42  ;;  %v20965_v3 = vld [vmem:[#allocation227_spill] sm:$0xff] }
 0x309   : > { %13860 = vmatprep.mubr.f32.mxu0 %v20956_v58  ;;  %v19049_v58 = vld [vmem:[#allocation2 + $0x540] sm:$0xff]  ;;  %v20971_v42 = vld [vmem:[#allocation239_spill] sm:$0xff] }
 0x30b   : > { %12869 = vmatmul.mubr.f32.gmra.mrb[56].mxu1 %v20957_v52  ;;  %v20970_v52 = vld [vmem:[#allocation22_spill] sm:$0xff] }
 0x30c   : > { %13861 = vmatmul.mubr.f32.gmra.mrb[120].mxu0 %v20958_v59  ;;  %12871 = vmatprep.mubr.f32.mxu1 %v20959_v55  ;;  %v20966_v59 = vld [vmem:[#allocation231_spill] sm:$0xff]  ;;  %v10987_v55 = vld [vmem:[%s19945_s1 + $0x428] sm:$0xff] }
 0x30d   : > { %13863 = vmatprep.mubr.f32.mxu0 %v20960_v46  ;;  %v10984_v46 = vld [vmem:[%s19945_s1 + $0x410] sm:$0xff] }
 0x30f   : > { %12872 = vmatmul.mubr.f32.gmra.mrb[58].mxu1 %v20961_v36  ;;  %v20969_v36 = vld [vmem:[#allocation237_spill] sm:$0xff] }
 0x310   : > { %13864 = vmatmul.mubr.f32.gmra.mrb[122].mxu0 %v20962_v14  ;;  %12874 = vmatprep.mubr.f32.mxu1 %v20963_v56  ;;  %v10985_v14 = vld [vmem:[%s19945_s1 + $0x418] sm:$0xff]  ;;  %v20968_v56 = vld [vmem:[#allocation21_spill] sm:$0xff] }
 0x311   : > { %13866 = vmatprep.mubr.f32.mxu0 %v19035_v48 }
 0x313   : > { %12875 = vmatmul.mubr.f32.gmra.mrb[60].mxu1 %v20964_v32  ;;  %v20967_v32 = vld [vmem:[#allocation234_spill] sm:$0xff] }
 0x314   : > { %13867 = vmatmul.mubr.f32.gmra.mrb[124].mxu0 %v19041_v29  ;;  %12877 = vmatprep.mubr.f32.mxu1 %v20965_v3  ;;  %v14580_v3 = vpack.c.bf16 %v10985_v14, %v10984_v46  ;;  %v20973_v46 = vld [vmem:[#allocation241_spill] sm:$0xff]  ;;  %v10988_v14 = vld [vmem:[%s19945_s1 + $0x430] sm:$0xff] }
 0x315   : > { %13869 = vmatprep.mubr.f32.mxu0 %v19043_v61 }
 0x317   : > { %12878 = vmatmul.mubr.f32.gmra.mrb[62].mxu1 %v20966_v59  ;;  %v10986_v59 = vld [vmem:[%s19945_s1 + $0x420] sm:$0xff] }
 0x318   : > { %13870 = vmatmul.mubr.f32.gmra.mrb[126].mxu0 %v19049_v58  ;;  %12880 = vmatprep.mubr.f32.mxu1 %v20967_v32  ;;  %v20972_v32 = vld [vmem:[#allocation23_spill] sm:$0xff] }
 0x319   : > { %13904 = vmatprep.mubr.f32.mxu0 %v20968_v56  ;;  %v14584_v56 = vpack.c.bf16 %v10987_v55, %v10986_v59  ;;  %v20977_v55 = vld [vmem:[#allocation244_spill] sm:$0xff]  ;;  %v10991_v59 = vld [vmem:[%s19945_s1 + $0x448] sm:$0xff] }
 0x31b   : > { %12881 = vmatmul.mubr.f32.gmra.mrb[64].mxu1 %v20969_v36  ;;  %v10989_v36 = vld [vmem:[%s19945_s1 + $0x438] sm:$0xff] }
 0x31c   : > { %13905 = vmatmul.mubr.f32.vlgmr.msra.gmra.mrb[0].mxu0 %v20970_v52  ;;  %12883 = vmatprep.mubr.f32.mxu1 %v20971_v42  ;;  %v20975_v52 = vld [vmem:[#allocation242_spill] sm:$0xff]  ;;  %v20976_v42 = vld [vmem:[#allocation25_spill] sm:$0xff] }
 0x31d   : > { %14579 = vmatpush3.bf16.msra.mxu0 %v18890_v15  ;;  %13907 = vmatprep.mubr.f32.mxu0 %v20972_v32  ;;  %v14588_v15 = vpack.c.bf16 %v10989_v36, %v10988_v14  ;;  %v10990_v32 = vld [vmem:[%s19945_s1 + $0x440] sm:$0xff] }
 0x31e   : > { %14581 = vmatprep.subr.bf16.mxu0 %v14580_v3  ;;  %v20981_v36 = vld [vmem:[#allocation248_spill] sm:$0xff]  ;;  %v20983_v14 = vld [vmem:[#allocation249_spill] sm:$0xff] }
 0x31f   : > { %12884 = vmatmul.mubr.f32.gmra.mrb[66].mxu1 %v20973_v46  ;;  %v20978_v46 = vld [vmem:[#allocation26_spill] sm:$0xff] }
 0x320   : > { %13908 = vmatmul.mubr.f32.gmra.mrb[2].mxu0 %v20974_v45  ;;  %12886 = vmatprep.mubr.f32.mxu1 %v20975_v52  ;;  %v20979_v45 = vld [vmem:[#allocation245_spill] sm:$0xff]  ;;  %v20980_v52 = vld [vmem:[#allocation27_spill] sm:$0xff] }
 0x321   : > { %13910 = vmatprep.mubr.f32.mxu0 %v20976_v42  ;;  %14583 = vmatpush3.bf16.msra.mxu0 %v14580_v3  ;;  %v14592_v42 = vpack.c.bf16 %v10991_v59, %v10990_v32  ;;  %v20982_v3 = vld [vmem:[#allocation28_spill] sm:$0xff]  ;;  %v20991_v59 = vld [vmem:[#allocation254_spill] sm:$0xff] }
 0x322   : > { %14585 = vmatprep.subr.bf16.mxu0 %v14584_v56  ;;  %v20990_v32 = vld [vmem:[#allocation32_spill] sm:$0xff] }
 0x323   : > { %12887 = vmatmul.mubr.f32.gmra.mrb[68].mxu1 %v20977_v55  ;;  %v20984_v55 = vld [vmem:[#allocation29_spill] sm:$0xff] }
 0x324   : > { %13911 = vmatmul.mubr.f32.gmra.mrb[4].mxu0 %v20978_v46  ;;  %12889 = vmatprep.mubr.f32.mxu1 %v20979_v45  ;;  %v20986_v46 = vld [vmem:[#allocation30_spill] sm:$0xff]  ;;  %v20987_v45 = vld [vmem:[#allocation252_spill] sm:$0xff] }
 0x325   : > { %13913 = vmatprep.mubr.f32.mxu0 %v20980_v52  ;;  %14587 = vmatpush3.bf16.msra.mxu0 %v14584_v56  ;;  %v20988_v52 = vld [vmem:[#allocation31_spill] sm:$0xff]  ;;  %v20989_v56 = vld [vmem:[#allocation253_spill] sm:$0xff] }
 0x326   : > { %14589 = vmatprep.subr.bf16.mxu0 %v14588_v15 }
 0x327   : > { %12890 = vmatmul.mubr.f32.gmra.mrb[70].mxu1 %v20981_v36  ;;  %v21161_v36 = vld [vmem:[#allocation217_spill] sm:$0xff] }
 0x328   : > { %13914 = vmatmul.mubr.f32.gmra.mrb[6].mxu0 %v20982_v3  ;;  %12892 = vmatprep.mubr.f32.mxu1 %v20983_v14  ;;  %v20992_v3 = vld [vmem:[#allocation33_spill] sm:$0xff]  ;;  %v21012_v14 = vld [vmem:[#allocation43_spill] sm:$0xff] }
 0x329   : > { %13916 = vmatprep.mubr.f32.mxu0 %v20984_v55  ;;  %14591 = vmatpush3.bf16.msra.mxu0 %v14588_v15  ;;  %v20993_v55 = vld [vmem:[#allocation255_spill] sm:$0xff]  ;;  %v20994_v15 = vld [vmem:[#allocation34_spill] sm:$0xff] }
 0x32a   : > { %14593 = vmatprep.subr.bf16.mxu0 %v14592_v42 }
 0x32b   : > { %12893 = vmatmul.mubr.f32.gmra.mrb[72].mxu1 %v20985_v54  ;;  %v20995_v54 = vld [vmem:[#allocation256_spill] sm:$0xff] }
 0x32c   : > { %13917 = vmatmul.mubr.f32.gmra.mrb[8].mxu0 %v20986_v46  ;;  %12895 = vmatprep.mubr.f32.mxu1 %v20987_v45  ;;  %v20996_v46 = vld [vmem:[#allocation35_spill] sm:$0xff]  ;;  %v20997_v45 = vld [vmem:[#allocation257_spill] sm:$0xff] }
 0x32d   : > { %13919 = vmatprep.mubr.f32.mxu0 %v20988_v52  ;;  %14595 = vmatpush3.bf16.msra.mxu0 %v14592_v42  ;;  %v20998_v52 = vld [vmem:[#allocation36_spill] sm:$0xff]  ;;  %v20999_v42 = vld [vmem:[#allocation258_spill] sm:$0xff] }
 0x32f   : > { %12896 = vmatmul.mubr.f32.gmra.mrb[74].mxu1 %v20989_v56  ;;  %v21000_v56 = vld [vmem:[#allocation37_spill] sm:$0xff] }
 0x330   : > { %13920 = vmatmul.mubr.f32.gmra.mrb[10].mxu0 %v20990_v32  ;;  %12898 = vmatprep.mubr.f32.mxu1 %v20991_v59  ;;  %v21001_v32 = vld [vmem:[#allocation259_spill] sm:$0xff]  ;;  %v21002_v59 = vld [vmem:[#allocation38_spill] sm:$0xff] }
 0x331   : > { %13922 = vmatprep.mubr.f32.mxu0 %v20992_v3  ;;  %v21003_v3 = vld [vmem:[#allocation260_spill] sm:$0xff] }
 0x333   : > { %12899 = vmatmul.mubr.f32.gmra.mrb[76].mxu1 %v20993_v55  ;;  %v21011_v55 = vld [vmem:[#allocation264_spill] sm:$0xff] }
 0x334   : > { %13923 = vmatmul.mubr.f32.gmra.mrb[12].mxu0 %v20994_v15  ;;  %12901 = vmatprep.mubr.f32.mxu1 %v20995_v54  ;;  %v10992_v15 = vld [vmem:[%s19945_s1 + $0x450] sm:$0xff] }
 0x335   : > { %13925 = vmatprep.mubr.f32.mxu0 %v20996_v46  ;;  %v10993_v46 = vld [vmem:[%s19945_s1 + $0x458] sm:$0xff]  ;;  %v21010_v54 = vld [vmem:[#allocation42_spill] sm:$0xff] }
 0x337   : > { %12902 = vmatmul.mubr.f32.gmra.mrb[78].mxu1 %v20997_v45  ;;  %v21004_v45 = vld [vmem:[#allocation39_spill] sm:$0xff] }
 0x338   : > { %13926 = vmatmul.mubr.f32.gmra.mrb[14].mxu0 %v20998_v52  ;;  %12904 = vmatprep.mubr.f32.mxu1 %v20999_v42  ;;  %v14596_v52 = vpack.c.bf16 %v10993_v46, %v10992_v15  ;;  %v21005_v42 = vld [vmem:[#allocation261_spill] sm:$0xff]  ;;  %v21014_v15 = vld [vmem:[#allocation44_spill] sm:$0xff]  ;;  %v21015_v46 = vld [vmem:[#allocation266_spill] sm:$0xff] }
 0x339   : > { %13928 = vmatprep.mubr.f32.mxu0 %v21000_v56  ;;  %v21006_v56 = vld [vmem:[#allocation40_spill] sm:$0xff] }
 0x33a   : > { %14597 = vmatprep.subr.bf16.mxu0 %v14596_v52 }
 0x33b   : > { %12905 = vmatmul.mubr.f32.gmra.mrb[80].mxu1 %v21001_v32  ;;  %v21007_v32 = vld [vmem:[#allocation262_spill] sm:$0xff]  ;;  %14599 = vmatpush3.bf16.msra.mxu0 %v14596_v52  ;;  %v21019_v52 = vld [vmem:[#allocation268_spill] sm:$0xff] }
 0x33c   : > { %13929 = vmatmul.mubr.f32.gmra.mrb[16].mxu0 %v21002_v59  ;;  %12907 = vmatprep.mubr.f32.mxu1 %v21003_v3  ;;  %v21008_v59 = vld [vmem:[#allocation41_spill] sm:$0xff]  ;;  %v21009_v3 = vld [vmem:[#allocation263_spill] sm:$0xff] }
 0x33d   : > { %13931 = vmatprep.mubr.f32.mxu0 %v21004_v45  ;;  %v21013_v45 = vld [vmem:[#allocation265_spill] sm:$0xff] }
 0x33f   : > { %12908 = vmatmul.mubr.f32.gmra.mrb[82].mxu1 %v21005_v42  ;;  %v21044_v42 = vld [vmem:[#allocation74_spill] sm:$0xff] }
 0x340   : > { %13932 = vmatmul.mubr.f32.gmra.mrb[18].mxu0 %v21006_v56  ;;  %12910 = vmatprep.mubr.f32.mxu1 %v21007_v32  ;;  %v21016_v56 = vld [vmem:[#allocation45_spill] sm:$0xff]  ;;  %v21017_v32 = vld [vmem:[#allocation267_spill] sm:$0xff] }
 0x341   : > { %13934 = vmatprep.mubr.f32.mxu0 %v21008_v59  ;;  %v21018_v59 = vld [vmem:[#allocation46_spill] sm:$0xff] }
 0x343   : > { %12911 = vmatmul.mubr.f32.gmra.mrb[84].mxu1 %v21009_v3  ;;  %v21020_v3 = vld [vmem:[#allocation47_spill] sm:$0xff] }
 0x344   : > { %13935 = vmatmul.mubr.f32.gmra.mrb[20].mxu0 %v21010_v54  ;;  %12913 = vmatprep.mubr.f32.mxu1 %v21011_v55  ;;  %v21021_v54 = vld [vmem:[#allocation269_spill] sm:$0xff]  ;;  %v21022_v55 = vld [vmem:[#allocation50_spill] sm:$0xff] }
 0x345   : > { %13937 = vmatprep.mubr.f32.mxu0 %v21012_v14  ;;  %v21023_v14 = vld [vmem:[#allocation270_spill] sm:$0xff] }
 0x347   : > { %12914 = vmatmul.mubr.f32.gmra.mrb[86].mxu1 %v21013_v45  ;;  %v21024_v45 = vld [vmem:[#allocation51_spill] sm:$0xff] }
 0x348   : > { %13938 = vmatmul.mubr.f32.gmra.mrb[22].mxu0 %v21014_v15  ;;  %12916 = vmatprep.mubr.f32.mxu1 %v21015_v46  ;;  %v21025_v15 = vld [vmem:[#allocation271_spill] sm:$0xff] }
 0x349   : > { %13940 = vmatprep.mubr.f32.mxu0 %v21016_v56  ;;  %v21026_v46 = vld [vmem:[#allocation55_spill] sm:$0xff]  ;;  %v21027_v56 = vld [vmem:[#allocation272_spill] sm:$0xff] }
 0x34b   : > { %12917 = vmatmul.mubr.f32.gmra.mrb[88].mxu1 %v21017_v32  ;;  %v21028_v32 = vld [vmem:[#allocation56_spill] sm:$0xff] }
 0x34c   : > { %13941 = vmatmul.mubr.f32.gmra.mrb[24].mxu0 %v21018_v59  ;;  %12919 = vmatprep.mubr.f32.mxu1 %v21019_v52  ;;  %v21029_v59 = vld [vmem:[#allocation273_spill] sm:$0xff]  ;;  %v21030_v52 = vld [vmem:[#allocation59_spill] sm:$0xff] }
 0x34d   : > { %13943 = vmatprep.mubr.f32.mxu0 %v21020_v3  ;;  %v21031_v3 = vld [vmem:[#allocation274_spill] sm:$0xff] }
 0x34f   : > { %12920 = vmatmul.mubr.f32.gmra.mrb[90].mxu1 %v21021_v54  ;;  %v21032_v54 = vld [vmem:[#allocation60_spill] sm:$0xff] }
 0x350   : > { %13944 = vmatmul.mubr.f32.gmra.mrb[26].mxu0 %v21022_v55  ;;  %12922 = vmatprep.mubr.f32.mxu1 %v21023_v14  ;;  %v21033_v55 = vld [vmem:[#allocation275_spill] sm:$0xff]  ;;  %v21034_v14 = vld [vmem:[#allocation64_spill] sm:$0xff] }
 0x351   : > { %13946 = vmatprep.mubr.f32.mxu0 %v21024_v45  ;;  %v21035_v45 = vld [vmem:[#allocation166_spill] sm:$0xff] }
 0x353   : > { %12923 = vmatmul.mubr.f32.gmra.mrb[92].mxu1 %v21025_v15  ;;  %v21043_v15 = vld [vmem:[#allocation173_spill] sm:$0xff] }
 0x354   : > { %13947 = vmatmul.mubr.f32.gmra.mrb[28].mxu0 %v21026_v46  ;;  %12925 = vmatprep.mubr.f32.mxu1 %v21027_v56  ;;  %v10994_v46 = vld [vmem:[%s19945_s1 + $0x460] sm:$0xff] }
 0x355   : > { %13949 = vmatprep.mubr.f32.mxu0 %v21028_v32  ;;  %v10995_v32 = vld [vmem:[%s19945_s1 + $0x468] sm:$0xff] }
 0x356   : > { %v21042_v56 = vld [vmem:[#allocation73_spill] sm:$0xff] }
 0x357   : > { %12926 = vmatmul.mubr.f32.gmra.mrb[94].mxu1 %v21029_v59  ;;  %v21036_v59 = vld [vmem:[#allocation65_spill] sm:$0xff] }
 0x358   : > { %13950 = vmatmul.mubr.f32.gmra.mrb[30].mxu0 %v21030_v52  ;;  %12928 = vmatprep.mubr.f32.mxu1 %v21031_v3  ;;  %v14600_v52 = vpack.c.bf16 %v10995_v32, %v10994_v46  ;;  %v21037_v3 = vld [vmem:[#allocation49_spill] sm:$0xff]  ;;  %v21047_v32 = vld [vmem:[#allocation175_spill] sm:$0xff] }
 0x359   : > { %13952 = vmatprep.mubr.f32.mxu0 %v21032_v54  ;;  %v21038_v54 = vld [vmem:[#allocation68_spill] sm:$0xff]  ;;  %v21046_v46 = vld [vmem:[#allocation77_spill] sm:$0xff] }
 0x35a   : > { %14601 = vmatprep.subr.bf16.mxu0 %v14600_v52 }
 0x35b   : > { %12929 = vmatmul.mubr.f32.gmra.mrb[96].mxu1 %v21033_v55  ;;  %v21039_v55 = vld [vmem:[#allocation168_spill] sm:$0xff]  ;;  %14603 = vmatpush3.bf16.msra.mxu0 %v14600_v52  ;;  %v21051_v52 = vld [vmem:[#allocation62_spill] sm:$0xff] }
 0x35c   : > { %13953 = vmatmul.mubr.f32.gmra.mrb[32].mxu0 %v21034_v14  ;;  %12931 = vmatprep.mubr.f32.mxu1 %v21035_v45  ;;  %v21040_v14 = vld [vmem:[#allocation69_spill] sm:$0xff]  ;;  %v21041_v45 = vld [vmem:[#allocation52_spill] sm:$0xff] }
 0x35d   : > { %13955 = vmatprep.mubr.f32.mxu0 %v21036_v59  ;;  %v21045_v59 = vld [vmem:[#allocation58_spill] sm:$0xff] }
 0x35f   : > { %12932 = vmatmul.mubr.f32.gmra.mrb[98].mxu1 %v21037_v3  ;;  %v21076_v3 = vld [vmem:[#allocation100_spill] sm:$0xff] }
 0x360   : > { %13956 = vmatmul.mubr.f32.gmra.mrb[34].mxu0 %v21038_v54  ;;  %12934 = vmatprep.mubr.f32.mxu1 %v21039_v55  ;;  %v21048_v54 = vld [vmem:[#allocation78_spill] sm:$0xff]  ;;  %v21049_v55 = vld [vmem:[#allocation61_spill] sm:$0xff] }
 0x361   : > { %13958 = vmatprep.mubr.f32.mxu0 %v21040_v14  ;;  %v21050_v14 = vld [vmem:[#allocation82_spill] sm:$0xff] }
 0x363   : > { %12935 = vmatmul.mubr.f32.gmra.mrb[100].mxu1 %v21041_v45  ;;  %v21052_v45 = vld [vmem:[#allocation83_spill] sm:$0xff] }
 0x364   : > { %13959 = vmatmul.mubr.f32.gmra.mrb[36].mxu0 %v21042_v56  ;;  %12937 = vmatprep.mubr.f32.mxu1 %v21043_v15  ;;  %v21053_v56 = vld [vmem:[#allocation181_spill] sm:$0xff]  ;;  %v21054_v15 = vld [vmem:[#allocation86_spill] sm:$0xff] }
 0x365   : > { %13961 = vmatprep.mubr.f32.mxu0 %v21044_v42  ;;  %v21055_v42 = vld [vmem:[#allocation67_spill] sm:$0xff] }
 0x367   : > { %12938 = vmatmul.mubr.f32.gmra.mrb[102].mxu1 %v21045_v59  ;;  %v21056_v59 = vld [vmem:[#allocation87_spill] sm:$0xff] }
 0x368   : > { %13962 = vmatmul.mubr.f32.gmra.mrb[38].mxu0 %v21046_v46  ;;  %12940 = vmatprep.mubr.f32.mxu1 %v21047_v32  ;;  %v21057_v46 = vld [vmem:[#allocation183_spill] sm:$0xff] }
 0x369   : > { %13964 = vmatprep.mubr.f32.mxu0 %v21048_v54  ;;  %v21058_v32 = vld [vmem:[#allocation91_spill] sm:$0xff]  ;;  %v21059_v54 = vld [vmem:[#allocation70_spill] sm:$0xff] }
 0x36b   : > { %12941 = vmatmul.mubr.f32.gmra.mrb[104].mxu1 %v21049_v55  ;;  %v21060_v55 = vld [vmem:[#allocation92_spill] sm:$0xff] }
 0x36c   : > { %13965 = vmatmul.mubr.f32.gmra.mrb[40].mxu0 %v21050_v14  ;;  %12943 = vmatprep.mubr.f32.mxu1 %v21051_v52  ;;  %v21061_v14 = vld [vmem:[#allocation71_spill] sm:$0xff]  ;;  %v21062_v52 = vld [vmem:[#allocation93_spill] sm:$0xff] }
 0x36d   : > { %13967 = vmatprep.mubr.f32.mxu0 %v21052_v45  ;;  %v21063_v45 = vld [vmem:[#allocation189_spill] sm:$0xff] }
 0x36f   : > { %12944 = vmatmul.mubr.f32.gmra.mrb[106].mxu1 %v21053_v56  ;;  %v21064_v56 = vld [vmem:[#allocation94_spill] sm:$0xff] }
 0x370   : > { %13968 = vmatmul.mubr.f32.gmra.mrb[42].mxu0 %v21054_v15  ;;  %12946 = vmatprep.mubr.f32.mxu1 %v21055_v42  ;;  %v21065_v15 = vld [vmem:[#allocation76_spill] sm:$0xff]  ;;  %v21066_v42 = vld [vmem:[#allocation95_spill] sm:$0xff] }
 0x371   : > { %13970 = vmatprep.mubr.f32.mxu0 %v21056_v59  ;;  %v21067_v59 = vld [vmem:[#allocation191_spill] sm:$0xff] }
 0x373   : > { %12947 = vmatmul.mubr.f32.gmra.mrb[108].mxu1 %v21057_v46  ;;  %v21075_v46 = vld [vmem:[#allocation85_spill] sm:$0xff] }
 0x374   : > { %13971 = vmatmul.mubr.f32.gmra.mrb[44].mxu0 %v21058_v32  ;;  %12949 = vmatprep.mubr.f32.mxu1 %v21059_v54  ;;  %v10996_v32 = vld [vmem:[%s19945_s1 + $0x470] sm:$0xff] }
 0x375   : > { %13973 = vmatprep.mubr.f32.mxu0 %v21060_v55  ;;  %v10997_v55 = vld [vmem:[%s19945_s1 + $0x478] sm:$0xff] }
 0x376   : > { %v21074_v54 = vld [vmem:[#allocation99_spill] sm:$0xff] }
 0x377   : > { %12950 = vmatmul.mubr.f32.gmra.mrb[110].mxu1 %v21061_v14  ;;  %v21068_v14 = vld [vmem:[#allocation96_spill] sm:$0xff] }
 0x378   : > { %13974 = vmatmul.mubr.f32.gmra.mrb[46].mxu0 %v21062_v52  ;;  %12952 = vmatprep.mubr.f32.mxu1 %v21063_v45  ;;  %v14604_v52 = vpack.c.bf16 %v10997_v55, %v10996_v32  ;;  %v21069_v45 = vld [vmem:[#allocation79_spill] sm:$0xff]  ;;  %v21078_v32 = vld [vmem:[#allocation101_spill] sm:$0xff]  ;;  %v21079_v55 = vld [vmem:[#allocation204_spill] sm:$0xff] }
 0x379   : > { %13976 = vmatprep.mubr.f32.mxu0 %v21064_v56  ;;  %v21070_v56 = vld [vmem:[#allocation97_spill] sm:$0xff] }
 0x37a   : > { %14605 = vmatprep.subr.bf16.mxu0 %v14604_v52 }
 0x37b   : > { %12953 = vmatmul.mubr.f32.gmra.mrb[112].mxu1 %v21065_v15  ;;  %v21071_v15 = vld [vmem:[#allocation80_spill] sm:$0xff]  ;;  %14607 = vmatpush3.bf16.msra.mxu0 %v14604_v52  ;;  %v21083_v52 = vld [vmem:[#allocation211_spill] sm:$0xff] }
 0x37c   : > { %13977 = vmatmul.mubr.f32.gmra.mrb[48].mxu0 %v21066_v42  ;;  %12955 = vmatprep.mubr.f32.mxu1 %v21067_v59  ;;  %v21072_v42 = vld [vmem:[#allocation98_spill] sm:$0xff]  ;;  %v21073_v59 = vld [vmem:[#allocation197_spill] sm:$0xff] }
 0x37d   : > { %13979 = vmatprep.mubr.f32.mxu0 %v21068_v14  ;;  %v21077_v14 = vld [vmem:[#allocation88_spill] sm:$0xff] }
 0x37f   : > { %12956 = vmatmul.mubr.f32.gmra.mrb[114].mxu1 %v21069_v45  ;;  %v21097_v45 = vld [vmem:[#allocation122_spill] sm:$0xff] }
 0x380   : > { %13980 = vmatmul.mubr.f32.gmra.mrb[50].mxu0 %v21070_v56  ;;  %12958 = vmatprep.mubr.f32.mxu1 %v21071_v15  ;;  %v21080_v56 = vld [vmem:[#allocation102_spill] sm:$0xff]  ;;  %v21081_v15 = vld [vmem:[#allocation207_spill] sm:$0xff] }
 0x381   : > { %13982 = vmatprep.mubr.f32.mxu0 %v21072_v42  ;;  %v21082_v42 = vld [vmem:[#allocation103_spill] sm:$0xff] }
 0x383   : > { %12959 = vmatmul.mubr.f32.gmra.mrb[116].mxu1 %v21073_v59  ;;  %v21084_v59 = vld [vmem:[#allocation104_spill] sm:$0xff] }
 0x384   : > { %13983 = vmatmul.mubr.f32.gmra.mrb[52].mxu0 %v21074_v54  ;;  %12961 = vmatprep.mubr.f32.mxu1 %v21075_v46  ;;  %v21085_v54 = vld [vmem:[#allocation215_spill] sm:$0xff]  ;;  %v21086_v46 = vld [vmem:[#allocation105_spill] sm:$0xff] }
 0x385   : > { %13985 = vmatprep.mubr.f32.mxu0 %v21076_v3  ;;  %v21087_v3 = vld [vmem:[#allocation220_spill] sm:$0xff] }
 0x387   : > { %12962 = vmatmul.mubr.f32.gmra.mrb[118].mxu1 %v21077_v14  ;;  %v21088_v14 = vld [vmem:[#allocation110_spill] sm:$0xff] }
 0x388   : > { %13986 = vmatmul.mubr.f32.gmra.mrb[54].mxu0 %v21078_v32  ;;  %12964 = vmatprep.mubr.f32.mxu1 %v21079_v55  ;;  %v21089_v32 = vld [vmem:[#allocation278_spill] sm:$0xff]  ;;  %v21090_v55 = vld [vmem:[#allocation112_spill] sm:$0xff] }
 0x389   : > { %13988 = vmatprep.mubr.f32.mxu0 %v21080_v56  ;;  %v21091_v56 = vld [vmem:[#allocation279_spill] sm:$0xff] }
 0x38b   : > { %12965 = vmatmul.mubr.f32.gmra.mrb[120].mxu1 %v21081_v15  ;;  %v21092_v15 = vld [vmem:[#allocation114_spill] sm:$0xff] }
 0x38c   : > { %13989 = vmatmul.mubr.f32.gmra.mrb[56].mxu0 %v21082_v42  ;;  %12967 = vmatprep.mubr.f32.mxu1 %v21083_v52  ;;  %v21093_v42 = vld [vmem:[#allocation283_spill] sm:$0xff]  ;;  %v21094_v52 = vld [vmem:[#allocation116_spill] sm:$0xff] }
 0x38d   : > { %13991 = vmatprep.mubr.f32.mxu0 %v21084_v59  ;;  %v15847_v59 = vld [vmem:[#allocation2 + $0x28] sm:$0xff] }
 0x38f   : > { %12968 = vmatmul.mubr.f32.gmra.mrb[122].mxu1 %v21085_v54  ;;  %v21095_v54 = vld [vmem:[#allocation118_spill] sm:$0xff] }
 0x390   : > { %13992 = vmatmul.mubr.f32.gmra.mrb[58].mxu0 %v21086_v46  ;;  %12970 = vmatprep.mubr.f32.mxu1 %v21087_v3  ;;  %v15848_v46 = vld [vmem:[#allocation2 + $0x30] sm:$0xff]  ;;  %v21096_v3 = vld [vmem:[#allocation120_spill] sm:$0xff] }
 0x391   : > { %13994 = vmatprep.mubr.f32.mxu0 %v21088_v14 }
 0x393   : > { %12971 = vmatmul.mubr.f32.gmra.mrb[124].mxu1 %v21089_v32  ;;  %v15849_v32 = vld [vmem:[#allocation2 + $0x38] sm:$0xff] }
 0x394   : > { %13995 = vmatmul.mubr.f32.gmra.mrb[60].mxu0 %v21090_v55  ;;  %12973 = vmatprep.mubr.f32.mxu1 %v21091_v56  ;;  %v21098_v56 = vld [vmem:[#allocation14_spill] sm:$0xff]  ;;  %v19306_v55 = vld [vmem:[#allocation2 + $0x518] sm:$0xff] }
 0x395   : > { %13997 = vmatprep.mubr.f32.mxu0 %v21092_v15  ;;  %v15850_v15 = vld [vmem:[#allocation2 + $0x40] sm:$0xff]  ;;  %21160 = vst [vmem:[#allocation108_spill] sm:$0xff] %v19306_v55  ;;  %v5409_v14 = vrot.slane %v19306_v55, 1 }
 0x396   : > { %v21164_v55 = vld [vmem:[#allocation228_spill] sm:$0xff] }
 0x397   : > { %12974 = vmatmul.mubr.f32.gmra.mrb[126].mxu1 %v21093_v42  ;;  %v21099_v42 = vld [vmem:[#allocation124_spill] sm:$0xff] }
 0x398   : > { %13998 = vmatmul.mubr.f32.gmra.mrb[62].mxu0 %v21094_v52  ;;  %13008 = vmatprep.mubr.f32.mxu1 %v15847_v59  ;;  %v15851_v52 = vld [vmem:[#allocation2 + $0x50] sm:$0xff] }
 0x399   : > { %14000 = vmatprep.mubr.f32.mxu0 %v21095_v54  ;;  %v21100_v59 = vld [vmem:[#allocation126_spill] sm:$0xff]  ;;  %v21121_v54 = vld [vmem:[#allocation156_spill] sm:$0xff] }
 0x39b   : > { %13009 = vmatmul.mubr.f32.vlgmr.msra.gmra.mrb[0].mxu1 %v15848_v46  ;;  %v21101_v46 = vld [vmem:[#allocation15_spill] sm:$0xff] }
 0x39c   : > { %14001 = vmatmul.mubr.f32.gmra.mrb[64].mxu0 %v21096_v3  ;;  %14616 = vmatpush3.bf16.msra.mxu1 %v20948_v47  ;;  %v15852_v3 = vld [vmem:[#allocation2 + $0x58] sm:$0xff] }
 0x39d   : > { %13011 = vmatprep.mubr.f32.mxu1 %v15849_v32  ;;  %14003 = vmatprep.mubr.f32.mxu0 %v21097_v45  ;;  %v21102_v47 = vld [vmem:[#allocation128_spill] sm:$0xff]  ;;  %v21103_v45 = vld [vmem:[#allocation130_spill] sm:$0xff] }
 0x39e   : > { %14609 = vmatprep.subr.bf16.mxu1 %v21098_v56  ;;  %v15853_v32 = vld [vmem:[#allocation2 + $0x60] sm:$0xff] }
 0x39f   : > { %13012 = vmatmul.mubr.f32.gmra.mrb[2].mxu1 %v15850_v15  ;;  %v21104_v15 = vld [vmem:[#allocation16_spill] sm:$0xff] }
 0x3a0   : > { %14004 = vmatmul.mubr.f32.gmra.mrb[66].mxu0 %v21099_v42  ;;  %13014 = vmatprep.mubr.f32.mxu1 %v15851_v52  ;;  %v15854_v42 = vld [vmem:[#allocation2 + $0x68] sm:$0xff]  ;;  %v21105_v52 = vld [vmem:[#allocation132_spill] sm:$0xff] }
 0x3a1   : > { %14006 = vmatprep.mubr.f32.mxu0 %v21100_v59  ;;  %14617 = vmatpush3.bf16.msra.mxu1 %v21098_v56  ;;  %v15855_v59 = vld [vmem:[#allocation2 + $0x78] sm:$0xff]  ;;  %v21106_v56 = vld [vmem:[#allocation134_spill] sm:$0xff] }
 0x3a2   : > { %14610 = vmatprep.subr.bf16.mxu1 %v21101_v46 }
 0x3a3   : > { %13015 = vmatmul.mubr.f32.gmra.mrb[4].mxu1 %v15852_v3  ;;  %v21107_v3 = vld [vmem:[#allocation17_spill] sm:$0xff] }
 0x3a4   : > { %14007 = vmatmul.mubr.f32.gmra.mrb[68].mxu0 %v21102_v47  ;;  %13017 = vmatprep.mubr.f32.mxu1 %v15853_v32  ;;  %v15856_v47 = vld [vmem:[#allocation2 + $0x80] sm:$0xff] }
 0x3a5   : > { %14009 = vmatprep.mubr.f32.mxu0 %v21103_v45  ;;  %14618 = vmatpush3.bf16.msra.mxu1 %v21101_v46  ;;  %v21108_v32 = vld [vmem:[#allocation136_spill] sm:$0xff]  ;;  %v15857_v45 = vld [vmem:[#allocation2 + $0x88] sm:$0xff] }
 0x3a6   : > { %14611 = vmatprep.subr.bf16.mxu1 %v21104_v15  ;;  %v21109_v46 = vld [vmem:[#allocation138_spill] sm:$0xff] }
 0x3a7   : > { %13018 = vmatmul.mubr.f32.gmra.mrb[6].mxu1 %v15854_v42  ;;  %v21110_v42 = vld [vmem:[#allocation18_spill] sm:$0xff] }
 0x3a8   : > { %14010 = vmatmul.mubr.f32.gmra.mrb[70].mxu0 %v21105_v52  ;;  %13020 = vmatprep.mubr.f32.mxu1 %v15855_v59  ;;  %v15858_v52 = vld [vmem:[#allocation2 + $0x90] sm:$0xff]  ;;  %v21111_v59 = vld [vmem:[#allocation140_spill] sm:$0xff] }
 0x3a9   : > { %14012 = vmatprep.mubr.f32.mxu0 %v21106_v56  ;;  %14619 = vmatpush3.bf16.msra.mxu1 %v21104_v15  ;;  %v15859_v56 = vld [vmem:[#allocation2 + $0xa0] sm:$0xff]  ;;  %v21112_v15 = vld [vmem:[#allocation142_spill] sm:$0xff] }
 0x3aa   : > { %14612 = vmatprep.subr.bf16.mxu1 %v21107_v3 }
 0x3ab   : > { %13021 = vmatmul.mubr.f32.gmra.mrb[8].mxu1 %v15856_v47  ;;  %v21113_v47 = vld [vmem:[#allocation19_spill] sm:$0xff] }
 0x3ac   : > { %14013 = vmatmul.mubr.f32.gmra.mrb[72].mxu0 %v21108_v32  ;;  %13023 = vmatprep.mubr.f32.mxu1 %v15857_v45  ;;  %v15860_v32 = vld [vmem:[#allocation2 + $0xa8] sm:$0xff]  ;;  %v21114_v45 = vld [vmem:[#allocation144_spill] sm:$0xff] }
 0x3ad   : > { %14015 = vmatprep.mubr.f32.mxu0 %v21109_v46  ;;  %14620 = vmatpush3.bf16.msra.mxu1 %v21107_v3  ;;  %v15861_v46 = vld [vmem:[#allocation2 + $0xb0] sm:$0xff] }
 0x3ae   : > { %14613 = vmatprep.subr.bf16.mxu1 %v21110_v42  ;;  %v21115_v3 = vld [vmem:[#allocation146_spill] sm:$0xff] }
 0x3af   : > { %13024 = vmatmul.mubr.f32.gmra.mrb[10].mxu1 %v15858_v52  ;;  %v21116_v52 = vld [vmem:[#allocation20_spill] sm:$0xff] }
 0x3b0   : > { %14016 = vmatmul.mubr.f32.gmra.mrb[74].mxu0 %v21111_v59  ;;  %13026 = vmatprep.mubr.f32.mxu1 %v15859_v56  ;;  %v15862_v59 = vld [vmem:[#allocation2 + $0xb8] sm:$0xff] }
 0x3b1   : > { %14018 = vmatprep.mubr.f32.mxu0 %v21112_v15  ;;  %14621 = vmatpush3.bf16.msra.mxu1 %v21110_v42  ;;  %v21117_v56 = vld [vmem:[#allocation148_spill] sm:$0xff]  ;;  %v15863_v15 = vld [vmem:[#allocation2 + $0xc8] sm:$0xff] }
 0x3b2   : > { %14614 = vmatprep.subr.bf16.mxu1 %v21113_v47  ;;  %v21118_v42 = vld [vmem:[#allocation150_spill] sm:$0xff] }
 0x3b3   : > { %13027 = vmatmul.mubr.f32.gmra.mrb[12].mxu1 %v15860_v32  ;;  %v15864_v32 = vld [vmem:[#allocation2 + $0xd0] sm:$0xff] }
 0x3b4   : > { %14019 = vmatmul.mubr.f32.gmra.mrb[76].mxu0 %v21114_v45  ;;  %13029 = vmatprep.mubr.f32.mxu1 %v15861_v46  ;;  %v21119_v45 = vld [vmem:[#allocation152_spill] sm:$0xff] }
 0x3b5   : > { %14021 = vmatprep.mubr.f32.mxu0 %v21115_v3  ;;  %14622 = vmatpush3.bf16.msra.mxu1 %v21113_v47  ;;  %v15865_v46 = vld [vmem:[#allocation2 + $0xd8] sm:$0xff]  ;;  %v21120_v3 = vld [vmem:[#allocation154_spill] sm:$0xff]  ;;  %v15866_v47 = vld [vmem:[#allocation2 + $0xe0] sm:$0xff] }
 0x3b6   : > { %14615 = vmatprep.subr.bf16.mxu1 %v21116_v52 }
 0x3b7   : > { %13030 = vmatmul.mubr.f32.gmra.mrb[14].mxu1 %v15862_v59  ;;  %v15867_v59 = vld [vmem:[#allocation2 + $0xf0] sm:$0xff] }
 0x3b8   : > { %14022 = vmatmul.mubr.f32.gmra.mrb[78].mxu0 %v21117_v56  ;;  %13032 = vmatprep.mubr.f32.mxu1 %v15863_v15  ;;  %v21122_v56 = vld [vmem:[#allocation158_spill] sm:$0xff]  ;;  %v15868_v15 = vld [vmem:[#allocation2 + $0xf8] sm:$0xff] }
 0x3b9   : > { %14024 = vmatprep.mubr.f32.mxu0 %v21118_v42  ;;  %14623 = vmatpush3.bf16.msra.mxu1 %v21116_v52  ;;  %v21123_v42 = vld [vmem:[#allocation160_spill] sm:$0xff] }
 0x3ba   : > { %v15869_v52 = vld [vmem:[#allocation2 + $0x100] sm:$0xff] }
 0x3bb   : > { %13033 = vmatmul.mubr.f32.gmra.mrb[16].mxu1 %v15864_v32  ;;  %v21124_v32 = vld [vmem:[#allocation162_spill] sm:$0xff] }
 0x3bc   : > { %14025 = vmatmul.mubr.f32.gmra.mrb[80].mxu0 %v21119_v45  ;;  %13035 = vmatprep.mubr.f32.mxu1 %v15865_v46  ;;  %v15870_v45 = vld [vmem:[#allocation2 + $0x108] sm:$0xff]  ;;  %v21125_v46 = vld [vmem:[#allocation164_spill] sm:$0xff] }
 0x3bd   : > { %14027 = vmatprep.mubr.f32.mxu0 %v21120_v3  ;;  %v15871_v3 = vld [vmem:[#allocation2 + $0x118] sm:$0xff] }
 0x3bf   : > { %13036 = vmatmul.mubr.f32.gmra.mrb[18].mxu1 %v15866_v47  ;;  %v21126_v47 = vld [vmem:[#allocation165_spill] sm:$0xff] }
 0x3c0   : > { %14028 = vmatmul.mubr.f32.gmra.mrb[82].mxu0 %v21121_v54  ;;  %13038 = vmatprep.mubr.f32.mxu1 %v15867_v59  ;;  %v15872_v54 = vld [vmem:[#allocation2 + $0x120] sm:$0xff] }
 0x3c1   : > { %14030 = vmatprep.mubr.f32.mxu0 %v21122_v56  ;;  %v21127_v59 = vld [vmem:[#allocation169_spill] sm:$0xff] }
 0x3c2   : > { %v15873_v56 = vld [vmem:[#allocation2 + $0x128] sm:$0xff] }
 0x3c3   : > { %13039 = vmatmul.mubr.f32.gmra.mrb[20].mxu1 %v15868_v15  ;;  %v21128_v15 = vld [vmem:[#allocation171_spill] sm:$0xff] }
 0x3c4   : > { %14031 = vmatmul.mubr.f32.gmra.mrb[84].mxu0 %v21123_v42  ;;  %13041 = vmatprep.mubr.f32.mxu1 %v15869_v52  ;;  %v15874_v42 = vld [vmem:[#allocation2 + $0x130] sm:$0xff]  ;;  %v21129_v52 = vld [vmem:[#allocation53_spill] sm:$0xff] }
 0x3c5   : > { %14033 = vmatprep.mubr.f32.mxu0 %v21124_v32  ;;  %v15875_v32 = vld [vmem:[#allocation2 + $0x140] sm:$0xff] }
 0x3c7   : > { %13042 = vmatmul.mubr.f32.gmra.mrb[22].mxu1 %v15870_v45  ;;  %v21130_v45 = vld [vmem:[#allocation57_spill] sm:$0xff] }
 0x3c8   : > { %14034 = vmatmul.mubr.f32.gmra.mrb[86].mxu0 %v21125_v46  ;;  %13044 = vmatprep.mubr.f32.mxu1 %v15871_v3  ;;  %v15876_v46 = vld [vmem:[#allocation2 + $0x148] sm:$0xff]  ;;  %v21131_v3 = vld [vmem:[#allocation176_spill] sm:$0xff] }
 0x3c9   : > { %14036 = vmatprep.mubr.f32.mxu0 %v21126_v47  ;;  %v15877_v47 = vld [vmem:[#allocation2 + $0x150] sm:$0xff] }
 0x3cb   : > { %13045 = vmatmul.mubr.f32.gmra.mrb[24].mxu1 %v15872_v54  ;;  %v21132_v54 = vld [vmem:[#allocation178_spill] sm:$0xff] }
 0x3cc   : > { %14037 = vmatmul.mubr.f32.gmra.mrb[88].mxu0 %v21127_v59  ;;  %13047 = vmatprep.mubr.f32.mxu1 %v15873_v56  ;;  %v15878_v59 = vld [vmem:[#allocation2 + $0x158] sm:$0xff] }
 0x3cd   : > { %14039 = vmatprep.mubr.f32.mxu0 %v21128_v15  ;;  %v21133_v56 = vld [vmem:[#allocation63_spill] sm:$0xff]  ;;  %v15879_v15 = vld [vmem:[#allocation2 + $0x168] sm:$0xff] }
 0x3cf   : > { %13048 = vmatmul.mubr.f32.gmra.mrb[26].mxu1 %v15874_v42  ;;  %v21134_v42 = vld [vmem:[#allocation180_spill] sm:$0xff] }
 0x3d0   : > { %14040 = vmatmul.mubr.f32.gmra.mrb[90].mxu0 %v21129_v52  ;;  %13050 = vmatprep.mubr.f32.mxu1 %v15875_v32  ;;  %v15880_v52 = vld [vmem:[#allocation2 + $0x170] sm:$0xff]  ;;  %v21135_v32 = vld [vmem:[#allocation184_spill] sm:$0xff] }
 0x3d1   : > { %14042 = vmatprep.mubr.f32.mxu0 %v21130_v45  ;;  %v15881_v45 = vld [vmem:[#allocation2 + $0x178] sm:$0xff] }
 0x3d3   : > { %13051 = vmatmul.mubr.f32.gmra.mrb[28].mxu1 %v15876_v46  ;;  %v21136_v46 = vld [vmem:[#allocation186_spill] sm:$0xff] }
 0x3d4   : > { %14043 = vmatmul.mubr.f32.gmra.mrb[92].mxu0 %v21131_v3  ;;  %13053 = vmatprep.mubr.f32.mxu1 %v15877_v47  ;;  %v15882_v3 = vld [vmem:[#allocation2 + $0x180] sm:$0xff] }
 0x3d5   : > { %14045 = vmatprep.mubr.f32.mxu0 %v21132_v54  ;;  %v21137_v47 = vld [vmem:[#allocation72_spill] sm:$0xff]  ;;  %v15883_v54 = vld [vmem:[#allocation2 + $0x190] sm:$0xff] }
 0x3d7   : > { %13054 = vmatmul.mubr.f32.gmra.mrb[30].mxu1 %v15878_v59  ;;  %v21138_v59 = vld [vmem:[#allocation188_spill] sm:$0xff] }
 0x3d8   : > { %14046 = vmatmul.mubr.f32.gmra.mrb[94].mxu0 %v21133_v56  ;;  %13056 = vmatprep.mubr.f32.mxu1 %v15879_v15  ;;  %v15884_v56 = vld [vmem:[#allocation2 + $0x198] sm:$0xff] }
 0x3d9   : > { %14048 = vmatprep.mubr.f32.mxu0 %v21134_v42  ;;  %v21139_v15 = vld [vmem:[#allocation192_spill] sm:$0xff] }
 0x3da   : > { %v15885_v42 = vld [vmem:[#allocation2 + $0x1a0] sm:$0xff] }
 0x3db   : > { %13057 = vmatmul.mubr.f32.gmra.mrb[32].mxu1 %v15880_v52  ;;  %v21140_v52 = vld [vmem:[#allocation194_spill] sm:$0xff] }
 0x3dc   : > { %14049 = vmatmul.mubr.f32.gmra.mrb[96].mxu0 %v21135_v32  ;;  %13059 = vmatprep.mubr.f32.mxu1 %v15881_v45  ;;  %v15886_v32 = vld [vmem:[#allocation2 + $0x1a8] sm:$0xff] }
 0x3dd   : > { %14051 = vmatprep.mubr.f32.mxu0 %v21136_v46  ;;  %v21141_v45 = vld [vmem:[#allocation81_spill] sm:$0xff]  ;;  %v15887_v46 = vld [vmem:[#allocation2 + $0x1b8] sm:$0xff] }
 0x3df   : > { %13060 = vmatmul.mubr.f32.gmra.mrb[34].mxu1 %v15882_v3  ;;  %v21142_v3 = vld [vmem:[#allocation196_spill] sm:$0xff] }
 0x3e0   : > { %14052 = vmatmul.mubr.f32.gmra.mrb[98].mxu0 %v21137_v47  ;;  %13062 = vmatprep.mubr.f32.mxu1 %v15883_v54  ;;  %v15888_v47 = vld [vmem:[#allocation2 + $0x1c0] sm:$0xff]  ;;  %v21143_v54 = vld [vmem:[#allocation199_spill] sm:$0xff] }
 0x3e1   : > { %14054 = vmatprep.mubr.f32.mxu0 %v21138_v59  ;;  %v15889_v59 = vld [vmem:[#allocation2 + $0x1c8] sm:$0xff] }
 0x3e3   : > { %13063 = vmatmul.mubr.f32.gmra.mrb[36].mxu1 %v15884_v56  ;;  %v21144_v56 = vld [vmem:[#allocation201_spill] sm:$0xff] }
 0x3e4   : > { %14055 = vmatmul.mubr.f32.gmra.mrb[100].mxu0 %v21139_v15  ;;  %13065 = vmatprep.mubr.f32.mxu1 %v15885_v42  ;;  %v15890_v15 = vld [vmem:[#allocation2 + $0x1d0] sm:$0xff]  ;;  %v21145_v42 = vld [vmem:[#allocation89_spill] sm:$0xff] }
 0x3e5   : > { %14057 = vmatprep.mubr.f32.mxu0 %v21140_v52  ;;  %v15891_v52 = vld [vmem:[#allocation2 + $0x1e0] sm:$0xff] }
 0x3e7   : > { %13066 = vmatmul.mubr.f32.gmra.mrb[38].mxu1 %v15886_v32  ;;  %v21146_v32 = vld [vmem:[#allocation203_spill] sm:$0xff] }
 0x3e8   : > { %14058 = vmatmul.mubr.f32.gmra.mrb[102].mxu0 %v21141_v45  ;;  %13068 = vmatprep.mubr.f32.mxu1 %v15887_v46  ;;  %v15892_v45 = vld [vmem:[#allocation2 + $0x1e8] sm:$0xff]  ;;  %v21147_v46 = vld [vmem:[#allocation208_spill] sm:$0xff] }
 0x3e9   : > { %14060 = vmatprep.mubr.f32.mxu0 %v21142_v3  ;;  %v15893_v3 = vld [vmem:[#allocation2 + $0x1f0] sm:$0xff] }
 0x3eb   : > { %13069 = vmatmul.mubr.f32.gmra.mrb[40].mxu1 %v15888_v47  ;;  %v21148_v47 = vld [vmem:[#allocation210_spill] sm:$0xff] }
 0x3ec   : > { %14061 = vmatmul.mubr.f32.gmra.mrb[104].mxu0 %v21143_v54  ;;  %13071 = vmatprep.mubr.f32.mxu1 %v15889_v59  ;;  %v15894_v54 = vld [vmem:[#allocation2 + $0x1f8] sm:$0xff] }
 0x3ed   : > { %14063 = vmatprep.mubr.f32.mxu0 %v21144_v56  ;;  %v21149_v59 = vld [vmem:[#allocation216_spill] sm:$0xff]  ;;  %v15895_v56 = vld [vmem:[#allocation2 + $0x208] sm:$0xff] }
 0x3ef   : > { %13072 = vmatmul.mubr.f32.gmra.mrb[42].mxu1 %v15890_v15  ;;  %v21150_v15 = vld [vmem:[#allocation219_spill] sm:$0xff] }
 0x3f0   : > { %14064 = vmatmul.mubr.f32.gmra.mrb[106].mxu0 %v21145_v42  ;;  %13074 = vmatprep.mubr.f32.mxu1 %v15891_v52  ;;  %v15896_v42 = vld [vmem:[#allocation2 + $0x210] sm:$0xff]  ;;  %v21151_v52 = vld [vmem:[#allocation224_spill] sm:$0xff] }
 0x3f1   : > { %14066 = vmatprep.mubr.f32.mxu0 %v21146_v32  ;;  %v15897_v32 = vld [vmem:[#allocation2 + $0x218] sm:$0xff] }
 0x3f3   : > { %13075 = vmatmul.mubr.f32.gmra.mrb[44].mxu1 %v15892_v45  ;;  %v21152_v45 = vld [vmem:[#allocation226_spill] sm:$0xff] }
 0x3f4   : > { %14067 = vmatmul.mubr.f32.gmra.mrb[108].mxu0 %v21147_v46  ;;  %13077 = vmatprep.mubr.f32.mxu1 %v15893_v3  ;;  %v15898_v46 = vld [vmem:[#allocation2 + $0x220] sm:$0xff]  ;;  %v21153_v3 = vld [vmem:[#allocation230_spill] sm:$0xff] }
 0x3f5   : > { %14069 = vmatprep.mubr.f32.mxu0 %v21148_v47  ;;  %v15899_v47 = vld [vmem:[#allocation2 + $0x230] sm:$0xff] }
 0x3f7   : > { %13078 = vmatmul.mubr.f32.gmra.mrb[46].mxu1 %v15894_v54  ;;  %v21154_v54 = vld [vmem:[#allocation232_spill] sm:$0xff] }
 0x3f8   : > { %14070 = vmatmul.mubr.f32.gmra.mrb[110].mxu0 %v21149_v59  ;;  %13080 = vmatprep.mubr.f32.mxu1 %v15895_v56  ;;  %v19292_v59 = vld [vmem:[#allocation2 + $0x500] sm:$0xff] }
 0x3f9   : > { %14072 = vmatprep.mubr.f32.mxu0 %v21150_v15  ;;  %21155 = vst [vmem:[#allocation250_spill] sm:$0xff] %v19292_v59  ;;  %v5404_v56 = vrot.slane %v19292_v59, 1  ;;  %v19295_v15 = vld [vmem:[#allocation2 + $0x508] sm:$0xff] }
 0x3fa   : > { %21156 = vst [vmem:[#allocation106_spill] sm:$0xff] %v19295_v15 }
 0x3fb   : > { %13081 = vmatmul.mubr.f32.gmra.mrb[48].mxu1 %v15896_v42  ;;  %v5405_v42 = vrot.slane %v19295_v15, 1  ;;  %v7986_v15 = vrot.slane %v19041_v29, 1 }
 0x3fc   : > { %14073 = vmatmul.mubr.f32.gmra.mrb[112].mxu0 %v21151_v52  ;;  %13083 = vmatprep.mubr.f32.mxu1 %v15897_v32  ;;  %v15902_v52 = vld [vmem:[#allocation2 + $0x238] sm:$0xff] }
 0x3fd   : > { %14075 = vmatprep.mubr.f32.mxu0 %v21152_v45  ;;  %v21157_v32 = vld [vmem:[#allocation236_spill] sm:$0xff] }
 0x3fe   : > { %v15903_v45 = vld [vmem:[#allocation2 + $0x240] sm:$0xff] }
 0x3ff   : > { %13084 = vmatmul.mubr.f32.gmra.mrb[50].mxu1 %v15898_v46  ;;  %v21158_v46 = vld [vmem:[#allocation238_spill] sm:$0xff] }
 0x400   : > { %14076 = vmatmul.mubr.f32.gmra.mrb[114].mxu0 %v21153_v3  ;;  %13086 = vmatprep.mubr.f32.mxu1 %v15899_v47  ;;  %v19300_v3 = vld [vmem:[#allocation2 + $0x510] sm:$0xff] }
 0x401   : > { %14078 = vmatprep.mubr.f32.mxu0 %v21154_v54  ;;  %21159 = vst [vmem:[#allocation107_spill] sm:$0xff] %v19300_v3  ;;  %v5407_v47 = vrot.slane %v19300_v3, 1  ;;  %v19304_v54 = vsel %vm1438_vm0, %v5404_v56, %v5405_v42  ;;  %v7985_v56 = vrot.slane %v19035_v48, 1  ;;  %v7990_v48 = vrot.slane %v19049_v58, 1  ;;  %v15909_v58 = vld [vmem:[#allocation2 + $0x290] sm:$0xff] }
 0x403   : > { %13087 = vmatmul.mubr.f32.gmra.mrb[52].mxu1 %v15902_v52  ;;  %v21162_v52 = vld [vmem:[#allocation240_spill] sm:$0xff]  ;;  %v19319_v59 = vsel %vm1438_vm0, %v5407_v47, %v5409_v14  ;;  %v7987_v29 = vsel %vm1438_vm0, %v7985_v56, %v7986_v15 }
 0x404   : > { %14079 = vmatmul.mubr.f32.gmra.mrb[116].mxu0 %v21157_v32  ;;  %13089 = vmatprep.mubr.f32.mxu1 %v15903_v45  ;;  %v21163_v32 = vld [vmem:[#allocation222_spill] sm:$0xff]  ;;  %v19314_v45 = vsel %vm1438_vm0, %v5405_v42, %v5407_v47  ;;  %v21167_v47 = vld [vmem:[#allocation233_spill] sm:$0xff] }
 0x405   : > { %14081 = vmatprep.mubr.f32.mxu0 %v21158_v46  ;;  %v15906_v46 = vld [vmem:[#allocation2 + $0x520] sm:$0x3] }
 0x406   : > { %v5411_v3 = vrot.slane %v15906_v46, 1  ;;  %v19331_v46 = vld [vmem:[#allocation2 + $0x548] sm:$0x3] }
 0x407   : > { %13090 = vmatmul.mubr.f32.gmra.mrb[54].mxu1 %v21161_v36  ;;  %v21165_v36 = vld [vmem:[#allocation229_spill] sm:$0xff] }
 0x408   : > { %14082 = vmatmul.mubr.f32.gmra.mrb[118].mxu0 %v21162_v52  ;;  %13092 = vmatprep.mubr.f32.mxu1 %v21163_v32  ;;  %v7988_v32 = vrot.slane %v19043_v61, 1  ;;  %v19327_v42 = vsel %vm1438_vm0, %v5409_v14, %v5411_v3  ;;  %v15908_v3 = vld [vmem:[#allocation2 + $0x288] sm:$0xff] }
 0x409   : > { %14084 = vmatprep.mubr.f32.mxu0 %v19304_v54  ;;  %21166 = vst [vmem:[#allocation109_spill] sm:$0xff] %v19327_v42 }
 0x40a   : > { %v7989_v61 = vsel %vm1438_vm0, %v7986_v15, %v7988_v32  ;;  %v7991_v14 = vsel %vm1438_vm0, %v7988_v32, %v7990_v48  ;;  %v15912_v15 = vld [vmem:[#allocation2 + $0x2b0] sm:$0xff]  ;;  %v15913_v32 = vld [vmem:[#allocation2 + $0x2b8] sm:$0xff] }
 0x40b   : > { %13093 = vmatmul.mubr.f32.gmra.mrb[56].mxu1 %v21164_v55  ;;  %v15907_v55 = vld [vmem:[#allocation2 + $0x280] sm:$0xff] }
 0x40c   : > { %14085 = vmatmul.mubr.f32.gmra.mrb[120].mxu0 %v19314_v45  ;;  %13095 = vmatprep.mubr.f32.mxu1 %v21165_v36  ;;  %v7992_v36 = vrot.slane %v19331_v46, 1 }
 0x40d   : > { %14087 = vmatprep.mubr.f32.mxu0 %v19319_v59 }
 0x40e   : > { %v7993_v56 = vsel %vm1438_vm0, %v7990_v48, %v7992_v36  ;;  %v15915_v48 = vld [vmem:[#allocation2 + $0x2d0] sm:$0xff] }
 0x40f   : > { %13096 = vmatmul.mubr.f32.gmra.mrb[58].mxu1 %v21167_v47  ;;  %v15910_v47 = vld [vmem:[#allocation2 + $0x298] sm:$0xff]  ;;  %v21168_v36 = vld [vmem:[#allocation202_spill] sm:$0xff] }
 0x410   : > { %14088 = vmatmul.mubr.f32.gmra.mrb[122].mxu0 %v19327_v42  ;;  %13098 = vmatprep.mubr.f32.mxu1 %v15907_v55  ;;  %v15911_v42 = vld [vmem:[#allocation2 + $0x2a8] sm:$0xff]  ;;  %v15916_v55 = vld [vmem:[#allocation2 + $0x2d8] sm:$0xff] }
 0x411   : > { %14090 = vmatprep.mubr.f32.mxu0 %v7987_v29  ;;  %v15914_v29 = vld [vmem:[#allocation2 + $0x2c0] sm:$0xff] }
 0x413   : > { %13099 = vmatmul.mubr.f32.gmra.mrb[60].mxu1 %v15908_v3 }
 0x414   : > { %14091 = vmatmul.mubr.f32.gmra.mrb[124].mxu0 %v7989_v61  ;;  %13101 = vmatprep.mubr.f32.mxu1 %v15909_v58  ;;  %v21169_v58 = vld [vmem:[#allocation90_spill] sm:$0xff] }
 0x415   : > { %14093 = vmatprep.mubr.f32.mxu0 %v7991_v14 }
 0x417   : > { %13102 = vmatmul.mubr.f32.gmra.mrb[62].mxu1 %v15910_v47 }
 0x418   : > { %14094 = vmatmul.mubr.f32.gmra.mrb[126].mxu0 %v7993_v56  ;;  %13104 = vmatprep.mubr.f32.mxu1 %v15911_v42  ;;  %v21170_v56 = vld [vmem:[#allocation205_spill] sm:$0xff] }
 0x419   : > { %14128 = vmatprep.mubr.f32.mxu0 %v20899_v23  ;;  %v15917_v23 = vld [vmem:[#allocation2 + $0x2e0] sm:$0xff] }
 0x41b   : > { %13105 = vmatmul.mubr.f32.gmra.mrb[64].mxu1 %v15912_v15 }
 0x41c   : > { %14129 = vmatmul.mubr.f32.vlgmr.msra.gmra.mrb[0].mxu0 %v20900_v16  ;;  %13107 = vmatprep.mubr.f32.mxu1 %v15913_v32  ;;  %v15918_v16 = vld [vmem:[#allocation2 + $0x2e8] sm:$0xff] }
 0x41d   : > { %14131 = vmatprep.mubr.f32.mxu0 %v20901_v8  ;;  %v15919_v8 = vld [vmem:[#allocation2 + $0x2f8] sm:$0xff]  ;;  %v21171_v32 = vld [vmem:[#allocation209_spill] sm:$0xff] }
 0x41f   : > { %13108 = vmatmul.mubr.f32.gmra.mrb[66].mxu1 %v15914_v29  ;;  %v15961_v29 = vld [vmem:[#allocation2 + $0x498] sm:$0xff] }
 0x420   : > { %14132 = vmatmul.mubr.f32.gmra.mrb[2].mxu0 %v20902_v53  ;;  %13110 = vmatprep.mubr.f32.mxu1 %v15915_v48  ;;  %v15920_v53 = vld [vmem:[#allocation2 + $0x300] sm:$0xff] }
 0x421   : > { %14134 = vmatprep.mubr.f32.mxu0 %v20903_v39  ;;  %v15921_v39 = vld [vmem:[#allocation2 + $0x308] sm:$0xff]  ;;  %v21172_v48 = vld [vmem:[#allocation212_spill] sm:$0xff] }
 0x423   : > { %13111 = vmatmul.mubr.f32.gmra.mrb[68].mxu1 %v15916_v55 }
 0x424   : > { %14135 = vmatmul.mubr.f32.gmra.mrb[4].mxu0 %v20904_v60  ;;  %13113 = vmatprep.mubr.f32.mxu1 %v15917_v23  ;;  %v15922_v60 = vld [vmem:[#allocation2 + $0x310] sm:$0xff] }
 0x425   : > { %14137 = vmatprep.mubr.f32.mxu0 %v20905_v50  ;;  %v15923_v50 = vld [vmem:[#allocation2 + $0x320] sm:$0xff] }
 0x427   : > { %13114 = vmatmul.mubr.f32.gmra.mrb[70].mxu1 %v15918_v16  ;;  %v15962_v16 = vld [vmem:[#allocation2 + $0x4a0] sm:$0xff] }
 0x428   : > { %14138 = vmatmul.mubr.f32.gmra.mrb[6].mxu0 %v20906_v44  ;;  %13116 = vmatprep.mubr.f32.mxu1 %v15919_v8  ;;  %v15924_v44 = vld [vmem:[#allocation2 + $0x328] sm:$0xff] }
 0x429   : > { %14140 = vmatprep.mubr.f32.mxu0 %v20907_v30  ;;  %v15925_v30 = vld [vmem:[#allocation2 + $0x330] sm:$0xff] }
 0x42a   : > { %v21173_v8 = vld [vmem:[#allocation218_spill] sm:$0xff] }
 0x42b   : > { %13117 = vmatmul.mubr.f32.gmra.mrb[72].mxu1 %v15920_v53  ;;  %v15963_v53 = vld [vmem:[#allocation2 + $0x4b0] sm:$0xff] }
 0x42c   : > { %14141 = vmatmul.mubr.f32.gmra.mrb[8].mxu0 %v20908_v11  ;;  %13119 = vmatprep.mubr.f32.mxu1 %v15921_v39  ;;  %v15926_v11 = vld [vmem:[#allocation2 + $0x338] sm:$0xff]  ;;  %v21174_v39 = vld [vmem:[#allocation221_spill] sm:$0xff] }
 0x42d   : > { %14143 = vmatprep.mubr.f32.mxu0 %v20909_v25  ;;  %v15927_v25 = vld [vmem:[#allocation2 + $0x348] sm:$0xff] }
 0x42f   : > { %13120 = vmatmul.mubr.f32.gmra.mrb[74].mxu1 %v15922_v60 }
 0x430   : > { %14144 = vmatmul.mubr.f32.gmra.mrb[10].mxu0 %v20910_v27  ;;  %13122 = vmatprep.mubr.f32.mxu1 %v15923_v50  ;;  %v15928_v27 = vld [vmem:[#allocation2 + $0x350] sm:$0xff] }
 0x431   : > { %14146 = vmatprep.mubr.f32.mxu0 %v20911_v40  ;;  %v15929_v40 = vld [vmem:[#allocation2 + $0x358] sm:$0xff] }
 0x433   : > { %13123 = vmatmul.mubr.f32.gmra.mrb[76].mxu1 %v15924_v44  ;;  %v15964_v44 = vld [vmem:[#allocation2 + $0x4b8] sm:$0xff] }
 0x434   : > { %14147 = vmatmul.mubr.f32.gmra.mrb[12].mxu0 %v20912_v10  ;;  %13125 = vmatprep.mubr.f32.mxu1 %v15925_v30  ;;  %v15930_v10 = vld [vmem:[#allocation2 + $0x360] sm:$0xff] }
 0x435   : > { %14149 = vmatprep.mubr.f32.mxu0 %v20913_v1  ;;  %v15931_v1 = vld [vmem:[#allocation2 + $0x370] sm:$0xff]  ;;  %v21175_v30 = vld [vmem:[#allocation225_spill] sm:$0xff] }
 0x437   : > { %13126 = vmatmul.mubr.f32.gmra.mrb[78].mxu1 %v15926_v11  ;;  %v15965_v11 = vld [vmem:[#allocation2 + $0x4c0] sm:$0xff] }
 0x438   : > { %14150 = vmatmul.mubr.f32.gmra.mrb[14].mxu0 %v20914_v37  ;;  %13128 = vmatprep.mubr.f32.mxu1 %v15927_v25  ;;  %v15932_v37 = vld [vmem:[#allocation2 + $0x378] sm:$0xff] }
 0x439   : > { %14152 = vmatprep.mubr.f32.mxu0 %v20915_v5  ;;  %v15933_v5 = vld [vmem:[#allocation2 + $0x380] sm:$0xff]  ;;  %v21176_v25 = vld [vmem:[#allocation227_spill] sm:$0xff] }
 0x43b   : > { %13129 = vmatmul.mubr.f32.gmra.mrb[80].mxu1 %v15928_v27 }
 0x43c   : > { %14153 = vmatmul.mubr.f32.gmra.mrb[16].mxu0 %v20916_v26  ;;  %13131 = vmatprep.mubr.f32.mxu1 %v15929_v40  ;;  %v15934_v26 = vld [vmem:[#allocation2 + $0x388] sm:$0xff] }
 0x43d   : > { %14155 = vmatprep.mubr.f32.mxu0 %v20917_v13  ;;  %v15935_v13 = vld [vmem:[#allocation2 + $0x398] sm:$0xff] }
 0x43f   : > { %13132 = vmatmul.mubr.f32.gmra.mrb[82].mxu1 %v15930_v10  ;;  %v15966_v10 = vld [vmem:[#allocation2 + $0x4c8] sm:$0xff] }
 0x440   : > { %14156 = vmatmul.mubr.f32.gmra.mrb[18].mxu0 %v20918_v38  ;;  %13134 = vmatprep.mubr.f32.mxu1 %v15931_v1  ;;  %v15936_v38 = vld [vmem:[#allocation2 + $0x3a0] sm:$0xff]  ;;  %v21177_v1 = vld [vmem:[#allocation231_spill] sm:$0xff] }
 0x441   : > { %14158 = vmatprep.mubr.f32.mxu0 %v20919_v22  ;;  %v15937_v22 = vld [vmem:[#allocation2 + $0x3a8] sm:$0xff] }
 0x443   : > { %13135 = vmatmul.mubr.f32.gmra.mrb[84].mxu1 %v15932_v37  ;;  %v15967_v37 = vld [vmem:[#allocation2 + $0x4d8] sm:$0xff] }
 0x444   : > { %14159 = vmatmul.mubr.f32.gmra.mrb[20].mxu0 %v20920_v2  ;;  %13137 = vmatprep.mubr.f32.mxu1 %v15933_v5  ;;  %v15938_v2 = vld [vmem:[#allocation2 + $0x3b0] sm:$0xff] }
 0x445   : > { %14161 = vmatprep.mubr.f32.mxu0 %v20921_v4  ;;  %v15939_v4 = vld [vmem:[#allocation2 + $0x3c0] sm:$0xff]  ;;  %v21178_v5 = vld [vmem:[#allocation234_spill] sm:$0xff] }
 0x447   : > { %13138 = vmatmul.mubr.f32.gmra.mrb[86].mxu1 %v15934_v26 }
 0x448   : > { %14162 = vmatmul.mubr.f32.gmra.mrb[22].mxu0 %v20922_v35  ;;  %13140 = vmatprep.mubr.f32.mxu1 %v15935_v13  ;;  %v15940_v35 = vld [vmem:[#allocation2 + $0x3c8] sm:$0xff] }
 0x449   : > { %14164 = vmatprep.mubr.f32.mxu0 %v20923_v12  ;;  %v15941_v12 = vld [vmem:[#allocation2 + $0x3d0] sm:$0xff] }
 0x44b   : > { %13141 = vmatmul.mubr.f32.gmra.mrb[88].mxu1 %v15936_v38  ;;  %v15968_v38 = vld [vmem:[#allocation2 + $0x4e0] sm:$0xff] }
 0x44c   : > { %14165 = vmatmul.mubr.f32.gmra.mrb[24].mxu0 %v20924_v33  ;;  %13143 = vmatprep.mubr.f32.mxu1 %v15937_v22  ;;  %v15942_v33 = vld [vmem:[#allocation2 + $0x3d8] sm:$0xff]  ;;  %v21179_v22 = vld [vmem:[#allocation237_spill] sm:$0xff] }
 0x44d   : > { %14167 = vmatprep.mubr.f32.mxu0 %v20925_v21  ;;  %v15943_v21 = vld [vmem:[#allocation2 + $0x3e8] sm:$0xff] }
 0x44f   : > { %13144 = vmatmul.mubr.f32.gmra.mrb[90].mxu1 %v15938_v2  ;;  %v15969_v2 = vld [vmem:[#allocation2 + $0x4e8] sm:$0xff] }
 0x450   : > { %14168 = vmatmul.mubr.f32.gmra.mrb[26].mxu0 %v20926_v28  ;;  %13146 = vmatprep.mubr.f32.mxu1 %v15939_v4  ;;  %v15944_v28 = vld [vmem:[#allocation2 + $0x3f0] sm:$0xff] }
 0x451   : > { %14170 = vmatprep.mubr.f32.mxu0 %v20927_v49  ;;  %v15945_v49 = vld [vmem:[#allocation2 + $0x3f8] sm:$0xff] }
 0x452   : > { %v21180_v4 = vld [vmem:[#allocation239_spill] sm:$0xff] }
 0x453   : > { %13147 = vmatmul.mubr.f32.gmra.mrb[92].mxu1 %v15940_v35 }
 0x454   : > { %14171 = vmatmul.mubr.f32.gmra.mrb[28].mxu0 %v20928_v41  ;;  %13149 = vmatprep.mubr.f32.mxu1 %v15941_v12  ;;  %v15946_v41 = vld [vmem:[#allocation2 + $0x400] sm:$0xff] }
 0x455   : > { %14173 = vmatprep.mubr.f32.mxu0 %v20929_v51  ;;  %v15947_v51 = vld [vmem:[#allocation2 + $0x410] sm:$0xff] }
 0x457   : > { %13150 = vmatmul.mubr.f32.gmra.mrb[94].mxu1 %v15942_v33  ;;  %v15970_v33 = vld [vmem:[#allocation2 + $0x4f0] sm:$0xff] }
 0x458   : > { %14174 = vmatmul.mubr.f32.gmra.mrb[30].mxu0 %v20930_v0  ;;  %13152 = vmatprep.mubr.f32.mxu1 %v15943_v21  ;;  %v15948_v0 = vld [vmem:[#allocation2 + $0x418] sm:$0xff]  ;;  %v21181_v21 = vld [vmem:[#allocation241_spill] sm:$0xff] }
 0x459   : > { %14176 = vmatprep.mubr.f32.mxu0 %v20931_v34  ;;  %v15949_v34 = vld [vmem:[#allocation2 + $0x420] sm:$0xff] }
 0x45b   : > { %13153 = vmatmul.mubr.f32.gmra.mrb[96].mxu1 %v15944_v28  ;;  %v21182_v28 = vld [vmem:[#allocation250_spill] sm:$0xff] }
 0x45c   : > { %14177 = vmatmul.mubr.f32.gmra.mrb[32].mxu0 %v20932_v62  ;;  %13155 = vmatprep.mubr.f32.mxu1 %v15945_v49  ;;  %v15950_v62 = vld [vmem:[#allocation2 + $0x428] sm:$0xff] }
 0x45d   : > { %14179 = vmatprep.mubr.f32.mxu0 %v20933_v57  ;;  %v15951_v57 = vld [vmem:[#allocation2 + $0x438] sm:$0xff]  ;;  %v21183_v49 = vld [vmem:[#allocation242_spill] sm:$0xff] }
 0x45f   : > { %13156 = vmatmul.mubr.f32.gmra.mrb[98].mxu1 %v15946_v41 }
 0x460   : > { %14180 = vmatmul.mubr.f32.gmra.mrb[34].mxu0 %v20934_v6  ;;  %13158 = vmatprep.mubr.f32.mxu1 %v15947_v51  ;;  %v15952_v6 = vld [vmem:[#allocation2 + $0x440] sm:$0xff] }
 0x461   : > { %14182 = vmatprep.mubr.f32.mxu0 %v20935_v43  ;;  %v15953_v43 = vld [vmem:[#allocation2 + $0x448] sm:$0xff] }
 0x463   : > { %13159 = vmatmul.mubr.f32.gmra.mrb[100].mxu1 %v15948_v0  ;;  %v21184_v0 = vld [vmem:[#allocation106_spill] sm:$0xff] }
 0x464   : > { %14183 = vmatmul.mubr.f32.gmra.mrb[36].mxu0 %v20936_v31  ;;  %13161 = vmatprep.mubr.f32.mxu1 %v15949_v34  ;;  %v21185_v34 = vld [vmem:[#allocation244_spill] sm:$0xff] }
 0x465   : > { %14185 = vmatprep.mubr.f32.mxu0 %v20937_v20  ;;  %v15954_v20 = vld [vmem:[#allocation2 + $0x450] sm:$0xff] }
 0x467   : > { %13162 = vmatmul.mubr.f32.gmra.mrb[102].mxu1 %v15950_v62  ;;  %v21186_v62 = vld [vmem:[#allocation107_spill] sm:$0xff] }
 0x468   : > { %14186 = vmatmul.mubr.f32.gmra.mrb[38].mxu0 %v20938_v7  ;;  %13164 = vmatprep.mubr.f32.mxu1 %v15951_v57  ;;  %v15955_v7 = vld [vmem:[#allocation2 + $0x460] sm:$0xff] }
 0x469   : > { %14188 = vmatprep.mubr.f32.mxu0 %v20939_v9  ;;  %v21187_v57 = vld [vmem:[#allocation245_spill] sm:$0xff] }
 0x46b   : > { %13165 = vmatmul.mubr.f32.gmra.mrb[104].mxu1 %v15952_v6 }
 0x46c   : > { %14189 = vmatmul.mubr.f32.gmra.mrb[40].mxu0 %v20940_v19  ;;  %13167 = vmatprep.mubr.f32.mxu1 %v15953_v43  ;;  %v15956_v19 = vld [vmem:[#allocation2 + $0x468] sm:$0xff] }
 0x46d   : > { %14191 = vmatprep.mubr.f32.mxu0 %v20942_v24  ;;  %v15957_v24 = vld [vmem:[#allocation2 + $0x470] sm:$0xff] }
 0x46e   : > { %v19382_v31 = vpop.f32.mrb[0].mxu1 }
 0x46f   : > { %v19384_v42 = vpop.f32.mrb[1].mxu1  ;;  %13168 = vmatmul.mubr.f32.gmra.mrb[106].mxu1 %v15954_v20  ;;  %v21188_v20 = vld [vmem:[#allocation108_spill] sm:$0xff] }
 0x470   : > { %14192 = vmatmul.mubr.f32.gmra.mrb[42].mxu0 %v20944_v63  ;;  %13170 = vmatprep.mubr.f32.mxu1 %v15955_v7  ;;  %v15958_v63 = vld [vmem:[#allocation2 + $0x478] sm:$0xff] }
 0x471   : > { %14194 = vmatprep.mubr.f32.mxu0 %v20946_v18  ;;  %v15959_v18 = vld [vmem:[#allocation2 + $0x488] sm:$0xff]  ;;  %v21189_v7 = vld [vmem:[#allocation248_spill] sm:$0xff] }
 0x472   : > { %v19388_v9 = vpop.f32.mrb[2].mxu1 }
 0x473   : > { %v19390_v61 = vpop.f32.mrb[3].mxu1  ;;  %13171 = vmatmul.mubr.f32.gmra.mrb[108].mxu1 %v15956_v19  ;;  %v21190_v19 = vld [vmem:[#allocation110_spill] sm:$0xff] }
 0x474   : > { %14195 = vmatmul.mubr.f32.gmra.mrb[44].mxu0 %v20949_v17  ;;  %13173 = vmatprep.mubr.f32.mxu1 %v15957_v24  ;;  %v15960_v17 = vld [vmem:[#allocation2 + $0x490] sm:$0xff]  ;;  %v21191_v24 = vld [vmem:[#allocation249_spill] sm:$0xff] }
 0x475   : > { %14197 = vmatprep.mubr.f32.mxu0 %v21168_v36 }
 0x476   : > { %v19394_v14 = vpop.f32.mrb[4].mxu1 }
 0x477   : > { %v19396_v3 = vpop.f32.mrb[5].mxu1  ;;  %13174 = vmatmul.mubr.f32.gmra.mrb[110].mxu1 %v15958_v63 }
 0x478   : > { %14198 = vmatmul.mubr.f32.gmra.mrb[46].mxu0 %v21169_v58  ;;  %13176 = vmatprep.mubr.f32.mxu1 %v15959_v18  ;;  %v21192_v58 = vld [vmem:[#allocation112_spill] sm:$0xff]  ;;  %v21193_v18 = vld [vmem:[#allocation251_spill] sm:$0xff] }
 0x479   : > { %14200 = vmatprep.mubr.f32.mxu0 %v21170_v56  ;;  %v21194_v56 = vld [vmem:[#allocation114_spill] sm:$0xff] }
 0x47a   : > { %v19400_v47 = vpop.f32.mrb[6].mxu1 }
 0x47b   : > { %v19402_v15 = vpop.f32.mrb[7].mxu1  ;;  %13177 = vmatmul.mubr.f32.gmra.mrb[112].mxu1 %v15960_v17  ;;  %v21195_v17 = vld [vmem:[#allocation252_spill] sm:$0xff] }
 0x47c   : > { %14201 = vmatmul.mubr.f32.gmra.mrb[48].mxu0 %v21171_v32  ;;  %13179 = vmatprep.mubr.f32.mxu1 %v15961_v29 }
 0x47d   : > { %14203 = vmatprep.mubr.f32.mxu0 %v21172_v48  ;;  %v21196_v48 = vld [vmem:[#allocation116_spill] sm:$0xff] }
 0x47e   : > { %v19406_v55 = vpop.f32.mrb[8].mxu1 }
 0x47f   : > { %v19408_v23 = vpop.f32.mrb[9].mxu1  ;;  %13180 = vmatmul.mubr.f32.gmra.mrb[114].mxu1 %v15962_v16  ;;  %v21197_v16 = vld [vmem:[#allocation253_spill] sm:$0xff] }
 0x480   : > { %14204 = vmatmul.mubr.f32.gmra.mrb[50].mxu0 %v21173_v8  ;;  %13182 = vmatprep.mubr.f32.mxu1 %v15963_v53  ;;  %v21198_v8 = vld [vmem:[#allocation118_spill] sm:$0xff] }
 0x481   : > { %14206 = vmatprep.mubr.f32.mxu0 %v21174_v39  ;;  %v21199_v53 = vld [vmem:[#allocation254_spill] sm:$0xff] }
 0x482   : > { %v19412_v60 = vpop.f32.mrb[10].mxu1 }
 0x483   : > { %v19414_v50 = vpop.f32.mrb[11].mxu1  ;;  %13183 = vmatmul.mubr.f32.gmra.mrb[116].mxu1 %v15964_v44 }
 0x484   : > { %14207 = vmatmul.mubr.f32.gmra.mrb[52].mxu0 %v21175_v30  ;;  %13185 = vmatprep.mubr.f32.mxu1 %v15965_v11  ;;  %v21200_v30 = vld [vmem:[#allocation120_spill] sm:$0xff]  ;;  %v21201_v11 = vld [vmem:[#allocation255_spill] sm:$0xff] }
 0x485   : > { %14209 = vmatprep.mubr.f32.mxu0 %v21176_v25  ;;  %v21202_v25 = vld [vmem:[#allocation122_spill] sm:$0xff] }
 0x486   : > { %v19418_v27 = vpop.f32.mrb[12].mxu1 }
 0x487   : > { %v19420_v40 = vpop.f32.mrb[13].mxu1  ;;  %13186 = vmatmul.mubr.f32.gmra.mrb[118].mxu1 %v15966_v10  ;;  %v21203_v10 = vld [vmem:[#allocation256_spill] sm:$0xff] }
 0x488   : > { %14210 = vmatmul.mubr.f32.gmra.mrb[54].mxu0 %v21177_v1  ;;  %13188 = vmatprep.mubr.f32.mxu1 %v15967_v37 }
 0x489   : > { %14212 = vmatprep.mubr.f32.mxu0 %v21178_v5  ;;  %v21204_v5 = vld [vmem:[#allocation124_spill] sm:$0xff] }
 0x48a   : > { %v19424_v26 = vpop.f32.mrb[14].mxu1 }
 0x48b   : > { %v19426_v13 = vpop.f32.mrb[15].mxu1  ;;  %13189 = vmatmul.mubr.f32.gmra.mrb[120].mxu1 %v15968_v38  ;;  %v21205_v38 = vld [vmem:[#allocation257_spill] sm:$0xff] }
 0x48c   : > { %14213 = vmatmul.mubr.f32.gmra.mrb[56].mxu0 %v21179_v22  ;;  %13191 = vmatprep.mubr.f32.mxu1 %v15969_v2  ;;  %v21206_v22 = vld [vmem:[#allocation126_spill] sm:$0xff] }
 0x48d   : > { %14215 = vmatprep.mubr.f32.mxu0 %v21180_v4  ;;  %v21207_v2 = vld [vmem:[#allocation258_spill] sm:$0xff] }
 0x48e   : > { %v19430_v35 = vpop.f32.mrb[16].mxu1 }
 0x48f   : > { %v19432_v12 = vpop.f32.mrb[17].mxu1  ;;  %13192 = vmatmul.mubr.f32.gmra.mrb[122].mxu1 %v15970_v33 }
 0x490   : > { %14216 = vmatmul.mubr.f32.gmra.mrb[58].mxu0 %v21181_v21  ;;  %13194 = vmatprep.mubr.f32.mxu1 %v21182_v28  ;;  %v21208_v21 = vld [vmem:[#allocation128_spill] sm:$0xff]  ;;  %v21209_v28 = vld [vmem:[#allocation259_spill] sm:$0xff] }
 0x491   : > { %14218 = vmatprep.mubr.f32.mxu0 %v21183_v49  ;;  %v21210_v49 = vld [vmem:[#allocation130_spill] sm:$0xff] }
 0x492   : > { %v19437_v41 = vpop.f32.mrb[18].mxu1 }
 0x493   : > { %v19439_v51 = vpop.f32.mrb[19].mxu1  ;;  %13195 = vmatmul.mubr.f32.gmra.mrb[124].mxu1 %v21184_v0  ;;  %v21211_v0 = vld [vmem:[#allocation260_spill] sm:$0xff] }
 0x494   : > { %14219 = vmatmul.mubr.f32.gmra.mrb[60].mxu0 %v21185_v34  ;;  %13197 = vmatprep.mubr.f32.mxu1 %v21186_v62 }
 0x495   : > { %14221 = vmatprep.mubr.f32.mxu0 %v21187_v57  ;;  %v21212_v57 = vld [vmem:[#allocation132_spill] sm:$0xff] }
 0x496   : > { %v19445_v6 = vpop.f32.mrb[20].mxu1 }
 0x497   : > { %v19447_v43 = vpop.f32.mrb[21].mxu1  ;;  %13198 = vmatmul.mubr.f32.gmra.mrb[126].mxu1 %v21188_v20  ;;  %v21213_v20 = vld [vmem:[#allocation261_spill] sm:$0xff] }
 0x498   : > { %14222 = vmatmul.mubr.f32.gmra.mrb[62].mxu0 %v21189_v7  ;;  %13328 = vmatprep.mubr.f32.mxu1 %v21190_v19  ;;  %v21214_v7 = vld [vmem:[#allocation134_spill] sm:$0xff] }
 0x499   : > { %14224 = vmatprep.mubr.f32.mxu0 %v21191_v24  ;;  %v21215_v19 = vld [vmem:[#allocation262_spill] sm:$0xff] }
 0x49a   : > { %v19453_v36 = vpop.f32.mrb[22].mxu1 }
 0x49b   : > { %v19455_v63 = vpop.f32.mrb[23].mxu1  ;;  %13329 = vmatmul.mubr.f32.vlgmr.msra.gmra.mrb[64].mxu1 %v21192_v58 }
 0x49c   : > { %14225 = vmatmul.mubr.f32.gmra.mrb[64].mxu0 %v21193_v18  ;;  %13331 = vmatprep.mubr.f32.mxu1 %v21194_v56  ;;  %v21216_v18 = vld [vmem:[#allocation136_spill] sm:$0xff]  ;;  %v21217_v56 = vld [vmem:[#allocation263_spill] sm:$0xff] }
 0x49d   : > { %14227 = vmatprep.mubr.f32.mxu0 %v21195_v17  ;;  %v21218_v17 = vld [vmem:[#allocation138_spill] sm:$0xff] }
 0x49e   : > { %v19461_v32 = vpop.f32.mrb[24].mxu1 }
 0x49f   : > { %v19463_v29 = vpop.f32.mrb[25].mxu1  ;;  %13332 = vmatmul.mubr.f32.gmra.mrb[66].mxu1 %v21196_v48  ;;  %v21219_v48 = vld [vmem:[#allocation264_spill] sm:$0xff] }
 0x4a0   : > { %14228 = vmatmul.mubr.f32.gmra.mrb[66].mxu0 %v21197_v16  ;;  %13334 = vmatprep.mubr.f32.mxu1 %v21198_v8 }
 0x4a1   : > { %14230 = vmatprep.mubr.f32.mxu0 %v21199_v53  ;;  %v21220_v53 = vld [vmem:[#allocation140_spill] sm:$0xff] }
 0x4a2   : > { %v19469_v39 = vpop.f32.mrb[26].mxu1 }
 0x4a3   : > { %v19471_v44 = vpop.f32.mrb[27].mxu1  ;;  %13335 = vmatmul.mubr.f32.gmra.mrb[68].mxu1 %v21200_v30  ;;  %v21221_v30 = vld [vmem:[#allocation265_spill] sm:$0xff] }
 0x4a4   : > { %14231 = vmatmul.mubr.f32.gmra.mrb[68].mxu0 %v21201_v11  ;;  %13337 = vmatprep.mubr.f32.mxu1 %v21202_v25  ;;  %v21222_v11 = vld [vmem:[#allocation142_spill] sm:$0xff] }
 0x4a5   : > { %14233 = vmatprep.mubr.f32.mxu0 %v21203_v10  ;;  %v21223_v25 = vld [vmem:[#allocation266_spill] sm:$0xff] }
 0x4a6   : > { %v19477_v1 = vpop.f32.mrb[28].mxu1 }
 0x4a7   : > { %v19479_v37 = vpop.f32.mrb[29].mxu1  ;;  %13338 = vmatmul.mubr.f32.gmra.mrb[70].mxu1 %v21204_v5 }
 0x4a8   : > { %14234 = vmatmul.mubr.f32.gmra.mrb[70].mxu0 %v21205_v38  ;;  %13340 = vmatprep.mubr.f32.mxu1 %v21206_v22  ;;  %v21224_v38 = vld [vmem:[#allocation144_spill] sm:$0xff]  ;;  %v21225_v22 = vld [vmem:[#allocation267_spill] sm:$0xff] }
 0x4a9   : > { %14236 = vmatprep.mubr.f32.mxu0 %v21207_v2  ;;  %v21226_v2 = vld [vmem:[#allocation146_spill] sm:$0xff] }
 0x4aa   : > { %v19485_v4 = vpop.f32.mrb[30].mxu1 }
 0x4ab   : > { %v19487_v33 = vpop.f32.mrb[31].mxu1  ;;  %13341 = vmatmul.mubr.f32.gmra.mrb[72].mxu1 %v21208_v21  ;;  %v21227_v21 = vld [vmem:[#allocation268_spill] sm:$0xff] }
 0x4ac   : > { %14237 = vmatmul.mubr.f32.gmra.mrb[72].mxu0 %v21209_v28  ;;  %13343 = vmatprep.mubr.f32.mxu1 %v21210_v49 }
 0x4ad   : > { %14239 = vmatprep.mubr.f32.mxu0 %v21211_v0  ;;  %v21228_v0 = vld [vmem:[#allocation148_spill] sm:$0xff] }
 0x4ae   : > { %v19493_v34 = vpop.f32.mrb[32].mxu1 }
 0x4af   : > { %v19495_v62 = vpop.f32.mrb[33].mxu1  ;;  %13344 = vmatmul.mubr.f32.gmra.mrb[74].mxu1 %v21212_v57  ;;  %v21229_v57 = vld [vmem:[#allocation269_spill] sm:$0xff] }
 0x4b0   : > { %14240 = vmatmul.mubr.f32.gmra.mrb[74].mxu0 %v21213_v20  ;;  %13346 = vmatprep.mubr.f32.mxu1 %v21214_v7  ;;  %v21230_v20 = vld [vmem:[#allocation150_spill] sm:$0xff] }
 0x4b1   : > { %14242 = vmatprep.mubr.f32.mxu0 %v21215_v19  ;;  %v21231_v7 = vld [vmem:[#allocation270_spill] sm:$0xff] }
 0x4b2   : > { %v19501_v24 = vpop.f32.mrb[34].mxu1 }
 0x4b3   : > { %v19503_v58 = vpop.f32.mrb[35].mxu1  ;;  %13347 = vmatmul.mubr.f32.gmra.mrb[76].mxu1 %v21216_v18 }
 0x4b4   : > { %14243 = vmatmul.mubr.f32.gmra.mrb[76].mxu0 %v21217_v56  ;;  %13349 = vmatprep.mubr.f32.mxu1 %v21218_v17  ;;  %v21232_v56 = vld [vmem:[#allocation152_spill] sm:$0xff]  ;;  %v21233_v17 = vld [vmem:[#allocation271_spill] sm:$0xff] }
 0x4b5   : > { %14245 = vmatprep.mubr.f32.mxu0 %v21219_v48  ;;  %v21234_v48 = vld [vmem:[#allocation154_spill] sm:$0xff] }
 0x4b6   : > { %v19509_v16 = vpop.f32.mrb[36].mxu1 }
 0x4b7   : > { %v19511_v8 = vpop.f32.mrb[37].mxu1  ;;  %13350 = vmatmul.mubr.f32.gmra.mrb[78].mxu1 %v21220_v53  ;;  %v21235_v53 = vld [vmem:[#allocation272_spill] sm:$0xff] }
 0x4b8   : > { %14246 = vmatmul.mubr.f32.gmra.mrb[78].mxu0 %v21221_v30  ;;  %13352 = vmatprep.mubr.f32.mxu1 %v21222_v11 }
 0x4b9   : > { %14248 = vmatprep.mubr.f32.mxu0 %v21223_v25  ;;  %v21237_v25 = vld [vmem:[#allocation156_spill] sm:$0xff] }
 0x4ba   : > { %v19517_v10 = vpop.f32.mrb[38].mxu1 }
 0x4bb   : > { %v19519_v5 = vpop.f32.mrb[39].mxu1  ;;  %13353 = vmatmul.mubr.f32.gmra.mrb[80].mxu1 %v21224_v38  ;;  %v21238_v38 = vld [vmem:[#allocation273_spill] sm:$0xff] }
 0x4bc   : > { %14249 = vmatmul.mubr.f32.gmra.mrb[80].mxu0 %v21225_v22  ;;  %13355 = vmatprep.mubr.f32.mxu1 %v21226_v2  ;;  %v21239_v22 = vld [vmem:[#allocation158_spill] sm:$0xff] }
 0x4bd   : > { %14251 = vmatprep.mubr.f32.mxu0 %v21227_v21  ;;  %v21240_v2 = vld [vmem:[#allocation274_spill] sm:$0xff] }
 0x4be   : > { %v19525_v28 = vpop.f32.mrb[40].mxu1 }
 0x4bf   : > { %v19527_v49 = vpop.f32.mrb[41].mxu1  ;;  %13356 = vmatmul.mubr.f32.gmra.mrb[82].mxu1 %v21228_v0 }
 0x4c0   : > { %14252 = vmatmul.mubr.f32.gmra.mrb[82].mxu0 %v21229_v57  ;;  %13358 = vmatprep.mubr.f32.mxu1 %v21230_v20  ;;  %v21243_v57 = vld [vmem:[#allocation160_spill] sm:$0xff]  ;;  %v21244_v20 = vld [vmem:[#allocation275_spill] sm:$0xff] }
 0x4c1   : > { %14254 = vmatprep.mubr.f32.mxu0 %v21231_v7  ;;  %v21245_v7 = vld [vmem:[#allocation162_spill] sm:$0xff] }
 0x4c2   : > { %v19533_v19 = vpop.f32.mrb[42].mxu1 }
 0x4c3   : > { %v19535_v18 = vpop.f32.mrb[43].mxu1  ;;  %13359 = vmatmul.mubr.f32.gmra.mrb[84].mxu1 %v21232_v56  ;;  %v21246_v56 = vld [vmem:[#allocation166_spill] sm:$0xff] }
 0x4c4   : > { %14255 = vmatmul.mubr.f32.gmra.mrb[84].mxu0 %v21233_v17  ;;  %13361 = vmatprep.mubr.f32.mxu1 %v21234_v48 }
 0x4c5   : > { %14257 = vmatprep.mubr.f32.mxu0 %v21235_v53  ;;  %v21249_v53 = vld [vmem:[#allocation164_spill] sm:$0xff] }
 0x4c6   : > { %v19541_v30 = vpop.f32.mrb[44].mxu1 }
 0x4c7   : > { %v19543_v11 = vpop.f32.mrb[45].mxu1  ;;  %13362 = vmatmul.mubr.f32.gmra.mrb[86].mxu1 %v21237_v25  ;;  %v21250_v25 = vld [vmem:[#allocation49_spill] sm:$0xff] }
 0x4c8   : > { %21236 = vst [vmem:[#allocation111_spill] sm:$0xff] %v19543_v11  ;;  %14258 = vmatmul.mubr.f32.gmra.mrb[86].mxu0 %v21238_v38  ;;  %13364 = vmatprep.mubr.f32.mxu1 %v21239_v22  ;;  %v21251_v38 = vld [vmem:[#allocation165_spill] sm:$0xff]  ;;  %v21252_v22 = vld [vmem:[#allocation168_spill] sm:$0xff]  ;;  %v21308_v11 = vld [vmem:[#allocation207_spill] sm:$0xff] }
 0x4c9   : > { %14260 = vmatprep.mubr.f32.mxu0 %v21240_v2 }
 0x4ca   : > { %v19549_v21 = vpop.f32.mrb[46].mxu1 }
 0x4cb   : > { %21241 = vst [vmem:[#allocation113_spill] sm:$0xff] %v19549_v21  ;;  %v19551_v0 = vpop.f32.mrb[47].mxu1  ;;  %13365 = vmatmul.mubr.f32.gmra.mrb[88].mxu1 %v21243_v57 }
 0x4cc   : > { %21242 = vst [vmem:[#allocation115_spill] sm:$0xff] %v19551_v0  ;;  %14261 = vmatmul.mubr.f32.gmra.mrb[88].mxu0 %v21244_v20  ;;  %13367 = vmatprep.mubr.f32.mxu1 %v21245_v7  ;;  %v21255_v20 = vld [vmem:[#allocation169_spill] sm:$0xff]  ;;  %v21256_v7 = vld [vmem:[#allocation52_spill] sm:$0xff] }
 0x4cd   : > { %14263 = vmatprep.mubr.f32.mxu0 %v21246_v56  ;;  %v21257_v56 = vld [vmem:[#allocation171_spill] sm:$0xff]  ;;  %v21298_v0 = vld [vmem:[#allocation80_spill] sm:$0xff] }
 0x4ce   : > { %v19557_v17 = vpop.f32.mrb[48].mxu1 }
 0x4cf   : > { %21247 = vst [vmem:[#allocation117_spill] sm:$0xff] %v19557_v17  ;;  %v19559_v48 = vpop.f32.mrb[49].mxu1  ;;  %13368 = vmatmul.mubr.f32.gmra.mrb[90].mxu1 %v21249_v53  ;;  %v21258_v17 = vld [vmem:[#allocation173_spill] sm:$0xff] }
 0x4d0   : > { %21248 = vst [vmem:[#allocation119_spill] sm:$0xff] %v19559_v48  ;;  %14264 = vmatmul.mubr.f32.gmra.mrb[90].mxu0 %v21250_v25  ;;  %13370 = vmatprep.mubr.f32.mxu1 %v21251_v38  ;;  %v21261_v25 = vld [vmem:[#allocation53_spill] sm:$0xff]  ;;  %v21262_v38 = vld [vmem:[#allocation58_spill] sm:$0xff] }
 0x4d1   : > { %14266 = vmatprep.mubr.f32.mxu0 %v21252_v22  ;;  %v21263_v22 = vld [vmem:[#allocation57_spill] sm:$0xff] }
 0x4d2   : > { %v19565_v2 = vpop.f32.mrb[50].mxu1 }
 0x4d3   : > { %21253 = vst [vmem:[#allocation121_spill] sm:$0xff] %v19565_v2  ;;  %v19567_v57 = vpop.f32.mrb[51].mxu1  ;;  %13371 = vmatmul.mubr.f32.gmra.mrb[92].mxu1 %v21255_v20  ;;  %v21264_v2 = vld [vmem:[#allocation175_spill] sm:$0xff] }
 0x4d4   : > { %21254 = vst [vmem:[#allocation123_spill] sm:$0xff] %v19567_v57  ;;  %14267 = vmatmul.mubr.f32.gmra.mrb[92].mxu0 %v21256_v7  ;;  %13373 = vmatprep.mubr.f32.mxu1 %v21257_v56  ;;  %v21267_v7 = vld [vmem:[#allocation176_spill] sm:$0xff]  ;;  %v21268_v56 = vld [vmem:[#allocation61_spill] sm:$0xff] }
 0x4d5   : > { %14269 = vmatprep.mubr.f32.mxu0 %v21258_v17  ;;  %v21269_v17 = vld [vmem:[#allocation178_spill] sm:$0xff] }
 0x4d6   : > { %v19573_v48 = vpop.f32.mrb[52].mxu1 }
 0x4d7   : > { %21259 = vst [vmem:[#allocation125_spill] sm:$0xff] %v19573_v48  ;;  %v19575_v53 = vpop.f32.mrb[53].mxu1  ;;  %13374 = vmatmul.mubr.f32.gmra.mrb[94].mxu1 %v21261_v25  ;;  %v21270_v48 = vld [vmem:[#allocation62_spill] sm:$0xff] }
 0x4d8   : > { %21260 = vst [vmem:[#allocation127_spill] sm:$0xff] %v19575_v53  ;;  %14270 = vmatmul.mubr.f32.gmra.mrb[94].mxu0 %v21262_v38  ;;  %13376 = vmatprep.mubr.f32.mxu1 %v21263_v22  ;;  %v21273_v38 = vld [vmem:[#allocation63_spill] sm:$0xff]  ;;  %v21274_v22 = vld [vmem:[#allocation181_spill] sm:$0xff] }
 0x4d9   : > { %14272 = vmatprep.mubr.f32.mxu0 %v21264_v2  ;;  %v21275_v2 = vld [vmem:[#allocation180_spill] sm:$0xff] }
 0x4da   : > { %v19581_v57 = vpop.f32.mrb[54].mxu1 }
 0x4db   : > { %21265 = vst [vmem:[#allocation129_spill] sm:$0xff] %v19581_v57  ;;  %v19583_v20 = vpop.f32.mrb[55].mxu1  ;;  %13377 = vmatmul.mubr.f32.gmra.mrb[96].mxu1 %v21267_v7  ;;  %v21276_v57 = vld [vmem:[#allocation67_spill] sm:$0xff] }
 0x4dc   : > { %21266 = vst [vmem:[#allocation131_spill] sm:$0xff] %v19583_v20  ;;  %14273 = vmatmul.mubr.f32.gmra.mrb[96].mxu0 %v21268_v56  ;;  %13379 = vmatprep.mubr.f32.mxu1 %v21269_v17  ;;  %v21279_v56 = vld [vmem:[#allocation184_spill] sm:$0xff]  ;;  %v21280_v17 = vld [vmem:[#allocation183_spill] sm:$0xff] }
 0x4dd   : > { %14275 = vmatprep.mubr.f32.mxu0 %v21270_v48  ;;  %v21281_v48 = vld [vmem:[#allocation186_spill] sm:$0xff] }
 0x4de   : > { %v19589_v53 = vpop.f32.mrb[56].mxu1 }
 0x4df   : > { %21271 = vst [vmem:[#allocation133_spill] sm:$0xff] %v19589_v53  ;;  %v19591_v25 = vpop.f32.mrb[57].mxu1  ;;  %13380 = vmatmul.mubr.f32.gmra.mrb[98].mxu1 %v21273_v38  ;;  %v21282_v53 = vld [vmem:[#allocation70_spill] sm:$0xff] }
 0x4e0   : > { %21272 = vst [vmem:[#allocation135_spill] sm:$0xff] %v19591_v25  ;;  %14276 = vmatmul.mubr.f32.gmra.mrb[98].mxu0 %v21274_v22  ;;  %13382 = vmatprep.mubr.f32.mxu1 %v21275_v2  ;;  %v21285_v22 = vld [vmem:[#allocation72_spill] sm:$0xff]  ;;  %v21286_v2 = vld [vmem:[#allocation71_spill] sm:$0xff] }
 0x4e1   : > { %14278 = vmatprep.mubr.f32.mxu0 %v21276_v57  ;;  %v21287_v57 = vld [vmem:[#allocation188_spill] sm:$0xff] }
 0x4e2   : > { %v19597_v20 = vpop.f32.mrb[58].mxu1 }
 0x4e3   : > { %21277 = vst [vmem:[#allocation137_spill] sm:$0xff] %v19597_v20  ;;  %v19599_v7 = vpop.f32.mrb[59].mxu1  ;;  %13383 = vmatmul.mubr.f32.gmra.mrb[100].mxu1 %v21279_v56  ;;  %v21288_v20 = vld [vmem:[#allocation189_spill] sm:$0xff] }
 0x4e4   : > { %21278 = vst [vmem:[#allocation139_spill] sm:$0xff] %v19599_v7  ;;  %14279 = vmatmul.mubr.f32.gmra.mrb[100].mxu0 %v21280_v17  ;;  %13385 = vmatprep.mubr.f32.mxu1 %v21281_v48  ;;  %v21291_v48 = vld [vmem:[#allocation192_spill] sm:$0xff] }
 0x4e5   : > { %14281 = vmatprep.mubr.f32.mxu0 %v21282_v53  ;;  %v21292_v53 = vld [vmem:[#allocation76_spill] sm:$0xff] }
 0x4e6   : > { %v19605_v25 = vpop.f32.mrb[60].mxu1 }
 0x4e7   : > { %21283 = vst [vmem:[#allocation141_spill] sm:$0xff] %v19605_v25  ;;  %v19607_v38 = vpop.f32.mrb[61].mxu1  ;;  %13386 = vmatmul.mubr.f32.gmra.mrb[102].mxu1 %v21285_v22  ;;  %v21293_v25 = vld [vmem:[#allocation194_spill] sm:$0xff] }
 0x4e8   : > { %21284 = vst [vmem:[#allocation143_spill] sm:$0xff] %v19607_v38  ;;  %14282 = vmatmul.mubr.f32.gmra.mrb[102].mxu0 %v21286_v2  ;;  %13388 = vmatprep.mubr.f32.mxu1 %v21287_v57  ;;  %v21294_v38 = vld [vmem:[#allocation191_spill] sm:$0xff]  ;;  %v21295_v2 = vld [vmem:[#allocation81_spill] sm:$0xff] }
 0x4e9   : > { %14284 = vmatprep.mubr.f32.mxu0 %v21288_v20  ;;  %v21296_v20 = vld [vmem:[#allocation79_spill] sm:$0xff] }
 0x4ea   : > { %v19613_v56 = vpop.f32.mrb[62].mxu1 }
 0x4eb   : > { %21289 = vst [vmem:[#allocation145_spill] sm:$0xff] %v19613_v56  ;;  %v19615_v17 = vpop.f32.mrb[63].mxu1  ;;  %13389 = vmatmul.mubr.f32.gmra.mrb[104].mxu1 %v21291_v48  ;;  %v21297_v56 = vld [vmem:[#allocation196_spill] sm:$0xff] }
 0x4ec   : > { %21290 = vst [vmem:[#allocation147_spill] sm:$0xff] %v19615_v17  ;;  %14285 = vmatmul.mubr.f32.gmra.mrb[104].mxu0 %v21292_v53  ;;  %13391 = vmatprep.mubr.f32.mxu1 %v21293_v25 }
 0x4ed   : > { %14287 = vmatprep.mubr.f32.mxu0 %v21294_v38 }
 0x4ef   : > { %v14130_v22 = vpop.f32.mrb[0].mxu0  ;;  %13392 = vmatmul.mubr.f32.gmra.mrb[106].mxu1 %v21295_v2  ;;  %v21299_v2 = vld [vmem:[#allocation199_spill] sm:$0xff] }
 0x4f0   : > { %v14624_v57 = vadd.f32 %v14130_v22, %v19382_v31  ;;  %v8944_v7 = vpop.f32.mrb[1].mxu0  ;;  %14288 = vmatmul.mubr.f32.gmra.mrb[106].mxu0 %v21296_v20  ;;  %13394 = vmatprep.mubr.f32.mxu1 %v21297_v56  ;;  %v21300_v20 = vld [vmem:[#allocation197_spill] sm:$0xff] }
 0x4f1   : > { %v14625_v17 = vadd.f32 %v8944_v7, %v19384_v42  ;;  %14290 = vmatprep.mubr.f32.mxu0 %v21298_v0  ;;  %v21301_v56 = vld [vmem:[#allocation201_spill] sm:$0xff] }
 0x4f2   : > { %9712 = vst [vmem:[%s16351_s6 + $0x8] sm:$0xff] %v14624_v57  ;;  %v9974_v25 = vmul.f32 %v14624_v57, %v14624_v57  ;;  %v21302_v0 = vld [vmem:[#allocation85_spill] sm:$0xff] }
 0x4f3   : > { %9711 = vst [vmem:[%s16351_s6] sm:$0xff] %v14625_v17  ;;  %v9839_v38 = vadd.f32 %v14625_v17, %v14624_v57  ;;  %v9973_v48 = vmul.f32 %v14625_v17, %v14625_v17  ;;  %v14133_v53 = vpop.f32.mrb[2].mxu0  ;;  %13395 = vmatmul.mubr.f32.gmra.mrb[108].mxu1 %v21299_v2  ;;  %v21303_v2 = vld [vmem:[#allocation89_spill] sm:$0xff] }
 0x4f4   : > { %v14626_v31 = vadd.f32 %v14133_v53, %v19388_v9  ;;  %v8954_v22 = vpop.f32.mrb[3].mxu0  ;;  %14291 = vmatmul.mubr.f32.gmra.mrb[108].mxu0 %v21300_v20  ;;  %13397 = vmatprep.mubr.f32.mxu1 %v21301_v56  ;;  %v21304_v20 = vld [vmem:[#allocation88_spill] sm:$0xff]  ;;  %v21305_v56 = vld [vmem:[#allocation203_spill] sm:$0xff] }
 0x4f5   : > { %v10101_v42 = vadd.f32 %v9974_v25, %v9973_v48  ;;  %v14627_v7 = vadd.f32 %v8954_v22, %v19390_v61  ;;  %14293 = vmatprep.mubr.f32.mxu0 %v21302_v0  ;;  %v21306_v0 = vld [vmem:[#allocation204_spill] sm:$0xff] }
 0x4f6   : > { %9714 = vst [vmem:[%s16351_s6 + $0x18] sm:$0xff] %v14626_v31  ;;  %v9976_v25 = vmul.f32 %v14626_v31, %v14626_v31 }
 0x4f7   : > { %9713 = vst [vmem:[%s16351_s6 + $0x10] sm:$0xff] %v14627_v7  ;;  %v9840_v17 = vadd.f32 %v14627_v7, %v9839_v38  ;;  %v9975_v57 = vmul.f32 %v14627_v7, %v14627_v7  ;;  %v14136_v21 = vpop.f32.mrb[4].mxu0  ;;  %13398 = vmatmul.mubr.f32.gmra.mrb[110].mxu1 %v21303_v2 }
 0x4f8   : > { %v14628_v9 = vadd.f32 %v14136_v21, %v19394_v14  ;;  %v8964_v53 = vpop.f32.mrb[5].mxu0  ;;  %14294 = vmatmul.mubr.f32.gmra.mrb[110].mxu0 %v21304_v20  ;;  %13400 = vmatprep.mubr.f32.mxu1 %v21305_v56  ;;  %v21307_v21 = vld [vmem:[#allocation208_spill] sm:$0xff] }
 0x4f9   : > { %v9841_v61 = vadd.f32 %v14626_v31, %v9840_v17  ;;  %v10102_v48 = vadd.f32 %v10101_v42, %v9975_v57  ;;  %v14629_v22 = vadd.f32 %v8964_v53, %v19396_v3  ;;  %14296 = vmatprep.mubr.f32.mxu0 %v21306_v0  ;;  %v21309_v31 = vld [vmem:[#allocation210_spill] sm:$0xff]  ;;  %v21310_v53 = vld [vmem:[#allocation211_spill] sm:$0xff] }
 0x4fa   : > { %9716 = vst [vmem:[%s16351_s6 + $0x28] sm:$0xff] %v14628_v9  ;;  %v9978_v3 = vmul.f32 %v14628_v9, %v14628_v9 }
 0x4fb   : > { %v10103_v38 = vadd.f32 %v10102_v48, %v9976_v25  ;;  %9715 = vst [vmem:[%s16351_s6 + $0x20] sm:$0xff] %v14629_v22  ;;  %v9842_v7 = vadd.f32 %v14629_v22, %v9841_v61  ;;  %v9977_v2 = vmul.f32 %v14629_v22, %v14629_v22  ;;  %v14139_v14 = vpop.f32.mrb[6].mxu0  ;;  %13401 = vmatmul.mubr.f32.gmra.mrb[112].mxu1 %v21307_v21  ;;  %v21311_v22 = vld [vmem:[#allocation216_spill] sm:$0xff] }
 0x4fc   : > { %v14630_v20 = vadd.f32 %v14139_v14, %v19400_v47  ;;  %v8974_v56 = vpop.f32.mrb[7].mxu0  ;;  %14297 = vmatmul.mubr.f32.gmra.mrb[112].mxu0 %v21308_v11  ;;  %13403 = vmatprep.mubr.f32.mxu1 %v21309_v31  ;;  %v21312_v14 = vld [vmem:[#allocation215_spill] sm:$0xff]  ;;  %v21314_v21 = vld [vmem:[#allocation220_spill] sm:$0xff] }
 0x4fd   : > { %v9843_v42 = vadd.f32 %v14628_v9, %v9842_v7  ;;  %v10104_v17 = vadd.f32 %v10103_v38, %v9977_v2  ;;  %v14631_v57 = vadd.f32 %v8974_v56, %v19402_v15  ;;  %14299 = vmatprep.mubr.f32.mxu0 %v21310_v53  ;;  %v21313_v9 = vld [vmem:[#allocation219_spill] sm:$0xff]  ;;  %v21316_v53 = vld [vmem:[#allocation278_spill] sm:$0xff] }
 0x4fe   : > { %9718 = vst [vmem:[%s16351_s6 + $0x38] sm:$0xff] %v14630_v20  ;;  %v9980_v15 = vmul.f32 %v14630_v20, %v14630_v20 }
 0x4ff   : > { %v10105_v25 = vadd.f32 %v10104_v17, %v9978_v3  ;;  %9717 = vst [vmem:[%s16351_s6 + $0x30] sm:$0xff] %v14631_v57  ;;  %v9844_v61 = vadd.f32 %v14631_v57, %v9843_v42  ;;  %v9979_v48 = vmul.f32 %v14631_v57, %v14631_v57  ;;  %v14142_v47 = vpop.f32.mrb[8].mxu0  ;;  %13404 = vmatmul.mubr.f32.gmra.mrb[114].mxu1 %v21311_v22  ;;  %v21315_v42 = vld [vmem:[#allocation224_spill] sm:$0xff] }
 0x500   : > { %v14632_v11 = vadd.f32 %v14142_v47, %v19406_v55  ;;  %v8984_v0 = vpop.f32.mrb[9].mxu0  ;;  %14300 = vmatmul.mubr.f32.gmra.mrb[114].mxu0 %v21312_v14  ;;  %13406 = vmatprep.mubr.f32.mxu1 %v21313_v9  ;;  %v21318_v47 = vld [vmem:[#allocation279_spill] sm:$0xff] }
 0x501   : > { %v9845_v38 = vadd.f32 %v14630_v20, %v9844_v61  ;;  %v10106_v7 = vadd.f32 %v10105_v25, %v9979_v48  ;;  %v14633_v2 = vadd.f32 %v8984_v0, %v19408_v23  ;;  %14302 = vmatprep.mubr.f32.mxu0 %v21314_v21  ;;  %v21317_v20 = vld [vmem:[#allocation226_spill] sm:$0xff] }
 0x502   : > { %9720 = vst [vmem:[%s16351_s6 + $0x48] sm:$0xff] %v14632_v11  ;;  %v9982_v23 = vmul.f32 %v14632_v11, %v14632_v11 }
 0x503   : > { %v10107_v56 = vadd.f32 %v10106_v7, %v9980_v15  ;;  %9719 = vst [vmem:[%s16351_s6 + $0x40] sm:$0xff] %v14633_v2  ;;  %v9846_v31 = vadd.f32 %v14633_v2, %v9845_v38  ;;  %v9981_v3 = vmul.f32 %v14633_v2, %v14633_v2  ;;  %v14145_v55 = vpop.f32.mrb[10].mxu0  ;;  %13407 = vmatmul.mubr.f32.gmra.mrb[116].mxu1 %v21315_v42  ;;  %v21320_v7 = vld [vmem:[#allocation283_spill] sm:$0xff] }
 0x504   : > { %v14634_v17 = vadd.f32 %v14145_v55, %v19412_v60  ;;  %v8994_v57 = vpop.f32.mrb[11].mxu0  ;;  %14303 = vmatmul.mubr.f32.gmra.mrb[116].mxu0 %v21316_v53  ;;  %13409 = vmatprep.mubr.f32.mxu1 %v21317_v20  ;;  %v21319_v60 = vld [vmem:[#allocation230_spill] sm:$0xff] }
 0x505   : > { %v9847_v25 = vadd.f32 %v14632_v11, %v9846_v31  ;;  %v10108_v61 = vadd.f32 %v10107_v56, %v9981_v3  ;;  %v14635_v48 = vadd.f32 %v8994_v57, %v19414_v50  ;;  %14305 = vmatprep.mubr.f32.mxu0 %v21318_v47  ;;  %v21321_v11 = vld [vmem:[#allocation232_spill] sm:$0xff]  ;;  %v15971_v3 = vld [vmem:[#allocation2 + $0x528] sm:$0xff]  ;;  %v15972_v42 = vld [vmem:[#allocation2 + $0x530] sm:$0xff] }
 0x506   : > { %9722 = vst [vmem:[%s16351_s6 + $0x58] sm:$0xff] %v14634_v17  ;;  %v9984_v50 = vmul.f32 %v14634_v17, %v14634_v17  ;;  %v21322_v31 = vld [vmem:[#allocation284_spill] sm:$0xff]  ;;  %v8848_v55 = vrot.slane %v15971_v3, 2  ;;  %v8849_v57 = vrot.slane %v15972_v42, 2  ;;  %v21324_v47 = vld [vmem:[#allocation206_spill] sm:$0xff] }
 0x507   : > { %v10109_v22 = vadd.f32 %v10108_v61, %v9982_v23  ;;  %9721 = vst [vmem:[%s16351_s6 + $0x50] sm:$0xff] %v14635_v48  ;;  %v9848_v0 = vadd.f32 %v14635_v48, %v9847_v25  ;;  %v9983_v14 = vmul.f32 %v14635_v48, %v14635_v48  ;;  %v14148_v9 = vpop.f32.mrb[12].mxu0  ;;  %13410 = vmatmul.mubr.f32.gmra.mrb[118].mxu1 %v21319_v60  ;;  %v21323_v25 = vld [vmem:[#allocation236_spill] sm:$0xff] }
 0x508   : > { %v14636_v15 = vadd.f32 %v14148_v9, %v19418_v27  ;;  %v9004_v38 = vpop.f32.mrb[13].mxu0  ;;  %14306 = vmatmul.mubr.f32.gmra.mrb[118].mxu0 %v21320_v7  ;;  %13412 = vmatprep.mubr.f32.mxu1 %v21321_v11  ;;  %v15973_v61 = vld [vmem:[#allocation2 + $0x538] sm:$0xff]  ;;  %v15974_v7 = vld [vmem:[#allocation2 + $0x540] sm:$0xff] }
 0x509   : > { %v9849_v2 = vadd.f32 %v14634_v17, %v9848_v0  ;;  %v10110_v21 = vadd.f32 %v10109_v22, %v9983_v14  ;;  %v14637_v56 = vadd.f32 %v9004_v38, %v19420_v40  ;;  %14308 = vmatprep.mubr.f32.mxu0 %v21322_v31  ;;  %v8851_v17 = vrot.slane %v15973_v61, 2  ;;  %v21325_v22 = vld [vmem:[#allocation238_spill] sm:$0xff]  ;;  %v21326_v38 = vld [vmem:[#allocation213_spill] sm:$0xff] }
 0x50a   : > { %9724 = vst [vmem:[%s16351_s6 + $0x68] sm:$0xff] %v14636_v15  ;;  %v9986_v0 = vmul.f32 %v14636_v15, %v14636_v15  ;;  %v8853_v11 = vrot.slane %v15974_v7, 2 }
 0x50b   : > { %v10111_v53 = vadd.f32 %v10110_v21, %v9984_v50  ;;  %9723 = vst [vmem:[%s16351_s6 + $0x60] sm:$0xff] %v14637_v56  ;;  %v9850_v27 = vadd.f32 %v14637_v56, %v9849_v2  ;;  %v9985_v20 = vmul.f32 %v14637_v56, %v14637_v56  ;;  %v14151_v23 = vpop.f32.mrb[14].mxu0  ;;  %13413 = vmatmul.mubr.f32.gmra.mrb[120].mxu1 %v21323_v25 }
 0x50c   : > { %v14638_v40 = vadd.f32 %v14151_v23, %v19424_v26  ;;  %v9014_v48 = vpop.f32.mrb[15].mxu0  ;;  %14309 = vmatmul.mubr.f32.gmra.mrb[120].mxu0 %v21324_v47  ;;  %13415 = vmatprep.mubr.f32.mxu1 %v21325_v22  ;;  %v8850_v50 = vsel %vm3282_vm1, %v8848_v55, %v8849_v57  ;;  %v8852_v3 = vsel %vm3282_vm1, %v8849_v57, %v8851_v17  ;;  %v8855_v55 = vrot.slane %v19331_v46, 2 }
 0x50d   : > { %v9851_v14 = vadd.f32 %v14636_v15, %v9850_v27  ;;  %v10112_v9 = vadd.f32 %v10111_v53, %v9985_v20  ;;  %v14639_v60 = vadd.f32 %v9014_v48, %v19426_v13  ;;  %14311 = vmatprep.mubr.f32.mxu0 %v21326_v38  ;;  %v21327_v13 = vld [vmem:[#allocation214_spill] sm:$0xff] }
 0x50e   : > { %9726 = vst [vmem:[%s16351_s6 + $0x78] sm:$0xff] %v14638_v40  ;;  %v9988_v42 = vmul.f32 %v14638_v40, %v14638_v40 }
 0x50f   : > { %v10113_v2 = vadd.f32 %v10112_v9, %v9986_v0  ;;  %9725 = vst [vmem:[%s16351_s6 + $0x70] sm:$0xff] %v14639_v60  ;;  %v9852_v26 = vadd.f32 %v14639_v60, %v9851_v14  ;;  %v9987_v21 = vmul.f32 %v14639_v60, %v14639_v60  ;;  %v14154_v56 = vpop.f32.mrb[16].mxu0  ;;  %13416 = vmatmul.mubr.f32.gmra.mrb[122].mxu1 %v21162_v52  ;;  %v21328_v0 = vld [vmem:[#allocation109_spill] sm:$0xff] }
 0x510   : > { %v14640_v15 = vadd.f32 %v14154_v56, %v19430_v35  ;;  %v9024_v31 = vpop.f32.mrb[17].mxu0  ;;  %14312 = vmatmul.mubr.f32.gmra.mrb[122].mxu0 %v21327_v13  ;;  %13418 = vmatprep.mubr.f32.mxu1 %v19304_v54  ;;  %v8854_v52 = vsel %vm3282_vm1, %v8851_v17, %v8853_v11 }
 0x511   : > { %v9853_v53 = vadd.f32 %v14638_v40, %v9852_v26  ;;  %v10114_v27 = vadd.f32 %v10113_v2, %v9987_v21  ;;  %v14641_v20 = vadd.f32 %v9024_v31, %v19432_v12  ;;  %14314 = vmatprep.mubr.f32.mxu0 %v8850_v50  ;;  %v8856_v12 = vsel %vm3282_vm1, %v8853_v11, %v8855_v55 }
 0x512   : > { %9728 = vst [vmem:[%s16351_s6 + $0x88] sm:$0xff] %v14640_v15  ;;  %v9990_v61 = vmul.f32 %v14640_v15, %v14640_v15 }
 0x513   : > { %v10115_v23 = vadd.f32 %v10114_v27, %v9988_v42  ;;  %9727 = vst [vmem:[%s16351_s6 + $0x80] sm:$0xff] %v14641_v20  ;;  %v9854_v35 = vadd.f32 %v14641_v20, %v9853_v53  ;;  %v9989_v25 = vmul.f32 %v14641_v20, %v14641_v20  ;;  %v14157_v54 = vpop.f32.mrb[18].mxu0  ;;  %13419 = vmatmul.mubr.f32.gmra.mrb[124].mxu1 %v19314_v45 }
 0x514   : > { %v14642_v46 = vadd.f32 %v14157_v54, %v19437_v41  ;;  %v9034_v57 = vpop.f32.mrb[19].mxu0  ;;  %14315 = vmatmul.mubr.f32.gmra.mrb[124].mxu0 %v8852_v3  ;;  %13421 = vmatprep.mubr.f32.mxu1 %v19319_v59 }
 0x515   : > { %v9855_v40 = vadd.f32 %v14640_v15, %v9854_v35  ;;  %v10116_v17 = vadd.f32 %v10115_v23, %v9989_v25  ;;  %v14643_v48 = vadd.f32 %v9034_v57, %v19439_v51  ;;  %14317 = vmatprep.mubr.f32.mxu0 %v8854_v52 }
 0x516   : > { %9730 = vst [vmem:[%s16351_s6 + $0x98] sm:$0xff] %v14642_v46  ;;  %v9992_v9 = vmul.f32 %v14642_v46, %v14642_v46 }
 0x517   : > { %v10117_v47 = vadd.f32 %v10116_v17, %v9990_v61  ;;  %9729 = vst [vmem:[%s16351_s6 + $0x90] sm:$0xff] %v14643_v48  ;;  %v9856_v45 = vadd.f32 %v14643_v48, %v9855_v40  ;;  %v9991_v22 = vmul.f32 %v14643_v48, %v14643_v48  ;;  %v14160_v41 = vpop.f32.mrb[20].mxu0  ;;  %13422 = vmatmul.mubr.f32.gmra.mrb[126].mxu1 %v21328_v0 }
 0x518   : > { %v14644_v59 = vadd.f32 %v14160_v41, %v19445_v6  ;;  %v9044_v14 = vpop.f32.mrb[21].mxu0  ;;  %14318 = vmatmul.mubr.f32.gmra.mrb[126].mxu0 %v8856_v12 }
 0x519   : > { %v9857_v60 = vadd.f32 %v14642_v46, %v9856_v45  ;;  %v10118_v38 = vadd.f32 %v10117_v47, %v9991_v22  ;;  %v14645_v51 = vadd.f32 %v9044_v14, %v19447_v43 }
 0x51a   : > { %9732 = vst [vmem:[%s16351_s6 + $0xa8] sm:$0xff] %v14644_v59  ;;  %v9994_v56 = vmul.f32 %v14644_v59, %v14644_v59 }
 0x51b   : > { %v10119_v7 = vadd.f32 %v10118_v38, %v9992_v9  ;;  %9731 = vst [vmem:[%s16351_s6 + $0xa0] sm:$0xff] %v14645_v51  ;;  %v9858_v11 = vadd.f32 %v14645_v51, %v9857_v60  ;;  %v9993_v50 = vmul.f32 %v14645_v51, %v14645_v51  ;;  %v14163_v2 = vpop.f32.mrb[22].mxu0 }
 0x51c   : > { %v14646_v26 = vadd.f32 %v14163_v2, %v19453_v36  ;;  %v9054_v21 = vpop.f32.mrb[23].mxu0 }
 0x51d   : > { %v9859_v6 = vadd.f32 %v14644_v59, %v9858_v11  ;;  %v10120_v15 = vadd.f32 %v10119_v7, %v9993_v50  ;;  %v14647_v31 = vadd.f32 %v9054_v21, %v19455_v63 }
 0x51e   : > { %9734 = vst [vmem:[%s16351_s6 + $0xb8] sm:$0xff] %v14646_v26  ;;  %v9996_v27 = vmul.f32 %v14646_v26, %v14646_v26 }
 0x51f   : > { %v10121_v13 = vadd.f32 %v10120_v15, %v9994_v56  ;;  %9733 = vst [vmem:[%s16351_s6 + $0xb0] sm:$0xff] %v14647_v31  ;;  %v9860_v43 = vadd.f32 %v14647_v31, %v9859_v6  ;;  %v9995_v3 = vmul.f32 %v14647_v31, %v14647_v31  ;;  %v14166_v55 = vpop.f32.mrb[24].mxu0 }
 0x520   : > { %v14648_v42 = vadd.f32 %v14166_v55, %v19461_v32  ;;  %v9064_v53 = vpop.f32.mrb[25].mxu0 }
 0x521   : > { %v9861_v36 = vadd.f32 %v14646_v26, %v9860_v43  ;;  %v10122_v20 = vadd.f32 %v10121_v13, %v9995_v3  ;;  %v14649_v52 = vadd.f32 %v9064_v53, %v19463_v29 }
 0x522   : > { %9736 = vst [vmem:[%s16351_s6 + $0xc8] sm:$0xff] %v14648_v42  ;;  %v9998_v57 = vmul.f32 %v14648_v42, %v14648_v42 }
 0x523   : > { %v10123_v23 = vadd.f32 %v10122_v20, %v9996_v27  ;;  %9735 = vst [vmem:[%s16351_s6 + $0xc0] sm:$0xff] %v14649_v52  ;;  %v9862_v63 = vadd.f32 %v14649_v52, %v9861_v36  ;;  %v9997_v35 = vmul.f32 %v14649_v52, %v14649_v52  ;;  %v14169_v25 = vpop.f32.mrb[26].mxu0 }
 0x524   : > { %v14650_v54 = vadd.f32 %v14169_v25, %v19469_v39  ;;  %v9074_v46 = vpop.f32.mrb[27].mxu0 }
 0x525   : > { %v9863_v32 = vadd.f32 %v14648_v42, %v9862_v63  ;;  %v10124_v12 = vadd.f32 %v10123_v23, %v9997_v35  ;;  %v14651_v61 = vadd.f32 %v9074_v46, %v19471_v44 }
 0x526   : > { %9738 = vst [vmem:[%s16351_s6 + $0xd8] sm:$0xff] %v14650_v54  ;;  %v10000_v22 = vmul.f32 %v14650_v54, %v14650_v54 }
 0x527   : > { %v10125_v40 = vadd.f32 %v10124_v12, %v9998_v57  ;;  %9737 = vst [vmem:[%s16351_s6 + $0xd0] sm:$0xff] %v14651_v61  ;;  %v9864_v29 = vadd.f32 %v14651_v61, %v9863_v32  ;;  %v9999_v17 = vmul.f32 %v14651_v61, %v14651_v61  ;;  %v14172_v48 = vpop.f32.mrb[28].mxu0 }
 0x528   : > { %v14652_v47 = vadd.f32 %v14172_v48, %v19477_v1  ;;  %v9084_v45 = vpop.f32.mrb[29].mxu0 }
 0x529   : > { %v9865_v39 = vadd.f32 %v14650_v54, %v9864_v29  ;;  %v10126_v41 = vadd.f32 %v10125_v40, %v9999_v17  ;;  %v14653_v0 = vadd.f32 %v9084_v45, %v19479_v37 }
 0x52a   : > { %9740 = vst [vmem:[%s16351_s6 + $0xe8] sm:$0xff] %v14652_v47  ;;  %v10002_v51 = vmul.f32 %v14652_v47, %v14652_v47 }
 0x52b   : > { %v10127_v59 = vadd.f32 %v10126_v41, %v10000_v22  ;;  %9739 = vst [vmem:[%s16351_s6 + $0xe0] sm:$0xff] %v14653_v0  ;;  %v9866_v44 = vadd.f32 %v14653_v0, %v9865_v39  ;;  %v10001_v14 = vmul.f32 %v14653_v0, %v14653_v0  ;;  %v14175_v9 = vpop.f32.mrb[30].mxu0 }
 0x52c   : > { %v14654_v60 = vadd.f32 %v14175_v9, %v19485_v4  ;;  %v9094_v38 = vpop.f32.mrb[31].mxu0 }
 0x52d   : > { %v9867_v1 = vadd.f32 %v14652_v47, %v9866_v44  ;;  %v10128_v7 = vadd.f32 %v10127_v59, %v10001_v14  ;;  %v14655_v11 = vadd.f32 %v9094_v38, %v19487_v33 }
 0x52e   : > { %9742 = vst [vmem:[%s16351_s6 + $0xf8] sm:$0xff] %v14654_v60  ;;  %v10004_v6 = vmul.f32 %v14654_v60, %v14654_v60 }
 0x52f   : > { %v10129_v50 = vadd.f32 %v10128_v7, %v10002_v51  ;;  %9741 = vst [vmem:[%s16351_s6 + $0xf0] sm:$0xff] %v14655_v11  ;;  %v9868_v37 = vadd.f32 %v14655_v11, %v9867_v1  ;;  %v10003_v2 = vmul.f32 %v14655_v11, %v14655_v11  ;;  %v14178_v26 = vpop.f32.mrb[32].mxu0 }
 0x530   : > { %v14656_v21 = vadd.f32 %v14178_v26, %v19493_v34  ;;  %v9104_v56 = vpop.f32.mrb[33].mxu0 }
 0x531   : > { %v9869_v4 = vadd.f32 %v14654_v60, %v9868_v37  ;;  %v10130_v15 = vadd.f32 %v10129_v50, %v10003_v2  ;;  %v14657_v31 = vadd.f32 %v9104_v56, %v19495_v62 }
 0x532   : > { %9744 = vst [vmem:[%s16351_s6 + $0x108] sm:$0xff] %v14656_v21  ;;  %v10006_v53 = vmul.f32 %v14656_v21, %v14656_v21 }
 0x533   : > { %v10131_v13 = vadd.f32 %v10130_v15, %v10004_v6  ;;  %9743 = vst [vmem:[%s16351_s6 + $0x100] sm:$0xff] %v14657_v31  ;;  %v9870_v33 = vadd.f32 %v14657_v31, %v9869_v4  ;;  %v10005_v43 = vmul.f32 %v14657_v31, %v14657_v31  ;;  %v14181_v3 = vpop.f32.mrb[34].mxu0  ;;  %v21329_v4 = vld [vmem:[#allocation111_spill] sm:$0xff] }
 0x534   : > { %v14658_v55 = vadd.f32 %v14181_v3, %v19501_v24  ;;  %v9114_v42 = vpop.f32.mrb[35].mxu0 }
 0x535   : > { %v9871_v34 = vadd.f32 %v14656_v21, %v9870_v33  ;;  %v10132_v27 = vadd.f32 %v10131_v13, %v10005_v43  ;;  %v14659_v36 = vadd.f32 %v9114_v42, %v19503_v58  ;;  %v21330_v43 = vld [vmem:[#allocation113_spill] sm:$0xff] }
 0x536   : > { %9746 = vst [vmem:[%s16351_s6 + $0x118] sm:$0xff] %v14658_v55  ;;  %v10008_v25 = vmul.f32 %v14658_v55, %v14658_v55 }
 0x537   : > { %v10133_v20 = vadd.f32 %v10132_v27, %v10006_v53  ;;  %9745 = vst [vmem:[%s16351_s6 + $0x110] sm:$0xff] %v14659_v36  ;;  %v9872_v62 = vadd.f32 %v14659_v36, %v9871_v34  ;;  %v10007_v52 = vmul.f32 %v14659_v36, %v14659_v36  ;;  %v14184_v23 = vpop.f32.mrb[36].mxu0  ;;  %v21331_v34 = vld [vmem:[#allocation115_spill] sm:$0xff] }
 0x538   : > { %v14660_v63 = vadd.f32 %v14184_v23, %v19509_v16  ;;  %v9124_v35 = vpop.f32.mrb[37].mxu0  ;;  %v21332_v23 = vld [vmem:[#allocation117_spill] sm:$0xff] }
 0x539   : > { %v9873_v24 = vadd.f32 %v14658_v55, %v9872_v62  ;;  %v10134_v54 = vadd.f32 %v10133_v20, %v10007_v52  ;;  %v14661_v46 = vadd.f32 %v9124_v35, %v19511_v8 }
 0x53a   : > { %9748 = vst [vmem:[%s16351_s6 + $0x128] sm:$0xff] %v14660_v63  ;;  %v10010_v29 = vmul.f32 %v14660_v63, %v14660_v63 }
 0x53b   : > { %v10135_v57 = vadd.f32 %v10134_v54, %v10008_v25  ;;  %9747 = vst [vmem:[%s16351_s6 + $0x120] sm:$0xff] %v14661_v46  ;;  %v9874_v58 = vadd.f32 %v14661_v46, %v9873_v24  ;;  %v10009_v32 = vmul.f32 %v14661_v46, %v14661_v46  ;;  %v14187_v12 = vpop.f32.mrb[38].mxu0  ;;  %v21333_v46 = vld [vmem:[#allocation119_spill] sm:$0xff] }
 0x53c   : > { %v14662_v61 = vadd.f32 %v14187_v12, %v19517_v10  ;;  %v9134_v40 = vpop.f32.mrb[39].mxu0 }
 0x53d   : > { %v9875_v16 = vadd.f32 %v14660_v63, %v9874_v58  ;;  %v10136_v17 = vadd.f32 %v10135_v57, %v10009_v32  ;;  %v14663_v48 = vadd.f32 %v9134_v40, %v19519_v5  ;;  %v21334_v40 = vld [vmem:[#allocation121_spill] sm:$0xff] }
 0x53e   : > { %9750 = vst [vmem:[%s16351_s6 + $0x138] sm:$0xff] %v14662_v61  ;;  %v10012_v0 = vmul.f32 %v14662_v61, %v14662_v61 }
 0x53f   : > { %v10137_v47 = vadd.f32 %v10136_v17, %v10010_v29  ;;  %9749 = vst [vmem:[%s16351_s6 + $0x130] sm:$0xff] %v14663_v48  ;;  %v9876_v8 = vadd.f32 %v14663_v48, %v9875_v16  ;;  %v10011_v45 = vmul.f32 %v14663_v48, %v14663_v48  ;;  %v14190_v22 = vpop.f32.mrb[40].mxu0 }
 0x540   : > { %v14664_v39 = vadd.f32 %v14190_v22, %v19525_v28  ;;  %v9144_v41 = vpop.f32.mrb[41].mxu0 }
 0x541   : > { %v9877_v10 = vadd.f32 %v14662_v61, %v9876_v8  ;;  %v10138_v59 = vadd.f32 %v10137_v47, %v10011_v45  ;;  %v14665_v44 = vadd.f32 %v9144_v41, %v19527_v49  ;;  %v21335_v8 = vld [vmem:[#allocation123_spill] sm:$0xff] }
 0x542   : > { %9752 = vst [vmem:[%s16351_s6 + $0x148] sm:$0xff] %v14664_v39  ;;  %v10014_v1 = vmul.f32 %v14664_v39, %v14664_v39 }
 0x543   : > { %v10139_v14 = vadd.f32 %v10138_v59, %v10012_v0  ;;  %9751 = vst [vmem:[%s16351_s6 + $0x140] sm:$0xff] %v14665_v44  ;;  %v9878_v5 = vadd.f32 %v14665_v44, %v9877_v10  ;;  %v10013_v9 = vmul.f32 %v14665_v44, %v14665_v44  ;;  %v14193_v60 = vpop.f32.mrb[42].mxu0  ;;  %v21336_v10 = vld [vmem:[#allocation125_spill] sm:$0xff] }
 0x544   : > { %v14666_v38 = vadd.f32 %v14193_v60, %v19533_v19  ;;  %v9154_v51 = vpop.f32.mrb[43].mxu0  ;;  %v21337_v60 = vld [vmem:[#allocation127_spill] sm:$0xff] }
 0x545   : > { %v9879_v28 = vadd.f32 %v14664_v39, %v9878_v5  ;;  %v10140_v7 = vadd.f32 %v10139_v14, %v10013_v9  ;;  %v14667_v11 = vadd.f32 %v9154_v51, %v19535_v18 }
 0x546   : > { %9754 = vst [vmem:[%s16351_s6 + $0x158] sm:$0xff] %v14666_v38  ;;  %v10016_v56 = vmul.f32 %v14666_v38, %v14666_v38 }
 0x547   : > { %v10141_v50 = vadd.f32 %v10140_v7, %v10014_v1  ;;  %9753 = vst [vmem:[%s16351_s6 + $0x150] sm:$0xff] %v14667_v11  ;;  %v9880_v49 = vadd.f32 %v14667_v11, %v9879_v28  ;;  %v10015_v37 = vmul.f32 %v14667_v11, %v14667_v11  ;;  %v14196_v2 = vpop.f32.mrb[44].mxu0  ;;  %v21338_v11 = vld [vmem:[#allocation129_spill] sm:$0xff] }
 0x548   : > { %v14668_v26 = vadd.f32 %v14196_v2, %v19541_v30  ;;  %v9164_v21 = vpop.f32.mrb[45].mxu0 }
 0x549   : > { %v9881_v19 = vadd.f32 %v14666_v38, %v9880_v49  ;;  %v10142_v6 = vadd.f32 %v10141_v50, %v10015_v37  ;;  %v14669_v15 = vadd.f32 %v9164_v21, %v21329_v4  ;;  %v21339_v21 = vld [vmem:[#allocation131_spill] sm:$0xff] }
 0x54a   : > { %9756 = vst [vmem:[%s16351_s6 + $0x168] sm:$0xff] %v14668_v26  ;;  %v10018_v42 = vmul.f32 %v14668_v26, %v14668_v26 }
 0x54b   : > { %v10143_v31 = vadd.f32 %v10142_v6, %v10016_v56  ;;  %9755 = vst [vmem:[%s16351_s6 + $0x160] sm:$0xff] %v14669_v15  ;;  %v9882_v18 = vadd.f32 %v14669_v15, %v9881_v19  ;;  %v10017_v13 = vmul.f32 %v14669_v15, %v14669_v15  ;;  %v14199_v33 = vpop.f32.mrb[46].mxu0 }
 0x54c   : > { %v14670_v3 = vadd.f32 %v14199_v33, %v21330_v43  ;;  %v9174_v55 = vpop.f32.mrb[47].mxu0 }
 0x54d   : > { %v9883_v30 = vadd.f32 %v14668_v26, %v9882_v18  ;;  %v10144_v53 = vadd.f32 %v10143_v31, %v10017_v13  ;;  %v14671_v27 = vadd.f32 %v9174_v55, %v21331_v34  ;;  %v21340_v31 = vld [vmem:[#allocation133_spill] sm:$0xff]  ;;  %v21341_v55 = vld [vmem:[#allocation135_spill] sm:$0xff] }
 0x54e   : > { %9758 = vst [vmem:[%s16351_s6 + $0x178] sm:$0xff] %v14670_v3  ;;  %v10020_v25 = vmul.f32 %v14670_v3, %v14670_v3 }
 0x54f   : > { %v10145_v36 = vadd.f32 %v10144_v53, %v10018_v42  ;;  %9757 = vst [vmem:[%s16351_s6 + $0x170] sm:$0xff] %v14671_v27  ;;  %v9884_v20 = vadd.f32 %v14671_v27, %v9883_v30  ;;  %v10019_v62 = vmul.f32 %v14671_v27, %v14671_v27  ;;  %v14202_v52 = vpop.f32.mrb[48].mxu0 }
 0x550   : > { %v14672_v63 = vadd.f32 %v14202_v52, %v21332_v23  ;;  %v9184_v35 = vpop.f32.mrb[49].mxu0 }
 0x551   : > { %v9885_v24 = vadd.f32 %v14670_v3, %v9884_v20  ;;  %v10146_v54 = vadd.f32 %v10145_v36, %v10019_v62  ;;  %v14673_v57 = vadd.f32 %v9184_v35, %v21333_v46  ;;  %v21342_v36 = vld [vmem:[#allocation137_spill] sm:$0xff]  ;;  %v21343_v35 = vld [vmem:[#allocation139_spill] sm:$0xff] }
 0x552   : > { %9760 = vst [vmem:[%s16351_s6 + $0x188] sm:$0xff] %v14672_v63  ;;  %v10022_v17 = vmul.f32 %v14672_v63, %v14672_v63 }
 0x553   : > { %v10147_v58 = vadd.f32 %v10146_v54, %v10020_v25  ;;  %9759 = vst [vmem:[%s16351_s6 + $0x180] sm:$0xff] %v14673_v57  ;;  %v9886_v32 = vadd.f32 %v14673_v57, %v9885_v24  ;;  %v10021_v12 = vmul.f32 %v14673_v57, %v14673_v57  ;;  %v14205_v61 = vpop.f32.mrb[50].mxu0 }
 0x554   : > { %v14674_v29 = vadd.f32 %v14205_v61, %v21334_v40  ;;  %v9194_v16 = vpop.f32.mrb[51].mxu0 }
 0x555   : > { %v9887_v48 = vadd.f32 %v14672_v63, %v9886_v32  ;;  %v10148_v47 = vadd.f32 %v10147_v58, %v10021_v12  ;;  %v14675_v45 = vadd.f32 %v9194_v16, %v21335_v8  ;;  %v21344_v58 = vld [vmem:[#allocation141_spill] sm:$0xff]  ;;  %v21345_v16 = vld [vmem:[#allocation143_spill] sm:$0xff] }
 0x556   : > { %9762 = vst [vmem:[%s16351_s6 + $0x198] sm:$0xff] %v14674_v29  ;;  %v10024_v14 = vmul.f32 %v14674_v29, %v14674_v29 }
 0x557   : > { %v10149_v22 = vadd.f32 %v10148_v47, %v10022_v17  ;;  %9761 = vst [vmem:[%s16351_s6 + $0x190] sm:$0xff] %v14675_v45  ;;  %v9888_v39 = vadd.f32 %v14675_v45, %v9887_v48  ;;  %v10023_v41 = vmul.f32 %v14675_v45, %v14675_v45  ;;  %v14208_v0 = vpop.f32.mrb[52].mxu0 }
 0x558   : > { %v14676_v59 = vadd.f32 %v14208_v0, %v21336_v10  ;;  %v9204_v44 = vpop.f32.mrb[53].mxu0 }
 0x559   : > { %v9889_v5 = vadd.f32 %v14674_v29, %v9888_v39  ;;  %v10150_v9 = vadd.f32 %v10149_v22, %v10023_v41  ;;  %v14677_v38 = vadd.f32 %v9204_v44, %v21337_v60  ;;  %v21346_v22 = vld [vmem:[#allocation145_spill] sm:$0xff]  ;;  %v21347_v44 = vld [vmem:[#allocation147_spill] sm:$0xff] }
 0x55a   : > { %9764 = vst [vmem:[%s16351_s6 + $0x1a8] sm:$0xff] %v14676_v59  ;;  %v10026_v37 = vmul.f32 %v14676_v59, %v14676_v59 }
 0x55b   : > { %v10151_v51 = vadd.f32 %v10150_v9, %v10024_v14  ;;  %9763 = vst [vmem:[%s16351_s6 + $0x1a0] sm:$0xff] %v14677_v38  ;;  %v9890_v1 = vadd.f32 %v14677_v38, %v9889_v5  ;;  %v10025_v28 = vmul.f32 %v14677_v38, %v14677_v38  ;;  %v14211_v7 = vpop.f32.mrb[54].mxu0 }
 0x55c   : > { %v14678_v50 = vadd.f32 %v14211_v7, %v21338_v11  ;;  %v9214_v49 = vpop.f32.mrb[55].mxu0 }
 0x55d   : > { %v9891_v2 = vadd.f32 %v14676_v59, %v9890_v1  ;;  %v10152_v26 = vadd.f32 %v10151_v51, %v10025_v28  ;;  %v14679_v56 = vadd.f32 %v9214_v49, %v21339_v21 }
 0x55e   : > { %9766 = vst [vmem:[%s16351_s6 + $0x1b8] sm:$0xff] %v14678_v50  ;;  %v10028_v33 = vmul.f32 %v14678_v50, %v14678_v50 }
 0x55f   : > { %v10153_v19 = vadd.f32 %v10152_v26, %v10026_v37  ;;  %9765 = vst [vmem:[%s16351_s6 + $0x1b0] sm:$0xff] %v14679_v56  ;;  %v9892_v6 = vadd.f32 %v14679_v56, %v9891_v2  ;;  %v10027_v4 = vmul.f32 %v14679_v56, %v14679_v56  ;;  %v14214_v15 = vpop.f32.mrb[56].mxu0 }
 0x560   : > { %v14680_v18 = vadd.f32 %v14214_v15, %v21340_v31  ;;  %v9224_v13 = vpop.f32.mrb[57].mxu0 }
 0x561   : > { %v9893_v43 = vadd.f32 %v14678_v50, %v9892_v6  ;;  %v10154_v3 = vadd.f32 %v10153_v19, %v10027_v4  ;;  %v14681_v42 = vadd.f32 %v9224_v13, %v21341_v55 }
 0x562   : > { %9768 = vst [vmem:[%s16351_s6 + $0x1c8] sm:$0xff] %v14680_v18  ;;  %v10030_v52 = vmul.f32 %v14680_v18, %v14680_v18 }
 0x563   : > { %v10155_v30 = vadd.f32 %v10154_v3, %v10028_v33  ;;  %9767 = vst [vmem:[%s16351_s6 + $0x1c0] sm:$0xff] %v14681_v42  ;;  %v9894_v53 = vadd.f32 %v14681_v42, %v9893_v43  ;;  %v10029_v34 = vmul.f32 %v14681_v42, %v14681_v42  ;;  %v14217_v27 = vpop.f32.mrb[58].mxu0 }
 0x564   : > { %v14682_v20 = vadd.f32 %v14217_v27, %v21342_v36  ;;  %v9234_v62 = vpop.f32.mrb[59].mxu0 }
 0x565   : > { %v9895_v23 = vadd.f32 %v14680_v18, %v9894_v53  ;;  %v10156_v63 = vadd.f32 %v10155_v30, %v10029_v34  ;;  %v14683_v25 = vadd.f32 %v9234_v62, %v21343_v35 }
 0x566   : > { %9770 = vst [vmem:[%s16351_s6 + $0x1d8] sm:$0xff] %v14682_v20  ;;  %v10032_v61 = vmul.f32 %v14682_v20, %v14682_v20 }
 0x567   : > { %v10157_v24 = vadd.f32 %v10156_v63, %v10030_v52  ;;  %9769 = vst [vmem:[%s16351_s6 + $0x1d0] sm:$0xff] %v14683_v25  ;;  %v9896_v54 = vadd.f32 %v14683_v25, %v9895_v23  ;;  %v10031_v46 = vmul.f32 %v14683_v25, %v14683_v25  ;;  %v14220_v57 = vpop.f32.mrb[60].mxu0 }
 0x568   : > { %v14684_v32 = vadd.f32 %v14220_v57, %v21344_v58  ;;  %v9244_v12 = vpop.f32.mrb[61].mxu0 }
 0x569   : > { %v9897_v40 = vadd.f32 %v14682_v20, %v9896_v54  ;;  %v10158_v29 = vadd.f32 %v10157_v24, %v10031_v46  ;;  %v14685_v17 = vadd.f32 %v9244_v12, %v21345_v16 }
 0x56a   : > { %9772 = vst [vmem:[%s16351_s6 + $0x1e8] sm:$0xff] %v14684_v32  ;;  %v10034_v0 = vmul.f32 %v14684_v32, %v14684_v32 }
 0x56b   : > { %v10159_v48 = vadd.f32 %v10158_v29, %v10032_v61  ;;  %9771 = vst [vmem:[%s16351_s6 + $0x1e0] sm:$0xff] %v14685_v17  ;;  %v9898_v47 = vadd.f32 %v14685_v17, %v9897_v40  ;;  %v10033_v8 = vmul.f32 %v14685_v17, %v14685_v17  ;;  %v14223_v45 = vpop.f32.mrb[62].mxu0 }
 0x56c   : > { %v14686_v39 = vadd.f32 %v14223_v45, %v21346_v22  ;;  %v9254_v41 = vpop.f32.mrb[63].mxu0 }
 0x56d   : > { %v9899_v10 = vadd.f32 %v14684_v32, %v9898_v47  ;;  %v10160_v59 = vadd.f32 %v10159_v48, %v10033_v8  ;;  %v14687_v14 = vadd.f32 %v9254_v41, %v21347_v44 }
 0x56e   : > { %9774 = vst [vmem:[%s16351_s6 + $0x1f8] sm:$0xff] %v14686_v39  ;;  %v13330_v5 = vpop.f32.mrb[64].mxu1  ;;  %v10036_v11 = vmul.f32 %v14686_v39, %v14686_v39 }
 0x56f   : > { %v10161_v9 = vadd.f32 %v10160_v59, %v10034_v0  ;;  %9773 = vst [vmem:[%s16351_s6 + $0x1f0] sm:$0xff] %v14687_v14  ;;  %v9900_v60 = vadd.f32 %v14687_v14, %v9899_v10  ;;  %v10035_v38 = vmul.f32 %v14687_v14, %v14687_v14  ;;  %v14226_v51 = vpop.f32.mrb[64].mxu0  ;;  %v5820_v1 = vpop.f32.mrb[65].mxu1 }
 0x570   : > { %v14688_v28 = vadd.f32 %v14226_v51, %v13330_v5  ;;  %v9264_v7 = vpop.f32.mrb[65].mxu0 }
 0x571   : > { %v9901_v50 = vadd.f32 %v14686_v39, %v9900_v60  ;;  %v10162_v49 = vadd.f32 %v10161_v9, %v10035_v38  ;;  %v14689_v37 = vadd.f32 %v9264_v7, %v5820_v1 }
 0x572   : > { %9776 = vst [vmem:[%s16351_s6 + $0x208] sm:$0xff] %v14688_v28  ;;  %v13333_v2 = vpop.f32.mrb[66].mxu1  ;;  %v10038_v31 = vmul.f32 %v14688_v28, %v14688_v28 }
 0x573   : > { %v10163_v26 = vadd.f32 %v10162_v49, %v10036_v11  ;;  %9775 = vst [vmem:[%s16351_s6 + $0x200] sm:$0xff] %v14689_v37  ;;  %v9902_v21 = vadd.f32 %v14689_v37, %v9901_v50  ;;  %v10037_v56 = vmul.f32 %v14689_v37, %v14689_v37  ;;  %v14229_v19 = vpop.f32.mrb[66].mxu0  ;;  %v5830_v6 = vpop.f32.mrb[67].mxu1 }
 0x574   : > { %v14690_v4 = vadd.f32 %v14229_v19, %v13333_v2  ;;  %v9274_v15 = vpop.f32.mrb[67].mxu0 }
 0x575   : > { %v9903_v18 = vadd.f32 %v14688_v28, %v9902_v21  ;;  %v10164_v13 = vadd.f32 %v10163_v26, %v10037_v56  ;;  %v14691_v33 = vadd.f32 %v9274_v15, %v5830_v6 }
 0x576   : > { %9778 = vst [vmem:[%s16351_s6 + $0x218] sm:$0xff] %v14690_v4  ;;  %v13336_v43 = vpop.f32.mrb[68].mxu1  ;;  %v10040_v36 = vmul.f32 %v14690_v4, %v14690_v4 }
 0x577   : > { %v10165_v3 = vadd.f32 %v10164_v13, %v10038_v31  ;;  %9777 = vst [vmem:[%s16351_s6 + $0x210] sm:$0xff] %v14691_v33  ;;  %v9904_v55 = vadd.f32 %v14691_v33, %v9903_v18  ;;  %v10039_v42 = vmul.f32 %v14691_v33, %v14691_v33  ;;  %v14232_v30 = vpop.f32.mrb[68].mxu0  ;;  %v5840_v53 = vpop.f32.mrb[69].mxu1 }
 0x578   : > { %v14692_v34 = vadd.f32 %v14232_v30, %v13336_v43  ;;  %v9284_v27 = vpop.f32.mrb[69].mxu0 }
 0x579   : > { %v9905_v20 = vadd.f32 %v14690_v4, %v9904_v55  ;;  %v10166_v62 = vadd.f32 %v10165_v3, %v10039_v42  ;;  %v14693_v52 = vadd.f32 %v9284_v27, %v5840_v53 }
 0x57a   : > { %9780 = vst [vmem:[%s16351_s6 + $0x228] sm:$0xff] %v14692_v34  ;;  %v13339_v23 = vpop.f32.mrb[70].mxu1  ;;  %v10042_v58 = vmul.f32 %v14692_v34, %v14692_v34 }
 0x57b   : > { %v10167_v63 = vadd.f32 %v10166_v62, %v10040_v36  ;;  %9779 = vst [vmem:[%s16351_s6 + $0x220] sm:$0xff] %v14693_v52  ;;  %v9906_v35 = vadd.f32 %v14693_v52, %v9905_v20  ;;  %v10041_v25 = vmul.f32 %v14693_v52, %v14693_v52  ;;  %v14235_v24 = vpop.f32.mrb[70].mxu0  ;;  %v5850_v54 = vpop.f32.mrb[71].mxu1 }
 0x57c   : > { %v14694_v46 = vadd.f32 %v14235_v24, %v13339_v23  ;;  %v9294_v57 = vpop.f32.mrb[71].mxu0 }
 0x57d   : > { %v10168_v32 = vadd.f32 %v10167_v63, %v10041_v25  ;;  %v14695_v12 = vadd.f32 %v9294_v57, %v5850_v54  ;;  %v9907_v61 = vadd.f32 %v14692_v34, %v9906_v35 }
 0x57e   : > { %9782 = vst [vmem:[%s16351_s6 + $0x238] sm:$0xff] %v14694_v46  ;;  %v13342_v40 = vpop.f32.mrb[72].mxu1  ;;  %v10044_v22 = vmul.f32 %v14694_v46, %v14694_v46 }
 0x57f   : > { %9781 = vst [vmem:[%s16351_s6 + $0x230] sm:$0xff] %v14695_v12  ;;  %v9908_v29 = vadd.f32 %v14695_v12, %v9907_v61  ;;  %v10043_v16 = vmul.f32 %v14695_v12, %v14695_v12  ;;  %v10169_v17 = vadd.f32 %v10168_v32, %v10042_v58  ;;  %v14238_v48 = vpop.f32.mrb[72].mxu0  ;;  %v5860_v47 = vpop.f32.mrb[73].mxu1 }
 0x580   : > { %v14696_v8 = vadd.f32 %v14238_v48, %v13342_v40  ;;  %v9304_v45 = vpop.f32.mrb[73].mxu0 }
 0x581   : > { %v10170_v39 = vadd.f32 %v10169_v17, %v10043_v16  ;;  %v14697_v41 = vadd.f32 %v9304_v45, %v5860_v47  ;;  %v9909_v0 = vadd.f32 %v14694_v46, %v9908_v29 }
 0x582   : > { %9784 = vst [vmem:[%s16351_s6 + $0x248] sm:$0xff] %v14696_v8  ;;  %v13345_v10 = vpop.f32.mrb[74].mxu1  ;;  %v10046_v51 = vmul.f32 %v14696_v8, %v14696_v8 }
 0x583   : > { %9783 = vst [vmem:[%s16351_s6 + $0x240] sm:$0xff] %v14697_v41  ;;  %v9910_v59 = vadd.f32 %v14697_v41, %v9909_v0  ;;  %v10045_v44 = vmul.f32 %v14697_v41, %v14697_v41  ;;  %v10171_v14 = vadd.f32 %v10170_v39, %v10044_v22  ;;  %v14241_v5 = vpop.f32.mrb[74].mxu0  ;;  %v5870_v9 = vpop.f32.mrb[75].mxu1 }
 0x584   : > { %v14698_v60 = vadd.f32 %v14241_v5, %v13345_v10  ;;  %v9314_v38 = vpop.f32.mrb[75].mxu0 }
 0x585   : > { %v10172_v1 = vadd.f32 %v10171_v14, %v10045_v44  ;;  %v14699_v28 = vadd.f32 %v9314_v38, %v5870_v9  ;;  %v9911_v7 = vadd.f32 %v14696_v8, %v9910_v59 }
 0x586   : > { %9786 = vst [vmem:[%s16351_s6 + $0x258] sm:$0xff] %v14698_v60  ;;  %v13348_v11 = vpop.f32.mrb[76].mxu1  ;;  %v10048_v19 = vmul.f32 %v14698_v60, %v14698_v60 }
 0x587   : > { %9785 = vst [vmem:[%s16351_s6 + $0x250] sm:$0xff] %v14699_v28  ;;  %v9912_v50 = vadd.f32 %v14699_v28, %v9911_v7  ;;  %v10047_v49 = vmul.f32 %v14699_v28, %v14699_v28  ;;  %v10173_v37 = vadd.f32 %v10172_v1, %v10046_v51  ;;  %v14244_v2 = vpop.f32.mrb[76].mxu0  ;;  %v5880_v26 = vpop.f32.mrb[77].mxu1 }
 0x588   : > { %v14700_v21 = vadd.f32 %v14244_v2, %v13348_v11  ;;  %v9324_v56 = vpop.f32.mrb[77].mxu0 }
 0x589   : > { %v10174_v6 = vadd.f32 %v10173_v37, %v10047_v49  ;;  %v14701_v4 = vadd.f32 %v9324_v56, %v5880_v26  ;;  %v9913_v15 = vadd.f32 %v14698_v60, %v9912_v50 }
 0x58a   : > { %9788 = vst [vmem:[%s16351_s6 + $0x268] sm:$0xff] %v14700_v21  ;;  %v13351_v31 = vpop.f32.mrb[78].mxu1  ;;  %v10050_v30 = vmul.f32 %v14700_v21, %v14700_v21 }
 0x58b   : > { %9787 = vst [vmem:[%s16351_s6 + $0x260] sm:$0xff] %v14701_v4  ;;  %v9914_v18 = vadd.f32 %v14701_v4, %v9913_v15  ;;  %v10049_v13 = vmul.f32 %v14701_v4, %v14701_v4  ;;  %v10175_v33 = vadd.f32 %v10174_v6, %v10048_v19  ;;  %v14247_v43 = vpop.f32.mrb[78].mxu0  ;;  %v5890_v3 = vpop.f32.mrb[79].mxu1 }
 0x58c   : > { %v14702_v55 = vadd.f32 %v14247_v43, %v13351_v31  ;;  %v9334_v42 = vpop.f32.mrb[79].mxu0 }
 0x58d   : > { %v10176_v53 = vadd.f32 %v10175_v33, %v10049_v13  ;;  %v14703_v34 = vadd.f32 %v9334_v42, %v5890_v3  ;;  %v9915_v27 = vadd.f32 %v14700_v21, %v9914_v18 }
 0x58e   : > { %9790 = vst [vmem:[%s16351_s6 + $0x278] sm:$0xff] %v14702_v55  ;;  %v13354_v36 = vpop.f32.mrb[80].mxu1  ;;  %v10052_v24 = vmul.f32 %v14702_v55, %v14702_v55 }
 0x58f   : > { %9789 = vst [vmem:[%s16351_s6 + $0x270] sm:$0xff] %v14703_v34  ;;  %v9916_v20 = vadd.f32 %v14703_v34, %v9915_v27  ;;  %v10051_v62 = vmul.f32 %v14703_v34, %v14703_v34  ;;  %v10177_v52 = vadd.f32 %v10176_v53, %v10050_v30  ;;  %v14250_v23 = vpop.f32.mrb[80].mxu0  ;;  %v5900_v63 = vpop.f32.mrb[81].mxu1 }
 0x590   : > { %v14704_v35 = vadd.f32 %v14250_v23, %v13354_v36  ;;  %v9344_v25 = vpop.f32.mrb[81].mxu0 }
 0x591   : > { %v10178_v54 = vadd.f32 %v10177_v52, %v10051_v62  ;;  %v14705_v46 = vadd.f32 %v9344_v25, %v5900_v63  ;;  %v9917_v57 = vadd.f32 %v14702_v55, %v9916_v20 }
 0x592   : > { %9792 = vst [vmem:[%s16351_s6 + $0x288] sm:$0xff] %v14704_v35  ;;  %v13357_v58 = vpop.f32.mrb[82].mxu1  ;;  %v10054_v48 = vmul.f32 %v14704_v35, %v14704_v35 }
 0x593   : > { %9791 = vst [vmem:[%s16351_s6 + $0x280] sm:$0xff] %v14705_v46  ;;  %v9918_v32 = vadd.f32 %v14705_v46, %v9917_v57  ;;  %v10053_v12 = vmul.f32 %v14705_v46, %v14705_v46  ;;  %v10179_v61 = vadd.f32 %v10178_v54, %v10052_v24  ;;  %v14253_v40 = vpop.f32.mrb[82].mxu0  ;;  %v5910_v29 = vpop.f32.mrb[83].mxu1 }
 0x594   : > { %v14706_v16 = vadd.f32 %v14253_v40, %v13357_v58  ;;  %v9354_v17 = vpop.f32.mrb[83].mxu0 }
 0x595   : > { %v10180_v47 = vadd.f32 %v10179_v61, %v10053_v12  ;;  %v14707_v8 = vadd.f32 %v9354_v17, %v5910_v29  ;;  %v9919_v45 = vadd.f32 %v14704_v35, %v9918_v32 }
 0x596   : > { %9794 = vst [vmem:[%s16351_s6 + $0x298] sm:$0xff] %v14706_v16  ;;  %v13360_v22 = vpop.f32.mrb[84].mxu1  ;;  %v10056_v5 = vmul.f32 %v14706_v16, %v14706_v16 }
 0x597   : > { %9793 = vst [vmem:[%s16351_s6 + $0x290] sm:$0xff] %v14707_v8  ;;  %v9920_v39 = vadd.f32 %v14707_v8, %v9919_v45  ;;  %v10055_v41 = vmul.f32 %v14707_v8, %v14707_v8  ;;  %v10181_v0 = vadd.f32 %v10180_v47, %v10054_v48  ;;  %v14256_v10 = vpop.f32.mrb[84].mxu0  ;;  %v5920_v59 = vpop.f32.mrb[85].mxu1 }
 0x598   : > { %v14708_v44 = vadd.f32 %v14256_v10, %v13360_v22  ;;  %v9364_v14 = vpop.f32.mrb[85].mxu0 }
 0x599   : > { %v10182_v9 = vadd.f32 %v10181_v0, %v10055_v41  ;;  %v14709_v60 = vadd.f32 %v9364_v14, %v5920_v59  ;;  %v9921_v38 = vadd.f32 %v14706_v16, %v9920_v39 }
 0x59a   : > { %9796 = vst [vmem:[%s16351_s6 + $0x2a8] sm:$0xff] %v14708_v44  ;;  %v13363_v51 = vpop.f32.mrb[86].mxu1  ;;  %v10058_v2 = vmul.f32 %v14708_v44, %v14708_v44 }
 0x59b   : > { %9795 = vst [vmem:[%s16351_s6 + $0x2a0] sm:$0xff] %v14709_v60  ;;  %v9922_v1 = vadd.f32 %v14709_v60, %v9921_v38  ;;  %v10057_v28 = vmul.f32 %v14709_v60, %v14709_v60  ;;  %v10183_v7 = vadd.f32 %v10182_v9, %v10056_v5  ;;  %v14259_v11 = vpop.f32.mrb[86].mxu0  ;;  %v5930_v50 = vpop.f32.mrb[87].mxu1 }
 0x59c   : > { %v14710_v49 = vadd.f32 %v14259_v11, %v13363_v51  ;;  %v9374_v37 = vpop.f32.mrb[87].mxu0 }
 0x59d   : > { %v10184_v26 = vadd.f32 %v10183_v7, %v10057_v28  ;;  %v14711_v21 = vadd.f32 %v9374_v37, %v5930_v50  ;;  %v9923_v56 = vadd.f32 %v14708_v44, %v9922_v1 }
 0x59e   : > { %9798 = vst [vmem:[%s16351_s6 + $0x2b8] sm:$0xff] %v14710_v49  ;;  %v13366_v19 = vpop.f32.mrb[88].mxu1  ;;  %v10060_v43 = vmul.f32 %v14710_v49, %v14710_v49 }
 0x59f   : > { %9797 = vst [vmem:[%s16351_s6 + $0x2b0] sm:$0xff] %v14711_v21  ;;  %v9924_v6 = vadd.f32 %v14711_v21, %v9923_v56  ;;  %v10059_v4 = vmul.f32 %v14711_v21, %v14711_v21  ;;  %v10185_v15 = vadd.f32 %v10184_v26, %v10058_v2  ;;  %v14262_v31 = vpop.f32.mrb[88].mxu0  ;;  %v5940_v18 = vpop.f32.mrb[89].mxu1 }
 0x5a0   : > { %v14712_v13 = vadd.f32 %v14262_v31, %v13366_v19  ;;  %v9384_v33 = vpop.f32.mrb[89].mxu0 }
 0x5a1   : > { %v10186_v3 = vadd.f32 %v10185_v15, %v10059_v4  ;;  %v14713_v55 = vadd.f32 %v9384_v33, %v5940_v18  ;;  %v9925_v42 = vadd.f32 %v14710_v49, %v9924_v6 }
 0x5a2   : > { %9800 = vst [vmem:[%s16351_s6 + $0x2c8] sm:$0xff] %v14712_v13  ;;  %v13369_v30 = vpop.f32.mrb[90].mxu1  ;;  %v10062_v23 = vmul.f32 %v14712_v13, %v14712_v13 }
 0x5a3   : > { %9799 = vst [vmem:[%s16351_s6 + $0x2c0] sm:$0xff] %v14713_v55  ;;  %v9926_v53 = vadd.f32 %v14713_v55, %v9925_v42  ;;  %v10061_v34 = vmul.f32 %v14713_v55, %v14713_v55  ;;  %v10187_v27 = vadd.f32 %v10186_v3, %v10060_v43  ;;  %v14265_v36 = vpop.f32.mrb[90].mxu0  ;;  %v5950_v20 = vpop.f32.mrb[91].mxu1 }
 0x5a4   : > { %v14714_v62 = vadd.f32 %v14265_v36, %v13369_v30  ;;  %v9394_v52 = vpop.f32.mrb[91].mxu0 }
 0x5a5   : > { %v10188_v63 = vadd.f32 %v10187_v27, %v10061_v34  ;;  %v14715_v35 = vadd.f32 %v9394_v52, %v5950_v20  ;;  %v9927_v25 = vadd.f32 %v14712_v13, %v9926_v53 }
 0x5a6   : > { %9802 = vst [vmem:[%s16351_s6 + $0x2d8] sm:$0xff] %v14714_v62  ;;  %v13372_v24 = vpop.f32.mrb[92].mxu1  ;;  %v10064_v40 = vmul.f32 %v14714_v62, %v14714_v62 }
 0x5a7   : > { %9801 = vst [vmem:[%s16351_s6 + $0x2d0] sm:$0xff] %v14715_v35  ;;  %v9928_v54 = vadd.f32 %v14715_v35, %v9927_v25  ;;  %v10063_v46 = vmul.f32 %v14715_v35, %v14715_v35  ;;  %v10189_v57 = vadd.f32 %v10188_v63, %v10062_v23  ;;  %v14268_v58 = vpop.f32.mrb[92].mxu0  ;;  %v5960_v32 = vpop.f32.mrb[93].mxu1 }
 0x5a8   : > { %v14716_v12 = vadd.f32 %v14268_v58, %v13372_v24  ;;  %v9404_v61 = vpop.f32.mrb[93].mxu0 }
 0x5a9   : > { %v10190_v29 = vadd.f32 %v10189_v57, %v10063_v46  ;;  %v14717_v16 = vadd.f32 %v9404_v61, %v5960_v32  ;;  %v9929_v17 = vadd.f32 %v14714_v62, %v9928_v54 }
 0x5aa   : > { %9804 = vst [vmem:[%s16351_s6 + $0x2e8] sm:$0xff] %v14716_v12  ;;  %v13375_v48 = vpop.f32.mrb[94].mxu1  ;;  %v10066_v10 = vmul.f32 %v14716_v12, %v14716_v12 }
 0x5ab   : > { %9803 = vst [vmem:[%s16351_s6 + $0x2e0] sm:$0xff] %v14717_v16  ;;  %v9930_v47 = vadd.f32 %v14717_v16, %v9929_v17  ;;  %v10065_v8 = vmul.f32 %v14717_v16, %v14717_v16  ;;  %v10191_v45 = vadd.f32 %v10190_v29, %v10064_v40  ;;  %v14271_v22 = vpop.f32.mrb[94].mxu0  ;;  %v5970_v39 = vpop.f32.mrb[95].mxu1 }
 0x5ac   : > { %v14718_v41 = vadd.f32 %v14271_v22, %v13375_v48  ;;  %v9414_v0 = vpop.f32.mrb[95].mxu0 }
 0x5ad   : > { %v10192_v59 = vadd.f32 %v10191_v45, %v10065_v8  ;;  %v14719_v44 = vadd.f32 %v9414_v0, %v5970_v39  ;;  %v9931_v14 = vadd.f32 %v14716_v12, %v9930_v47 }
 0x5ae   : > { %9806 = vst [vmem:[%s16351_s6 + $0x2f8] sm:$0xff] %v14718_v41  ;;  %v13378_v5 = vpop.f32.mrb[96].mxu1  ;;  %v10068_v11 = vmul.f32 %v14718_v41, %v14718_v41 }
 0x5af   : > { %9805 = vst [vmem:[%s16351_s6 + $0x2f0] sm:$0xff] %v14719_v44  ;;  %v9932_v9 = vadd.f32 %v14719_v44, %v9931_v14  ;;  %v10067_v60 = vmul.f32 %v14719_v44, %v14719_v44  ;;  %v10193_v38 = vadd.f32 %v10192_v59, %v10066_v10  ;;  %v14274_v51 = vpop.f32.mrb[96].mxu0  ;;  %v5980_v1 = vpop.f32.mrb[97].mxu1 }
 0x5b0   : > { %v14720_v28 = vadd.f32 %v14274_v51, %v13378_v5  ;;  %v9424_v7 = vpop.f32.mrb[97].mxu0 }
 0x5b1   : > { %v10194_v50 = vadd.f32 %v10193_v38, %v10067_v60  ;;  %v14721_v49 = vadd.f32 %v9424_v7, %v5980_v1  ;;  %v9933_v37 = vadd.f32 %v14718_v41, %v9932_v9 }
 0x5b2   : > { %9808 = vst [vmem:[%s16351_s6 + $0x308] sm:$0xff] %v14720_v28  ;;  %v13381_v2 = vpop.f32.mrb[98].mxu1  ;;  %v10070_v31 = vmul.f32 %v14720_v28, %v14720_v28 }
 0x5b3   : > { %9807 = vst [vmem:[%s16351_s6 + $0x300] sm:$0xff] %v14721_v49  ;;  %v9934_v26 = vadd.f32 %v14721_v49, %v9933_v37  ;;  %v10069_v21 = vmul.f32 %v14721_v49, %v14721_v49  ;;  %v10195_v56 = vadd.f32 %v10194_v50, %v10068_v11  ;;  %v14277_v19 = vpop.f32.mrb[98].mxu0  ;;  %v5990_v6 = vpop.f32.mrb[99].mxu1 }
 0x5b4   : > { %v14722_v4 = vadd.f32 %v14277_v19, %v13381_v2  ;;  %v9434_v15 = vpop.f32.mrb[99].mxu0 }
 0x5b5   : > { %v10196_v18 = vadd.f32 %v10195_v56, %v10069_v21  ;;  %v14723_v13 = vadd.f32 %v9434_v15, %v5990_v6  ;;  %v9935_v33 = vadd.f32 %v14720_v28, %v9934_v26 }
 0x5b6   : > { %9810 = vst [vmem:[%s16351_s6 + $0x318] sm:$0xff] %v14722_v4  ;;  %v13384_v43 = vpop.f32.mrb[100].mxu1  ;;  %v10072_v36 = vmul.f32 %v14722_v4, %v14722_v4 }
 0x5b7   : > { %9809 = vst [vmem:[%s16351_s6 + $0x310] sm:$0xff] %v14723_v13  ;;  %v9936_v3 = vadd.f32 %v14723_v13, %v9935_v33  ;;  %v10071_v55 = vmul.f32 %v14723_v13, %v14723_v13  ;;  %v10197_v42 = vadd.f32 %v10196_v18, %v10070_v31  ;;  %v14280_v30 = vpop.f32.mrb[100].mxu0  ;;  %v6000_v53 = vpop.f32.mrb[101].mxu1 }
 0x5b8   : > { %v14724_v34 = vadd.f32 %v14280_v30, %v13384_v43  ;;  %v9444_v27 = vpop.f32.mrb[101].mxu0 }
 0x5b9   : > { %v10198_v20 = vadd.f32 %v10197_v42, %v10071_v55  ;;  %v14725_v62 = vadd.f32 %v9444_v27, %v6000_v53  ;;  %v9937_v52 = vadd.f32 %v14722_v4, %v9936_v3 }
 0x5ba   : > { %9812 = vst [vmem:[%s16351_s6 + $0x328] sm:$0xff] %v14724_v34  ;;  %v13387_v23 = vpop.f32.mrb[102].mxu1  ;;  %v10074_v58 = vmul.f32 %v14724_v34, %v14724_v34 }
 0x5bb   : > { %9811 = vst [vmem:[%s16351_s6 + $0x320] sm:$0xff] %v14725_v62  ;;  %v9938_v63 = vadd.f32 %v14725_v62, %v9937_v52  ;;  %v10073_v35 = vmul.f32 %v14725_v62, %v14725_v62  ;;  %v10199_v25 = vadd.f32 %v10198_v20, %v10072_v36  ;;  %v14283_v24 = vpop.f32.mrb[102].mxu0  ;;  %v6010_v54 = vpop.f32.mrb[103].mxu1 }
 0x5bc   : > { %v14726_v46 = vadd.f32 %v14283_v24, %v13387_v23  ;;  %v9454_v57 = vpop.f32.mrb[103].mxu0 }
 0x5bd   : > { %v10200_v32 = vadd.f32 %v10199_v25, %v10073_v35  ;;  %v14727_v12 = vadd.f32 %v9454_v57, %v6010_v54  ;;  %v9939_v61 = vadd.f32 %v14724_v34, %v9938_v63 }
 0x5be   : > { %9814 = vst [vmem:[%s16351_s6 + $0x338] sm:$0xff] %v14726_v46  ;;  %v13390_v40 = vpop.f32.mrb[104].mxu1  ;;  %v10076_v22 = vmul.f32 %v14726_v46, %v14726_v46 }
 0x5bf   : > { %9813 = vst [vmem:[%s16351_s6 + $0x330] sm:$0xff] %v14727_v12  ;;  %v9940_v29 = vadd.f32 %v14727_v12, %v9939_v61  ;;  %v10075_v16 = vmul.f32 %v14727_v12, %v14727_v12  ;;  %v10201_v17 = vadd.f32 %v10200_v32, %v10074_v58  ;;  %v14286_v48 = vpop.f32.mrb[104].mxu0  ;;  %v6020_v47 = vpop.f32.mrb[105].mxu1 }
 0x5c0   : > { %v14728_v8 = vadd.f32 %v14286_v48, %v13390_v40  ;;  %v9464_v45 = vpop.f32.mrb[105].mxu0 }
 0x5c1   : > { %v10202_v39 = vadd.f32 %v10201_v17, %v10075_v16  ;;  %v14729_v41 = vadd.f32 %v9464_v45, %v6020_v47  ;;  %v9941_v0 = vadd.f32 %v14726_v46, %v9940_v29 }
 0x5c2   : > { %9816 = vst [vmem:[%s16351_s6 + $0x348] sm:$0xff] %v14728_v8  ;;  %v13393_v10 = vpop.f32.mrb[106].mxu1  ;;  %v10078_v51 = vmul.f32 %v14728_v8, %v14728_v8 }
 0x5c3   : > { %9815 = vst [vmem:[%s16351_s6 + $0x340] sm:$0xff] %v14729_v41  ;;  %v9942_v59 = vadd.f32 %v14729_v41, %v9941_v0  ;;  %v10077_v44 = vmul.f32 %v14729_v41, %v14729_v41  ;;  %v10203_v14 = vadd.f32 %v10202_v39, %v10076_v22  ;;  %v14289_v5 = vpop.f32.mrb[106].mxu0  ;;  %v6030_v9 = vpop.f32.mrb[107].mxu1 }
 0x5c4   : > { %v14730_v60 = vadd.f32 %v14289_v5, %v13393_v10  ;;  %v9474_v38 = vpop.f32.mrb[107].mxu0 }
 0x5c5   : > { %v10204_v1 = vadd.f32 %v10203_v14, %v10077_v44  ;;  %v14731_v28 = vadd.f32 %v9474_v38, %v6030_v9  ;;  %v9943_v7 = vadd.f32 %v14728_v8, %v9942_v59 }
 0x5c6   : > { %9818 = vst [vmem:[%s16351_s6 + $0x358] sm:$0xff] %v14730_v60  ;;  %v13396_v11 = vpop.f32.mrb[108].mxu1  ;;  %v10080_v19 = vmul.f32 %v14730_v60, %v14730_v60 }
 0x5c7   : > { %9817 = vst [vmem:[%s16351_s6 + $0x350] sm:$0xff] %v14731_v28  ;;  %v9944_v50 = vadd.f32 %v14731_v28, %v9943_v7  ;;  %v10079_v49 = vmul.f32 %v14731_v28, %v14731_v28  ;;  %v10205_v37 = vadd.f32 %v10204_v1, %v10078_v51  ;;  %v14292_v2 = vpop.f32.mrb[108].mxu0  ;;  %v6040_v26 = vpop.f32.mrb[109].mxu1 }
 0x5c8   : > { %v14732_v21 = vadd.f32 %v14292_v2, %v13396_v11  ;;  %v9484_v56 = vpop.f32.mrb[109].mxu0 }
 0x5c9   : > { %v10206_v6 = vadd.f32 %v10205_v37, %v10079_v49  ;;  %v14733_v4 = vadd.f32 %v9484_v56, %v6040_v26  ;;  %v9945_v15 = vadd.f32 %v14730_v60, %v9944_v50 }
 0x5ca   : > { %9820 = vst [vmem:[%s16351_s6 + $0x368] sm:$0xff] %v14732_v21  ;;  %v13399_v31 = vpop.f32.mrb[110].mxu1  ;;  %v10082_v30 = vmul.f32 %v14732_v21, %v14732_v21 }
 0x5cb   : > { %9819 = vst [vmem:[%s16351_s6 + $0x360] sm:$0xff] %v14733_v4  ;;  %v9946_v18 = vadd.f32 %v14733_v4, %v9945_v15  ;;  %v10081_v13 = vmul.f32 %v14733_v4, %v14733_v4  ;;  %v10207_v33 = vadd.f32 %v10206_v6, %v10080_v19  ;;  %v14295_v43 = vpop.f32.mrb[110].mxu0  ;;  %v6050_v3 = vpop.f32.mrb[111].mxu1 }
 0x5cc   : > { %v14734_v55 = vadd.f32 %v14295_v43, %v13399_v31  ;;  %v9494_v42 = vpop.f32.mrb[111].mxu0 }
 0x5cd   : > { %v10208_v53 = vadd.f32 %v10207_v33, %v10081_v13  ;;  %v14735_v34 = vadd.f32 %v9494_v42, %v6050_v3  ;;  %v9947_v27 = vadd.f32 %v14732_v21, %v9946_v18 }
 0x5ce   : > { %9822 = vst [vmem:[%s16351_s6 + $0x378] sm:$0xff] %v14734_v55  ;;  %v13402_v36 = vpop.f32.mrb[112].mxu1  ;;  %v10084_v24 = vmul.f32 %v14734_v55, %v14734_v55 }
 0x5cf   : > { %9821 = vst [vmem:[%s16351_s6 + $0x370] sm:$0xff] %v14735_v34  ;;  %v9948_v20 = vadd.f32 %v14735_v34, %v9947_v27  ;;  %v10083_v62 = vmul.f32 %v14735_v34, %v14735_v34  ;;  %v10209_v52 = vadd.f32 %v10208_v53, %v10082_v30  ;;  %v14298_v23 = vpop.f32.mrb[112].mxu0  ;;  %v6060_v63 = vpop.f32.mrb[113].mxu1 }
 0x5d0   : > { %v14736_v35 = vadd.f32 %v14298_v23, %v13402_v36  ;;  %v9504_v25 = vpop.f32.mrb[113].mxu0 }
 0x5d1   : > { %v10210_v54 = vadd.f32 %v10209_v52, %v10083_v62  ;;  %v14737_v46 = vadd.f32 %v9504_v25, %v6060_v63  ;;  %v9949_v57 = vadd.f32 %v14734_v55, %v9948_v20 }
 0x5d2   : > { %9824 = vst [vmem:[%s16351_s6 + $0x388] sm:$0xff] %v14736_v35  ;;  %v13405_v58 = vpop.f32.mrb[114].mxu1  ;;  %v10086_v48 = vmul.f32 %v14736_v35, %v14736_v35 }
 0x5d3   : > { %9823 = vst [vmem:[%s16351_s6 + $0x380] sm:$0xff] %v14737_v46  ;;  %v9950_v32 = vadd.f32 %v14737_v46, %v9949_v57  ;;  %v10085_v12 = vmul.f32 %v14737_v46, %v14737_v46  ;;  %v10211_v61 = vadd.f32 %v10210_v54, %v10084_v24  ;;  %v14301_v40 = vpop.f32.mrb[114].mxu0  ;;  %v6070_v29 = vpop.f32.mrb[115].mxu1 }
 0x5d4   : > { %v14738_v16 = vadd.f32 %v14301_v40, %v13405_v58  ;;  %v9514_v17 = vpop.f32.mrb[115].mxu0 }
 0x5d5   : > { %v10212_v47 = vadd.f32 %v10211_v61, %v10085_v12  ;;  %v14739_v8 = vadd.f32 %v9514_v17, %v6070_v29  ;;  %v9951_v45 = vadd.f32 %v14736_v35, %v9950_v32 }
 0x5d6   : > { %9826 = vst [vmem:[%s16351_s6 + $0x398] sm:$0xff] %v14738_v16  ;;  %v13408_v22 = vpop.f32.mrb[116].mxu1  ;;  %v10088_v5 = vmul.f32 %v14738_v16, %v14738_v16 }
 0x5d7   : > { %9825 = vst [vmem:[%s16351_s6 + $0x390] sm:$0xff] %v14739_v8  ;;  %v9952_v39 = vadd.f32 %v14739_v8, %v9951_v45  ;;  %v10087_v41 = vmul.f32 %v14739_v8, %v14739_v8  ;;  %v10213_v0 = vadd.f32 %v10212_v47, %v10086_v48  ;;  %v14304_v10 = vpop.f32.mrb[116].mxu0  ;;  %v6080_v59 = vpop.f32.mrb[117].mxu1 }
 0x5d8   : > { %v14740_v44 = vadd.f32 %v14304_v10, %v13408_v22  ;;  %v9524_v14 = vpop.f32.mrb[117].mxu0 }
 0x5d9   : > { %v10214_v9 = vadd.f32 %v10213_v0, %v10087_v41  ;;  %v14741_v60 = vadd.f32 %v9524_v14, %v6080_v59  ;;  %v9953_v38 = vadd.f32 %v14738_v16, %v9952_v39 }
 0x5da   : > { %9828 = vst [vmem:[%s16351_s6 + $0x3a8] sm:$0xff] %v14740_v44  ;;  %v13411_v51 = vpop.f32.mrb[118].mxu1  ;;  %v10090_v2 = vmul.f32 %v14740_v44, %v14740_v44 }
 0x5db   : > { %9827 = vst [vmem:[%s16351_s6 + $0x3a0] sm:$0xff] %v14741_v60  ;;  %v9954_v1 = vadd.f32 %v14741_v60, %v9953_v38  ;;  %v10089_v28 = vmul.f32 %v14741_v60, %v14741_v60  ;;  %v10215_v7 = vadd.f32 %v10214_v9, %v10088_v5  ;;  %v14307_v11 = vpop.f32.mrb[118].mxu0  ;;  %v6090_v50 = vpop.f32.mrb[119].mxu1 }
 0x5dc   : > { %v14742_v49 = vadd.f32 %v14307_v11, %v13411_v51  ;;  %v9534_v37 = vpop.f32.mrb[119].mxu0 }
 0x5dd   : > { %v10216_v26 = vadd.f32 %v10215_v7, %v10089_v28  ;;  %v14743_v21 = vadd.f32 %v9534_v37, %v6090_v50  ;;  %v9955_v56 = vadd.f32 %v14740_v44, %v9954_v1 }
 0x5de   : > { %9830 = vst [vmem:[%s16351_s6 + $0x3b8] sm:$0xff] %v14742_v49  ;;  %v13414_v19 = vpop.f32.mrb[120].mxu1  ;;  %v10092_v43 = vmul.f32 %v14742_v49, %v14742_v49 }
 0x5df   : > { %9829 = vst [vmem:[%s16351_s6 + $0x3b0] sm:$0xff] %v14743_v21  ;;  %v9956_v6 = vadd.f32 %v14743_v21, %v9955_v56  ;;  %v10091_v4 = vmul.f32 %v14743_v21, %v14743_v21  ;;  %v10217_v15 = vadd.f32 %v10216_v26, %v10090_v2  ;;  %v14310_v31 = vpop.f32.mrb[120].mxu0  ;;  %v6100_v18 = vpop.f32.mrb[121].mxu1 }
 0x5e0   : > { %v14744_v13 = vadd.f32 %v14310_v31, %v13414_v19  ;;  %v9544_v33 = vpop.f32.mrb[121].mxu0 }
 0x5e1   : > { %v10218_v3 = vadd.f32 %v10217_v15, %v10091_v4  ;;  %v14745_v55 = vadd.f32 %v9544_v33, %v6100_v18  ;;  %v9957_v42 = vadd.f32 %v14742_v49, %v9956_v6 }
 0x5e2   : > { %9832 = vst [vmem:[%s16351_s6 + $0x3c8] sm:$0xff] %v14744_v13  ;;  %v13417_v30 = vpop.f32.mrb[122].mxu1  ;;  %v10094_v23 = vmul.f32 %v14744_v13, %v14744_v13 }
 0x5e3   : > { %9831 = vst [vmem:[%s16351_s6 + $0x3c0] sm:$0xff] %v14745_v55  ;;  %v9958_v53 = vadd.f32 %v14745_v55, %v9957_v42  ;;  %v10093_v34 = vmul.f32 %v14745_v55, %v14745_v55  ;;  %v10219_v27 = vadd.f32 %v10218_v3, %v10092_v43  ;;  %v14313_v36 = vpop.f32.mrb[122].mxu0  ;;  %v6110_v20 = vpop.f32.mrb[123].mxu1 }
 0x5e4   : > { %v14746_v62 = vadd.f32 %v14313_v36, %v13417_v30  ;;  %v9554_v52 = vpop.f32.mrb[123].mxu0 }
 0x5e5   : > { %v10220_v63 = vadd.f32 %v10219_v27, %v10093_v34  ;;  %v14747_v35 = vadd.f32 %v9554_v52, %v6110_v20  ;;  %v9959_v25 = vadd.f32 %v14744_v13, %v9958_v53 }
 0x5e6   : > { %9834 = vst [vmem:[%s16351_s6 + $0x3d8] sm:$0xff] %v14746_v62  ;;  %v13420_v24 = vpop.f32.mrb[124].mxu1  ;;  %v10096_v40 = vmul.f32 %v14746_v62, %v14746_v62 }
 0x5e7   : > { %9833 = vst [vmem:[%s16351_s6 + $0x3d0] sm:$0xff] %v14747_v35  ;;  %v9960_v54 = vadd.f32 %v14747_v35, %v9959_v25  ;;  %v10095_v46 = vmul.f32 %v14747_v35, %v14747_v35  ;;  %v10221_v57 = vadd.f32 %v10220_v63, %v10094_v23  ;;  %v14316_v58 = vpop.f32.mrb[124].mxu0  ;;  %v6120_v32 = vpop.f32.mrb[125].mxu1 }
 0x5e8   : > { %v14748_v12 = vadd.f32 %v14316_v58, %v13420_v24  ;;  %v9564_v61 = vpop.f32.mrb[125].mxu0 }
 0x5e9   : > { %v10222_v29 = vadd.f32 %v10221_v57, %v10095_v46  ;;  %v14749_v16 = vadd.f32 %v9564_v61, %v6120_v32  ;;  %v9961_v17 = vadd.f32 %v14746_v62, %v9960_v54 }
 0x5ea   : > { %9836 = vst [vmem:[%s16351_s6 + $0x3e8] sm:$0xff] %v14748_v12  ;;  %v13423_v48 = vpop.f32.mrb[126].mxu1  ;;  %v10098_v10 = vmul.f32 %v14748_v12, %v14748_v12 }
 0x5eb   : > { %9835 = vst [vmem:[%s16351_s6 + $0x3e0] sm:$0xff] %v14749_v16  ;;  %v9962_v47 = vadd.f32 %v14749_v16, %v9961_v17  ;;  %v10097_v8 = vmul.f32 %v14749_v16, %v14749_v16  ;;  %v10223_v45 = vadd.f32 %v10222_v29, %v10096_v40  ;;  %v14319_v22 = vpop.f32.mrb[126].mxu0  ;;  %v6130_v39 = vpop.f32.mrb[127].mxu1 }
 0x5ec   : > { %v14750_v41 = vadd.f32 %v14319_v22, %v13423_v48  ;;  %v9574_v0 = vpop.f32.mrb[127].mxu0 }
 0x5ed   : > { %v10224_v59 = vadd.f32 %v10223_v45, %v10097_v8  ;;  %v14751_v44 = vadd.f32 %v9574_v0, %v6130_v39  ;;  %v9963_v14 = vadd.f32 %v14748_v12, %v9962_v47 }
 0x5ee   : > { %9838 = vst [vmem:[%s16351_s6 + $0x3f8] sm:$0xff] %v14750_v41 }
 0x5ef   : > { %9837 = vst [vmem:[%s16351_s6 + $0x3f0] sm:$0xff] %v14751_v44  ;;  %v9964_v5 = vadd.f32 %v14751_v44, %v9963_v14  ;;  %v10099_v9 = vmul.f32 %v14751_v44, %v14751_v44  ;;  %v10225_v60 = vadd.f32 %v10224_v59, %v10098_v10 }
 0x5f0   : > { %15988 = shalt.err (!%p15985_p3)
}
 0x5f1   : > { %s15989_s6 = scalar_lea.hbm %s19859_s4, 16384  ;;  %s15993_s21 = scalar_lea.hbm %s19946_s2, 32768 }
 0x5f2   : > { %p15990_p5 = scmp.ne.s32.totalorder %s19859_s4, %s15989_s6  ;;  %p15994_p9 = scmp.lt.u32.totalorder %s19859_s4, %s19946_s2 }
 0x5f3   : > { %p15995_p10 = scmp.lt.u32.totalorder %s15993_s21, %s15989_s6  ;;  %p15997_p12 = scmp.lt.u32.totalorder %s15989_s6, %s19859_s4 }
 0x5f4   : > { %p15991_p6 = pnand %p15990_p5, %p16153_p4 }
 0x5f5   : > { %p15996_p11 = por %p15995_p10, %p15994_p9 }
 0x5f6   : > { %p15992_p7 = pneg %p15991_p6 }
 0x5f7   : > { %p15998_p13 = por %p15997_p12, %p15996_p11 }
 0x5f9   : > { %p15999_p0 = pnand %p15998_p13, %p15992_p7 }
 0x5fb   : > { %16002 = shalt.err (!%p15999_p0)
}
 0x5fc   : > { %s16090_s29 = smov 128   ;;  %s16091_s30 = smov 8   ;;  %v10100_v38 = vmul.f32 %v14750_v41, %v14750_v41  ;;  %v9965_v51 = vadd.f32 %v14750_v41, %v9964_v5  ;;  %v10226_v1 = vadd.f32 %v10225_v60, %v10099_v9 }
 0x5fd   : > { %15648 = dma.vmem_to_hbm [thread:$0]  (%p16153_p4), %s19861_s28, 16384, %s19859_s4, %s10236_s5, %s16090_s29, %s16090_s29, %s16091_s30  }
 0x5fe   : > { %v9966_v28 = vrot.slane %v9965_v51, 4  ;;  %v10227_v7 = vadd.f32 %v10226_v1, %v10100_v38  ;;  %s11002_s8 = sshll.u32 %s16079_s15, 5  ;;  %s10274_s9 = sshll.u32 %s16355_s7, 4  ;;  %s19897_s9 = int_to_ptr.vmem [resolvable:$true] %s10274_s9 }
 0x5ff   : > { %s19895_s5 = scalar_lea.hbm %s19947_s3, %s11002_s8  ;;  %s10241_s10 = scalar_lea.sflag [#allocation7], %s16169_s26 }
 0x600   : > { %v9967_v11 = vadd.f32 %v9966_v28, %v9965_v51  ;;  %v10228_v50 = vrot.slane %v10227_v7, 4  ;;  %s16003_s11 = scalar_lea.vmem %s19897_s9, 32  ;;  %s16092_s15 = smov [#allocation6]  }
 0x601   : > { %p16004_p1 = scmp.ne.s32.totalorder %s19897_s9, %s16003_s11  ;;  %s16007_s6 = sshll.u32 %s16092_s15, 4  ;;  %s16008_s6 = int_to_ptr.vmem [resolvable:$false] %s16007_s6 }
 0x602   : > { %v9968_v49 = vrot.slane %v9967_v11, 2  ;;  %v10229_v37 = vadd.f32 %v10228_v50, %v10227_v7  ;;  %s16009_s18 = scalar_lea.vmem %s16008_s6, 64  ;;  %p16010_p5 = scmp.lt.s32.totalorder %s19897_s9, %s16008_s6 }
 0x603   : > { %p16005_p2 = pnand %p16004_p1, %p16153_p4  ;;  %p16011_p6 = scmp.lt.s32.totalorder %s16009_s18, %s16003_s11 }
 0x604   : > { %v9969_v2 = vadd.f32 %v9968_v49, %v9967_v11  ;;  %v10230_v26 = vrot.slane %v10229_v37, 2 }
 0x605   : > { %p16006_p3 = pneg %p16005_p2  ;;  %p16012_p7 = por %p16011_p6, %p16010_p5 }
 0x606   : > { %v9970_v21 = vrot.slane %v9969_v2, 1  ;;  %v10231_v56 = vadd.f32 %v10230_v26, %v10229_v37 }
 0x607   : > { %p16013_p9 = pnand %p16012_p7, %p16006_p3 }
 0x608   : > { %v9971_v19 = vadd.f32 %v9970_v21, %v9969_v2  ;;  %v10232_v6 = vrot.slane %v10231_v56, 1 }
 0x60a   : > { %9972 = vst [vmem:[%s16355_s7] sm:$0x1] %v9971_v19  ;;  %v10233_v4 = vadd.f32 %v10232_v6, %v10231_v56 }
 0x60c   : > { %10234 = vst [vmem:[%s16355_s7 + $0x1] sm:$0x1] %v10233_v4 }
 0x60d   : > { %16016 = shalt.err (!%p16013_p9)
}
 0x60e   : > { %s16017_s26 = scalar_lea.hbm %s19895_s5, 32  ;;  %s16021_s21 = scalar_lea.hbm %s19947_s3, 64 }
 0x60f   : > { %p16018_p10 = scmp.ne.s32.totalorder %s19895_s5, %s16017_s26  ;;  %p16022_p13 = scmp.lt.u32.totalorder %s19895_s5, %s19947_s3 }
 0x610   : > { %p16023_p0 = scmp.lt.u32.totalorder %s16021_s21, %s16017_s26  ;;  %p16025_p2 = scmp.lt.u32.totalorder %s16017_s26, %s19895_s5 }
 0x611   : > { %p16019_p11 = pnand %p16018_p10, %p16153_p4 }
 0x612   : > { %p16024_p1 = por %p16023_p0, %p16022_p13 }
 0x613   : > { %p16020_p12 = pneg %p16019_p11 }
 0x614   : > { %p16026_p3 = por %p16025_p2, %p16024_p1 }
 0x616   : > { %p16027_p5 = pnand %p16026_p3, %p16020_p12 }
 0x618   : > { %16030 = shalt.err (!%p16027_p5)
}
 0x619   : > { %15649 = dma.vmem_to_hbm [thread:$0]  (%p16153_p4), %s19897_s9, 32, %s19895_s5, %s10241_s10  }
 0x61a PF: > { %p15659_p6 = scmp.ge.s32.totalorder %s16087_s17, 2  ;;  %s10286_s29 = sand.u32 1, %s16067_s12  }
 0x61b   : > { %s10287_s30 = scalar_lea.sflag [#allocation5], %s10286_s29 }
 0x61c   : > { %p15653_p7 = pnand %p15659_p6, %p16160_p8 }
 0x61e   : > { %16058 = dma.done.wait (!%p15653_p7), %s10287_s30, 16384  }
 0x61f   : > { %16060 = vsyncadd (!%p15653_p7), %s10287_s30, 4294950912  ;;  %s10296_s8 = scalar_lea.sflag [#allocation7], %s10286_s29 }
 0x620   : > { %16062 = dma.done.wait (!%p15653_p7), %s10296_s8, 32  }
 0x621   : > { %16064 = vsyncadd (!%p15653_p7), %s10296_s8, 4294967264  ;;  %s20_s17 = sadd.s32 1, %s16087_s17   ;;  %s21348_s12 = smov %s16071_s13 }
 0x622   : > { %p17_p9 = scmp.ge.s32.totalorder %s20_s17, 4   ;;  %s21349_s13 = smov %s16075_s14 }
 0x623   : > { %s21350_s14 = smov %s16166_s25  ;;  %s21351_s15 = smov %s16083_s16 }
 0x624   : > { %s21352_s16 = smov %s21354_s20  ;;  %19 = sbr.rel (!%p17_p9) target bundleno = 6 (0x6), region = 198 }
 0x62b   :  { %10301 = vsyncpa [#allocation5], 1 }
 0x62c   :  { %10303 = vsyncpa [#allocation5 + $0x1], 1 }
 0x62d   :  { %10304 = vsyncpa [#allocation7], 1 }
 0x62e   :  { %10306 = vsyncpa [#allocation7 + $0x1], 1 }
 0x62f   :  { %10307 = vsyncmov [#allocation3] }
 0x632   :  { %s10308_s22 = vpop.sfrf %10307 }
 0x633   :  { %p11005_p4 = scmp.ne.s32.totalorder %s10308_s22, 0 }
 0x635   :  { %10312 = shalt.err (%p11005_p4)  }
 0x636   :  { %10314 = vsyncmov [#allocation3 + $0x1] }
 0x639   :  { %s10315_s24 = vpop.sfrf %10314 }
 0x63a   :  { %p11006_p8 = scmp.ne.s32.totalorder %s10315_s24, 0 }
 0x63c   :  { %10319 = shalt.err (%p11006_p8)  }

</bundles_post_ra>
